<compile_context>
chip_gen: v6e
topology: v6e:2x2x1
jax: 0.10.0
libtpu: 0.0.40
codegen_flags: <defaults>
</compile_context>

<pallas_src>
import jax
import jax.numpy as jnp
import numpy as np
from jax.experimental import pallas as pl
from jax.experimental.pallas import tpu as pltpu


# ----------------------------------------------------------------------------
# Fused kernel: 4 lane-dense matmuls + bias/ReLU, all activations in VMEM.
# ----------------------------------------------------------------------------
def _cnn_fused_kernel(x_ref, w1_ref, b1_ref, w2_ref, b2_ref, w3_ref, b3_ref,
                      wl_ref, bl_ref, out_ref):
    f32 = jnp.float32
    bf16 = jnp.bfloat16

    # conv1 + ReLU:  (Bt, 784) @ (784, 3136); output rows ordered (h, w, c).
    a1 = jnp.dot(x_ref[...], w1_ref[...], preferred_element_type=f32)
    a1 = jnp.maximum(a1 + b1_ref[...], 0.0)

    # conv2 + ReLU:  (Bt, 3136) @ (3136, 784)
    a2 = jnp.dot(a1.astype(bf16), w2_ref[...], preferred_element_type=f32)
    a2 = jnp.maximum(a2 + b2_ref[...], 0.0)

    # conv3 + ReLU:  (Bt, 784) @ (784, 160)
    a3 = jnp.dot(a2.astype(bf16), w3_ref[...], preferred_element_type=f32)
    a3 = jnp.maximum(a3 + b3_ref[...], 0.0)

    # Linear(160 -> 10); torch's channel-major flatten is folded into wl rows.
    logits = jnp.dot(a3.astype(bf16), wl_ref[...], preferred_element_type=f32)
    out_ref[...] = logits + bl_ref[...]


# ----------------------------------------------------------------------------
# One-time parameter repacking (host side, numpy)
# ----------------------------------------------------------------------------
def _conv3x3_s2_toeplitz(w, *, hi, ho):
    """Fold a 3x3 / stride-2 / pad-1 conv (PyTorch OIHW weight) into a dense
    (hi*hi*Ci, ho*ho*Co) matrix acting on a row-major (h, w, c) flattened input
    and producing a row-major (h, w, c) flattened output.  Zero padding is
    encoded by simply omitting out-of-range taps."""
    co, ci = w.shape[0], w.shape[1]
    t = np.zeros((hi * hi * ci, ho * ho * co), np.float32)
    for oy in range(ho):
        for ox in range(ho):
            col = (oy * ho + ox) * co
            for kh in range(3):
                iy = 2 * oy + kh - 1
                if not 0 <= iy < hi:
                    continue
                for kw in range(3):
                    ix = 2 * ox + kw - 1
                    if not 0 <= ix < hi:
                        continue
                    for c in range(ci):
                        t[(iy * hi + ix) * ci + c, col:col + co] = w[:, c, kh, kw]
    return t


def prepare_params(params):
    """Repack PyTorch-layout parameters for the fused kernel (runs once)."""
    w1t = _conv3x3_s2_toeplitz(np.asarray(params["w1"]), hi=28, ho=14)  # (784, 3136)
    w2t = _conv3x3_s2_toeplitz(np.asarray(params["w2"]), hi=14, ho=7)   # (3136, 784)
    w3t = _conv3x3_s2_toeplitz(np.asarray(params["w3"]), hi=7, ho=4)    # (784, 160)
    # Linear weight: torch flatten order is (c, h, w); our a3 rows are (h, w, c).
    wl = np.asarray(params["wl"]).reshape(10, 10, 4, 4)                 # (o, c, h, w)
    wlt = np.transpose(wl, (2, 3, 1, 0)).reshape(160, 10)               # rows (h,w,c)

    def brow(b, reps):   # per-output-position bias row, f32
        return jnp.asarray(np.tile(np.asarray(b), reps)[None, :], jnp.float32)

    return {
        "w1": jnp.asarray(w1t, jnp.bfloat16),
        "b1": brow(params["b1"], 14 * 14),       # (1, 3136)
        "w2": jnp.asarray(w2t, jnp.bfloat16),
        "b2": brow(params["b2"], 7 * 7),         # (1, 784)
        "w3": jnp.asarray(w3t, jnp.bfloat16),
        "b3": brow(params["b3"], 4 * 4),         # (1, 160)
        "wl": jnp.asarray(wlt, jnp.bfloat16),    # (160, 10)
        "bl": jnp.asarray(np.asarray(params["bl"])[None, :], jnp.float32),
    }


# ----------------------------------------------------------------------------
# Host-side wrapper
# ----------------------------------------------------------------------------
_BT_MAX = 256          # max batch tile (samples per grid step)


def _cdiv(a, b):
    return -(-a // b)


def _round_up(a, b):
    return _cdiv(a, b) * b


def _pick_tiling(B):
    """Large batch tile, even number of grid steps >= 2 (v7x dual-TC sharding),
    batch padded to a multiple of 8."""
    nb = 2 * _cdiv(B, 2 * _BT_MAX)
    bt = _round_up(_cdiv(B, nb), 8)
    return bt, nb, nb * bt


def cnn_forward(prepped, xb):
    """Forward pass. xb: (B, 1, 28, 28) f32 (PyTorch NCHW layout)."""
    B = xb.shape[0]
    x = xb.reshape(B, 28 * 28).astype(jnp.bfloat16)      # lane-dense raw images
    bt, nb, b_pad = _pick_tiling(B)
    if b_pad != B:
        x = jnp.pad(x, ((0, b_pad - B), (0, 0)))

    flops = 2 * b_pad * (784 * 3136 + 3136 * 784 + 784 * 160 + 160 * 10)
    bytes_accessed = (b_pad * 784 * 2 + b_pad * 10 * 4
                      + 2 * (784 * 3136 + 3136 * 784 + 784 * 160 + 160 * 10)
                      + 4 * (3136 + 784 + 160 + 10))

    out = pl.pallas_call(
        _cnn_fused_kernel,
        out_shape=jax.ShapeDtypeStruct((b_pad, 10), jnp.float32),
        grid_spec=pltpu.PrefetchScalarGridSpec(
            num_scalar_prefetch=0,
            grid=(nb,),
            in_specs=[
                pl.BlockSpec((bt, 784), lambda i: (i, 0)),      # raw images
                pl.BlockSpec((784, 3136), lambda i: (0, 0)),    # conv1 Toeplitz
                pl.BlockSpec((1, 3136), lambda i: (0, 0)),      # b1 row
                pl.BlockSpec((3136, 784), lambda i: (0, 0)),    # conv2 Toeplitz
                pl.BlockSpec((1, 784), lambda i: (0, 0)),       # b2 row
                pl.BlockSpec((784, 160), lambda i: (0, 0)),     # conv3 Toeplitz
                pl.BlockSpec((1, 160), lambda i: (0, 0)),       # b3 row
                pl.BlockSpec((160, 10), lambda i: (0, 0)),      # linear weight
                pl.BlockSpec((1, 10), lambda i: (0, 0)),        # linear bias
            ],
            out_specs=pl.BlockSpec((bt, 10), lambda i: (i, 0)),
        ),
        compiler_params=pltpu.CompilerParams(
            dimension_semantics=("parallel",),
            vmem_limit_bytes=48 * 1024 * 1024,
        ),
        cost_estimate=pl.CostEstimate(
            flops=flops, transcendentals=0, bytes_accessed=bytes_accessed),
    )(x, prepped["w1"], prepped["b1"], prepped["w2"], prepped["b2"],
      prepped["w3"], prepped["b3"], prepped["wl"], prepped["bl"])
    return out[:B]


# ----------------------------------------------------------------------------
# Parameter init (PyTorch layout) and pure-XLA reference
# ----------------------------------------------------------------------------
def init_params(key):
    ks = jax.random.split(key, 8)
    def init(k, shape, fan_in):
        bound = 1.0 / np.sqrt(fan_in)
        return jax.random.uniform(k, shape, jnp.float32, -bound, bound)
    return {
        "w1": init(ks[0], (16, 1, 3, 3), 1 * 9),
        "b1": init(ks[1], (16,), 1 * 9),
        "w2": init(ks[2], (16, 16, 3, 3), 16 * 9),
        "b2": init(ks[3], (16,), 16 * 9),
        "w3": init(ks[4], (10, 16, 3, 3), 16 * 9),
        "b3": init(ks[5], (10,), 16 * 9),
        "wl": init(ks[6], (10, 160), 160),
        "bl": init(ks[7], (10,), 160),
    }


def reference_forward(params, xb):
    """Pure-JAX (XLA, f32) reference with PyTorch semantics."""
    def conv(x, w, b):
        y = jax.lax.conv_general_dilated(
            x, w, window_strides=(2, 2), padding=((1, 1), (1, 1)),
            dimension_numbers=("NCHW", "OIHW", "NCHW"))
        return jax.nn.relu(y + b.reshape(1, -1, 1, 1))
    x = conv(xb, params["w1"], params["b1"])
    x = conv(x, params["w2"], params["b2"])
    x = conv(x, params["w3"], params["b3"])
    x = x.reshape(x.shape[0], -1)
    return x @ params["wl"].T + params["bl"]


# TODO(synk): training pieces of the PyTorch module (Adam optimizer, train()
# cross-entropy/backward step, compute_acc) are out of scope for the forward kernel.

if __name__ == "__main__":
    key = jax.random.PRNGKey(0)
    pkey, xkey = jax.random.split(key)
    params = init_params(pkey)
    prepped = prepare_params(params)

    # MNIST-shaped input: spatial must be 28 so the conv stack yields 10*4*4=160.
    B = 2
    x = jax.random.normal(xkey, (B, 1, 28, 28), jnp.float32)

    fwd = jax.jit(cnn_forward)
    out = jax.block_until_ready(fwd(prepped, x))
    assert out.shape == (B, 10) and out.dtype == jnp.float32

    ref = jax.block_until_ready(reference_forward(params, x))
    # Tolerance reflects bf16 MXU operands (f32 accumulation / bias / ReLU).
    np.testing.assert_allclose(np.asarray(out), np.asarray(ref),
                               rtol=5e-2, atol=5e-2)

    print("KERNEL_OK")
</pallas_src>

<mosaic_0001>
module attributes {stable_mosaic.version = 11 : i64} {
  func.func @_cnn_fused_kernel(%arg0: i32, %arg1: memref<8x784xbf16, #tpu.memory_space<vmem>>, %arg2: memref<784x3136xbf16, #tpu.memory_space<vmem>>, %arg3: memref<1x3136xf32, #tpu.memory_space<vmem>>, %arg4: memref<3136x784xbf16, #tpu.memory_space<vmem>>, %arg5: memref<1x784xf32, #tpu.memory_space<vmem>>, %arg6: memref<784x160xbf16, #tpu.memory_space<vmem>>, %arg7: memref<1x160xf32, #tpu.memory_space<vmem>>, %arg8: memref<160x10xbf16, #tpu.memory_space<vmem>>, %arg9: memref<1x10xf32, #tpu.memory_space<vmem>>, %arg10: memref<8x10xf32, #tpu.memory_space<vmem>>) attributes {dimension_semantics = [#tpu.dimension_semantics<parallel>], iteration_bounds = array<i64: 2>, scalar_prefetch = 0 : i64, scratch_operands = 0 : i64, tpu.core_type = #tpu.core_type<tc>, window_params = [{transform_indices = @transform_0, window_bounds = array<i64: 8, 784>}, {pipeline_mode = #tpu.pipeline_mode<synchronous>, transform_indices = @transform_1, window_bounds = array<i64: 784, 3136>}, {pipeline_mode = #tpu.pipeline_mode<synchronous>, transform_indices = @transform_2, window_bounds = array<i64: 1, 3136>}, {pipeline_mode = #tpu.pipeline_mode<synchronous>, transform_indices = @transform_3, window_bounds = array<i64: 3136, 784>}, {pipeline_mode = #tpu.pipeline_mode<synchronous>, transform_indices = @transform_4, window_bounds = array<i64: 1, 784>}, {pipeline_mode = #tpu.pipeline_mode<synchronous>, transform_indices = @transform_5, window_bounds = array<i64: 784, 160>}, {pipeline_mode = #tpu.pipeline_mode<synchronous>, transform_indices = @transform_6, window_bounds = array<i64: 1, 160>}, {pipeline_mode = #tpu.pipeline_mode<synchronous>, transform_indices = @transform_7, window_bounds = array<i64: 160, 10>}, {pipeline_mode = #tpu.pipeline_mode<synchronous>, transform_indices = @transform_8, window_bounds = array<i64: 1, 10>}, {transform_indices = @transform_9, window_bounds = array<i64: 8, 10>}]} {
    %c0 = arith.constant 0 : index
    %c0_0 = arith.constant 0 : index
    %0 = vector.load %arg1[%c0, %c0_0] : memref<8x784xbf16, #tpu.memory_space<vmem>>, vector<8x784xbf16>
    %c0_1 = arith.constant 0 : index
    %c0_2 = arith.constant 0 : index
    %1 = vector.load %arg2[%c0_1, %c0_2] : memref<784x3136xbf16, #tpu.memory_space<vmem>>, vector<784x3136xbf16>
    %cst = arith.constant dense<0.000000e+00> : vector<8x3136xf32>
    %2 = tpu.matmul %0, %1, %cst {dimension_numbers = #tpu.dot_dimension_numbers<[1], [0], [0], [1], [0, 0, 1, 1], [], []>} : vector<8x784xbf16>, vector<784x3136xbf16>, vector<8x3136xf32> -> vector<8x3136xf32>
    %c0_3 = arith.constant 0 : index
    %c0_4 = arith.constant 0 : index
    %3 = vector.load %arg3[%c0_3, %c0_4] : memref<1x3136xf32, #tpu.memory_space<vmem>>, vector<1x3136xf32>
    %4 = vector.broadcast %3 : vector<1x3136xf32> to vector<8x3136xf32>
    %5 = arith.addf %2, %4 : vector<8x3136xf32>
    %cst_5 = arith.constant 0.000000e+00 : f32
    %6 = vector.broadcast %cst_5 : f32 to vector<8x3136xf32>
    %7 = arith.maximumf %5, %6 : vector<8x3136xf32>
    %8 = arith.truncf %7 : vector<8x3136xf32> to vector<8x3136xbf16>
    %c0_6 = arith.constant 0 : index
    %c0_7 = arith.constant 0 : index
    %9 = vector.load %arg4[%c0_6, %c0_7] : memref<3136x784xbf16, #tpu.memory_space<vmem>>, vector<3136x784xbf16>
    %cst_8 = arith.constant dense<0.000000e+00> : vector<8x784xf32>
    %10 = tpu.matmul %8, %9, %cst_8 {dimension_numbers = #tpu.dot_dimension_numbers<[1], [0], [0], [1], [0, 0, 1, 1], [], []>} : vector<8x3136xbf16>, vector<3136x784xbf16>, vector<8x784xf32> -> vector<8x784xf32>
    %c0_9 = arith.constant 0 : index
    %c0_10 = arith.constant 0 : index
    %11 = vector.load %arg5[%c0_9, %c0_10] : memref<1x784xf32, #tpu.memory_space<vmem>>, vector<1x784xf32>
    %12 = vector.broadcast %11 : vector<1x784xf32> to vector<8x784xf32>
    %13 = arith.addf %10, %12 : vector<8x784xf32>
    %cst_11 = arith.constant 0.000000e+00 : f32
    %14 = vector.broadcast %cst_11 : f32 to vector<8x784xf32>
    %15 = arith.maximumf %13, %14 : vector<8x784xf32>
    %16 = arith.truncf %15 : vector<8x784xf32> to vector<8x784xbf16>
    %c0_12 = arith.constant 0 : index
    %c0_13 = arith.constant 0 : index
    %17 = vector.load %arg6[%c0_12, %c0_13] : memref<784x160xbf16, #tpu.memory_space<vmem>>, vector<784x160xbf16>
    %cst_14 = arith.constant dense<0.000000e+00> : vector<8x160xf32>
    %18 = tpu.matmul %16, %17, %cst_14 {dimension_numbers = #tpu.dot_dimension_numbers<[1], [0], [0], [1], [0, 0, 1, 1], [], []>} : vector<8x784xbf16>, vector<784x160xbf16>, vector<8x160xf32> -> vector<8x160xf32>
    %c0_15 = arith.constant 0 : index
    %c0_16 = arith.constant 0 : index
    %19 = vector.load %arg7[%c0_15, %c0_16] : memref<1x160xf32, #tpu.memory_space<vmem>>, vector<1x160xf32>
    %20 = vector.broadcast %19 : vector<1x160xf32> to vector<8x160xf32>
    %21 = arith.addf %18, %20 : vector<8x160xf32>
    %cst_17 = arith.constant 0.000000e+00 : f32
    %22 = vector.broadcast %cst_17 : f32 to vector<8x160xf32>
    %23 = arith.maximumf %21, %22 : vector<8x160xf32>
    %24 = arith.truncf %23 : vector<8x160xf32> to vector<8x160xbf16>
    %c0_18 = arith.constant 0 : index
    %c0_19 = arith.constant 0 : index
    %25 = vector.load %arg8[%c0_18, %c0_19] : memref<160x10xbf16, #tpu.memory_space<vmem>>, vector<160x10xbf16>
    %cst_20 = arith.constant dense<0.000000e+00> : vector<8x10xf32>
    %26 = tpu.matmul %24, %25, %cst_20 {dimension_numbers = #tpu.dot_dimension_numbers<[1], [0], [0], [1], [0, 0, 1, 1], [], []>} : vector<8x160xbf16>, vector<160x10xbf16>, vector<8x10xf32> -> vector<8x10xf32>
    %c0_21 = arith.constant 0 : index
    %c0_22 = arith.constant 0 : index
    %27 = vector.load %arg9[%c0_21, %c0_22] : memref<1x10xf32, #tpu.memory_space<vmem>>, vector<1x10xf32>
    %28 = vector.broadcast %27 : vector<1x10xf32> to vector<8x10xf32>
    %29 = arith.addf %26, %28 : vector<8x10xf32>
    %c0_23 = arith.constant 0 : index
    %c0_24 = arith.constant 0 : index
    %30 = vector.load %arg10[%c0_23, %c0_24] : memref<8x10xf32, #tpu.memory_space<vmem>>, vector<8x10xf32>
    tpu.vector_store %arg10[%c0_23, %c0_24], %29 {strides = array<i32>} : memref<8x10xf32, #tpu.memory_space<vmem>>, vector<8x10xf32>,
    return
  }
  func.func @transform_0(%arg0: i32) -> (i32, i32) {
    %c0_i32 = arith.constant 0 : i32
    %c0_i32_0 = arith.constant 0 : i32
    return %arg0, %c0_i32 : i32, i32
  }
  func.func @transform_1(%arg0: i32) -> (i32, i32) {
    %c0_i32 = arith.constant 0 : i32
    %c0_i32_0 = arith.constant 0 : i32
    %c0_i32_1 = arith.constant 0 : i32
    return %c0_i32, %c0_i32_0 : i32, i32
  }
  func.func @transform_2(%arg0: i32) -> (i32, i32) {
    %c0_i32 = arith.constant 0 : i32
    %c0_i32_0 = arith.constant 0 : i32
    %c0_i32_1 = arith.constant 0 : i32
    return %c0_i32, %c0_i32_0 : i32, i32
  }
  func.func @transform_3(%arg0: i32) -> (i32, i32) {
    %c0_i32 = arith.constant 0 : i32
    %c0_i32_0 = arith.constant 0 : i32
    %c0_i32_1 = arith.constant 0 : i32
    return %c0_i32, %c0_i32_0 : i32, i32
  }
  func.func @transform_4(%arg0: i32) -> (i32, i32) {
    %c0_i32 = arith.constant 0 : i32
    %c0_i32_0 = arith.constant 0 : i32
    %c0_i32_1 = arith.constant 0 : i32
    return %c0_i32, %c0_i32_0 : i32, i32
  }
  func.func @transform_5(%arg0: i32) -> (i32, i32) {
    %c0_i32 = arith.constant 0 : i32
    %c0_i32_0 = arith.constant 0 : i32
    %c0_i32_1 = arith.constant 0 : i32
    return %c0_i32, %c0_i32_0 : i32, i32
  }
  func.func @transform_6(%arg0: i32) -> (i32, i32) {
    %c0_i32 = arith.constant 0 : i32
    %c0_i32_0 = arith.constant 0 : i32
    %c0_i32_1 = arith.constant 0 : i32
    return %c0_i32, %c0_i32_0 : i32, i32
  }
  func.func @transform_7(%arg0: i32) -> (i32, i32) {
    %c0_i32 = arith.constant 0 : i32
    %c0_i32_0 = arith.constant 0 : i32
    %c0_i32_1 = arith.constant 0 : i32
    return %c0_i32, %c0_i32_0 : i32, i32
  }
  func.func @transform_8(%arg0: i32) -> (i32, i32) {
    %c0_i32 = arith.constant 0 : i32
    %c0_i32_0 = arith.constant 0 : i32
    %c0_i32_1 = arith.constant 0 : i32
    return %c0_i32, %c0_i32_0 : i32, i32
  }
  func.func @transform_9(%arg0: i32) -> (i32, i32) {
    %c0_i32 = arith.constant 0 : i32
    %c0_i32_0 = arith.constant 0 : i32
    return %arg0, %c0_i32 : i32, i32
  }
}

</mosaic_0001>

<bundles_post_ra>
// kernel: cnn_forward.1
= control target key start
LH: loop header
LB: loop body
LE: loop exit
PB: predicated region body
PF: predicated region fallthrough
CT: control target
= control target key end

     0   :  { %s29000_s30 = smov 0   ;;  %s37921_s0 = inlined_call_operand.vmem [shape: bf16[16,784], index: 0, kind: input, shape index: {}]   ;;  %s37922_s1 = inlined_call_operand.vmem [shape: bf16[784,3136], index: 1, kind: input, shape index: {}]   ;;  %s37923_s2 = inlined_call_operand.vmem [shape: f32[1,3136], index: 2, kind: input, shape index: {}]   ;;  %s37924_s3 = inlined_call_operand.vmem [shape: bf16[3136,784], index: 3, kind: input, shape index: {}]   ;;  %s37925_s4 = inlined_call_operand.vmem [shape: f32[1,784], index: 4, kind: input, shape index: {}]   ;;  %s37926_s5 = inlined_call_operand.vmem [shape: bf16[784,160], index: 5, kind: input, shape index: {}]   ;;  %s37927_s6 = inlined_call_operand.vmem [shape: f32[1,160], index: 6, kind: input, shape index: {}]   ;;  %s37928_s7 = inlined_call_operand.vmem [shape: bf16[160,10], index: 7, kind: input, shape index: {}]   ;;  %s37929_s8 = inlined_call_operand.vmem [shape: f32[1,10], index: 8, kind: input, shape index: {}]   ;;  %s37930_s9 = inlined_call_operand.vmem [shape: f32[16,10], index: 9, kind: output, shape index: {}]  }
   0x1 LB: > { %s21878_s10 = sadd.s32 4294967295, %s28945_s30   ;;  %p21882_p0 = scmp.ge.s32.totalorder %s28945_s30, 1  ;;  %s28945_s30 = sphi %s29000_s30, %s19_s30  }
   0x2   : > { %p287_p1 = scmp.lt.s32.totalorder %s28945_s30, 3 }
   0x4   : > { %p288_p2 = pnand %p21882_p0, %p287_p1 }
   0x5   : > { %p322_p3 = scmp.lt.s32.totalorder (!%p288_p2), %s21878_s10, 1 }
   0x6   : > { %291 = sbr.rel (%p288_p2) target bundleno = 3246 (0xcae), region = 56 }
   0xb   : > { %v24987_v0 = vld [vmem:[%s37922_s1 + $0x57c] ss:$100 sps:$4 sm:$0xff]   ;;  %v24993_v4 = vld [vmem:[%s37922_s1 + $0x4b4] ss:$100 sps:$4 sm:$0xff]   ;;  %v24999_v8 = vld [vmem:[%s37922_s1 + $0x3ec] ss:$100 sps:$4 sm:$0xff]  }
   0xc   : > { %v24989_v1 = vld [vmem:[%s37922_s1 + $0x11fc] ss:$100 sps:$4 sm:$0xff]   ;;  %7945 = vmatprep.subr.bf16.mxu0 %v24987_v0  ;;  %v24995_v5 = vld [vmem:[%s37922_s1 + $0x1134] ss:$100 sps:$4 sm:$0xff]   ;;  %v25001_v9 = vld [vmem:[%s37922_s1 + $0x106c] ss:$100 sps:$4 sm:$0xff]  }
   0xd   : > { %v24991_v2 = vld [vmem:[%s37922_s1 + $0x578] ss:$100 sps:$4 sm:$0xff]   ;;  %7986 = vmatprep.subr.bf16.mxu1 %v24989_v1  ;;  %v24997_v6 = vld [vmem:[%s37922_s1 + $0x4b0] ss:$100 sps:$4 sm:$0xff]   ;;  %v25003_v10 = vld [vmem:[%s37922_s1 + $0x3e8] ss:$100 sps:$4 sm:$0xff]  }
   0xe   : > { %v24992_v3 = vld [vmem:[%s37922_s1 + $0x11f8] ss:$100 sps:$4 sm:$0xff]   ;;  %7946 = vmatpush1.bf16.msra.mxu0 %v24991_v2  ;;  %v24998_v7 = vld [vmem:[%s37922_s1 + $0x1130] ss:$100 sps:$4 sm:$0xff]   ;;  %v25004_v11 = vld [vmem:[%s37922_s1 + $0x1068] ss:$100 sps:$4 sm:$0xff]  }
   0xf   : > { %7987 = vmatpush1.bf16.msra.mxu1 %v24992_v3  ;;  %7947 = vmatprep.subr.bf16.mxu0 %v24993_v4  ;;  %v25005_v12 = vld [vmem:[%s37922_s1 + $0x324] ss:$100 sps:$4 sm:$0xff]   ;;  %v25011_v16 = vld [vmem:[%s37922_s1 + $0x25c] ss:$100 sps:$4 sm:$0xff]   ;;  %v25017_v20 = vld [vmem:[%s37922_s1 + $0x194] ss:$100 sps:$4 sm:$0xff]  }
  0x10   : > { %7988 = vmatprep.subr.bf16.mxu1 %v24995_v5  ;;  %v25007_v13 = vld [vmem:[%s37922_s1 + $0xfa4] ss:$100 sps:$4 sm:$0xff]   ;;  %v25013_v17 = vld [vmem:[%s37922_s1 + $0xedc] ss:$100 sps:$4 sm:$0xff]   ;;  %v25019_v21 = vld [vmem:[%s37922_s1 + $0xe14] ss:$100 sps:$4 sm:$0xff]  }
  0x11   : > { %v25009_v14 = vld [vmem:[%s37922_s1 + $0x320] ss:$100 sps:$4 sm:$0xff]   ;;  %v25015_v18 = vld [vmem:[%s37922_s1 + $0x258] ss:$100 sps:$4 sm:$0xff]   ;;  %v25021_v22 = vld [vmem:[%s37922_s1 + $0x190] ss:$100 sps:$4 sm:$0xff]  }
  0x12   : > { %7948 = vmatpush1.bf16.msra.mxu0 %v24997_v6  ;;  %v25010_v15 = vld [vmem:[%s37922_s1 + $0xfa0] ss:$100 sps:$4 sm:$0xff]   ;;  %v25016_v19 = vld [vmem:[%s37922_s1 + $0xed8] ss:$100 sps:$4 sm:$0xff]   ;;  %v25022_v23 = vld [vmem:[%s37922_s1 + $0xe10] ss:$100 sps:$4 sm:$0xff]  }
  0x13   : > { %7989 = vmatpush1.bf16.msra.mxu1 %v24998_v7  ;;  %7949 = vmatprep.subr.bf16.mxu0 %v24999_v8  ;;  %v25023_v24 = vld [vmem:[%s37922_s1 + $0xcc] ss:$100 sps:$4 sm:$0xff]   ;;  %v25029_v28 = vld [vmem:[%s37922_s1 + $0x4] ss:$100 sps:$4 sm:$0xff]   ;;  %v25035_v32 = vld [vmem:[%s37922_s1 + $0xbbc] ss:$100 sps:$4 sm:$0xff]  }
  0x14   : > { %7990 = vmatprep.subr.bf16.mxu1 %v25001_v9  ;;  %v25025_v25 = vld [vmem:[%s37922_s1 + $0xd4c] ss:$100 sps:$4 sm:$0xff]   ;;  %v25031_v29 = vld [vmem:[%s37922_s1 + $0xc84] ss:$100 sps:$4 sm:$0xff]   ;;  %v25037_v33 = vld [vmem:[%s37922_s1 + $0x183c] ss:$100 sps:$4 sm:$0xff]  }
  0x15   : > { %v25027_v26 = vld [vmem:[%s37922_s1 + $0xc8] ss:$100 sps:$4 sm:$0xff]   ;;  %v25033_v30 = vld [vmem:[%s37922_s1] ss:$100 sps:$4 sm:$0xff]   ;;  %v25039_v34 = vld [vmem:[%s37922_s1 + $0xbb8] ss:$100 sps:$4 sm:$0xff]  }
  0x16   : > { %7950 = vmatpush1.bf16.msra.mxu0 %v25003_v10  ;;  %v25028_v27 = vld [vmem:[%s37922_s1 + $0xd48] ss:$100 sps:$4 sm:$0xff]   ;;  %v25034_v31 = vld [vmem:[%s37922_s1 + $0xc80] ss:$100 sps:$4 sm:$0xff]   ;;  %v25040_v35 = vld [vmem:[%s37922_s1 + $0x1838] ss:$100 sps:$4 sm:$0xff]  }
  0x17   : > { %7991 = vmatpush1.bf16.msra.mxu1 %v25004_v11  ;;  %7951 = vmatprep.subr.bf16.mxu0 %v25005_v12  ;;  %s37932_s10 = smov (!%p322_p3, %s21878_s10), 1  ;;  %v25041_v36 = vld [vmem:[%s37922_s1 + $0xaf4] ss:$100 sps:$4 sm:$0xff]   ;;  %v25047_v40 = vld [vmem:[%s37922_s1 + $0xa2c] ss:$100 sps:$4 sm:$0xff]   ;;  %vm7941_vm0 = vcmask 130048  }
  0x18   : > { %7992 = vmatprep.subr.bf16.mxu1 %v25007_v13  ;;  %v25043_v37 = vld [vmem:[%s37922_s1 + $0x1774] ss:$100 sps:$4 sm:$0xff]   ;;  %s24975_s13 = smul.u32 28, %s37932_s10  ;;  %v25049_v41 = vld [vmem:[%s37922_s1 + $0x16ac] ss:$100 sps:$4 sm:$0xff]   ;;  %v28947_v13 = vmov 0  }
  0x19   : > { %v25045_v38 = vld [vmem:[%s37922_s1 + $0xaf0] ss:$100 sps:$4 sm:$0xff]   ;;  %v25051_v42 = vld [vmem:[%s37922_s1 + $0xa28] ss:$100 sps:$4 sm:$0xff]   ;;  %v25057_v49 = vld [vmem:[%s37922_s1 + $0x960] ss:$100 sps:$4 sm:$0xff]  }
  0x1a   : > { %7952 = vmatpush1.bf16.msra.mxu0 %v25009_v14  ;;  %v25046_v39 = vld [vmem:[%s37922_s1 + $0x1770] ss:$100 sps:$4 sm:$0xff]   ;;  %v25052_v43 = vld [vmem:[%s37922_s1 + $0x16a8] ss:$100 sps:$4 sm:$0xff]   ;;  %s29150_s26 = scalar_lea.vmem %s37921_s0, %s24975_s13  ;;  %v25058_v50 = vld [vmem:[%s37922_s1 + $0x15e0] ss:$100 sps:$4 sm:$0xff]  }
  0x1b   : > { %7993 = vmatpush1.bf16.msra.mxu1 %v25010_v15  ;;  %7953 = vmatprep.subr.bf16.mxu0 %v25011_v16  ;;  %v25053_v44 = vld [vmem:[%s37922_s1 + $0x964] ss:$100 sps:$4 sm:$0xff]   ;;  %v25059_v52 = vld [vmem:[%s37922_s1 + $0x89c] ss:$100 sps:$4 sm:$0xff]   ;;  %v25065_v56 = vld [vmem:[%s37922_s1 + $0x7d4] ss:$100 sps:$4 sm:$0xff]  }
  0x1c   : > { %7994 = vmatprep.subr.bf16.mxu1 %v25013_v17  ;;  %v25055_v45 = vld [vmem:[%s37922_s1 + $0x15e4] ss:$100 sps:$4 sm:$0xff]   ;;  %v25061_v53 = vld [vmem:[%s37922_s1 + $0x151c] ss:$100 sps:$4 sm:$0xff]   ;;  %v25067_v57 = vld [vmem:[%s37922_s1 + $0x1454] ss:$100 sps:$4 sm:$0xff]  }
  0x1d   : > { %v332_v46 = vld [vmem:[%s29150_s26] sm:$0xff]  ;;  %v333_v48 = vld [vmem:[%s29150_s26 + $0x8] sm:$0xff]  ;;  %v25063_v54 = vld [vmem:[%s37922_s1 + $0x898] ss:$100 sps:$4 sm:$0xff]   ;;  %vm28949_vm1 = vmmov 0   ;;  %vm18784_vm2 = vcmask 523264  }
  0x1e   : > { %7954 = vmatpush1.bf16.msra.mxu0 %v25015_v18  ;;  %v29159_v47 = vcombine.high %v332_v46, %v332_v46  ;;  %v29168_v51 = vcombine.high %v333_v48, %v333_v48  ;;  %v25064_v55 = vld [vmem:[%s37922_s1 + $0x1518] ss:$100 sps:$4 sm:$0xff]   ;;  %v25069_v58 = vld [vmem:[%s37922_s1 + $0x7d0] ss:$100 sps:$4 sm:$0xff]   ;;  %v25075_v62 = vld [vmem:[%s37922_s1 + $0x708] ss:$100 sps:$4 sm:$0xff]   ;;  %v29226_v6 = vcombine.low %v332_v46, %v332_v46  ;;  %v29228_v7 = vcombine.low %v333_v48, %v333_v48 }
  0x1f   : > { %7995 = vmatpush1.bf16.msra.mxu1 %v25016_v19  ;;  %7955 = vmatprep.subr.bf16.mxu0 %v25017_v20  ;;  %v25070_v59 = vld [vmem:[%s37922_s1 + $0x1450] ss:$100 sps:$4 sm:$0xff]   ;;  %v25076_v63 = vld [vmem:[%s37922_s1 + $0x1388] ss:$100 sps:$4 sm:$0xff]   ;;  %v25081_v2 = vld [vmem:[%s37922_s1 + $0x640] ss:$100 sps:$4 sm:$0xff]  }
  0x20   : > { %7996 = vmatprep.subr.bf16.mxu1 %v25019_v21  ;;  %7977 = vmatprep.mubr.bf16.mxu0 %v29159_v47  ;;  %v25071_v60 = vld [vmem:[%s37922_s1 + $0x70c] ss:$100 sps:$4 sm:$0xff]   ;;  %v25077_v0 = vld [vmem:[%s37922_s1 + $0x644] ss:$100 sps:$4 sm:$0xff]   ;;  %v25089_v4 = vld [vmem:[%s37922_s1 + $0x1e7c] ss:$100 sps:$4 sm:$0xff]  }
  0x21   : > { %8018 = vmatprep.mubr.bf16.mxu1 %v29168_v51  ;;  %v25073_v61 = vld [vmem:[%s37922_s1 + $0x138c] ss:$100 sps:$4 sm:$0xff]   ;;  %v25079_v1 = vld [vmem:[%s37922_s1 + $0x12c4] ss:$100 sps:$4 sm:$0xff]   ;;  %v25087_v8 = vld [vmem:[%s37922_s1 + $0x1e78] ss:$100 sps:$4 sm:$0xff]  }
  0x22   : > { %7956 = vmatpush1.bf16.msra.mxu0 %v25021_v22  ;;  %v25082_v3 = vld [vmem:[%s37922_s1 + $0x12c0] ss:$100 sps:$4 sm:$0xff]   ;;  %v25095_v10 = vld [vmem:[%s37922_s1 + $0x1db4] ss:$100 sps:$4 sm:$0xff]   ;;  %v25101_v14 = vld [vmem:[%s37922_s1 + $0x1cec] ss:$100 sps:$4 sm:$0xff]  }
  0x23   : > { %7997 = vmatpush1.bf16.msra.mxu1 %v25022_v23  ;;  %7957 = vmatprep.subr.bf16.mxu0 %v25023_v24  ;;  %v25092_v5 = vld [vmem:[%s37922_s1 + $0x2584] ss:$100 sps:$4 sm:$0xff]   ;;  %v25093_v12 = vld [vmem:[%s37922_s1 + $0x1db0] ss:$100 sps:$4 sm:$0xff]   ;;  %v29258_v17 = vld [vmem:[%s29150_s26 + $0x18] ss:$0 sps:$4 sm:$0xff]  }
  0x24   : > { %7998 = vmatprep.subr.bf16.mxu1 %v25025_v25  ;;  %v25090_v9 = vld [vmem:[%s37922_s1 + $0x2580] ss:$100 sps:$4 sm:$0xff]   ;;  %v25099_v16 = vld [vmem:[%s37922_s1 + $0x1ce8] ss:$100 sps:$4 sm:$0xff]   ;;  %v25103_v20 = vld [vmem:[%s37922_s1 + $0x4b8] ss:$100 sps:$4 sm:$0xff]  }
  0x25   : > { %v25098_v11 = vld [vmem:[%s37922_s1 + $0x584] ss:$100 sps:$4 sm:$0xff]   ;;  %v25105_v18 = vld [vmem:[%s37922_s1 + $0x4bc] ss:$100 sps:$4 sm:$0xff]   ;;  %v25111_v22 = vld [vmem:[%s37922_s1 + $0x3f4] ss:$100 sps:$4 sm:$0xff]  }
  0x26   : > { %7958 = vmatpush1.bf16.msra.mxu0 %v25027_v26  ;;  %v25096_v15 = vld [vmem:[%s37922_s1 + $0x580] ss:$100 sps:$4 sm:$0xff]   ;;  %v25109_v24 = vld [vmem:[%s37922_s1 + $0x3f0] ss:$100 sps:$4 sm:$0xff]   ;;  %v25112_v25 = vld [vmem:[%s37922_s1 + $0x1b58] ss:$100 sps:$4 sm:$0xff]  }
  0x27   : > { %7999 = vmatpush1.bf16.msra.mxu1 %v25028_v27  ;;  %7959 = vmatprep.subr.bf16.mxu0 %v25029_v28  ;;  %v25108_v19 = vld [vmem:[%s37922_s1 + $0x1c24] ss:$100 sps:$4 sm:$0xff]   ;;  %v25114_v23 = vld [vmem:[%s37922_s1 + $0x1b5c] ss:$100 sps:$4 sm:$0xff]   ;;  %v25117_v26 = vld [vmem:[%s37922_s1 + $0x32c] ss:$100 sps:$4 sm:$0xff]  }
  0x28   : > { %8000 = vmatprep.subr.bf16.mxu1 %v25031_v29  ;;  %v25106_v21 = vld [vmem:[%s37922_s1 + $0x1c20] ss:$100 sps:$4 sm:$0xff]   ;;  %v25120_v27 = vld [vmem:[%s37922_s1 + $0x1a94] ss:$100 sps:$4 sm:$0xff]   ;;  %v25115_v28 = vld [vmem:[%s37922_s1 + $0x328] ss:$100 sps:$4 sm:$0xff]  }
  0x29   : > { %v25118_v29 = vld [vmem:[%s37922_s1 + $0x1a90] ss:$100 sps:$4 sm:$0xff]   ;;  %v25139_v46 = vld [vmem:[%s37922_s1 + $0x8] ss:$100 sps:$4 sm:$0xff]   ;;  %vm21779_vm3 = vcmask 261120   ;;  %s21884_s15 = sshll.u32 %s37932_s10, 3 }
  0x2a   : > { %7960 = vmatpush1.bf16.msra.mxu0 %v25033_v30  ;;  %v25123_v30 = vld [vmem:[%s37922_s1 + $0x264] ss:$100 sps:$4 sm:$0xff]   ;;  %v25142_v48 = vld [vmem:[%s37922_s1 + $0x23f0] ss:$100 sps:$4 sm:$0xff]   ;;  %s330_s20 = scalar_lea.vmem %s37930_s9, %s21884_s15  ;;  %vm21823_vm4 = vcmask 80896  }
  0x2b   : > { %8001 = vmatpush1.bf16.msra.mxu1 %v25034_v31  ;;  %7961 = vmatprep.subr.bf16.mxu0 %v25035_v32  ;;  %v25126_v31 = vld [vmem:[%s37922_s1 + $0x19cc] ss:$100 sps:$4 sm:$0xff]  }
  0x2c   : > { %8002 = vmatprep.subr.bf16.mxu1 %v25037_v33  ;;  %v29306_v32 = vld [vmem:[%s29150_s26 + $0x10] sm:$0xff] }
  0x2d   : > { %v29310_v33 = vcombine.high %v29306_v32, %v29306_v32 }
  0x2e   : > { %7962 = vmatpush2.bf16.msra.mxu0 %v25039_v34  ;;  %v25121_v34 = vld [vmem:[%s37922_s1 + $0x260] ss:$100 sps:$4 sm:$0xff]  }
  0x2f   : > { %8003 = vmatpush2.bf16.msra.mxu1 %v25040_v35  ;;  %7963 = vmatprep.subr.bf16.mxu0 %v25041_v36  ;;  %v25124_v35 = vld [vmem:[%s37922_s1 + $0x19c8] ss:$100 sps:$4 sm:$0xff]   ;;  %v25129_v36 = vld [vmem:[%s37922_s1 + $0x19c] ss:$100 sps:$4 sm:$0xff]  }
  0x30   : > { %8004 = vmatprep.subr.bf16.mxu1 %v25043_v37  ;;  %v25132_v37 = vld [vmem:[%s37922_s1 + $0x1904] ss:$100 sps:$4 sm:$0xff]  }
  0x32   : > { %7964 = vmatpush2.bf16.msra.mxu0 %v25045_v38  ;;  %v25127_v38 = vld [vmem:[%s37922_s1 + $0x198] ss:$100 sps:$4 sm:$0xff]  }
  0x33   : > { %8005 = vmatpush2.bf16.msra.mxu1 %v25046_v39  ;;  %7965 = vmatprep.subr.bf16.mxu0 %v25047_v40  ;;  %v25130_v39 = vld [vmem:[%s37922_s1 + $0x1900] ss:$100 sps:$4 sm:$0xff]   ;;  %v25135_v40 = vld [vmem:[%s37922_s1 + $0xd4] ss:$100 sps:$4 sm:$0xff]  }
  0x34   : > { %8006 = vmatprep.subr.bf16.mxu1 %v25049_v41  ;;  %v25138_v41 = vld [vmem:[%s37922_s1 + $0x24bc] ss:$100 sps:$4 sm:$0xff]  }
  0x36   : > { %7966 = vmatpush2.bf16.msra.mxu0 %v25051_v42  ;;  %v25133_v42 = vld [vmem:[%s37922_s1 + $0xd0] ss:$100 sps:$4 sm:$0xff]  }
  0x37   : > { %8007 = vmatpush2.bf16.msra.mxu1 %v25052_v43  ;;  %7967 = vmatprep.subr.bf16.mxu0 %v25053_v44  ;;  %v25136_v43 = vld [vmem:[%s37922_s1 + $0x24b8] ss:$100 sps:$4 sm:$0xff]   ;;  %v25141_v44 = vld [vmem:[%s37922_s1 + $0xc] ss:$100 sps:$4 sm:$0xff]  }
  0x38   : > { %8008 = vmatprep.subr.bf16.mxu1 %v25055_v45  ;;  %v25144_v45 = vld [vmem:[%s37922_s1 + $0x23f4] ss:$100 sps:$4 sm:$0xff]  }
  0x3a   : > { %7968 = vmatpush2.bf16.msra.mxu0 %v25057_v49  ;;  %v25147_v49 = vld [vmem:[%s37922_s1 + $0xbc4] ss:$100 sps:$4 sm:$0xff]  }
  0x3b   : > { %8009 = vmatpush2.bf16.msra.mxu1 %v25058_v50  ;;  %7969 = vmatprep.subr.bf16.mxu0 %v25059_v52  ;;  %v25150_v50 = vld [vmem:[%s37922_s1 + $0x232c] ss:$100 sps:$4 sm:$0xff]   ;;  %v25145_v52 = vld [vmem:[%s37922_s1 + $0xbc0] ss:$100 sps:$4 sm:$0xff]  }
  0x3c   : > { %8010 = vmatprep.subr.bf16.mxu1 %v25061_v53  ;;  %v25148_v53 = vld [vmem:[%s37922_s1 + $0x2328] ss:$100 sps:$4 sm:$0xff]  }
  0x3e   : > { %7970 = vmatpush2.bf16.msra.mxu0 %v25063_v54  ;;  %v25153_v54 = vld [vmem:[%s37922_s1 + $0xafc] ss:$100 sps:$4 sm:$0xff]  }
  0x3f   : > { %8011 = vmatpush2.bf16.msra.mxu1 %v25064_v55  ;;  %7971 = vmatprep.subr.bf16.mxu0 %v25065_v56  ;;  %v25156_v55 = vld [vmem:[%s37922_s1 + $0x2264] ss:$100 sps:$4 sm:$0xff]   ;;  %v25151_v56 = vld [vmem:[%s37922_s1 + $0xaf8] ss:$100 sps:$4 sm:$0xff]  }
  0x40   : > { %8012 = vmatprep.subr.bf16.mxu1 %v25067_v57  ;;  %v25154_v57 = vld [vmem:[%s37922_s1 + $0x2260] ss:$100 sps:$4 sm:$0xff]  }
  0x42   : > { %7972 = vmatpush2.bf16.msra.mxu0 %v25069_v58  ;;  %v25159_v58 = vld [vmem:[%s37922_s1 + $0xa34] ss:$100 sps:$4 sm:$0xff]  }
  0x43   : > { %8013 = vmatpush2.bf16.msra.mxu1 %v25070_v59  ;;  %7973 = vmatprep.subr.bf16.mxu0 %v25071_v60  ;;  %v25162_v59 = vld [vmem:[%s37922_s1 + $0x219c] ss:$100 sps:$4 sm:$0xff]   ;;  %v25157_v60 = vld [vmem:[%s37922_s1 + $0xa30] ss:$100 sps:$4 sm:$0xff]  }
  0x44   : > { %8014 = vmatprep.subr.bf16.mxu1 %v25073_v61  ;;  %v25160_v61 = vld [vmem:[%s37922_s1 + $0x2198] ss:$100 sps:$4 sm:$0xff]  }
  0x46   : > { %7974 = vmatpush2.bf16.msra.mxu0 %v25075_v62  ;;  %v25165_v62 = vld [vmem:[%s37922_s1 + $0x96c] ss:$100 sps:$4 sm:$0xff]  }
  0x47   : > { %8015 = vmatpush2.bf16.msra.mxu1 %v25076_v63  ;;  %7975 = vmatprep.subr.bf16.mxu0 %v25077_v0  ;;  %v25168_v63 = vld [vmem:[%s37922_s1 + $0x20d4] ss:$100 sps:$4 sm:$0xff]   ;;  %v25163_v0 = vld [vmem:[%s37922_s1 + $0x968] ss:$100 sps:$4 sm:$0xff]  }
  0x48   : > { %8016 = vmatprep.subr.bf16.mxu1 %v25079_v1  ;;  %v25166_v1 = vld [vmem:[%s37922_s1 + $0x20d0] ss:$100 sps:$4 sm:$0xff]  }
  0x4a   : > { %7976 = vmatpush2.bf16.msra.mxu0 %v25081_v2  ;;  %v25171_v2 = vld [vmem:[%s37922_s1 + $0x8a4] ss:$100 sps:$4 sm:$0xff]  }
  0x4b   : > { %8017 = vmatpush2.bf16.msra.mxu1 %v25082_v3  ;;  %8027 = vmatprep.subr.bf16.mxu0 %v25089_v4  ;;  %v25174_v3 = vld [vmem:[%s37922_s1 + $0x200c] ss:$100 sps:$4 sm:$0xff]   ;;  %v25169_v4 = vld [vmem:[%s37922_s1 + $0x8a0] ss:$100 sps:$4 sm:$0xff]  }
  0x4c   : > { %8082 = vmatprep.subr.bf16.mxu1 %v25092_v5  ;;  %v25172_v5 = vld [vmem:[%s37922_s1 + $0x2008] ss:$100 sps:$4 sm:$0xff]  }
  0x4d   : > { %7978 = vmatmul.mubr.bf16.vlgmr.msra.gmra.mxu0 %v29226_v6 }
  0x4e   : > { %8019 = vmatmul.mubr.bf16.vlgmr.msra.gmra.mxu1 %v29228_v7  ;;  %8028 = vmatpush1.bf16.msra.mxu0 %v25087_v8  ;;  %v25177_v8 = vld [vmem:[%s37922_s1 + $0x7dc] ss:$100 sps:$4 sm:$0xff]  }
  0x4f   : > { %8083 = vmatpush1.bf16.msra.mxu1 %v25090_v9  ;;  %8029 = vmatprep.subr.bf16.mxu0 %v25095_v10  ;;  %v25180_v9 = vld [vmem:[%s37922_s1 + $0x1f44] ss:$100 sps:$4 sm:$0xff]   ;;  %v25175_v10 = vld [vmem:[%s37922_s1 + $0x7d8] ss:$100 sps:$4 sm:$0xff]  }
  0x50   : > { %8100 = vmatprep.mubr.bf16.mxu1 %v28947_v13  ;;  %8109 = vmatprep.subr.bf16.mxu1 %v25098_v11  ;;  %v25178_v11 = vld [vmem:[%s37922_s1 + $0x1f40] ss:$100 sps:$4 sm:$0xff]  }
  0x51   : > { %8059 = vmatprep.mubr.bf16.mxu0 %v29310_v33 }
  0x52   : > { %8030 = vmatpush1.bf16.msra.mxu0 %v25093_v12  ;;  %v25184_v12 = vld [vmem:[%s37922_s1 + $0x714] ss:$100 sps:$4 sm:$0xff]  }
  0x53   : > { %8031 = vmatprep.subr.bf16.mxu0 %v25101_v14  ;;  %v25188_v14 = vld [vmem:[%s37922_s1 + $0x1204] ss:$100 sps:$4 sm:$0xff]  }
  0x56   : > { %23118 = vmatmul.mubr.msk.bf16.vlgmr.msra.gmra.mxu1 %vm7941_vm0, %v29258_v17  ;;  %8032 = vmatpush1.bf16.msra.mxu0 %v25099_v16  ;;  %v29438_v16 = vcombine.low %v29306_v32, %v29306_v32  ;;  %v25212_v32 = vld [vmem:[%s37922_s1 + $0xee4] ss:$100 sps:$4 sm:$0xff]  }
  0x57   : > { %8110 = vmatpush1.bf16.msra.mxu1 %v25096_v15  ;;  %8033 = vmatprep.subr.bf16.mxu0 %v25108_v19  ;;  %v25182_v15 = vld [vmem:[%s37922_s1 + $0x710] ss:$100 sps:$4 sm:$0xff]  }
  0x58   : > { %8111 = vmatprep.subr.bf16.mxu1 %v25105_v18  ;;  %8141 = vmatprep.mubr.bf16.mxu1 %v29159_v47  ;;  %v25186_v18 = vld [vmem:[%s37922_s1 + $0x1200] ss:$100 sps:$4 sm:$0xff]   ;;  %v25191_v19 = vld [vmem:[%s37922_s1 + $0x64c] ss:$100 sps:$4 sm:$0xff]  }
  0x5a   : > { %8034 = vmatpush1.bf16.msra.mxu0 %v25106_v21  ;;  %v25189_v21 = vld [vmem:[%s37922_s1 + $0x648] ss:$100 sps:$4 sm:$0xff]  }
  0x5b   : > { %8112 = vmatpush1.bf16.msra.mxu1 %v25103_v20  ;;  %8035 = vmatprep.subr.bf16.mxu0 %v25114_v23  ;;  %v25194_v20 = vld [vmem:[%s37922_s1 + $0x113c] ss:$100 sps:$4 sm:$0xff]   ;;  %v25197_v23 = vld [vmem:[%s37922_s1 + $0x1e84] ss:$100 sps:$4 sm:$0xff]  }
  0x5c   : > { %8113 = vmatprep.subr.bf16.mxu1 %v25111_v22  ;;  %v25192_v22 = vld [vmem:[%s37922_s1 + $0x1138] ss:$100 sps:$4 sm:$0xff]  }
  0x5e   : > { %8036 = vmatpush1.bf16.msra.mxu0 %v25112_v25  ;;  %v25195_v25 = vld [vmem:[%s37922_s1 + $0x1e80] ss:$100 sps:$4 sm:$0xff]  }
  0x5f   : > { %8114 = vmatpush1.bf16.msra.mxu1 %v25109_v24  ;;  %8037 = vmatprep.subr.bf16.mxu0 %v25120_v27  ;;  %v25200_v24 = vld [vmem:[%s37922_s1 + $0x1074] ss:$100 sps:$4 sm:$0xff]   ;;  %v25203_v27 = vld [vmem:[%s37922_s1 + $0x1dbc] ss:$100 sps:$4 sm:$0xff]  }
  0x60   : > { %8115 = vmatprep.subr.bf16.mxu1 %v25117_v26  ;;  %v25198_v26 = vld [vmem:[%s37922_s1 + $0x1070] ss:$100 sps:$4 sm:$0xff]  }
  0x62   : > { %8038 = vmatpush1.bf16.msra.mxu0 %v25118_v29  ;;  %v25201_v29 = vld [vmem:[%s37922_s1 + $0x1db8] ss:$100 sps:$4 sm:$0xff]  }
  0x63   : > { %8116 = vmatpush1.bf16.msra.mxu1 %v25115_v28  ;;  %8039 = vmatprep.subr.bf16.mxu0 %v25126_v31  ;;  %v25206_v28 = vld [vmem:[%s37922_s1 + $0xfac] ss:$100 sps:$4 sm:$0xff]   ;;  %v25209_v31 = vld [vmem:[%s37922_s1 + $0x1cf4] ss:$100 sps:$4 sm:$0xff]  }
  0x64   : > { %8117 = vmatprep.subr.bf16.mxu1 %v25123_v30  ;;  %v25204_v30 = vld [vmem:[%s37922_s1 + $0xfa8] ss:$100 sps:$4 sm:$0xff]  }
  0x66   : > { %8040 = vmatpush1.bf16.msra.mxu0 %v25124_v35  ;;  %v25210_v35 = vld [vmem:[%s37922_s1 + $0xee0] ss:$100 sps:$4 sm:$0xff]  }
  0x67   : > { %8118 = vmatpush1.bf16.msra.mxu1 %v25121_v34  ;;  %8041 = vmatprep.subr.bf16.mxu0 %v25132_v37  ;;  %v25207_v34 = vld [vmem:[%s37922_s1 + $0x1cf0] ss:$100 sps:$4 sm:$0xff]   ;;  %v25218_v37 = vld [vmem:[%s37922_s1 + $0xe1c] ss:$100 sps:$4 sm:$0xff]  }
  0x68   : > { %8119 = vmatprep.subr.bf16.mxu1 %v25129_v36  ;;  %v25215_v36 = vld [vmem:[%s37922_s1 + $0x1c2c] ss:$100 sps:$4 sm:$0xff]  }
  0x6a   : > { %8042 = vmatpush1.bf16.msra.mxu0 %v25130_v39  ;;  %v25216_v39 = vld [vmem:[%s37922_s1 + $0xe18] ss:$100 sps:$4 sm:$0xff]  }
  0x6b   : > { %8120 = vmatpush1.bf16.msra.mxu1 %v25127_v38  ;;  %8043 = vmatprep.subr.bf16.mxu0 %v25138_v41  ;;  %v25213_v38 = vld [vmem:[%s37922_s1 + $0x1c28] ss:$100 sps:$4 sm:$0xff]   ;;  %v25224_v41 = vld [vmem:[%s37922_s1 + $0xd54] ss:$100 sps:$4 sm:$0xff]  }
  0x6c   : > { %8121 = vmatprep.subr.bf16.mxu1 %v25135_v40  ;;  %v25221_v40 = vld [vmem:[%s37922_s1 + $0x1b64] ss:$100 sps:$4 sm:$0xff]  }
  0x6e   : > { %8044 = vmatpush2.bf16.msra.mxu0 %v25136_v43  ;;  %v25222_v43 = vld [vmem:[%s37922_s1 + $0xd50] ss:$100 sps:$4 sm:$0xff]  }
  0x6f   : > { %8122 = vmatpush1.bf16.msra.mxu1 %v25133_v42  ;;  %8045 = vmatprep.subr.bf16.mxu0 %v25144_v45  ;;  %v25219_v42 = vld [vmem:[%s37922_s1 + $0x1b60] ss:$100 sps:$4 sm:$0xff]   ;;  %v25230_v45 = vld [vmem:[%s37922_s1 + $0xc8c] ss:$100 sps:$4 sm:$0xff]  }
  0x70   : > { %8123 = vmatprep.subr.bf16.mxu1 %v25141_v44  ;;  %v25227_v44 = vld [vmem:[%s37922_s1 + $0x1a9c] ss:$100 sps:$4 sm:$0xff]  }
  0x72   : > { %8046 = vmatpush2.bf16.msra.mxu0 %v25142_v48  ;;  %v25228_v48 = vld [vmem:[%s37922_s1 + $0xc88] ss:$100 sps:$4 sm:$0xff]  }
  0x73   : > { %8124 = vmatpush1.bf16.msra.mxu1 %v25139_v46  ;;  %8047 = vmatprep.subr.bf16.mxu0 %v25150_v50  ;;  %v25225_v46 = vld [vmem:[%s37922_s1 + $0x1a98] ss:$100 sps:$4 sm:$0xff]   ;;  %v25236_v50 = vld [vmem:[%s37922_s1 + $0x1844] ss:$100 sps:$4 sm:$0xff]  }
  0x74   : > { %8125 = vmatprep.subr.bf16.mxu1 %v25147_v49  ;;  %v25233_v49 = vld [vmem:[%s37922_s1 + $0x19d4] ss:$100 sps:$4 sm:$0xff]  }
  0x76   : > { %8048 = vmatpush2.bf16.msra.mxu0 %v25148_v53  ;;  %v25234_v53 = vld [vmem:[%s37922_s1 + $0x1840] ss:$100 sps:$4 sm:$0xff]  }
  0x77   : > { %8126 = vmatpush2.bf16.msra.mxu1 %v25145_v52  ;;  %8049 = vmatprep.subr.bf16.mxu0 %v25156_v55  ;;  %v25231_v52 = vld [vmem:[%s37922_s1 + $0x19d0] ss:$100 sps:$4 sm:$0xff]   ;;  %v25242_v55 = vld [vmem:[%s37922_s1 + $0x177c] ss:$100 sps:$4 sm:$0xff]  }
  0x78   : > { %8127 = vmatprep.subr.bf16.mxu1 %v25153_v54  ;;  %v25239_v54 = vld [vmem:[%s37922_s1 + $0x190c] ss:$100 sps:$4 sm:$0xff]  }
  0x7a   : > { %8050 = vmatpush2.bf16.msra.mxu0 %v25154_v57  ;;  %v25240_v57 = vld [vmem:[%s37922_s1 + $0x1778] ss:$100 sps:$4 sm:$0xff]  }
  0x7b   : > { %8128 = vmatpush2.bf16.msra.mxu1 %v25151_v56  ;;  %8051 = vmatprep.subr.bf16.mxu0 %v25162_v59  ;;  %v25237_v56 = vld [vmem:[%s37922_s1 + $0x1908] ss:$100 sps:$4 sm:$0xff]   ;;  %v25248_v59 = vld [vmem:[%s37922_s1 + $0x16b4] ss:$100 sps:$4 sm:$0xff]  }
  0x7c   : > { %8129 = vmatprep.subr.bf16.mxu1 %v25159_v58  ;;  %v25245_v58 = vld [vmem:[%s37922_s1 + $0x24c4] ss:$100 sps:$4 sm:$0xff]  }
  0x7e   : > { %8052 = vmatpush2.bf16.msra.mxu0 %v25160_v61  ;;  %v25246_v61 = vld [vmem:[%s37922_s1 + $0x16b0] ss:$100 sps:$4 sm:$0xff]  }
  0x7f   : > { %8130 = vmatpush2.bf16.msra.mxu1 %v25157_v60  ;;  %8053 = vmatprep.subr.bf16.mxu0 %v25168_v63  ;;  %v25243_v60 = vld [vmem:[%s37922_s1 + $0x24c0] ss:$100 sps:$4 sm:$0xff]   ;;  %v25254_v63 = vld [vmem:[%s37922_s1 + $0x15ec] ss:$100 sps:$4 sm:$0xff]  }
  0x80   : > { %8131 = vmatprep.subr.bf16.mxu1 %v25165_v62  ;;  %v25251_v62 = vld [vmem:[%s37922_s1 + $0x23fc] ss:$100 sps:$4 sm:$0xff]  }
  0x82   : > { %8054 = vmatpush2.bf16.msra.mxu0 %v25166_v1  ;;  %v25252_v1 = vld [vmem:[%s37922_s1 + $0x15e8] ss:$100 sps:$4 sm:$0xff]  }
  0x83   : > { %8132 = vmatpush2.bf16.msra.mxu1 %v25163_v0  ;;  %8055 = vmatprep.subr.bf16.mxu0 %v25174_v3  ;;  %v25249_v0 = vld [vmem:[%s37922_s1 + $0x23f8] ss:$100 sps:$4 sm:$0xff]   ;;  %v25260_v3 = vld [vmem:[%s37922_s1 + $0x1524] ss:$100 sps:$4 sm:$0xff]  }
  0x84   : > { %8133 = vmatprep.subr.bf16.mxu1 %v25171_v2  ;;  %v25257_v2 = vld [vmem:[%s37922_s1 + $0x2334] ss:$100 sps:$4 sm:$0xff]  }
  0x86   : > { %8056 = vmatpush2.bf16.msra.mxu0 %v25172_v5  ;;  %v25258_v5 = vld [vmem:[%s37922_s1 + $0x1520] ss:$100 sps:$4 sm:$0xff]  }
  0x87   : > { %8134 = vmatpush2.bf16.msra.mxu1 %v25169_v4  ;;  %8057 = vmatprep.subr.bf16.mxu0 %v25180_v9  ;;  %v25255_v4 = vld [vmem:[%s37922_s1 + $0x2330] ss:$100 sps:$4 sm:$0xff]   ;;  %v25266_v9 = vld [vmem:[%s37922_s1 + $0x145c] ss:$100 sps:$4 sm:$0xff]  }
  0x88   : > { %8135 = vmatprep.subr.bf16.mxu1 %v25177_v8  ;;  %v25263_v8 = vld [vmem:[%s37922_s1 + $0x226c] ss:$100 sps:$4 sm:$0xff]  }
  0x8a   : > { %8058 = vmatpush2.bf16.msra.mxu0 %v25178_v11  ;;  %v25264_v11 = vld [vmem:[%s37922_s1 + $0x1458] ss:$100 sps:$4 sm:$0xff]  }
  0x8b   : > { %8136 = vmatpush2.bf16.msra.mxu1 %v25175_v10  ;;  %8150 = vmatprep.subr.bf16.mxu0 %v25188_v14  ;;  %v25261_v10 = vld [vmem:[%s37922_s1 + $0x2268] ss:$100 sps:$4 sm:$0xff]   ;;  %v25272_v14 = vld [vmem:[%s37922_s1 + $0x1394] ss:$100 sps:$4 sm:$0xff]  }
  0x8c   : > { %8137 = vmatprep.subr.bf16.mxu1 %v25184_v12  ;;  %v25269_v12 = vld [vmem:[%s37922_s1 + $0x21a4] ss:$100 sps:$4 sm:$0xff]  }
  0x8d   : > { %8060 = vmatmul.mubr.bf16.vlgmr.msra.gmra.mxu0 %v29438_v16 }
  0x8e   : > { %8151 = vmatpush1.bf16.msra.mxu0 %v25186_v18  ;;  %8182 = vmatprep.mubr.bf16.mxu0 %v29168_v51  ;;  %v25270_v18 = vld [vmem:[%s37922_s1 + $0x1390] ss:$100 sps:$4 sm:$0xff]  }
  0x8f   : > { %8138 = vmatpush2.bf16.msra.mxu1 %v25182_v15  ;;  %8152 = vmatprep.subr.bf16.mxu0 %v25194_v20  ;;  %v25267_v15 = vld [vmem:[%s37922_s1 + $0x21a0] ss:$100 sps:$4 sm:$0xff]   ;;  %v25278_v20 = vld [vmem:[%s37922_s1 + $0x12cc] ss:$100 sps:$4 sm:$0xff]  }
  0x90   : > { %8139 = vmatprep.subr.bf16.mxu1 %v25191_v19  ;;  %v25275_v19 = vld [vmem:[%s37922_s1 + $0x20dc] ss:$100 sps:$4 sm:$0xff]  }
  0x92   : > { %8153 = vmatpush1.bf16.msra.mxu0 %v25192_v22  ;;  %v25276_v22 = vld [vmem:[%s37922_s1 + $0x12c8] ss:$100 sps:$4 sm:$0xff]  }
  0x93   : > { %8140 = vmatpush2.bf16.msra.mxu1 %v25189_v21  ;;  %8154 = vmatprep.subr.bf16.mxu0 %v25200_v24  ;;  %v25273_v21 = vld [vmem:[%s37922_s1 + $0x20d8] ss:$100 sps:$4 sm:$0xff]   ;;  %v25284_v24 = vld [vmem:[%s37922_s1 + $0x258c] ss:$100 sps:$4 sm:$0xff]  }
  0x94   : > { %8191 = vmatprep.subr.bf16.mxu1 %v25197_v23  ;;  %v25281_v23 = vld [vmem:[%s37922_s1 + $0x2014] ss:$100 sps:$4 sm:$0xff]  }
  0x96   : > { %8142 = vmatmul.mubr.bf16.vlgmr.msra.gmra.mxu1 %v29226_v6  ;;  %8155 = vmatpush1.bf16.msra.mxu0 %v25198_v26  ;;  %v25282_v26 = vld [vmem:[%s37922_s1 + $0x2588] ss:$100 sps:$4 sm:$0xff]  }
  0x97   : > { %8192 = vmatpush1.bf16.msra.mxu1 %v25195_v25  ;;  %8156 = vmatprep.subr.bf16.mxu0 %v25206_v28  ;;  %v25279_v25 = vld [vmem:[%s37922_s1 + $0x2010] ss:$100 sps:$4 sm:$0xff]  }
  0x98   : > { %8193 = vmatprep.subr.bf16.mxu1 %v25203_v27  ;;  %8223 = vmatprep.mubr.bf16.mxu1 %v29310_v33  ;;  %v25287_v27 = vld [vmem:[%s37922_s1 + $0x1f4c] ss:$100 sps:$4 sm:$0xff]  }
  0x99   : > { %v25290_v28 = vld [vmem:[%s37922_s1 + $0x58c] ss:$100 sps:$4 sm:$0xff]  }
  0x9a   : > { %8157 = vmatpush1.bf16.msra.mxu0 %v25204_v30  ;;  %v25293_v30 = vld [vmem:[%s37922_s1 + $0x120c] ss:$100 sps:$4 sm:$0xff]  }
  0x9b   : > { %8194 = vmatpush1.bf16.msra.mxu1 %v25201_v29  ;;  %8158 = vmatprep.subr.bf16.mxu0 %v25212_v32  ;;  %v25285_v29 = vld [vmem:[%s37922_s1 + $0x1f48] ss:$100 sps:$4 sm:$0xff]  }
  0x9c   : > { %8195 = vmatprep.subr.bf16.mxu1 %v25209_v31  ;;  %v25288_v31 = vld [vmem:[%s37922_s1 + $0x588] ss:$100 sps:$4 sm:$0xff]  }
  0x9d   : > { %v25291_v32 = vld [vmem:[%s37922_s1 + $0x1208] ss:$100 sps:$4 sm:$0xff]  }
  0x9e   : > { %8159 = vmatpush1.bf16.msra.mxu0 %v25210_v35  ;;  %v25299_v35 = vld [vmem:[%s37922_s1 + $0x1144] ss:$100 sps:$4 sm:$0xff]  }
  0x9f   : > { %8196 = vmatpush1.bf16.msra.mxu1 %v25207_v34  ;;  %8160 = vmatprep.subr.bf16.mxu0 %v25218_v37  ;;  %v25296_v34 = vld [vmem:[%s37922_s1 + $0x4c4] ss:$100 sps:$4 sm:$0xff]  }
  0xa0   : > { %8197 = vmatprep.subr.bf16.mxu1 %v25215_v36  ;;  %v25294_v36 = vld [vmem:[%s37922_s1 + $0x4c0] ss:$100 sps:$4 sm:$0xff]  }
  0xa1   : > { %v25297_v37 = vld [vmem:[%s37922_s1 + $0x1140] ss:$100 sps:$4 sm:$0xff]  }
  0xa2   : > { %8161 = vmatpush1.bf16.msra.mxu0 %v25216_v39  ;;  %v25300_v39 = vld [vmem:[%s37922_s1 + $0x3f8] ss:$100 sps:$4 sm:$0xff]  }
  0xa3   : > { %8198 = vmatpush1.bf16.msra.mxu1 %v25213_v38  ;;  %8162 = vmatprep.subr.bf16.mxu0 %v25224_v41  ;;  %v25302_v38 = vld [vmem:[%s37922_s1 + $0x3fc] ss:$100 sps:$4 sm:$0xff]   ;;  %v25308_v41 = vld [vmem:[%s37922_s1 + $0x334] ss:$100 sps:$4 sm:$0xff]  }
  0xa4   : > { %8199 = vmatprep.subr.bf16.mxu1 %v25221_v40  ;;  %v25303_v40 = vld [vmem:[%s37922_s1 + $0x1078] ss:$100 sps:$4 sm:$0xff]  }
  0xa6   : > { %8163 = vmatpush1.bf16.msra.mxu0 %v25222_v43  ;;  %v25306_v43 = vld [vmem:[%s37922_s1 + $0x330] ss:$100 sps:$4 sm:$0xff]  }
  0xa7   : > { %8200 = vmatpush1.bf16.msra.mxu1 %v25219_v42  ;;  %8164 = vmatprep.subr.bf16.mxu0 %v25230_v45  ;;  %v25311_v42 = vld [vmem:[%s37922_s1 + $0xfb4] ss:$100 sps:$4 sm:$0xff]   ;;  %v25314_v45 = vld [vmem:[%s37922_s1 + $0x26c] ss:$100 sps:$4 sm:$0xff]  }
  0xa8   : > { %8201 = vmatprep.subr.bf16.mxu1 %v25227_v44  ;;  %v25309_v44 = vld [vmem:[%s37922_s1 + $0xfb0] ss:$100 sps:$4 sm:$0xff]  }
  0xaa   : > { %8165 = vmatpush1.bf16.msra.mxu0 %v25228_v48  ;;  %v25312_v48 = vld [vmem:[%s37922_s1 + $0x268] ss:$100 sps:$4 sm:$0xff]  }
  0xab   : > { %8202 = vmatpush1.bf16.msra.mxu1 %v25225_v46  ;;  %8166 = vmatprep.subr.bf16.mxu0 %v25236_v50  ;;  %v25317_v46 = vld [vmem:[%s37922_s1 + $0xeec] ss:$100 sps:$4 sm:$0xff]   ;;  %v25320_v50 = vld [vmem:[%s37922_s1 + $0x1a4] ss:$100 sps:$4 sm:$0xff]  }
  0xac   : > { %8203 = vmatprep.subr.bf16.mxu1 %v25233_v49  ;;  %v25315_v49 = vld [vmem:[%s37922_s1 + $0xee8] ss:$100 sps:$4 sm:$0xff]  }
  0xae   : > { %8167 = vmatpush2.bf16.msra.mxu0 %v25234_v53  ;;  %v25318_v53 = vld [vmem:[%s37922_s1 + $0x1a0] ss:$100 sps:$4 sm:$0xff]  }
  0xaf   : > { %8204 = vmatpush1.bf16.msra.mxu1 %v25231_v52  ;;  %8168 = vmatprep.subr.bf16.mxu0 %v25242_v55  ;;  %v25323_v52 = vld [vmem:[%s37922_s1 + $0xe24] ss:$100 sps:$4 sm:$0xff]   ;;  %v25326_v55 = vld [vmem:[%s37922_s1 + $0xdc] ss:$100 sps:$4 sm:$0xff]  }
  0xb0   : > { %8205 = vmatprep.subr.bf16.mxu1 %v25239_v54  ;;  %v25321_v54 = vld [vmem:[%s37922_s1 + $0xe20] ss:$100 sps:$4 sm:$0xff]  }
  0xb2   : > { %8169 = vmatpush2.bf16.msra.mxu0 %v25240_v57  ;;  %v25324_v57 = vld [vmem:[%s37922_s1 + $0xd8] ss:$100 sps:$4 sm:$0xff]  }
  0xb3   : > { %8206 = vmatpush1.bf16.msra.mxu1 %v25237_v56  ;;  %8170 = vmatprep.subr.bf16.mxu0 %v25248_v59  ;;  %v25329_v56 = vld [vmem:[%s37922_s1 + $0xd5c] ss:$100 sps:$4 sm:$0xff]   ;;  %v25332_v59 = vld [vmem:[%s37922_s1 + $0x14] ss:$100 sps:$4 sm:$0xff]  }
  0xb4   : > { %8207 = vmatprep.subr.bf16.mxu1 %v25245_v58  ;;  %v25327_v58 = vld [vmem:[%s37922_s1 + $0xd58] ss:$100 sps:$4 sm:$0xff]  }
  0xb6   : > { %8171 = vmatpush2.bf16.msra.mxu0 %v25246_v61  ;;  %v25330_v61 = vld [vmem:[%s37922_s1 + $0x10] ss:$100 sps:$4 sm:$0xff]  }
  0xb7   : > { %8208 = vmatpush2.bf16.msra.mxu1 %v25243_v60  ;;  %8172 = vmatprep.subr.bf16.mxu0 %v25254_v63  ;;  %v25335_v60 = vld [vmem:[%s37922_s1 + $0xc94] ss:$100 sps:$4 sm:$0xff]   ;;  %v25338_v63 = vld [vmem:[%s37922_s1 + $0xbcc] ss:$100 sps:$4 sm:$0xff]  }
  0xb8   : > { %8209 = vmatprep.subr.bf16.mxu1 %v25251_v62  ;;  %v25333_v62 = vld [vmem:[%s37922_s1 + $0xc90] ss:$100 sps:$4 sm:$0xff]  }
  0xba   : > { %8173 = vmatpush2.bf16.msra.mxu0 %v25252_v1  ;;  %v25336_v1 = vld [vmem:[%s37922_s1 + $0xbc8] ss:$100 sps:$4 sm:$0xff]  }
  0xbb   : > { %8210 = vmatpush2.bf16.msra.mxu1 %v25249_v0  ;;  %8174 = vmatprep.subr.bf16.mxu0 %v25260_v3  ;;  %v25341_v0 = vld [vmem:[%s37922_s1 + $0x184c] ss:$100 sps:$4 sm:$0xff]   ;;  %v25344_v3 = vld [vmem:[%s37922_s1 + $0xb04] ss:$100 sps:$4 sm:$0xff]  }
  0xbc   : > { %8211 = vmatprep.subr.bf16.mxu1 %v25257_v2  ;;  %v25339_v2 = vld [vmem:[%s37922_s1 + $0x1848] ss:$100 sps:$4 sm:$0xff]  }
  0xbe   : > { %8175 = vmatpush2.bf16.msra.mxu0 %v25258_v5  ;;  %v25342_v5 = vld [vmem:[%s37922_s1 + $0xb00] ss:$100 sps:$4 sm:$0xff]  }
  0xbf   : > { %8212 = vmatpush2.bf16.msra.mxu1 %v25255_v4  ;;  %8176 = vmatprep.subr.bf16.mxu0 %v25266_v9  ;;  %v25347_v4 = vld [vmem:[%s37922_s1 + $0x1784] ss:$100 sps:$4 sm:$0xff]   ;;  %v25350_v9 = vld [vmem:[%s37922_s1 + $0xa3c] ss:$100 sps:$4 sm:$0xff]  }
  0xc0   : > { %8213 = vmatprep.subr.bf16.mxu1 %v25263_v8  ;;  %v25345_v8 = vld [vmem:[%s37922_s1 + $0x1780] ss:$100 sps:$4 sm:$0xff]  }
  0xc2   : > { %8177 = vmatpush2.bf16.msra.mxu0 %v25264_v11  ;;  %v25348_v11 = vld [vmem:[%s37922_s1 + $0xa38] ss:$100 sps:$4 sm:$0xff]  }
  0xc3   : > { %8214 = vmatpush2.bf16.msra.mxu1 %v25261_v10  ;;  %8178 = vmatprep.subr.bf16.mxu0 %v25272_v14  ;;  %v25353_v10 = vld [vmem:[%s37922_s1 + $0x16bc] ss:$100 sps:$4 sm:$0xff]   ;;  %v25356_v14 = vld [vmem:[%s37922_s1 + $0x974] ss:$100 sps:$4 sm:$0xff]  }
  0xc4   : > { %8215 = vmatprep.subr.bf16.mxu1 %v25269_v12  ;;  %v25351_v12 = vld [vmem:[%s37922_s1 + $0x16b8] ss:$100 sps:$4 sm:$0xff]  }
  0xc6   : > { %8179 = vmatpush2.bf16.msra.mxu0 %v25270_v18  ;;  %v25354_v18 = vld [vmem:[%s37922_s1 + $0x970] ss:$100 sps:$4 sm:$0xff]  }
  0xc7   : > { %8216 = vmatpush2.bf16.msra.mxu1 %v25267_v15  ;;  %8180 = vmatprep.subr.bf16.mxu0 %v25278_v20  ;;  %v25359_v15 = vld [vmem:[%s37922_s1 + $0x15f4] ss:$100 sps:$4 sm:$0xff]   ;;  %v1618_v20 = vlaneseq }
  0xc8   : > { %8217 = vmatprep.subr.bf16.mxu1 %v25275_v19  ;;  %v25357_v19 = vld [vmem:[%s37922_s1 + $0x15f0] ss:$100 sps:$4 sm:$0xff]  }
  0xca   : > { %8181 = vmatpush2.bf16.msra.mxu0 %v25276_v22  ;;  %v25365_v22 = vld [vmem:[%s37922_s1 + $0x152c] ss:$100 sps:$4 sm:$0xff]  }
  0xcb   : > { %8218 = vmatpush2.bf16.msra.mxu1 %v25273_v21  ;;  %8246 = vmatprep.subr.bf16.mxu0 %v25284_v24  ;;  %v25362_v21 = vld [vmem:[%s37922_s1 + $0x8ac] ss:$100 sps:$4 sm:$0xff]  }
  0xcc   : > { %8219 = vmatprep.subr.bf16.mxu1 %v25281_v23  ;;  %v25360_v23 = vld [vmem:[%s37922_s1 + $0x8a8] ss:$100 sps:$4 sm:$0xff]  }
  0xcd   : > { %8183 = vmatmul.mubr.bf16.vlgmr.msra.gmra.mxu0 %v29228_v7  ;;  %v25363_v24 = vld [vmem:[%s37922_s1 + $0x1528] ss:$100 sps:$4 sm:$0xff]  }
  0xce   : > { %8247 = vmatpush1.bf16.msra.mxu0 %v25282_v26  ;;  %8264 = vmatprep.mubr.bf16.mxu0 %v28947_v13  ;;  %v25368_v26 = vld [vmem:[%s37922_s1 + $0x7e4] ss:$100 sps:$4 sm:$0xff]  }
  0xcf   : > { %8220 = vmatpush2.bf16.msra.mxu1 %v25279_v25  ;;  %8273 = vmatprep.subr.bf16.mxu0 %v25290_v28  ;;  %v29808_v25 = vshrl.u32 %v1618_v20, 7  ;;  %v25366_v28 = vld [vmem:[%s37922_s1 + $0x7e0] ss:$100 sps:$4 sm:$0xff]   ;;  %v25408_v20 = vld [vmem:[%s37922_s1 + $0x1b68] ss:$100 sps:$4 sm:$0xff]  }
  0xd0   : > { %8221 = vmatprep.subr.bf16.mxu1 %v25287_v27  ;;  %v25371_v27 = vld [vmem:[%s37922_s1 + $0x1464] ss:$100 sps:$4 sm:$0xff]  }
  0xd3   : > { %8222 = vmatpush2.bf16.msra.mxu1 %v25285_v29  ;;  %v25369_v29 = vld [vmem:[%s37922_s1 + $0x1460] ss:$100 sps:$4 sm:$0xff]  }
  0xd4   : > { %8314 = vmatprep.subr.bf16.mxu1 %v25293_v30  ;;  %v25374_v30 = vld [vmem:[%s37922_s1 + $0x71c] ss:$100 sps:$4 sm:$0xff]  }
  0xd5   : > { %23119 = vmatmul.mubr.msk.bf16.vlgmr.msra.gmra.mxu0 %vm7941_vm0, %v29258_v17  ;;  %v25305_v17 = vld [vmem:[%s37922_s1 + $0x107c] ss:$100 sps:$4 sm:$0xff]  }
  0xd6   : > { %8224 = vmatmul.mubr.bf16.vlgmr.msra.gmra.mxu1 %v29438_v16  ;;  %8274 = vmatpush1.bf16.msra.mxu0 %v25288_v31  ;;  %v29826_v31 = vsub.s32 0, %v29808_v25 }
  0xd7   : > { %8315 = vmatpush1.bf16.msra.mxu1 %v25291_v32  ;;  %8275 = vmatprep.subr.bf16.mxu0 %v25296_v34  ;;  %v25377_v32 = vld [vmem:[%s37922_s1 + $0x139c] ss:$100 sps:$4 sm:$0xff]  }
  0xd8   : > { %8316 = vmatprep.subr.bf16.mxu1 %v25299_v35  ;;  %8305 = vmatprep.mubr.bf16.mxu0 %v29159_v47  ;;  %v1610_v34 = vld [vmem:[%s37923_s2] sm:$0xff]  ;;  %v29835_v35 = vsub.s32 1, %v29808_v25 }
  0xd9   : > { %8346 = vmatprep.mubr.bf16.mxu1 %v29168_v51 }
  0xda   : > { %8276 = vmatpush1.bf16.msra.mxu0 %v25294_v36  ;;  %v25372_v36 = vld [vmem:[%s37922_s1 + $0x718] ss:$100 sps:$4 sm:$0xff]  }
  0xdb   : > { %8317 = vmatpush1.bf16.msra.mxu1 %v25297_v37  ;;  %8277 = vmatprep.subr.bf16.mxu0 %v25302_v38  ;;  %v25375_v37 = vld [vmem:[%s37922_s1 + $0x1398] ss:$100 sps:$4 sm:$0xff]   ;;  %v1621_v38 = vrot.slane %v1610_v34, %v29826_v31 }
  0xdc   : > { %8318 = vmatprep.subr.bf16.mxu1 %v25305_v17  ;;  %v25380_v17 = vld [vmem:[%s37922_s1 + $0x654] ss:$100 sps:$4 sm:$0xff]  }
  0xde   : > { %8278 = vmatpush1.bf16.msra.mxu0 %v25300_v39  ;;  %v25383_v39 = vld [vmem:[%s37922_s1 + $0x12d4] ss:$100 sps:$4 sm:$0xff]  }
  0xdf   : > { %8319 = vmatpush1.bf16.msra.mxu1 %v25303_v40  ;;  %8279 = vmatprep.subr.bf16.mxu0 %v25308_v41  ;;  %v1625_v40 = vrot.slane %v1610_v34, %v29835_v35  ;;  %v25378_v41 = vld [vmem:[%s37922_s1 + $0x650] ss:$100 sps:$4 sm:$0xff]   ;;  %v25423_v34 = vld [vmem:[%s37922_s1 + $0x1a8] ss:$100 sps:$4 sm:$0xff]  }
  0xe0   : > { %8320 = vmatprep.subr.bf16.mxu1 %v25311_v42  ;;  %v25381_v42 = vld [vmem:[%s37922_s1 + $0x12d0] ss:$100 sps:$4 sm:$0xff]  }
  0xe2   : > { %8280 = vmatpush1.bf16.msra.mxu0 %v25306_v43 }
  0xe3   : > { %8321 = vmatpush1.bf16.msra.mxu1 %v25309_v44  ;;  %8281 = vmatprep.subr.bf16.mxu0 %v25314_v45  ;;  %v25386_v45 = vld [vmem:[%s37922_s1 + $0x1e8c] ss:$100 sps:$4 sm:$0xff]  }
  0xe4   : > { %8322 = vmatprep.subr.bf16.mxu1 %v25317_v46 }
  0xe6   : > { %8282 = vmatpush1.bf16.msra.mxu0 %v25312_v48 }
  0xe7   : > { %8323 = vmatpush1.bf16.msra.mxu1 %v25315_v49  ;;  %8283 = vmatprep.subr.bf16.mxu0 %v25320_v50  ;;  %v25389_v50 = vld [vmem:[%s37922_s1 + $0x2594] ss:$100 sps:$4 sm:$0xff]  }
  0xe8   : > { %8324 = vmatprep.subr.bf16.mxu1 %v25323_v52 }
  0xea   : > { %8284 = vmatpush1.bf16.msra.mxu0 %v25318_v53 }
  0xeb   : > { %8325 = vmatpush1.bf16.msra.mxu1 %v25321_v54  ;;  %8285 = vmatprep.subr.bf16.mxu0 %v25326_v55  ;;  %v25384_v54 = vld [vmem:[%s37922_s1 + $0x1e88] ss:$100 sps:$4 sm:$0xff]   ;;  %v25387_v55 = vld [vmem:[%s37922_s1 + $0x2590] ss:$100 sps:$4 sm:$0xff]  }
  0xec   : > { %8326 = vmatprep.subr.bf16.mxu1 %v25329_v56 }
  0xee   : > { %8286 = vmatpush1.bf16.msra.mxu0 %v25324_v57 }
  0xef   : > { %8327 = vmatpush1.bf16.msra.mxu1 %v25327_v58  ;;  %8287 = vmatprep.subr.bf16.mxu0 %v25332_v59 }
  0xf0   : > { %8328 = vmatprep.subr.bf16.mxu1 %v25335_v60 }
  0xf2   : > { %8288 = vmatpush1.bf16.msra.mxu0 %v25330_v61  ;;  %v25392_v61 = vld [vmem:[%s37922_s1 + $0x1dc4] ss:$100 sps:$4 sm:$0xff]  }
  0xf3   : > { %8329 = vmatpush1.bf16.msra.mxu1 %v25333_v62  ;;  %8289 = vmatprep.subr.bf16.mxu0 %v25338_v63  ;;  %v25395_v62 = vld [vmem:[%s37922_s1 + $0x594] ss:$100 sps:$4 sm:$0xff]   ;;  %v25390_v63 = vld [vmem:[%s37922_s1 + $0x1dc0] ss:$100 sps:$4 sm:$0xff]  }
  0xf4   : > { %8330 = vmatprep.subr.bf16.mxu1 %v25341_v0 }
  0xf6   : > { %8290 = vmatpush2.bf16.msra.mxu0 %v25336_v1 }
  0xf7   : > { %8331 = vmatpush2.bf16.msra.mxu1 %v25339_v2  ;;  %8291 = vmatprep.subr.bf16.mxu0 %v25344_v3  ;;  %v25398_v2 = vld [vmem:[%s37922_s1 + $0x1cfc] ss:$100 sps:$4 sm:$0xff]   ;;  %v25393_v3 = vld [vmem:[%s37922_s1 + $0x590] ss:$100 sps:$4 sm:$0xff]  }
  0xf8   : > { %8332 = vmatprep.subr.bf16.mxu1 %v25347_v4  ;;  %v25396_v4 = vld [vmem:[%s37922_s1 + $0x1cf8] ss:$100 sps:$4 sm:$0xff]  }
  0xfa   : > { %8292 = vmatpush2.bf16.msra.mxu0 %v25342_v5 }
  0xfb   : > { %8333 = vmatpush2.bf16.msra.mxu1 %v25345_v8  ;;  %8293 = vmatprep.subr.bf16.mxu0 %v25350_v9  ;;  %v25401_v9 = vld [vmem:[%s37922_s1 + $0x4cc] ss:$100 sps:$4 sm:$0xff]  }
  0xfc   : > { %8334 = vmatprep.subr.bf16.mxu1 %v25353_v10  ;;  %v25404_v10 = vld [vmem:[%s37922_s1 + $0x1c34] ss:$100 sps:$4 sm:$0xff]  }
  0xfe   : > { %8294 = vmatpush2.bf16.msra.mxu0 %v25348_v11  ;;  %v28924_v11 = vld [vmem:[%s29150_s26 + $0x18] ss:$0 sps:$4 sm:$0xff]  }
  0xff   : > { %8335 = vmatpush2.bf16.msra.mxu1 %v25351_v12  ;;  %8295 = vmatprep.subr.bf16.mxu0 %v25356_v14  ;;  %v25399_v12 = vld [vmem:[%s37922_s1 + $0x4c8] ss:$100 sps:$4 sm:$0xff]   ;;  %v25402_v14 = vld [vmem:[%s37922_s1 + $0x1c30] ss:$100 sps:$4 sm:$0xff]  }
 0x100   : > { %8336 = vmatprep.subr.bf16.mxu1 %v25359_v15  ;;  %v25407_v15 = vld [vmem:[%s37922_s1 + $0x404] ss:$100 sps:$4 sm:$0xff]  }
 0x102   : > { %8296 = vmatpush2.bf16.msra.mxu0 %v25354_v18  ;;  %v25410_v18 = vld [vmem:[%s37922_s1 + $0x1b6c] ss:$100 sps:$4 sm:$0xff]  }
 0x103   : > { %8337 = vmatpush2.bf16.msra.mxu1 %v25357_v19  ;;  %8297 = vmatprep.subr.bf16.mxu0 %v25362_v21  ;;  %v25405_v19 = vld [vmem:[%s37922_s1 + $0x400] ss:$100 sps:$4 sm:$0xff]  }
 0x104   : > { %8338 = vmatprep.subr.bf16.mxu1 %v25365_v22  ;;  %v25413_v21 = vld [vmem:[%s37922_s1 + $0x33c] ss:$100 sps:$4 sm:$0xff]   ;;  %v25416_v22 = vld [vmem:[%s37922_s1 + $0x1aa4] ss:$100 sps:$4 sm:$0xff]  }
 0x106   : > { %8298 = vmatpush2.bf16.msra.mxu0 %v25360_v23  ;;  %v25411_v23 = vld [vmem:[%s37922_s1 + $0x338] ss:$100 sps:$4 sm:$0xff]  }
 0x107   : > { %8339 = vmatpush2.bf16.msra.mxu1 %v25363_v24  ;;  %8299 = vmatprep.subr.bf16.mxu0 %v25368_v26  ;;  %v25414_v24 = vld [vmem:[%s37922_s1 + $0x1aa0] ss:$100 sps:$4 sm:$0xff]   ;;  %v25419_v26 = vld [vmem:[%s37922_s1 + $0x274] ss:$100 sps:$4 sm:$0xff]  }
 0x108   : > { %8340 = vmatprep.subr.bf16.mxu1 %v25371_v27  ;;  %v25422_v27 = vld [vmem:[%s37922_s1 + $0x19dc] ss:$100 sps:$4 sm:$0xff]  }
 0x10a   : > { %8300 = vmatpush2.bf16.msra.mxu0 %v25366_v28  ;;  %v25417_v28 = vld [vmem:[%s37922_s1 + $0x270] ss:$100 sps:$4 sm:$0xff]  }
 0x10b   : > { %8341 = vmatpush2.bf16.msra.mxu1 %v25369_v29  ;;  %8301 = vmatprep.subr.bf16.mxu0 %v25374_v30  ;;  %v25420_v29 = vld [vmem:[%s37922_s1 + $0x19d8] ss:$100 sps:$4 sm:$0xff]   ;;  %v25425_v30 = vld [vmem:[%s37922_s1 + $0x1ac] ss:$100 sps:$4 sm:$0xff]  }
 0x10c   : > { %8342 = vmatprep.subr.bf16.mxu1 %v25377_v32  ;;  %v25428_v32 = vld [vmem:[%s37922_s1 + $0x1914] ss:$100 sps:$4 sm:$0xff]  }
 0x10d   : > { %v7979_v43 = vpop.f32.mrf.mxu0 }
 0x10e   : > { %v8020_v44 = vpop.f32.mrf.mxu1  ;;  %v7980_v46 = vadd.f32 %v7979_v43, %v1621_v38  ;;  %8302 = vmatpush2.bf16.msra.mxu0 %v25372_v36  ;;  %v25426_v36 = vld [vmem:[%s37922_s1 + $0x1910] ss:$100 sps:$4 sm:$0xff]   ;;  %v25438_v43 = vld [vmem:[%s37922_s1 + $0x2400] ss:$100 sps:$4 sm:$0xff]  }
 0x10f   : > { %8343 = vmatpush2.bf16.msra.mxu1 %v25375_v37  ;;  %v7981_v48 = vpop.f32.mrf.mxu0  ;;  %8303 = vmatprep.subr.bf16.mxu0 %v25380_v17  ;;  %v25431_v37 = vld [vmem:[%s37922_s1 + $0xe4] ss:$100 sps:$4 sm:$0xff]   ;;  %v25434_v38 = vld [vmem:[%s37922_s1 + $0x24cc] ss:$100 sps:$4 sm:$0xff]  }
 0x110   : > { %v8022_v49 = vpop.f32.mrf.mxu1  ;;  %8344 = vmatprep.subr.bf16.mxu1 %v25383_v39  ;;  %v29863_v52 = vadd.f32 %v8020_v44, %v7980_v46  ;;  %v7982_v53 = vadd.f32 %v7981_v48, %v1625_v40  ;;  %v25429_v17 = vld [vmem:[%s37922_s1 + $0xe0] ss:$100 sps:$4 sm:$0xff]   ;;  %v25432_v39 = vld [vmem:[%s37922_s1 + $0x24c8] ss:$100 sps:$4 sm:$0xff]   ;;  %v25443_v44 = vld [vmem:[%s37922_s1 + $0xbd4] ss:$100 sps:$4 sm:$0xff]  }
 0x111   : > { %v7983_v56 = vpop.f32.mrf.mxu0  ;;  %v25437_v40 = vld [vmem:[%s37922_s1 + $0x1c] ss:$100 sps:$4 sm:$0xff]   ;;  %v25441_v46 = vld [vmem:[%s37922_s1 + $0xbd0] ss:$100 sps:$4 sm:$0xff]  }
 0x112   : > { %v8024_v57 = vpop.f32.mrf.mxu1  ;;  %v29871_v58 = vadd.f32 %v8022_v49, %v7982_v53  ;;  %8304 = vmatpush2.bf16.msra.mxu0 %v25378_v41  ;;  %v25440_v41 = vld [vmem:[%s37922_s1 + $0x2404] ss:$100 sps:$4 sm:$0xff]   ;;  %v25444_v48 = vld [vmem:[%s37922_s1 + $0x2338] ss:$100 sps:$4 sm:$0xff]   ;;  %v25449_v49 = vld [vmem:[%s37922_s1 + $0xb0c] ss:$100 sps:$4 sm:$0xff]  }
 0x113   : > { %8345 = vmatpush2.bf16.msra.mxu1 %v25381_v42  ;;  %v7984_v59 = vpop.f32.mrf.mxu0  ;;  %8355 = vmatprep.subr.bf16.mxu0 %v25386_v45  ;;  %v25435_v42 = vld [vmem:[%s37922_s1 + $0x18] ss:$100 sps:$4 sm:$0xff]   ;;  %v25447_v53 = vld [vmem:[%s37922_s1 + $0xb08] ss:$100 sps:$4 sm:$0xff]   ;;  %v25453_v57 = vld [vmem:[%s37922_s1 + $0xa40] ss:$100 sps:$4 sm:$0xff]  }
 0x114   : > { %v8025_v60 = vpop.f32.mrf.mxu1  ;;  %8410 = vmatprep.subr.bf16.mxu1 %v25389_v50  ;;  %v25446_v45 = vld [vmem:[%s37922_s1 + $0x233c] ss:$100 sps:$4 sm:$0xff]   ;;  %v25452_v50 = vld [vmem:[%s37922_s1 + $0x2274] ss:$100 sps:$4 sm:$0xff]   ;;  %v25458_v56 = vld [vmem:[%s37922_s1 + $0x21ac] ss:$100 sps:$4 sm:$0xff]  }
 0x115   : > { %8306 = vmatmul.mubr.bf16.vlgmr.msra.gmra.mxu0 %v29226_v6  ;;  %v25456_v59 = vld [vmem:[%s37922_s1 + $0x21a8] ss:$100 sps:$4 sm:$0xff]   ;;  %v25461_v60 = vld [vmem:[%s37922_s1 + $0x97c] ss:$100 sps:$4 sm:$0xff]  }
 0x116   : > { %8347 = vmatmul.mubr.bf16.vlgmr.msra.gmra.mxu1 %v29228_v7  ;;  %v29884_v0 = vpop.f32.mrf.mxu1  ;;  %8356 = vmatpush1.bf16.msra.mxu0 %v25384_v54  ;;  %v25450_v54 = vld [vmem:[%s37922_s1 + $0x2270] ss:$100 sps:$4 sm:$0xff]  }
 0x117   : > { %8411 = vmatpush1.bf16.msra.mxu1 %v25387_v55  ;;  %8357 = vmatprep.subr.bf16.mxu0 %v25392_v61  ;;  %v25455_v55 = vld [vmem:[%s37922_s1 + $0xa44] ss:$100 sps:$4 sm:$0xff]  }
 0x118   : > { %v29886_v1 = vpop.f32.mrf.mxu1  ;;  %8428 = vmatprep.mubr.bf16.mxu1 %v28947_v13  ;;  %8437 = vmatprep.subr.bf16.mxu1 %v25395_v62  ;;  %v25464_v61 = vld [vmem:[%s37922_s1 + $0x20e4] ss:$100 sps:$4 sm:$0xff]   ;;  %v25459_v62 = vld [vmem:[%s37922_s1 + $0x978] ss:$100 sps:$4 sm:$0xff]  }
 0x119   : > { %8387 = vmatprep.mubr.bf16.mxu0 %v29310_v33 }
 0x11a   : > { %v8106_v5 = vpop.f32.mrf.mxu1  ;;  %8358 = vmatpush1.bf16.msra.mxu0 %v25390_v63  ;;  %v25462_v63 = vld [vmem:[%s37922_s1 + $0x20e0] ss:$100 sps:$4 sm:$0xff]  }
 0x11b   : > { %8359 = vmatprep.subr.bf16.mxu0 %v25398_v2  ;;  %v25467_v2 = vld [vmem:[%s37922_s1 + $0x8b4] ss:$100 sps:$4 sm:$0xff]  }
 0x11c   : > { %v8107_v8 = vpop.f32.mrf.mxu1  ;;  %v25468_v5 = vld [vmem:[%s37922_s1 + $0x2018] ss:$100 sps:$4 sm:$0xff]  }
 0x11d   : > { %v25473_v8 = vld [vmem:[%s37922_s1 + $0x7ec] ss:$100 sps:$4 sm:$0xff]  }
 0x11e   : > { %23120 = vmatmul.mubr.msk.bf16.vlgmr.msra.gmra.mxu1 %vm7941_vm0, %v28924_v11  ;;  %8360 = vmatpush1.bf16.msra.mxu0 %v25396_v4  ;;  %v25465_v4 = vld [vmem:[%s37922_s1 + $0x8b0] ss:$100 sps:$4 sm:$0xff]  }
 0x11f   : > { %8438 = vmatpush1.bf16.msra.mxu1 %v25393_v3  ;;  %8361 = vmatprep.subr.bf16.mxu0 %v25404_v10  ;;  %v25470_v3 = vld [vmem:[%s37922_s1 + $0x201c] ss:$100 sps:$4 sm:$0xff]  }
 0x120   : > { %8439 = vmatprep.subr.bf16.mxu1 %v25401_v9  ;;  %8469 = vmatprep.mubr.bf16.mxu1 %v29159_v47  ;;  %v25476_v9 = vld [vmem:[%s37922_s1 + $0x1f54] ss:$100 sps:$4 sm:$0xff]  }
 0x122   : > { %8362 = vmatpush1.bf16.msra.mxu0 %v25402_v14  ;;  %v25474_v14 = vld [vmem:[%s37922_s1 + $0x1f50] ss:$100 sps:$4 sm:$0xff]  }
 0x123   : > { %8440 = vmatpush1.bf16.msra.mxu1 %v25399_v12  ;;  %8363 = vmatprep.subr.bf16.mxu0 %v25410_v18  ;;  %v25471_v12 = vld [vmem:[%s37922_s1 + $0x7e8] ss:$100 sps:$4 sm:$0xff]  }
 0x124   : > { %8441 = vmatprep.subr.bf16.mxu1 %v25407_v15  ;;  %v25479_v18 = vld [vmem:[%s37922_s1 + $0x724] ss:$100 sps:$4 sm:$0xff]  }
 0x126   : > { %8364 = vmatpush1.bf16.msra.mxu0 %v25408_v20 }
 0x127   : > { %8442 = vmatpush1.bf16.msra.mxu1 %v25405_v19  ;;  %8365 = vmatprep.subr.bf16.mxu0 %v25416_v22 }
 0x128   : > { %8443 = vmatprep.subr.bf16.mxu1 %v25413_v21 }
 0x12a   : > { %8366 = vmatpush1.bf16.msra.mxu0 %v25414_v24  ;;  %v25480_v24 = vld [vmem:[%s37922_s1 + $0x1210] ss:$100 sps:$4 sm:$0xff]  }
 0x12b   : > { %8444 = vmatpush1.bf16.msra.mxu1 %v25411_v23  ;;  %8367 = vmatprep.subr.bf16.mxu0 %v25422_v27  ;;  %v25477_v23 = vld [vmem:[%s37922_s1 + $0x720] ss:$100 sps:$4 sm:$0xff]   ;;  %v25486_v27 = vld [vmem:[%s37922_s1 + $0x1148] ss:$100 sps:$4 sm:$0xff]  }
 0x12c   : > { %8445 = vmatprep.subr.bf16.mxu1 %v25419_v26 }
 0x12e   : > { %8368 = vmatpush1.bf16.msra.mxu0 %v25420_v29 }
 0x12f   : > { %8446 = vmatpush1.bf16.msra.mxu1 %v25417_v28  ;;  %8369 = vmatprep.subr.bf16.mxu0 %v25428_v32  ;;  %v25494_v32 = vld [vmem:[%s37922_s1 + $0x1084] ss:$100 sps:$4 sm:$0xff]  }
 0x130   : > { %8447 = vmatprep.subr.bf16.mxu1 %v25425_v30  ;;  %v25491_v30 = vld [vmem:[%s37922_s1 + $0x1e94] ss:$100 sps:$4 sm:$0xff]  }
 0x132   : > { %8370 = vmatpush1.bf16.msra.mxu0 %v25426_v36  ;;  %v25492_v36 = vld [vmem:[%s37922_s1 + $0x1080] ss:$100 sps:$4 sm:$0xff]  }
 0x133   : > { %8448 = vmatpush1.bf16.msra.mxu1 %v25423_v34  ;;  %8371 = vmatprep.subr.bf16.mxu0 %v25434_v38  ;;  %v25489_v34 = vld [vmem:[%s37922_s1 + $0x1e90] ss:$100 sps:$4 sm:$0xff]  }
 0x134   : > { %8449 = vmatprep.subr.bf16.mxu1 %v25431_v37  ;;  %v25497_v38 = vld [vmem:[%s37922_s1 + $0x1dcc] ss:$100 sps:$4 sm:$0xff]  }
 0x136   : > { %8372 = vmatpush2.bf16.msra.mxu0 %v25432_v39  ;;  %v25500_v39 = vld [vmem:[%s37922_s1 + $0xfbc] ss:$100 sps:$4 sm:$0xff]  }
 0x137   : > { %8450 = vmatpush1.bf16.msra.mxu1 %v25429_v17  ;;  %8373 = vmatprep.subr.bf16.mxu0 %v25440_v41  ;;  %v25498_v41 = vld [vmem:[%s37922_s1 + $0xfb8] ss:$100 sps:$4 sm:$0xff]  }
 0x138   : > { %8451 = vmatprep.subr.bf16.mxu1 %v25437_v40  ;;  %v25495_v40 = vld [vmem:[%s37922_s1 + $0x1dc8] ss:$100 sps:$4 sm:$0xff]  }
 0x13a   : > { %8374 = vmatpush2.bf16.msra.mxu0 %v25438_v43  ;;  %v25506_v43 = vld [vmem:[%s37922_s1 + $0xef4] ss:$100 sps:$4 sm:$0xff]  }
 0x13b   : > { %8452 = vmatpush1.bf16.msra.mxu1 %v25435_v42  ;;  %8375 = vmatprep.subr.bf16.mxu0 %v25446_v45  ;;  %v25503_v42 = vld [vmem:[%s37922_s1 + $0x1d04] ss:$100 sps:$4 sm:$0xff]   ;;  %v25504_v45 = vld [vmem:[%s37922_s1 + $0xef0] ss:$100 sps:$4 sm:$0xff]  }
 0x13c   : > { %8453 = vmatprep.subr.bf16.mxu1 %v25443_v44  ;;  %v25501_v44 = vld [vmem:[%s37922_s1 + $0x1d00] ss:$100 sps:$4 sm:$0xff]  }
 0x13e   : > { %8376 = vmatpush2.bf16.msra.mxu0 %v25444_v48  ;;  %v25512_v48 = vld [vmem:[%s37922_s1 + $0xe2c] ss:$100 sps:$4 sm:$0xff]  }
 0x13f   : > { %8454 = vmatpush2.bf16.msra.mxu1 %v25441_v46  ;;  %8377 = vmatprep.subr.bf16.mxu0 %v25452_v50  ;;  %v25509_v46 = vld [vmem:[%s37922_s1 + $0x1c3c] ss:$100 sps:$4 sm:$0xff]   ;;  %v25510_v50 = vld [vmem:[%s37922_s1 + $0xe28] ss:$100 sps:$4 sm:$0xff]  }
 0x140   : > { %8455 = vmatprep.subr.bf16.mxu1 %v25449_v49  ;;  %v25507_v49 = vld [vmem:[%s37922_s1 + $0x1c38] ss:$100 sps:$4 sm:$0xff]  }
 0x142   : > { %8378 = vmatpush2.bf16.msra.mxu0 %v25450_v54  ;;  %v25518_v54 = vld [vmem:[%s37922_s1 + $0xd64] ss:$100 sps:$4 sm:$0xff]  }
 0x143   : > { %8456 = vmatpush2.bf16.msra.mxu1 %v25447_v53  ;;  %8379 = vmatprep.subr.bf16.mxu0 %v25458_v56  ;;  %v25515_v53 = vld [vmem:[%s37922_s1 + $0x1b74] ss:$100 sps:$4 sm:$0xff]   ;;  %v25516_v56 = vld [vmem:[%s37922_s1 + $0xd60] ss:$100 sps:$4 sm:$0xff]  }
 0x144   : > { %8457 = vmatprep.subr.bf16.mxu1 %v25455_v55  ;;  %v25513_v55 = vld [vmem:[%s37922_s1 + $0x1b70] ss:$100 sps:$4 sm:$0xff]  }
 0x146   : > { %8380 = vmatpush2.bf16.msra.mxu0 %v25456_v59  ;;  %v25524_v59 = vld [vmem:[%s37922_s1 + $0xc9c] ss:$100 sps:$4 sm:$0xff]  }
 0x147   : > { %8458 = vmatpush2.bf16.msra.mxu1 %v25453_v57  ;;  %8381 = vmatprep.subr.bf16.mxu0 %v25464_v61  ;;  %v25521_v57 = vld [vmem:[%s37922_s1 + $0x1aac] ss:$100 sps:$4 sm:$0xff]   ;;  %v25522_v61 = vld [vmem:[%s37922_s1 + $0xc98] ss:$100 sps:$4 sm:$0xff]  }
 0x148   : > { %8459 = vmatprep.subr.bf16.mxu1 %v25461_v60  ;;  %v25519_v60 = vld [vmem:[%s37922_s1 + $0x1aa8] ss:$100 sps:$4 sm:$0xff]  }
 0x14a   : > { %8382 = vmatpush2.bf16.msra.mxu0 %v25462_v63  ;;  %v25530_v63 = vld [vmem:[%s37922_s1 + $0x1854] ss:$100 sps:$4 sm:$0xff]  }
 0x14b   : > { %8460 = vmatpush2.bf16.msra.mxu1 %v25459_v62  ;;  %8383 = vmatprep.subr.bf16.mxu0 %v25470_v3  ;;  %v25527_v62 = vld [vmem:[%s37922_s1 + $0x19e4] ss:$100 sps:$4 sm:$0xff]   ;;  %v25528_v3 = vld [vmem:[%s37922_s1 + $0x1850] ss:$100 sps:$4 sm:$0xff]  }
 0x14c   : > { %8461 = vmatprep.subr.bf16.mxu1 %v25467_v2  ;;  %v25525_v2 = vld [vmem:[%s37922_s1 + $0x19e0] ss:$100 sps:$4 sm:$0xff]  }
 0x14d   : > { %v8061_v10 = vpop.f32.mrf.mxu0 }
 0x14e   : > { %v8062_v11 = vadd.f32 %v8061_v10, %v29863_v52  ;;  %8384 = vmatpush2.bf16.msra.mxu0 %v25468_v5  ;;  %v25482_v52 = vld [vmem:[%s37922_s1 + $0x1214] ss:$100 sps:$4 sm:$0xff]   ;;  %v25536_v5 = vld [vmem:[%s37922_s1 + $0x178c] ss:$100 sps:$4 sm:$0xff]  }
 0x14f   : > { %8462 = vmatpush2.bf16.msra.mxu1 %v25465_v4  ;;  %v8063_v15 = vpop.f32.mrf.mxu0  ;;  %8385 = vmatprep.subr.bf16.mxu0 %v25476_v9  ;;  %v25533_v4 = vld [vmem:[%s37922_s1 + $0x191c] ss:$100 sps:$4 sm:$0xff]   ;;  %v25534_v9 = vld [vmem:[%s37922_s1 + $0x1788] ss:$100 sps:$4 sm:$0xff]   ;;  %v25539_v10 = vld [vmem:[%s37922_s1 + $0x24d4] ss:$100 sps:$4 sm:$0xff]  }
 0x150   : > { %8463 = vmatprep.subr.bf16.mxu1 %v25473_v8  ;;  %v30066_v19 = vadd.f32 %v29884_v0, %v8062_v11  ;;  %v8064_v20 = vadd.f32 %v8063_v15, %v29871_v58  ;;  %v25485_v58 = vld [vmem:[%s37922_s1 + $0x65c] ss:$100 sps:$4 sm:$0xff]   ;;  %v25488_v0 = vld [vmem:[%s37922_s1 + $0x114c] ss:$100 sps:$4 sm:$0xff]   ;;  %v25542_v11 = vld [vmem:[%s37922_s1 + $0x16c4] ss:$100 sps:$4 sm:$0xff]  }
 0x151   : > { %v8065_v21 = vpop.f32.mrf.mxu0  ;;  %v25531_v8 = vld [vmem:[%s37922_s1 + $0x1918] ss:$100 sps:$4 sm:$0xff]   ;;  %v25545_v15 = vld [vmem:[%s37922_s1 + $0x240c] ss:$100 sps:$4 sm:$0xff]  }
 0x152   : > { %v30070_v22 = vadd.f32 %v29886_v1, %v8064_v20  ;;  %8386 = vmatpush2.bf16.msra.mxu0 %v25474_v14  ;;  %v25483_v1 = vld [vmem:[%s37922_s1 + $0x658] ss:$100 sps:$4 sm:$0xff]   ;;  %v25540_v14 = vld [vmem:[%s37922_s1 + $0x16c0] ss:$100 sps:$4 sm:$0xff]  }
 0x153   : > { %8464 = vmatpush2.bf16.msra.mxu1 %v25471_v12  ;;  %v8066_v26 = vpop.f32.mrf.mxu0  ;;  %8478 = vmatprep.subr.bf16.mxu0 %v25482_v52  ;;  %v25537_v12 = vld [vmem:[%s37922_s1 + $0x24d0] ss:$100 sps:$4 sm:$0xff]   ;;  %v25543_v52 = vld [vmem:[%s37922_s1 + $0x2408] ss:$100 sps:$4 sm:$0xff]   ;;  %v25546_v20 = vld [vmem:[%s37922_s1 + $0x15f8] ss:$100 sps:$4 sm:$0xff]  }
 0x154   : > { %8465 = vmatprep.subr.bf16.mxu1 %v25479_v18  ;;  %v25548_v18 = vld [vmem:[%s37922_s1 + $0x15fc] ss:$100 sps:$4 sm:$0xff]   ;;  %v25551_v21 = vld [vmem:[%s37922_s1 + $0x2344] ss:$100 sps:$4 sm:$0xff]   ;;  %v25552_v26 = vld [vmem:[%s37922_s1 + $0x1530] ss:$100 sps:$4 sm:$0xff]  }
 0x155   : > { %8388 = vmatmul.mubr.bf16.vlgmr.msra.gmra.mxu0 %v29438_v16 }
 0x156   : > { %v30090_v28 = vpop.f32.mrf.mxu1  ;;  %8479 = vmatpush1.bf16.msra.mxu0 %v25480_v24  ;;  %8510 = vmatprep.mubr.bf16.mxu0 %v29168_v51  ;;  %v25549_v24 = vld [vmem:[%s37922_s1 + $0x2340] ss:$100 sps:$4 sm:$0xff]  }
 0x157   : > { %8466 = vmatpush2.bf16.msra.mxu1 %v25477_v23  ;;  %8480 = vmatprep.subr.bf16.mxu0 %v25488_v0  ;;  %v25554_v23 = vld [vmem:[%s37922_s1 + $0x1534] ss:$100 sps:$4 sm:$0xff]   ;;  %v25560_v0 = vld [vmem:[%s37922_s1 + $0x146c] ss:$100 sps:$4 sm:$0xff]  }
 0x158   : > { %v30093_v29 = vpop.f32.mrf.mxu1  ;;  %8467 = vmatprep.subr.bf16.mxu1 %v25485_v58  ;;  %v25557_v58 = vld [vmem:[%s37922_s1 + $0x227c] ss:$100 sps:$4 sm:$0xff]  }
 0x15a   : > { %v8147_v37 = vpop.f32.mrf.mxu1  ;;  %8481 = vmatpush1.bf16.msra.mxu0 %v25486_v27  ;;  %v30240_v27 = vsub.s32 3, %v29808_v25 }
 0x15b   : > { %8468 = vmatpush2.bf16.msra.mxu1 %v25483_v1  ;;  %8482 = vmatprep.subr.bf16.mxu0 %v25494_v32  ;;  %v30237_v1 = vsub.s32 2, %v29808_v25  ;;  %v25558_v32 = vld [vmem:[%s37922_s1 + $0x1468] ss:$100 sps:$4 sm:$0xff]   ;;  %v30257_v37 = vld [vmem:[%s37923_s2] sm:$0xff] }
 0x15c   : > { %v8148_v17 = vpop.f32.mrf.mxu1  ;;  %8519 = vmatprep.subr.bf16.mxu1 %v25491_v30  ;;  %v25555_v30 = vld [vmem:[%s37922_s1 + $0x2278] ss:$100 sps:$4 sm:$0xff]  }
 0x15d   : > { %v1633_v17 = vrot.slane %v30257_v37, %v30240_v27 }
 0x15e   : > { %8470 = vmatmul.mubr.bf16.vlgmr.msra.gmra.mxu1 %v29226_v6  ;;  %8483 = vmatpush1.bf16.msra.mxu0 %v25492_v36  ;;  %v25566_v36 = vld [vmem:[%s37922_s1 + $0x13a4] ss:$100 sps:$4 sm:$0xff]  }
 0x15f   : > { %8520 = vmatpush1.bf16.msra.mxu1 %v25489_v34  ;;  %8484 = vmatprep.subr.bf16.mxu0 %v25500_v39  ;;  %v25563_v34 = vld [vmem:[%s37922_s1 + $0x21b4] ss:$100 sps:$4 sm:$0xff]  }
 0x160   : > { %8521 = vmatprep.subr.bf16.mxu1 %v25497_v38  ;;  %8551 = vmatprep.mubr.bf16.mxu1 %v29310_v33  ;;  %v1629_v38 = vrot.slane %v30257_v37, %v30237_v1  ;;  %v25561_v39 = vld [vmem:[%s37922_s1 + $0x21b0] ss:$100 sps:$4 sm:$0xff]  }
 0x162   : > { %8485 = vmatpush1.bf16.msra.mxu0 %v25498_v41  ;;  %v25569_v41 = vld [vmem:[%s37922_s1 + $0x20ec] ss:$100 sps:$4 sm:$0xff]  }
 0x163   : > { %8522 = vmatpush1.bf16.msra.mxu1 %v25495_v40  ;;  %8486 = vmatprep.subr.bf16.mxu0 %v25506_v43  ;;  %v25564_v40 = vld [vmem:[%s37922_s1 + $0x13a0] ss:$100 sps:$4 sm:$0xff]   ;;  %v8144_v43 = vadd.f32 %v30090_v28, %v1629_v38 }
 0x164   : > { %8523 = vmatprep.subr.bf16.mxu1 %v25503_v42  ;;  %v25572_v42 = vld [vmem:[%s37922_s1 + $0x12dc] ss:$100 sps:$4 sm:$0xff]   ;;  %v25575_v28 = vld [vmem:[%s37922_s1 + $0x2024] ss:$100 sps:$4 sm:$0xff]  }
 0x165   : > { %v25600_v38 = vld [vmem:[%s37922_s1 + $0x340] ss:$100 sps:$4 sm:$0xff]  }
 0x166   : > { %8487 = vmatpush1.bf16.msra.mxu0 %v25504_v45  ;;  %v8146_v45 = vadd.f32 %v30093_v29, %v1633_v17  ;;  %v25578_v29 = vld [vmem:[%s37922_s1 + $0x259c] ss:$100 sps:$4 sm:$0xff]  }
 0x167   : > { %8524 = vmatpush1.bf16.msra.mxu1 %v25501_v44  ;;  %8488 = vmatprep.subr.bf16.mxu0 %v25512_v48  ;;  %v25567_v48 = vld [vmem:[%s37922_s1 + $0x20e8] ss:$100 sps:$4 sm:$0xff]   ;;  %v25603_v17 = vld [vmem:[%s37922_s1 + $0xfc0] ss:$100 sps:$4 sm:$0xff]  }
 0x168   : > { %8525 = vmatprep.subr.bf16.mxu1 %v25509_v46 }
 0x16a   : > { %8489 = vmatpush1.bf16.msra.mxu0 %v25510_v50 }
 0x16b   : > { %8526 = vmatpush1.bf16.msra.mxu1 %v25507_v49  ;;  %8490 = vmatprep.subr.bf16.mxu0 %v25518_v54  ;;  %v25570_v49 = vld [vmem:[%s37922_s1 + $0x12d8] ss:$100 sps:$4 sm:$0xff]  }
 0x16c   : > { %8527 = vmatprep.subr.bf16.mxu1 %v25515_v53 }
 0x16e   : > { %8491 = vmatpush1.bf16.msra.mxu0 %v25516_v56  ;;  %v25576_v56 = vld [vmem:[%s37922_s1 + $0x2598] ss:$100 sps:$4 sm:$0xff]  }
 0x16f   : > { %8528 = vmatpush1.bf16.msra.mxu1 %v25513_v55  ;;  %8492 = vmatprep.subr.bf16.mxu0 %v25524_v59  ;;  %v25573_v55 = vld [vmem:[%s37922_s1 + $0x2020] ss:$100 sps:$4 sm:$0xff]  }
 0x170   : > { %8529 = vmatprep.subr.bf16.mxu1 %v25521_v57  ;;  %v25581_v59 = vld [vmem:[%s37922_s1 + $0x1f5c] ss:$100 sps:$4 sm:$0xff]  }
 0x172   : > { %8493 = vmatpush1.bf16.msra.mxu0 %v25522_v61  ;;  %v25579_v61 = vld [vmem:[%s37922_s1 + $0x1f58] ss:$100 sps:$4 sm:$0xff]  }
 0x173   : > { %8530 = vmatpush1.bf16.msra.mxu1 %v25519_v60  ;;  %8494 = vmatprep.subr.bf16.mxu0 %v25530_v63  ;;  %v25584_v60 = vld [vmem:[%s37922_s1 + $0x59c] ss:$100 sps:$4 sm:$0xff]  }
 0x174   : > { %8531 = vmatprep.subr.bf16.mxu1 %v25527_v62 }
 0x176   : > { %8495 = vmatpush2.bf16.msra.mxu0 %v25528_v3 }
 0x177   : > { %8532 = vmatpush1.bf16.msra.mxu1 %v25525_v2  ;;  %8496 = vmatprep.subr.bf16.mxu0 %v25536_v5  ;;  %v25587_v5 = vld [vmem:[%s37922_s1 + $0x121c] ss:$100 sps:$4 sm:$0xff]  }
 0x178   : > { %8533 = vmatprep.subr.bf16.mxu1 %v25533_v4 }
 0x17a   : > { %8497 = vmatpush2.bf16.msra.mxu0 %v25534_v9 }
 0x17b   : > { %8534 = vmatpush1.bf16.msra.mxu1 %v25531_v8  ;;  %8498 = vmatprep.subr.bf16.mxu0 %v25542_v11  ;;  %v25585_v11 = vld [vmem:[%s37922_s1 + $0x1218] ss:$100 sps:$4 sm:$0xff]  }
 0x17c   : > { %8535 = vmatprep.subr.bf16.mxu1 %v25539_v10  ;;  %v25582_v10 = vld [vmem:[%s37922_s1 + $0x598] ss:$100 sps:$4 sm:$0xff]  }
 0x17e   : > { %8499 = vmatpush2.bf16.msra.mxu0 %v25540_v14 }
 0x17f   : > { %8536 = vmatpush2.bf16.msra.mxu1 %v25537_v12  ;;  %8500 = vmatprep.subr.bf16.mxu0 %v25548_v18 }
 0x180   : > { %8537 = vmatprep.subr.bf16.mxu1 %v25545_v15  ;;  %v25590_v15 = vld [vmem:[%s37922_s1 + $0x4d4] ss:$100 sps:$4 sm:$0xff]  }
 0x182   : > { %8501 = vmatpush2.bf16.msra.mxu0 %v25546_v20 }
 0x183   : > { %8538 = vmatpush2.bf16.msra.mxu1 %v25543_v52  ;;  %8502 = vmatprep.subr.bf16.mxu0 %v25554_v23  ;;  %v25588_v23 = vld [vmem:[%s37922_s1 + $0x4d0] ss:$100 sps:$4 sm:$0xff]  }
 0x184   : > { %8539 = vmatprep.subr.bf16.mxu1 %v25551_v21  ;;  %v25593_v21 = vld [vmem:[%s37922_s1 + $0x1154] ss:$100 sps:$4 sm:$0xff]  }
 0x186   : > { %8503 = vmatpush2.bf16.msra.mxu0 %v25552_v26  ;;  %v30333_v26 = vld [vmem:[%s29150_s26 + $0x18] ss:$0 sps:$4 sm:$0xff]  }
 0x187   : > { %8540 = vmatpush2.bf16.msra.mxu1 %v25549_v24  ;;  %8504 = vmatprep.subr.bf16.mxu0 %v25560_v0  ;;  %v25591_v24 = vld [vmem:[%s37922_s1 + $0x1150] ss:$100 sps:$4 sm:$0xff]  }
 0x188   : > { %8541 = vmatprep.subr.bf16.mxu1 %v25557_v58  ;;  %v25596_v58 = vld [vmem:[%s37922_s1 + $0x40c] ss:$100 sps:$4 sm:$0xff]  }
 0x189   : > { %v25599_v0 = vld [vmem:[%s37922_s1 + $0x108c] ss:$100 sps:$4 sm:$0xff]  }
 0x18a   : > { %8505 = vmatpush2.bf16.msra.mxu0 %v25558_v32  ;;  %v25597_v32 = vld [vmem:[%s37922_s1 + $0x1088] ss:$100 sps:$4 sm:$0xff]  }
 0x18b   : > { %8542 = vmatpush2.bf16.msra.mxu1 %v25555_v30  ;;  %8506 = vmatprep.subr.bf16.mxu0 %v25566_v36  ;;  %v25594_v30 = vld [vmem:[%s37922_s1 + $0x408] ss:$100 sps:$4 sm:$0xff]  }
 0x18c   : > { %8543 = vmatprep.subr.bf16.mxu1 %v25563_v34  ;;  %v25602_v34 = vld [vmem:[%s37922_s1 + $0x344] ss:$100 sps:$4 sm:$0xff]  }
 0x18d   : > { %v8184_v44 = vpop.f32.mrf.mxu0  ;;  %v25605_v36 = vld [vmem:[%s37922_s1 + $0xfc4] ss:$100 sps:$4 sm:$0xff]  }
 0x18e   : > { %v8185_v46 = vadd.f32 %v8184_v44, %v8144_v43  ;;  %8507 = vmatpush2.bf16.msra.mxu0 %v25564_v40  ;;  %v25611_v40 = vld [vmem:[%s37922_s1 + $0xefc] ss:$100 sps:$4 sm:$0xff]   ;;  %v25614_v43 = vld [vmem:[%s37922_s1 + $0x1b4] ss:$100 sps:$4 sm:$0xff]  }
 0x18f   : > { %8544 = vmatpush2.bf16.msra.mxu1 %v25561_v39  ;;  %v8186_v50 = vpop.f32.mrf.mxu0  ;;  %8508 = vmatprep.subr.bf16.mxu0 %v25572_v42  ;;  %v25608_v39 = vld [vmem:[%s37922_s1 + $0x27c] ss:$100 sps:$4 sm:$0xff]   ;;  %v25617_v44 = vld [vmem:[%s37922_s1 + $0xe34] ss:$100 sps:$4 sm:$0xff]  }
 0x190   : > { %8545 = vmatprep.subr.bf16.mxu1 %v25569_v41  ;;  %v8187_v53 = vadd.f32 %v8186_v50, %v8146_v45  ;;  %v25606_v41 = vld [vmem:[%s37922_s1 + $0x278] ss:$100 sps:$4 sm:$0xff]   ;;  %v25612_v45 = vld [vmem:[%s37922_s1 + $0x1b0] ss:$100 sps:$4 sm:$0xff]   ;;  %v25618_v50 = vld [vmem:[%s37922_s1 + $0xe8] ss:$100 sps:$4 sm:$0xff]  }
 0x191   : > { %v8188_v54 = vpop.f32.mrf.mxu0  ;;  %v25609_v42 = vld [vmem:[%s37922_s1 + $0xef8] ss:$100 sps:$4 sm:$0xff]  }
 0x192   : > { %8509 = vmatpush2.bf16.msra.mxu0 %v25570_v49  ;;  %v25623_v49 = vld [vmem:[%s37922_s1 + $0xd6c] ss:$100 sps:$4 sm:$0xff]   ;;  %v25624_v54 = vld [vmem:[%s37922_s1 + $0x20] ss:$100 sps:$4 sm:$0xff]  }
 0x193   : > { %8546 = vmatpush2.bf16.msra.mxu1 %v25567_v48  ;;  %v8189_v57 = vpop.f32.mrf.mxu0  ;;  %8574 = vmatprep.subr.bf16.mxu0 %v25578_v29  ;;  %v25620_v48 = vld [vmem:[%s37922_s1 + $0xec] ss:$100 sps:$4 sm:$0xff]   ;;  %v25626_v29 = vld [vmem:[%s37922_s1 + $0x24] ss:$100 sps:$4 sm:$0xff]  }
 0x194   : > { %8547 = vmatprep.subr.bf16.mxu1 %v25575_v28  ;;  %v25621_v28 = vld [vmem:[%s37922_s1 + $0xd68] ss:$100 sps:$4 sm:$0xff]   ;;  %v25635_v57 = vld [vmem:[%s37922_s1 + $0x185c] ss:$100 sps:$4 sm:$0xff]  }
 0x195   : > { %8511 = vmatmul.mubr.bf16.vlgmr.msra.gmra.mxu0 %v29228_v7  ;;  %v8266_v63 = vpop.f32.mrf.mxu0 }
 0x196   : > { %v8225_v62 = vpop.f32.mrf.mxu1  ;;  %8575 = vmatpush1.bf16.msra.mxu0 %v25576_v56  ;;  %8592 = vmatprep.mubr.bf16.mxu0 %v28947_v13  ;;  %v25632_v56 = vld [vmem:[%s37922_s1 + $0xbdc] ss:$100 sps:$4 sm:$0xff]  }
 0x197   : > { %v8226_v2 = vadd.f32 %v8225_v62, %v8185_v46  ;;  %8548 = vmatpush2.bf16.msra.mxu1 %v25573_v55  ;;  %v8268_v4 = vpop.f32.mrf.mxu0  ;;  %8601 = vmatprep.subr.bf16.mxu0 %v25584_v60  ;;  %v25615_v46 = vld [vmem:[%s37922_s1 + $0xe30] ss:$100 sps:$4 sm:$0xff]   ;;  %v25627_v55 = vld [vmem:[%s37922_s1 + $0xca0] ss:$100 sps:$4 sm:$0xff]   ;;  %v25633_v60 = vld [vmem:[%s37922_s1 + $0x1858] ss:$100 sps:$4 sm:$0xff]  }
 0x198   : > { %v8227_v3 = vpop.f32.mrf.mxu1  ;;  %8549 = vmatprep.subr.bf16.mxu1 %v25581_v59  ;;  %v25630_v59 = vld [vmem:[%s37922_s1 + $0xbd8] ss:$100 sps:$4 sm:$0xff]  }
 0x199   : > { %v30309_v8 = vadd.f32 %v8266_v63, %v8226_v2  ;;  %v8228_v9 = vadd.f32 %v8227_v3, %v8187_v53  ;;  %v8270_v14 = vpop.f32.mrf.mxu0  ;;  %v25629_v53 = vld [vmem:[%s37922_s1 + $0xca4] ss:$100 sps:$4 sm:$0xff]   ;;  %v25641_v62 = vld [vmem:[%s37922_s1 + $0x1794] ss:$100 sps:$4 sm:$0xff]   ;;  %v25644_v3 = vld [vmem:[%s37922_s1 + $0xa4c] ss:$100 sps:$4 sm:$0xff]  }
 0x19a   : > { %v8229_v12 = vpop.f32.mrf.mxu1  ;;  %v25636_v63 = vld [vmem:[%s37922_s1 + $0xb10] ss:$100 sps:$4 sm:$0xff]   ;;  %v25651_v14 = vld [vmem:[%s37922_s1 + $0x1600] ss:$100 sps:$4 sm:$0xff]  }
 0x19b   : > { %v30320_v18 = vadd.f32 %v8268_v4, %v8228_v9  ;;  %8550 = vmatpush2.bf16.msra.mxu1 %v25579_v61  ;;  %v8271_v20 = vpop.f32.mrf.mxu0  ;;  %v25638_v61 = vld [vmem:[%s37922_s1 + $0xb14] ss:$100 sps:$4 sm:$0xff]   ;;  %v25647_v4 = vld [vmem:[%s37922_s1 + $0x16cc] ss:$100 sps:$4 sm:$0xff]   ;;  %v25648_v12 = vld [vmem:[%s37922_s1 + $0x980] ss:$100 sps:$4 sm:$0xff]  }
 0x19c   : > { %v8230_v52 = vpop.f32.mrf.mxu1  ;;  %8642 = vmatprep.subr.bf16.mxu1 %v25587_v5  ;;  %v25639_v2 = vld [vmem:[%s37922_s1 + $0x1790] ss:$100 sps:$4 sm:$0xff]   ;;  %v25642_v5 = vld [vmem:[%s37922_s1 + $0xa48] ss:$100 sps:$4 sm:$0xff]   ;;  %v25654_v20 = vld [vmem:[%s37922_s1 + $0x8b8] ss:$100 sps:$4 sm:$0xff]  }
 0x19d   : > { %23121 = vmatmul.mubr.msk.bf16.vlgmr.msra.gmra.mxu0 %vm7941_vm0, %v30333_v26  ;;  %v25645_v9 = vld [vmem:[%s37922_s1 + $0x16c8] ss:$100 sps:$4 sm:$0xff]   ;;  %v25659_v52 = vld [vmem:[%s37922_s1 + $0x153c] ss:$100 sps:$4 sm:$0xff]  }
 0x19e   : > { %8552 = vmatmul.mubr.bf16.vlgmr.msra.gmra.mxu1 %v29438_v16  ;;  %8602 = vmatpush1.bf16.msra.mxu0 %v25582_v10  ;;  %v25650_v10 = vld [vmem:[%s37922_s1 + $0x984] ss:$100 sps:$4 sm:$0xff]  }
 0x19f   : > { %8643 = vmatpush1.bf16.msra.mxu1 %v25585_v11  ;;  %8603 = vmatprep.subr.bf16.mxu0 %v25590_v15  ;;  %v25653_v11 = vld [vmem:[%s37922_s1 + $0x1604] ss:$100 sps:$4 sm:$0xff]   ;;  %v25656_v15 = vld [vmem:[%s37922_s1 + $0x8bc] ss:$100 sps:$4 sm:$0xff]  }
 0x1a0   : > { %8644 = vmatprep.subr.bf16.mxu1 %v25593_v21  ;;  %8633 = vmatprep.mubr.bf16.mxu0 %v29159_v47  ;;  %v25657_v21 = vld [vmem:[%s37922_s1 + $0x1538] ss:$100 sps:$4 sm:$0xff]  }
 0x1a1   : > { %8674 = vmatprep.mubr.bf16.mxu1 %v29168_v51 }
 0x1a2   : > { %8604 = vmatpush1.bf16.msra.mxu0 %v25588_v23  ;;  %v25662_v23 = vld [vmem:[%s37922_s1 + $0x7f4] ss:$100 sps:$4 sm:$0xff]  }
 0x1a3   : > { %8645 = vmatpush1.bf16.msra.mxu1 %v25591_v24  ;;  %8605 = vmatprep.subr.bf16.mxu0 %v25596_v58  ;;  %v25665_v24 = vld [vmem:[%s37922_s1 + $0x1474] ss:$100 sps:$4 sm:$0xff]  }
 0x1a4   : > { %8646 = vmatprep.subr.bf16.mxu1 %v25599_v0  ;;  %v25660_v58 = vld [vmem:[%s37922_s1 + $0x7f0] ss:$100 sps:$4 sm:$0xff]  }
 0x1a5   : > { %v25663_v0 = vld [vmem:[%s37922_s1 + $0x1470] ss:$100 sps:$4 sm:$0xff]  }
 0x1a6   : > { %8606 = vmatpush1.bf16.msra.mxu0 %v25594_v30  ;;  %v30484_v30 = vsub.s32 4, %v29808_v25 }
 0x1a7   : > { %8647 = vmatpush1.bf16.msra.mxu1 %v25597_v32  ;;  %8607 = vmatprep.subr.bf16.mxu0 %v25602_v34  ;;  %v25668_v32 = vld [vmem:[%s37922_s1 + $0x72c] ss:$100 sps:$4 sm:$0xff]  }
 0x1a8   : > { %8648 = vmatprep.subr.bf16.mxu1 %v25605_v36  ;;  %v25671_v34 = vld [vmem:[%s37922_s1 + $0x13ac] ss:$100 sps:$4 sm:$0xff]   ;;  %v30493_v36 = vsub.s32 5, %v29808_v25 }
 0x1aa   : > { %8608 = vmatpush1.bf16.msra.mxu0 %v25600_v38  ;;  %v25666_v38 = vld [vmem:[%s37922_s1 + $0x728] ss:$100 sps:$4 sm:$0xff]  }
 0x1ab   : > { %8649 = vmatpush1.bf16.msra.mxu1 %v25603_v17  ;;  %8609 = vmatprep.subr.bf16.mxu0 %v25608_v39  ;;  %v25669_v17 = vld [vmem:[%s37922_s1 + $0x13a8] ss:$100 sps:$4 sm:$0xff]   ;;  %v1637_v39 = vrot.slane %v30257_v37, %v30484_v30 }
 0x1ac   : > { %8650 = vmatprep.subr.bf16.mxu1 %v25611_v40  ;;  %v25674_v40 = vld [vmem:[%s37922_s1 + $0x664] ss:$100 sps:$4 sm:$0xff]  }
 0x1ae   : > { %8610 = vmatpush1.bf16.msra.mxu0 %v25606_v41  ;;  %v25677_v41 = vld [vmem:[%s37922_s1 + $0x12e4] ss:$100 sps:$4 sm:$0xff]  }
 0x1af   : > { %8651 = vmatpush1.bf16.msra.mxu1 %v25609_v42  ;;  %8611 = vmatprep.subr.bf16.mxu0 %v25614_v43  ;;  %v1641_v42 = vrot.slane %v30257_v37, %v30493_v36  ;;  %v25672_v43 = vld [vmem:[%s37922_s1 + $0x660] ss:$100 sps:$4 sm:$0xff]  }
 0x1b0   : > { %8652 = vmatprep.subr.bf16.mxu1 %v25617_v44  ;;  %v25675_v44 = vld [vmem:[%s37922_s1 + $0x12e0] ss:$100 sps:$4 sm:$0xff]  }
 0x1b1   : > { %v25683_v37 = vld [vmem:[%s37922_s1 + $0x25a4] ss:$100 sps:$4 sm:$0xff]  }
 0x1b2   : > { %8612 = vmatpush1.bf16.msra.mxu0 %v25612_v45 }
 0x1b3   : > { %8653 = vmatpush1.bf16.msra.mxu1 %v25615_v46  ;;  %8613 = vmatprep.subr.bf16.mxu0 %v25620_v48  ;;  %v25680_v48 = vld [vmem:[%s37922_s1 + $0x1e9c] ss:$100 sps:$4 sm:$0xff]  }
 0x1b4   : > { %8654 = vmatprep.subr.bf16.mxu1 %v25623_v49 }
 0x1b6   : > { %8614 = vmatpush1.bf16.msra.mxu0 %v25618_v50 }
 0x1b7   : > { %8655 = vmatpush1.bf16.msra.mxu1 %v25621_v28  ;;  %8615 = vmatprep.subr.bf16.mxu0 %v25626_v29 }
 0x1b8   : > { %8656 = vmatprep.subr.bf16.mxu1 %v25629_v53 }
 0x1ba   : > { %8616 = vmatpush1.bf16.msra.mxu0 %v25624_v54  ;;  %v25678_v54 = vld [vmem:[%s37922_s1 + $0x1e98] ss:$100 sps:$4 sm:$0xff]  }
 0x1bb   : > { %8657 = vmatpush1.bf16.msra.mxu1 %v25627_v55  ;;  %8617 = vmatprep.subr.bf16.mxu0 %v25632_v56  ;;  %v25681_v55 = vld [vmem:[%s37922_s1 + $0x25a0] ss:$100 sps:$4 sm:$0xff]  }
 0x1bc   : > { %8658 = vmatprep.subr.bf16.mxu1 %v25635_v57 }
 0x1be   : > { %8618 = vmatpush2.bf16.msra.mxu0 %v25630_v59 }
 0x1bf   : > { %8659 = vmatpush2.bf16.msra.mxu1 %v25633_v60  ;;  %8619 = vmatprep.subr.bf16.mxu0 %v25638_v61 }
 0x1c0   : > { %8660 = vmatprep.subr.bf16.mxu1 %v25641_v62  ;;  %v25686_v62 = vld [vmem:[%s37922_s1 + $0x1dd4] ss:$100 sps:$4 sm:$0xff]  }
 0x1c2   : > { %8620 = vmatpush2.bf16.msra.mxu0 %v25636_v63  ;;  %v25689_v63 = vld [vmem:[%s37922_s1 + $0x5a4] ss:$100 sps:$4 sm:$0xff]  }
 0x1c3   : > { %8661 = vmatpush2.bf16.msra.mxu1 %v25639_v2  ;;  %8621 = vmatprep.subr.bf16.mxu0 %v25644_v3  ;;  %v25684_v2 = vld [vmem:[%s37922_s1 + $0x1dd0] ss:$100 sps:$4 sm:$0xff]  }
 0x1c4   : > { %8662 = vmatprep.subr.bf16.mxu1 %v25647_v4 }
 0x1c6   : > { %8622 = vmatpush2.bf16.msra.mxu0 %v25642_v5  ;;  %v25692_v5 = vld [vmem:[%s37922_s1 + $0x1d0c] ss:$100 sps:$4 sm:$0xff]  }
 0x1c7   : > { %8663 = vmatpush2.bf16.msra.mxu1 %v25645_v9  ;;  %8623 = vmatprep.subr.bf16.mxu0 %v25650_v10  ;;  %v25687_v9 = vld [vmem:[%s37922_s1 + $0x5a0] ss:$100 sps:$4 sm:$0xff]   ;;  %v25690_v10 = vld [vmem:[%s37922_s1 + $0x1d08] ss:$100 sps:$4 sm:$0xff]  }
 0x1c8   : > { %8664 = vmatprep.subr.bf16.mxu1 %v25653_v11 }
 0x1ca   : > { %8624 = vmatpush2.bf16.msra.mxu0 %v25648_v12 }
 0x1cb   : > { %8665 = vmatpush2.bf16.msra.mxu1 %v25651_v14  ;;  %8625 = vmatprep.subr.bf16.mxu0 %v25656_v15  ;;  %v25695_v14 = vld [vmem:[%s37922_s1 + $0x4dc] ss:$100 sps:$4 sm:$0xff]   ;;  %v25698_v15 = vld [vmem:[%s37922_s1 + $0x1c44] ss:$100 sps:$4 sm:$0xff]  }
 0x1cc   : > { %8666 = vmatprep.subr.bf16.mxu1 %v25659_v52  ;;  %v25693_v52 = vld [vmem:[%s37922_s1 + $0x4d8] ss:$100 sps:$4 sm:$0xff]  }
 0x1ce   : > { %8626 = vmatpush2.bf16.msra.mxu0 %v25654_v20  ;;  %v25696_v20 = vld [vmem:[%s37922_s1 + $0x1c40] ss:$100 sps:$4 sm:$0xff]  }
 0x1cf   : > { %8667 = vmatpush2.bf16.msra.mxu1 %v25657_v21  ;;  %8627 = vmatprep.subr.bf16.mxu0 %v25662_v23  ;;  %v25701_v21 = vld [vmem:[%s37922_s1 + $0x414] ss:$100 sps:$4 sm:$0xff]  }
 0x1d0   : > { %8668 = vmatprep.subr.bf16.mxu1 %v25665_v24  ;;  %v25699_v23 = vld [vmem:[%s37922_s1 + $0x410] ss:$100 sps:$4 sm:$0xff]   ;;  %v25702_v24 = vld [vmem:[%s37922_s1 + $0x1b78] ss:$100 sps:$4 sm:$0xff]  }
 0x1d2   : > { %8628 = vmatpush2.bf16.msra.mxu0 %v25660_v58  ;;  %v25707_v58 = vld [vmem:[%s37922_s1 + $0x34c] ss:$100 sps:$4 sm:$0xff]  }
 0x1d3   : > { %8669 = vmatpush2.bf16.msra.mxu1 %v25663_v0  ;;  %8629 = vmatprep.subr.bf16.mxu0 %v25668_v32  ;;  %v25710_v0 = vld [vmem:[%s37922_s1 + $0x1ab4] ss:$100 sps:$4 sm:$0xff]   ;;  %v25705_v32 = vld [vmem:[%s37922_s1 + $0x348] ss:$100 sps:$4 sm:$0xff]  }
 0x1d4   : > { %8670 = vmatprep.subr.bf16.mxu1 %v25671_v34  ;;  %v25708_v34 = vld [vmem:[%s37922_s1 + $0x1ab0] ss:$100 sps:$4 sm:$0xff]  }
 0x1d5   : > { %v8307_v45 = vpop.f32.mrf.mxu0 }
 0x1d6   : > { %v8348_v46 = vpop.f32.mrf.mxu1  ;;  %v8308_v49 = vadd.f32 %v8307_v45, %v1637_v39  ;;  %8630 = vmatpush2.bf16.msra.mxu0 %v25666_v38  ;;  %v25713_v38 = vld [vmem:[%s37922_s1 + $0x284] ss:$100 sps:$4 sm:$0xff]   ;;  %v25725_v45 = vld [vmem:[%s37922_s1 + $0xf4] ss:$100 sps:$4 sm:$0xff]  }
 0x1d7   : > { %8671 = vmatpush2.bf16.msra.mxu1 %v25669_v17  ;;  %v8309_v50 = vpop.f32.mrf.mxu0  ;;  %8631 = vmatprep.subr.bf16.mxu0 %v25674_v40  ;;  %v25716_v17 = vld [vmem:[%s37922_s1 + $0x19ec] ss:$100 sps:$4 sm:$0xff]   ;;  %v25711_v39 = vld [vmem:[%s37922_s1 + $0x280] ss:$100 sps:$4 sm:$0xff]  }
 0x1d8   : > { %v8350_v28 = vpop.f32.mrf.mxu1  ;;  %8672 = vmatprep.subr.bf16.mxu1 %v25677_v41  ;;  %v30523_v29 = vadd.f32 %v8348_v46, %v8308_v49  ;;  %v8310_v53 = vadd.f32 %v8309_v50, %v1641_v42  ;;  %v25714_v40 = vld [vmem:[%s37922_s1 + $0x19e8] ss:$100 sps:$4 sm:$0xff]   ;;  %v25719_v41 = vld [vmem:[%s37922_s1 + $0x1bc] ss:$100 sps:$4 sm:$0xff]  }
 0x1d9   : > { %v8311_v56 = vpop.f32.mrf.mxu0  ;;  %v25722_v42 = vld [vmem:[%s37922_s1 + $0x1924] ss:$100 sps:$4 sm:$0xff]   ;;  %v25728_v46 = vld [vmem:[%s37922_s1 + $0x24dc] ss:$100 sps:$4 sm:$0xff]   ;;  %v25731_v50 = vld [vmem:[%s37922_s1 + $0x2c] ss:$100 sps:$4 sm:$0xff]  }
 0x1da   : > { %v8352_v57 = vpop.f32.mrf.mxu1  ;;  %v30531_v59 = vadd.f32 %v8350_v28, %v8310_v53  ;;  %8632 = vmatpush2.bf16.msra.mxu0 %v25672_v43  ;;  %v25717_v43 = vld [vmem:[%s37922_s1 + $0x1b8] ss:$100 sps:$4 sm:$0xff]   ;;  %v25732_v53 = vld [vmem:[%s37922_s1 + $0x2410] ss:$100 sps:$4 sm:$0xff]   ;;  %v25735_v56 = vld [vmem:[%s37922_s1 + $0xbe0] ss:$100 sps:$4 sm:$0xff]  }
 0x1db   : > { %8673 = vmatpush2.bf16.msra.mxu1 %v25675_v44  ;;  %v8312_v60 = vpop.f32.mrf.mxu0  ;;  %8683 = vmatprep.subr.bf16.mxu0 %v25680_v48  ;;  %v25720_v44 = vld [vmem:[%s37922_s1 + $0x1920] ss:$100 sps:$4 sm:$0xff]   ;;  %v25723_v48 = vld [vmem:[%s37922_s1 + $0xf0] ss:$100 sps:$4 sm:$0xff]   ;;  %v25726_v49 = vld [vmem:[%s37922_s1 + $0x24d8] ss:$100 sps:$4 sm:$0xff]  }
 0x1dc   : > { %v8353_v61 = vpop.f32.mrf.mxu1  ;;  %8738 = vmatprep.subr.bf16.mxu1 %v25683_v37  ;;  %v25734_v28 = vld [vmem:[%s37922_s1 + $0x2414] ss:$100 sps:$4 sm:$0xff]   ;;  %v25729_v37 = vld [vmem:[%s37922_s1 + $0x28] ss:$100 sps:$4 sm:$0xff]   ;;  %v25743_v60 = vld [vmem:[%s37922_s1 + $0xb1c] ss:$100 sps:$4 sm:$0xff]  }
 0x1dd   : > { %8634 = vmatmul.mubr.bf16.vlgmr.msra.gmra.mxu0 %v29226_v6  ;;  %v25738_v57 = vld [vmem:[%s37922_s1 + $0x2348] ss:$100 sps:$4 sm:$0xff]  }
 0x1de   : > { %8675 = vmatmul.mubr.bf16.vlgmr.msra.gmra.mxu1 %v29228_v7  ;;  %v30544_v3 = vpop.f32.mrf.mxu1  ;;  %8684 = vmatpush1.bf16.msra.mxu0 %v25678_v54  ;;  %v25737_v54 = vld [vmem:[%s37922_s1 + $0xbe4] ss:$100 sps:$4 sm:$0xff]  }
 0x1df   : > { %8739 = vmatpush1.bf16.msra.mxu1 %v25681_v55  ;;  %8685 = vmatprep.subr.bf16.mxu0 %v25686_v62  ;;  %v25740_v55 = vld [vmem:[%s37922_s1 + $0x234c] ss:$100 sps:$4 sm:$0xff]   ;;  %v25746_v61 = vld [vmem:[%s37922_s1 + $0x2284] ss:$100 sps:$4 sm:$0xff]   ;;  %v25741_v62 = vld [vmem:[%s37922_s1 + $0xb18] ss:$100 sps:$4 sm:$0xff]  }
 0x1e0   : > { %v30546_v4 = vpop.f32.mrf.mxu1  ;;  %8756 = vmatprep.mubr.bf16.mxu1 %v28947_v13  ;;  %8765 = vmatprep.subr.bf16.mxu1 %v25689_v63  ;;  %v25744_v63 = vld [vmem:[%s37922_s1 + $0x2280] ss:$100 sps:$4 sm:$0xff]  }
 0x1e1   : > { %8715 = vmatprep.mubr.bf16.mxu0 %v29310_v33 }
 0x1e2   : > { %v8434_v11 = vpop.f32.mrf.mxu1  ;;  %8686 = vmatpush1.bf16.msra.mxu0 %v25684_v2  ;;  %v25749_v2 = vld [vmem:[%s37922_s1 + $0xa54] ss:$100 sps:$4 sm:$0xff]  }
 0x1e3   : > { %8687 = vmatprep.subr.bf16.mxu0 %v25692_v5  ;;  %v25752_v5 = vld [vmem:[%s37922_s1 + $0x21bc] ss:$100 sps:$4 sm:$0xff]   ;;  %v25755_v11 = vld [vmem:[%s37922_s1 + $0x98c] ss:$100 sps:$4 sm:$0xff]  }
 0x1e4   : > { %v8435_v12 = vpop.f32.mrf.mxu1 }
 0x1e5   : > { %v25758_v12 = vld [vmem:[%s37922_s1 + $0x20f4] ss:$100 sps:$4 sm:$0xff]  }
 0x1e6   : > { %23122 = vmatmul.mubr.msk.bf16.vlgmr.msra.gmra.mxu1 %vm7941_vm0, %v30333_v26  ;;  %8688 = vmatpush1.bf16.msra.mxu0 %v25690_v10  ;;  %v25704_v26 = vld [vmem:[%s37922_s1 + $0x1b7c] ss:$100 sps:$4 sm:$0xff]  }
 0x1e7   : > { %8766 = vmatpush1.bf16.msra.mxu1 %v25687_v9  ;;  %8689 = vmatprep.subr.bf16.mxu0 %v25698_v15  ;;  %v25747_v9 = vld [vmem:[%s37922_s1 + $0xa50] ss:$100 sps:$4 sm:$0xff]   ;;  %v25750_v10 = vld [vmem:[%s37922_s1 + $0x21b8] ss:$100 sps:$4 sm:$0xff]  }
 0x1e8   : > { %8767 = vmatprep.subr.bf16.mxu1 %v25695_v14  ;;  %8797 = vmatprep.mubr.bf16.mxu1 %v29159_v47  ;;  %v25753_v14 = vld [vmem:[%s37922_s1 + $0x988] ss:$100 sps:$4 sm:$0xff]   ;;  %v25756_v15 = vld [vmem:[%s37922_s1 + $0x20f0] ss:$100 sps:$4 sm:$0xff]  }
 0x1ea   : > { %8690 = vmatpush1.bf16.msra.mxu0 %v25696_v20  ;;  %v25764_v20 = vld [vmem:[%s37922_s1 + $0x202c] ss:$100 sps:$4 sm:$0xff]  }
 0x1eb   : > { %8768 = vmatpush1.bf16.msra.mxu1 %v25693_v52  ;;  %8691 = vmatprep.subr.bf16.mxu0 %v25704_v26  ;;  %v25761_v52 = vld [vmem:[%s37922_s1 + $0x8c4] ss:$100 sps:$4 sm:$0xff]  }
 0x1ec   : > { %8769 = vmatprep.subr.bf16.mxu1 %v25701_v21  ;;  %v25759_v21 = vld [vmem:[%s37922_s1 + $0x8c0] ss:$100 sps:$4 sm:$0xff]   ;;  %v25762_v26 = vld [vmem:[%s37922_s1 + $0x2028] ss:$100 sps:$4 sm:$0xff]  }
 0x1ee   : > { %8692 = vmatpush1.bf16.msra.mxu0 %v25702_v24  ;;  %v25770_v24 = vld [vmem:[%s37922_s1 + $0x1f64] ss:$100 sps:$4 sm:$0xff]  }
 0x1ef   : > { %8770 = vmatpush1.bf16.msra.mxu1 %v25699_v23  ;;  %8693 = vmatprep.subr.bf16.mxu0 %v25710_v0  ;;  %v25767_v23 = vld [vmem:[%s37922_s1 + $0x7fc] ss:$100 sps:$4 sm:$0xff]  }
 0x1f0   : > { %8771 = vmatprep.subr.bf16.mxu1 %v25707_v58 }
 0x1f2   : > { %8694 = vmatpush1.bf16.msra.mxu0 %v25708_v34  ;;  %v25768_v34 = vld [vmem:[%s37922_s1 + $0x1f60] ss:$100 sps:$4 sm:$0xff]  }
 0x1f3   : > { %8772 = vmatpush1.bf16.msra.mxu1 %v25705_v32  ;;  %8695 = vmatprep.subr.bf16.mxu0 %v25716_v17  ;;  %v25765_v32 = vld [vmem:[%s37922_s1 + $0x7f8] ss:$100 sps:$4 sm:$0xff]  }
 0x1f4   : > { %8773 = vmatprep.subr.bf16.mxu1 %v25713_v38  ;;  %v25773_v17 = vld [vmem:[%s37922_s1 + $0x734] ss:$100 sps:$4 sm:$0xff]  }
 0x1f6   : > { %8696 = vmatpush1.bf16.msra.mxu0 %v25714_v40 }
 0x1f7   : > { %8774 = vmatpush1.bf16.msra.mxu1 %v25711_v39  ;;  %8697 = vmatprep.subr.bf16.mxu0 %v25722_v42 }
 0x1f8   : > { %8775 = vmatprep.subr.bf16.mxu1 %v25719_v41 }
 0x1fa   : > { %8698 = vmatpush1.bf16.msra.mxu0 %v25720_v44  ;;  %v25774_v44 = vld [vmem:[%s37922_s1 + $0x1220] ss:$100 sps:$4 sm:$0xff]  }
 0x1fb   : > { %8776 = vmatpush1.bf16.msra.mxu1 %v25717_v43  ;;  %8699 = vmatprep.subr.bf16.mxu0 %v25728_v46  ;;  %v25771_v43 = vld [vmem:[%s37922_s1 + $0x730] ss:$100 sps:$4 sm:$0xff]   ;;  %v25780_v46 = vld [vmem:[%s37922_s1 + $0x1158] ss:$100 sps:$4 sm:$0xff]  }
 0x1fc   : > { %8777 = vmatprep.subr.bf16.mxu1 %v25725_v45 }
 0x1fe   : > { %8700 = vmatpush2.bf16.msra.mxu0 %v25726_v49 }
 0x1ff   : > { %8778 = vmatpush1.bf16.msra.mxu1 %v25723_v48  ;;  %8701 = vmatprep.subr.bf16.mxu0 %v25734_v28  ;;  %v25788_v28 = vld [vmem:[%s37922_s1 + $0x1094] ss:$100 sps:$4 sm:$0xff]  }
 0x200   : > { %8779 = vmatprep.subr.bf16.mxu1 %v25731_v50  ;;  %v25785_v50 = vld [vmem:[%s37922_s1 + $0x1ea4] ss:$100 sps:$4 sm:$0xff]  }
 0x202   : > { %8702 = vmatpush2.bf16.msra.mxu0 %v25732_v53  ;;  %v25786_v53 = vld [vmem:[%s37922_s1 + $0x1090] ss:$100 sps:$4 sm:$0xff]  }
 0x203   : > { %8780 = vmatpush1.bf16.msra.mxu1 %v25729_v37  ;;  %8703 = vmatprep.subr.bf16.mxu0 %v25740_v55  ;;  %v25783_v37 = vld [vmem:[%s37922_s1 + $0x1ea0] ss:$100 sps:$4 sm:$0xff]  }
 0x204   : > { %8781 = vmatprep.subr.bf16.mxu1 %v25737_v54  ;;  %v25791_v55 = vld [vmem:[%s37922_s1 + $0x1ddc] ss:$100 sps:$4 sm:$0xff]  }
 0x206   : > { %8704 = vmatpush2.bf16.msra.mxu0 %v25738_v57  ;;  %v25794_v57 = vld [vmem:[%s37922_s1 + $0xfcc] ss:$100 sps:$4 sm:$0xff]  }
 0x207   : > { %8782 = vmatpush2.bf16.msra.mxu1 %v25735_v56  ;;  %8705 = vmatprep.subr.bf16.mxu0 %v25746_v61  ;;  %v25792_v61 = vld [vmem:[%s37922_s1 + $0xfc8] ss:$100 sps:$4 sm:$0xff]  }
 0x208   : > { %8783 = vmatprep.subr.bf16.mxu1 %v25743_v60  ;;  %v25789_v60 = vld [vmem:[%s37922_s1 + $0x1dd8] ss:$100 sps:$4 sm:$0xff]  }
 0x20a   : > { %8706 = vmatpush2.bf16.msra.mxu0 %v25744_v63  ;;  %v25800_v63 = vld [vmem:[%s37922_s1 + $0xf04] ss:$100 sps:$4 sm:$0xff]  }
 0x20b   : > { %8784 = vmatpush2.bf16.msra.mxu1 %v25741_v62  ;;  %8707 = vmatprep.subr.bf16.mxu0 %v25752_v5  ;;  %v25797_v62 = vld [vmem:[%s37922_s1 + $0x1d14] ss:$100 sps:$4 sm:$0xff]   ;;  %v25798_v5 = vld [vmem:[%s37922_s1 + $0xf00] ss:$100 sps:$4 sm:$0xff]  }
 0x20c   : > { %8785 = vmatprep.subr.bf16.mxu1 %v25749_v2  ;;  %v25795_v2 = vld [vmem:[%s37922_s1 + $0x1d10] ss:$100 sps:$4 sm:$0xff]  }
 0x20e   : > { %8708 = vmatpush2.bf16.msra.mxu0 %v25750_v10  ;;  %v25806_v10 = vld [vmem:[%s37922_s1 + $0xe3c] ss:$100 sps:$4 sm:$0xff]  }
 0x20f   : > { %8786 = vmatpush2.bf16.msra.mxu1 %v25747_v9  ;;  %8709 = vmatprep.subr.bf16.mxu0 %v25758_v12  ;;  %v25803_v9 = vld [vmem:[%s37922_s1 + $0x1c4c] ss:$100 sps:$4 sm:$0xff]   ;;  %v25804_v12 = vld [vmem:[%s37922_s1 + $0xe38] ss:$100 sps:$4 sm:$0xff]  }
 0x210   : > { %8787 = vmatprep.subr.bf16.mxu1 %v25755_v11  ;;  %v25801_v11 = vld [vmem:[%s37922_s1 + $0x1c48] ss:$100 sps:$4 sm:$0xff]  }
 0x212   : > { %8710 = vmatpush2.bf16.msra.mxu0 %v25756_v15  ;;  %v25812_v15 = vld [vmem:[%s37922_s1 + $0xd74] ss:$100 sps:$4 sm:$0xff]  }
 0x213   : > { %8788 = vmatpush2.bf16.msra.mxu1 %v25753_v14  ;;  %8711 = vmatprep.subr.bf16.mxu0 %v25764_v20  ;;  %v25809_v14 = vld [vmem:[%s37922_s1 + $0x1b84] ss:$100 sps:$4 sm:$0xff]   ;;  %v25810_v20 = vld [vmem:[%s37922_s1 + $0xd70] ss:$100 sps:$4 sm:$0xff]  }
 0x214   : > { %8789 = vmatprep.subr.bf16.mxu1 %v25761_v52  ;;  %v25807_v52 = vld [vmem:[%s37922_s1 + $0x1b80] ss:$100 sps:$4 sm:$0xff]  }
 0x215   : > { %v8389_v58 = vpop.f32.mrf.mxu0 }
 0x216   : > { %v8390_v0 = vadd.f32 %v8389_v58, %v30523_v29  ;;  %8712 = vmatpush2.bf16.msra.mxu0 %v25762_v26  ;;  %v25776_v29 = vld [vmem:[%s37922_s1 + $0x1224] ss:$100 sps:$4 sm:$0xff]   ;;  %v25818_v26 = vld [vmem:[%s37922_s1 + $0xcac] ss:$100 sps:$4 sm:$0xff]   ;;  %v25821_v58 = vld [vmem:[%s37922_s1 + $0x19f4] ss:$100 sps:$4 sm:$0xff]  }
 0x217   : > { %8790 = vmatpush2.bf16.msra.mxu1 %v25759_v21  ;;  %v8391_v38 = vpop.f32.mrf.mxu0  ;;  %8713 = vmatprep.subr.bf16.mxu0 %v25770_v24  ;;  %v25815_v21 = vld [vmem:[%s37922_s1 + $0x1abc] ss:$100 sps:$4 sm:$0xff]   ;;  %v25816_v24 = vld [vmem:[%s37922_s1 + $0xca8] ss:$100 sps:$4 sm:$0xff]  }
 0x218   : > { %8791 = vmatprep.subr.bf16.mxu1 %v25767_v23  ;;  %v30726_v39 = vadd.f32 %v30544_v3, %v8390_v0  ;;  %v8392_v40 = vadd.f32 %v8391_v38, %v30531_v59  ;;  %v25779_v59 = vld [vmem:[%s37922_s1 + $0x66c] ss:$100 sps:$4 sm:$0xff]   ;;  %v25782_v3 = vld [vmem:[%s37922_s1 + $0x115c] ss:$100 sps:$4 sm:$0xff]   ;;  %v25824_v0 = vld [vmem:[%s37922_s1 + $0x1864] ss:$100 sps:$4 sm:$0xff]  }
 0x219   : > { %v8393_v41 = vpop.f32.mrf.mxu0  ;;  %v25813_v23 = vld [vmem:[%s37922_s1 + $0x1ab8] ss:$100 sps:$4 sm:$0xff]   ;;  %v25827_v38 = vld [vmem:[%s37922_s1 + $0x192c] ss:$100 sps:$4 sm:$0xff]  }
 0x21a   : > { %v30730_v42 = vadd.f32 %v30546_v4, %v8392_v40  ;;  %8714 = vmatpush2.bf16.msra.mxu0 %v25768_v34  ;;  %v25777_v4 = vld [vmem:[%s37922_s1 + $0x668] ss:$100 sps:$4 sm:$0xff]   ;;  %v25822_v34 = vld [vmem:[%s37922_s1 + $0x1860] ss:$100 sps:$4 sm:$0xff]   ;;  %v25828_v40 = vld [vmem:[%s37922_s1 + $0x1798] ss:$100 sps:$4 sm:$0xff]  }
 0x21b   : > { %8792 = vmatpush2.bf16.msra.mxu1 %v25765_v32  ;;  %v8394_v45 = vpop.f32.mrf.mxu0  ;;  %8806 = vmatprep.subr.bf16.mxu0 %v25776_v29  ;;  %v25819_v32 = vld [vmem:[%s37922_s1 + $0x19f0] ss:$100 sps:$4 sm:$0xff]   ;;  %v25825_v29 = vld [vmem:[%s37922_s1 + $0x1928] ss:$100 sps:$4 sm:$0xff]  }
 0x21c   : > { %8793 = vmatprep.subr.bf16.mxu1 %v25773_v17  ;;  %v25830_v17 = vld [vmem:[%s37922_s1 + $0x179c] ss:$100 sps:$4 sm:$0xff]   ;;  %v25833_v41 = vld [vmem:[%s37922_s1 + $0x24e4] ss:$100 sps:$4 sm:$0xff]   ;;  %v25834_v45 = vld [vmem:[%s37922_s1 + $0x16d0] ss:$100 sps:$4 sm:$0xff]  }
 0x21d   : > { %8716 = vmatmul.mubr.bf16.vlgmr.msra.gmra.mxu0 %v29438_v16 }
 0x21e   : > { %v30750_v48 = vpop.f32.mrf.mxu1  ;;  %8807 = vmatpush1.bf16.msra.mxu0 %v25774_v44  ;;  %8838 = vmatprep.mubr.bf16.mxu0 %v29168_v51  ;;  %v25831_v44 = vld [vmem:[%s37922_s1 + $0x24e0] ss:$100 sps:$4 sm:$0xff]  }
 0x21f   : > { %8794 = vmatpush2.bf16.msra.mxu1 %v25771_v43  ;;  %8808 = vmatprep.subr.bf16.mxu0 %v25782_v3  ;;  %v25836_v43 = vld [vmem:[%s37922_s1 + $0x16d4] ss:$100 sps:$4 sm:$0xff]   ;;  %v25842_v3 = vld [vmem:[%s37922_s1 + $0x160c] ss:$100 sps:$4 sm:$0xff]  }
 0x220   : > { %v30753_v49 = vpop.f32.mrf.mxu1  ;;  %8795 = vmatprep.subr.bf16.mxu1 %v25779_v59  ;;  %v25839_v59 = vld [vmem:[%s37922_s1 + $0x241c] ss:$100 sps:$4 sm:$0xff]  }
 0x222   : > { %v8475_v54 = vpop.f32.mrf.mxu1  ;;  %8809 = vmatpush1.bf16.msra.mxu0 %v25780_v46  ;;  %v25840_v46 = vld [vmem:[%s37922_s1 + $0x1608] ss:$100 sps:$4 sm:$0xff]  }
 0x223   : > { %8796 = vmatpush2.bf16.msra.mxu1 %v25777_v4  ;;  %8810 = vmatprep.subr.bf16.mxu0 %v25788_v28  ;;  %v25837_v4 = vld [vmem:[%s37922_s1 + $0x2418] ss:$100 sps:$4 sm:$0xff]   ;;  %v25848_v28 = vld [vmem:[%s37922_s1 + $0x1544] ss:$100 sps:$4 sm:$0xff]   ;;  %v25851_v54 = vld [vmem:[%s37922_s1 + $0x228c] ss:$100 sps:$4 sm:$0xff]  }
 0x224   : > { %v8476_v56 = vpop.f32.mrf.mxu1  ;;  %8847 = vmatprep.subr.bf16.mxu1 %v25785_v50  ;;  %v25845_v50 = vld [vmem:[%s37922_s1 + $0x2354] ss:$100 sps:$4 sm:$0xff]  }
 0x225   : > { %v30897_v56 = vsub.s32 6, %v29808_v25 }
 0x226   : > { %8798 = vmatmul.mubr.bf16.vlgmr.msra.gmra.mxu1 %v29226_v6  ;;  %8811 = vmatpush1.bf16.msra.mxu0 %v25786_v53  ;;  %v25846_v53 = vld [vmem:[%s37922_s1 + $0x1540] ss:$100 sps:$4 sm:$0xff]  }
 0x227   : > { %8848 = vmatpush1.bf16.msra.mxu1 %v25783_v37  ;;  %8812 = vmatprep.subr.bf16.mxu0 %v25794_v57  ;;  %v25843_v37 = vld [vmem:[%s37922_s1 + $0x2350] ss:$100 sps:$4 sm:$0xff]   ;;  %v30900_v57 = vsub.s32 7, %v29808_v25 }
 0x228   : > { %8849 = vmatprep.subr.bf16.mxu1 %v25791_v55  ;;  %8879 = vmatprep.mubr.bf16.mxu1 %v29310_v33  ;;  %v25854_v55 = vld [vmem:[%s37922_s1 + $0x147c] ss:$100 sps:$4 sm:$0xff]   ;;  %v25860_v25 = vld [vmem:[%s37922_s1 + $0x13b4] ss:$100 sps:$4 sm:$0xff]  }
 0x22a   : > { %8813 = vmatpush1.bf16.msra.mxu0 %v25792_v61  ;;  %v25852_v61 = vld [vmem:[%s37922_s1 + $0x1478] ss:$100 sps:$4 sm:$0xff]  }
 0x22b   : > { %8850 = vmatpush1.bf16.msra.mxu1 %v25789_v60  ;;  %8814 = vmatprep.subr.bf16.mxu0 %v25800_v63  ;;  %v25849_v60 = vld [vmem:[%s37922_s1 + $0x2288] ss:$100 sps:$4 sm:$0xff]   ;;  %v28927_v63 = vld [vmem:[%s37923_s2] sm:$0xff] }
 0x22c   : > { %8851 = vmatprep.subr.bf16.mxu1 %v25797_v62  ;;  %v25857_v62 = vld [vmem:[%s37922_s1 + $0x21c4] ss:$100 sps:$4 sm:$0xff]  }
 0x22e   : > { %8815 = vmatpush1.bf16.msra.mxu0 %v25798_v5  ;;  %v1649_v5 = vrot.slane %v28927_v63, %v30900_v57 }
 0x22f   : > { %8852 = vmatpush1.bf16.msra.mxu1 %v25795_v2  ;;  %8816 = vmatprep.subr.bf16.mxu0 %v25806_v10  ;;  %v1645_v2 = vrot.slane %v28927_v63, %v30897_v56  ;;  %v25858_v10 = vld [vmem:[%s37922_s1 + $0x13b0] ss:$100 sps:$4 sm:$0xff]   ;;  %v30989_v63 = vld [vmem:[%s29150_s26 + $0x18] ss:$0 sps:$4 sm:$0xff]  }
 0x230   : > { %8853 = vmatprep.subr.bf16.mxu1 %v25803_v9  ;;  %v25855_v9 = vld [vmem:[%s37922_s1 + $0x21c0] ss:$100 sps:$4 sm:$0xff]  }
 0x232   : > { %8817 = vmatpush1.bf16.msra.mxu0 %v25804_v12  ;;  %v25866_v12 = vld [vmem:[%s37922_s1 + $0x12ec] ss:$100 sps:$4 sm:$0xff]  }
 0x233   : > { %8854 = vmatpush1.bf16.msra.mxu1 %v25801_v11  ;;  %8818 = vmatprep.subr.bf16.mxu0 %v25812_v15  ;;  %v25863_v11 = vld [vmem:[%s37922_s1 + $0x20fc] ss:$100 sps:$4 sm:$0xff]  }
 0x234   : > { %8855 = vmatprep.subr.bf16.mxu1 %v25809_v14  ;;  %v8472_v14 = vadd.f32 %v30750_v48, %v1645_v2  ;;  %v25869_v48 = vld [vmem:[%s37922_s1 + $0x2034] ss:$100 sps:$4 sm:$0xff]   ;;  %v25890_v2 = vld [vmem:[%s37922_s1 + $0x41c] ss:$100 sps:$4 sm:$0xff]  }
 0x236   : > { %8819 = vmatpush1.bf16.msra.mxu0 %v25810_v20 }
 0x237   : > { %8856 = vmatpush1.bf16.msra.mxu1 %v25807_v52  ;;  %8820 = vmatprep.subr.bf16.mxu0 %v25818_v26  ;;  %v8474_v52 = vadd.f32 %v30753_v49, %v1649_v5  ;;  %v25864_v26 = vld [vmem:[%s37922_s1 + $0x12e8] ss:$100 sps:$4 sm:$0xff]   ;;  %v25893_v5 = vld [vmem:[%s37922_s1 + $0x109c] ss:$100 sps:$4 sm:$0xff]  }
 0x238   : > { %8857 = vmatprep.subr.bf16.mxu1 %v25815_v21  ;;  %v25861_v21 = vld [vmem:[%s37922_s1 + $0x20f8] ss:$100 sps:$4 sm:$0xff]   ;;  %v25872_v49 = vld [vmem:[%s37922_s1 + $0x25ac] ss:$100 sps:$4 sm:$0xff]  }
 0x23a   : > { %8821 = vmatpush1.bf16.msra.mxu0 %v25816_v24 }
 0x23b   : > { %8858 = vmatpush1.bf16.msra.mxu1 %v25813_v23  ;;  %8822 = vmatprep.subr.bf16.mxu0 %v25824_v0  ;;  %v25867_v0 = vld [vmem:[%s37922_s1 + $0x2030] ss:$100 sps:$4 sm:$0xff]  }
 0x23c   : > { %8859 = vmatprep.subr.bf16.mxu1 %v25821_v58 }
 0x23e   : > { %8823 = vmatpush2.bf16.msra.mxu0 %v25822_v34 }
 0x23f   : > { %8860 = vmatpush1.bf16.msra.mxu1 %v25819_v32  ;;  %8824 = vmatprep.subr.bf16.mxu0 %v25830_v17  ;;  %v25870_v32 = vld [vmem:[%s37922_s1 + $0x25a8] ss:$100 sps:$4 sm:$0xff]  }
 0x240   : > { %8861 = vmatprep.subr.bf16.mxu1 %v25827_v38  ;;  %v25875_v38 = vld [vmem:[%s37922_s1 + $0x1f6c] ss:$100 sps:$4 sm:$0xff]  }
 0x241   : > { %v25878_v17 = vld [vmem:[%s37922_s1 + $0x5ac] ss:$100 sps:$4 sm:$0xff]  }
 0x242   : > { %8825 = vmatpush2.bf16.msra.mxu0 %v25828_v40 }
 0x243   : > { %8862 = vmatpush1.bf16.msra.mxu1 %v25825_v29  ;;  %8826 = vmatprep.subr.bf16.mxu0 %v25836_v43  ;;  %v25873_v29 = vld [vmem:[%s37922_s1 + $0x1f68] ss:$100 sps:$4 sm:$0xff]  }
 0x244   : > { %8863 = vmatprep.subr.bf16.mxu1 %v25833_v41 }
 0x246   : > { %8827 = vmatpush2.bf16.msra.mxu0 %v25834_v45 }
 0x247   : > { %8864 = vmatpush2.bf16.msra.mxu1 %v25831_v44  ;;  %8828 = vmatprep.subr.bf16.mxu0 %v25842_v3 }
 0x248   : > { %8865 = vmatprep.subr.bf16.mxu1 %v25839_v59  ;;  %v25881_v59 = vld [vmem:[%s37922_s1 + $0x122c] ss:$100 sps:$4 sm:$0xff]  }
 0x24a   : > { %8829 = vmatpush2.bf16.msra.mxu0 %v25840_v46  ;;  %v25876_v46 = vld [vmem:[%s37922_s1 + $0x5a8] ss:$100 sps:$4 sm:$0xff]  }
 0x24b   : > { %8866 = vmatpush2.bf16.msra.mxu1 %v25837_v4  ;;  %8830 = vmatprep.subr.bf16.mxu0 %v25848_v28 }
 0x24c   : > { %8867 = vmatprep.subr.bf16.mxu1 %v25845_v50  ;;  %v25879_v50 = vld [vmem:[%s37922_s1 + $0x1228] ss:$100 sps:$4 sm:$0xff]  }
 0x24e   : > { %8831 = vmatpush2.bf16.msra.mxu0 %v25846_v53  ;;  %v25884_v53 = vld [vmem:[%s37922_s1 + $0x4e4] ss:$100 sps:$4 sm:$0xff]  }
 0x24f   : > { %8868 = vmatpush2.bf16.msra.mxu1 %v25843_v37  ;;  %8832 = vmatprep.subr.bf16.mxu0 %v25854_v55 }
 0x250   : > { %8869 = vmatprep.subr.bf16.mxu1 %v25851_v54 }
 0x252   : > { %8833 = vmatpush2.bf16.msra.mxu0 %v25852_v61  ;;  %v25887_v61 = vld [vmem:[%s37922_s1 + $0x1164] ss:$100 sps:$4 sm:$0xff]  }
 0x253   : > { %8870 = vmatpush2.bf16.msra.mxu1 %v25849_v60  ;;  %8834 = vmatprep.subr.bf16.mxu0 %v25860_v25  ;;  %v25885_v25 = vld [vmem:[%s37922_s1 + $0x1160] ss:$100 sps:$4 sm:$0xff]  }
 0x254   : > { %8871 = vmatprep.subr.bf16.mxu1 %v25857_v62  ;;  %v25882_v62 = vld [vmem:[%s37922_s1 + $0x4e0] ss:$100 sps:$4 sm:$0xff]  }
 0x255   : > { %v8512_v15 = vpop.f32.mrf.mxu0 }
 0x256   : > { %v8513_v20 = vadd.f32 %v8512_v15, %v8472_v14  ;;  %8835 = vmatpush2.bf16.msra.mxu0 %v25858_v10  ;;  %v25891_v10 = vld [vmem:[%s37922_s1 + $0x1098] ss:$100 sps:$4 sm:$0xff]   ;;  %v25894_v14 = vld [vmem:[%s37922_s1 + $0x350] ss:$100 sps:$4 sm:$0xff]  }
 0x257   : > { %8872 = vmatpush2.bf16.msra.mxu1 %v25855_v9  ;;  %v8514_v23 = vpop.f32.mrf.mxu0  ;;  %8836 = vmatprep.subr.bf16.mxu0 %v25866_v12  ;;  %v25888_v9 = vld [vmem:[%s37922_s1 + $0x418] ss:$100 sps:$4 sm:$0xff]   ;;  %v25897_v15 = vld [vmem:[%s37922_s1 + $0xfd0] ss:$100 sps:$4 sm:$0xff]  }
 0x258   : > { %8873 = vmatprep.subr.bf16.mxu1 %v25863_v11  ;;  %v8515_v24 = vadd.f32 %v8514_v23, %v8474_v52  ;;  %v25896_v11 = vld [vmem:[%s37922_s1 + $0x354] ss:$100 sps:$4 sm:$0xff]   ;;  %v25902_v52 = vld [vmem:[%s37922_s1 + $0x28c] ss:$100 sps:$4 sm:$0xff]   ;;  %v25908_v23 = vld [vmem:[%s37922_s1 + $0x1c4] ss:$100 sps:$4 sm:$0xff]  }
 0x259   : > { %v8516_v58 = vpop.f32.mrf.mxu0  ;;  %v25899_v12 = vld [vmem:[%s37922_s1 + $0xfd4] ss:$100 sps:$4 sm:$0xff]  }
 0x25a   : > { %8837 = vmatpush2.bf16.msra.mxu0 %v25864_v26  ;;  %v25903_v26 = vld [vmem:[%s37922_s1 + $0xf08] ss:$100 sps:$4 sm:$0xff]   ;;  %v25914_v58 = vld [vmem:[%s37922_s1 + $0xfc] ss:$100 sps:$4 sm:$0xff]  }
 0x25b   : > { %8874 = vmatpush2.bf16.msra.mxu1 %v25861_v21  ;;  %v8517_v34 = vpop.f32.mrf.mxu0  ;;  %8902 = vmatprep.subr.bf16.mxu0 %v25872_v49  ;;  %v25900_v21 = vld [vmem:[%s37922_s1 + $0x288] ss:$100 sps:$4 sm:$0xff]   ;;  %v25906_v49 = vld [vmem:[%s37922_s1 + $0x1c0] ss:$100 sps:$4 sm:$0xff]  }
 0x25c   : > { %8875 = vmatprep.subr.bf16.mxu1 %v25869_v48  ;;  %v25911_v48 = vld [vmem:[%s37922_s1 + $0xe44] ss:$100 sps:$4 sm:$0xff]   ;;  %v25915_v34 = vld [vmem:[%s37922_s1 + $0xd78] ss:$100 sps:$4 sm:$0xff]  }
 0x25d   : > { %8839 = vmatmul.mubr.bf16.vlgmr.msra.gmra.mxu0 %v29228_v7  ;;  %v8594_v41 = vpop.f32.mrf.mxu0 }
 0x25e   : > { %v8553_v40 = vpop.f32.mrf.mxu1  ;;  %8903 = vmatpush1.bf16.msra.mxu0 %v25870_v32  ;;  %8920 = vmatprep.mubr.bf16.mxu0 %v28947_v13  ;;  %v25912_v32 = vld [vmem:[%s37922_s1 + $0xf8] ss:$100 sps:$4 sm:$0xff]  }
 0x25f   : > { %v8554_v43 = vadd.f32 %v8553_v40, %v8513_v20  ;;  %8876 = vmatpush2.bf16.msra.mxu1 %v25867_v0  ;;  %v8596_v45 = vpop.f32.mrf.mxu0  ;;  %8929 = vmatprep.subr.bf16.mxu0 %v25878_v17  ;;  %v25905_v20 = vld [vmem:[%s37922_s1 + $0xf0c] ss:$100 sps:$4 sm:$0xff]   ;;  %v25917_v0 = vld [vmem:[%s37922_s1 + $0xd7c] ss:$100 sps:$4 sm:$0xff]   ;;  %v25923_v17 = vld [vmem:[%s37922_s1 + $0xcb4] ss:$100 sps:$4 sm:$0xff]  }
 0x260   : > { %v8555_v44 = vpop.f32.mrf.mxu1  ;;  %8877 = vmatprep.subr.bf16.mxu1 %v25875_v38  ;;  %v25920_v38 = vld [vmem:[%s37922_s1 + $0x34] ss:$100 sps:$4 sm:$0xff]  }
 0x261   : > { %v30965_v3 = vadd.f32 %v8594_v41, %v8554_v43  ;;  %v8556_v4 = vadd.f32 %v8555_v44, %v8515_v24  ;;  %v8598_v37 = vpop.f32.mrf.mxu0  ;;  %v25909_v24 = vld [vmem:[%s37922_s1 + $0xe40] ss:$100 sps:$4 sm:$0xff]   ;;  %v25921_v40 = vld [vmem:[%s37922_s1 + $0xcb0] ss:$100 sps:$4 sm:$0xff]   ;;  %v25924_v44 = vld [vmem:[%s37922_s1 + $0xbe8] ss:$100 sps:$4 sm:$0xff]  }
 0x262   : > { %v8557_v28 = vpop.f32.mrf.mxu1  ;;  %v25926_v41 = vld [vmem:[%s37922_s1 + $0xbec] ss:$100 sps:$4 sm:$0xff]   ;;  %v25941_v37 = vld [vmem:[%s37922_s1 + $0x16dc] ss:$100 sps:$4 sm:$0xff]  }
 0x263   : > { %v30976_v54 = vadd.f32 %v8596_v45, %v8556_v4  ;;  %8878 = vmatpush2.bf16.msra.mxu1 %v25873_v29  ;;  %v8599_v60 = vpop.f32.mrf.mxu0  ;;  %v25918_v29 = vld [vmem:[%s37922_s1 + $0x30] ss:$100 sps:$4 sm:$0xff]   ;;  %v25927_v45 = vld [vmem:[%s37922_s1 + $0x1868] ss:$100 sps:$4 sm:$0xff]   ;;  %v25938_v28 = vld [vmem:[%s37922_s1 + $0xa5c] ss:$100 sps:$4 sm:$0xff]  }
 0x264   : > { %v8558_v55 = vpop.f32.mrf.mxu1  ;;  %8970 = vmatprep.subr.bf16.mxu1 %v25881_v59  ;;  %v25929_v43 = vld [vmem:[%s37922_s1 + $0x186c] ss:$100 sps:$4 sm:$0xff]   ;;  %v25932_v59 = vld [vmem:[%s37922_s1 + $0xb24] ss:$100 sps:$4 sm:$0xff]   ;;  %v25944_v60 = vld [vmem:[%s37922_s1 + $0x994] ss:$100 sps:$4 sm:$0xff]  }
 0x265   : > { %23123 = vmatmul.mubr.msk.bf16.vlgmr.msra.gmra.mxu0 %vm7941_vm0, %v30989_v63  ;;  %v25935_v4 = vld [vmem:[%s37922_s1 + $0x17a4] ss:$100 sps:$4 sm:$0xff]   ;;  %v25939_v55 = vld [vmem:[%s37922_s1 + $0x16d8] ss:$100 sps:$4 sm:$0xff]  }
 0x266   : > { %8880 = vmatmul.mubr.bf16.vlgmr.msra.gmra.mxu1 %v29438_v16  ;;  %8930 = vmatpush1.bf16.msra.mxu0 %v25876_v46  ;;  %v25930_v46 = vld [vmem:[%s37922_s1 + $0xb20] ss:$100 sps:$4 sm:$0xff]  }
 0x267   : > { %8971 = vmatpush1.bf16.msra.mxu1 %v25879_v50  ;;  %8931 = vmatprep.subr.bf16.mxu0 %v25884_v53  ;;  %v25933_v50 = vld [vmem:[%s37922_s1 + $0x17a0] ss:$100 sps:$4 sm:$0xff]   ;;  %v25936_v53 = vld [vmem:[%s37922_s1 + $0xa58] ss:$100 sps:$4 sm:$0xff]  }
 0x268   : > { %8972 = vmatprep.subr.bf16.mxu1 %v25887_v61  ;;  %8961 = vmatprep.mubr.bf16.mxu0 %v29159_v47  ;;  %v25947_v61 = vld [vmem:[%s37922_s1 + $0x1614] ss:$100 sps:$4 sm:$0xff]  }
 0x269   : > { %9002 = vmatprep.mubr.bf16.mxu1 %v29168_v51 }
 0x26a   : > { %8932 = vmatpush1.bf16.msra.mxu0 %v25882_v62  ;;  %v25942_v62 = vld [vmem:[%s37922_s1 + $0x990] ss:$100 sps:$4 sm:$0xff]  }
 0x26b   : > { %8973 = vmatpush1.bf16.msra.mxu1 %v25885_v25  ;;  %8933 = vmatprep.subr.bf16.mxu0 %v25890_v2  ;;  %v25945_v25 = vld [vmem:[%s37922_s1 + $0x1610] ss:$100 sps:$4 sm:$0xff]  }
 0x26c   : > { %8974 = vmatprep.subr.bf16.mxu1 %v25893_v5  ;;  %v25950_v2 = vld [vmem:[%s37922_s1 + $0x8cc] ss:$100 sps:$4 sm:$0xff]  }
 0x26d   : > { %v25953_v5 = vld [vmem:[%s37922_s1 + $0x154c] ss:$100 sps:$4 sm:$0xff]  }
 0x26e   : > { %8934 = vmatpush1.bf16.msra.mxu0 %v25888_v9  ;;  %v25948_v9 = vld [vmem:[%s37922_s1 + $0x8c8] ss:$100 sps:$4 sm:$0xff]  }
 0x26f   : > { %8975 = vmatpush1.bf16.msra.mxu1 %v25891_v10  ;;  %8935 = vmatprep.subr.bf16.mxu0 %v25896_v11  ;;  %v25951_v10 = vld [vmem:[%s37922_s1 + $0x1548] ss:$100 sps:$4 sm:$0xff]  }
 0x270   : > { %8976 = vmatprep.subr.bf16.mxu1 %v25899_v12  ;;  %v25956_v11 = vld [vmem:[%s37922_s1 + $0x804] ss:$100 sps:$4 sm:$0xff]  }
 0x271   : > { %v25959_v12 = vld [vmem:[%s37922_s1 + $0x1484] ss:$100 sps:$4 sm:$0xff]  }
 0x272   : > { %8936 = vmatpush1.bf16.msra.mxu0 %v25894_v14  ;;  %v25954_v14 = vld [vmem:[%s37922_s1 + $0x800] ss:$100 sps:$4 sm:$0xff]  }
 0x273   : > { %8977 = vmatpush1.bf16.msra.mxu1 %v25897_v15  ;;  %8937 = vmatprep.subr.bf16.mxu0 %v25902_v52  ;;  %v25957_v15 = vld [vmem:[%s37922_s1 + $0x1480] ss:$100 sps:$4 sm:$0xff]  }
 0x274   : > { %8978 = vmatprep.subr.bf16.mxu1 %v25905_v20  ;;  %v25962_v52 = vld [vmem:[%s37922_s1 + $0x73c] ss:$100 sps:$4 sm:$0xff]  }
 0x275   : > { %v25965_v20 = vld [vmem:[%s37922_s1 + $0x13bc] ss:$100 sps:$4 sm:$0xff]  }
 0x276   : > { %8938 = vmatpush1.bf16.msra.mxu0 %v25900_v21  ;;  %v1611_v21 = vld [vmem:[%s37923_s2 + $0x8] sm:$0xff] }
 0x277   : > { %8979 = vmatpush1.bf16.msra.mxu1 %v25903_v26  ;;  %8939 = vmatprep.subr.bf16.mxu0 %v25908_v23  ;;  %v25960_v26 = vld [vmem:[%s37922_s1 + $0x738] ss:$100 sps:$4 sm:$0xff]  }
 0x278   : > { %8980 = vmatprep.subr.bf16.mxu1 %v25911_v48  ;;  %v25963_v23 = vld [vmem:[%s37922_s1 + $0x13b8] ss:$100 sps:$4 sm:$0xff]   ;;  %v1653_v48 = vrot.slane %v1611_v21, %v29826_v31 }
 0x27a   : > { %8940 = vmatpush1.bf16.msra.mxu0 %v25906_v49  ;;  %v25968_v49 = vld [vmem:[%s37922_s1 + $0x674] ss:$100 sps:$4 sm:$0xff]  }
 0x27b   : > { %8981 = vmatpush1.bf16.msra.mxu1 %v25909_v24  ;;  %8941 = vmatprep.subr.bf16.mxu0 %v25914_v58  ;;  %v25971_v24 = vld [vmem:[%s37922_s1 + $0x12f4] ss:$100 sps:$4 sm:$0xff]   ;;  %v1657_v58 = vrot.slane %v1611_v21, %v29835_v35  ;;  %v25993_v21 = vld [vmem:[%s37922_s1 + $0x420] ss:$100 sps:$4 sm:$0xff]  }
 0x27c   : > { %8982 = vmatprep.subr.bf16.mxu1 %v25917_v0  ;;  %v25966_v0 = vld [vmem:[%s37922_s1 + $0x670] ss:$100 sps:$4 sm:$0xff]  }
 0x27e   : > { %8942 = vmatpush1.bf16.msra.mxu0 %v25912_v32  ;;  %v25969_v32 = vld [vmem:[%s37922_s1 + $0x12f0] ss:$100 sps:$4 sm:$0xff]  }
 0x27f   : > { %8983 = vmatpush1.bf16.msra.mxu1 %v25915_v34  ;;  %8943 = vmatprep.subr.bf16.mxu0 %v25920_v38 }
 0x280   : > { %8984 = vmatprep.subr.bf16.mxu1 %v25923_v17  ;;  %v25974_v17 = vld [vmem:[%s37922_s1 + $0x1eac] ss:$100 sps:$4 sm:$0xff]  }
 0x282   : > { %8944 = vmatpush1.bf16.msra.mxu0 %v25918_v29 }
 0x283   : > { %8985 = vmatpush1.bf16.msra.mxu1 %v25921_v40  ;;  %8945 = vmatprep.subr.bf16.mxu0 %v25926_v41 }
 0x284   : > { %8986 = vmatprep.subr.bf16.mxu1 %v25929_v43  ;;  %v25977_v43 = vld [vmem:[%s37922_s1 + $0x25b4] ss:$100 sps:$4 sm:$0xff]  }
 0x286   : > { %8946 = vmatpush2.bf16.msra.mxu0 %v25924_v44 }
 0x287   : > { %8987 = vmatpush2.bf16.msra.mxu1 %v25927_v45  ;;  %8947 = vmatprep.subr.bf16.mxu0 %v25932_v59  ;;  %v25972_v59 = vld [vmem:[%s37922_s1 + $0x1ea8] ss:$100 sps:$4 sm:$0xff]  }
 0x288   : > { %8988 = vmatprep.subr.bf16.mxu1 %v25935_v4  ;;  %v25975_v4 = vld [vmem:[%s37922_s1 + $0x25b0] ss:$100 sps:$4 sm:$0xff]  }
 0x28a   : > { %8948 = vmatpush2.bf16.msra.mxu0 %v25930_v46 }
 0x28b   : > { %8989 = vmatpush2.bf16.msra.mxu1 %v25933_v50  ;;  %8949 = vmatprep.subr.bf16.mxu0 %v25938_v28 }
 0x28c   : > { %8990 = vmatprep.subr.bf16.mxu1 %v25941_v37 }
 0x28e   : > { %8950 = vmatpush2.bf16.msra.mxu0 %v25936_v53 }
 0x28f   : > { %8991 = vmatpush2.bf16.msra.mxu1 %v25939_v55  ;;  %8951 = vmatprep.subr.bf16.mxu0 %v25944_v60  ;;  %v25980_v55 = vld [vmem:[%s37922_s1 + $0x1de4] ss:$100 sps:$4 sm:$0xff]   ;;  %v25983_v60 = vld [vmem:[%s37922_s1 + $0x5b4] ss:$100 sps:$4 sm:$0xff]  }
 0x290   : > { %8992 = vmatprep.subr.bf16.mxu1 %v25947_v61  ;;  %v25978_v61 = vld [vmem:[%s37922_s1 + $0x1de0] ss:$100 sps:$4 sm:$0xff]  }
 0x292   : > { %8952 = vmatpush2.bf16.msra.mxu0 %v25942_v62 }
 0x293   : > { %8993 = vmatpush2.bf16.msra.mxu1 %v25945_v25  ;;  %8953 = vmatprep.subr.bf16.mxu0 %v25950_v2  ;;  %v25986_v2 = vld [vmem:[%s37922_s1 + $0x1d1c] ss:$100 sps:$4 sm:$0xff]  }
 0x294   : > { %8994 = vmatprep.subr.bf16.mxu1 %v25953_v5  ;;  %v25981_v5 = vld [vmem:[%s37922_s1 + $0x5b0] ss:$100 sps:$4 sm:$0xff]  }
 0x296   : > { %8954 = vmatpush2.bf16.msra.mxu0 %v25948_v9  ;;  %v25984_v9 = vld [vmem:[%s37922_s1 + $0x1d18] ss:$100 sps:$4 sm:$0xff]  }
 0x297   : > { %8995 = vmatpush2.bf16.msra.mxu1 %v25951_v10  ;;  %8955 = vmatprep.subr.bf16.mxu0 %v25956_v11 }
 0x298   : > { %8996 = vmatprep.subr.bf16.mxu1 %v25959_v12  ;;  %v25989_v12 = vld [vmem:[%s37922_s1 + $0x4ec] ss:$100 sps:$4 sm:$0xff]  }
 0x29a   : > { %8956 = vmatpush2.bf16.msra.mxu0 %v25954_v14  ;;  %v25992_v14 = vld [vmem:[%s37922_s1 + $0x1c54] ss:$100 sps:$4 sm:$0xff]  }
 0x29b   : > { %8997 = vmatpush2.bf16.msra.mxu1 %v25957_v15  ;;  %8957 = vmatprep.subr.bf16.mxu0 %v25962_v52  ;;  %v25987_v15 = vld [vmem:[%s37922_s1 + $0x4e8] ss:$100 sps:$4 sm:$0xff]   ;;  %v25990_v52 = vld [vmem:[%s37922_s1 + $0x1c50] ss:$100 sps:$4 sm:$0xff]  }
 0x29c   : > { %8998 = vmatprep.subr.bf16.mxu1 %v25965_v20  ;;  %v25995_v20 = vld [vmem:[%s37922_s1 + $0x424] ss:$100 sps:$4 sm:$0xff]  }
 0x29d   : > { %v8635_v34 = vpop.f32.mrf.mxu0 }
 0x29e   : > { %v8676_v38 = vpop.f32.mrf.mxu1  ;;  %v8636_v29 = vadd.f32 %v8635_v34, %v1653_v48  ;;  %8958 = vmatpush2.bf16.msra.mxu0 %v25960_v26  ;;  %v25996_v26 = vld [vmem:[%s37922_s1 + $0x1b88] ss:$100 sps:$4 sm:$0xff]   ;;  %v26008_v34 = vld [vmem:[%s37922_s1 + $0x19f8] ss:$100 sps:$4 sm:$0xff]  }
 0x29f   : > { %8999 = vmatpush2.bf16.msra.mxu1 %v25963_v23  ;;  %v8637_v40 = vpop.f32.mrf.mxu0  ;;  %8959 = vmatprep.subr.bf16.mxu0 %v25968_v49  ;;  %v26001_v23 = vld [vmem:[%s37922_s1 + $0x35c] ss:$100 sps:$4 sm:$0xff]   ;;  %v26004_v48 = vld [vmem:[%s37922_s1 + $0x1ac4] ss:$100 sps:$4 sm:$0xff]  }
 0x2a0   : > { %v8678_v41 = vpop.f32.mrf.mxu1  ;;  %9000 = vmatprep.subr.bf16.mxu1 %v25971_v24  ;;  %v31174_v44 = vadd.f32 %v8676_v38, %v8636_v29  ;;  %v8638_v45 = vadd.f32 %v8637_v40, %v1657_v58  ;;  %v25999_v49 = vld [vmem:[%s37922_s1 + $0x358] ss:$100 sps:$4 sm:$0xff]   ;;  %v26002_v24 = vld [vmem:[%s37922_s1 + $0x1ac0] ss:$100 sps:$4 sm:$0xff]   ;;  %v26013_v38 = vld [vmem:[%s37922_s1 + $0x1cc] ss:$100 sps:$4 sm:$0xff]  }
 0x2a1   : > { %v8639_v46 = vpop.f32.mrf.mxu0  ;;  %v26007_v58 = vld [vmem:[%s37922_s1 + $0x294] ss:$100 sps:$4 sm:$0xff]   ;;  %v26011_v29 = vld [vmem:[%s37922_s1 + $0x1c8] ss:$100 sps:$4 sm:$0xff]  }
 0x2a2   : > { %v8680_v50 = vpop.f32.mrf.mxu1  ;;  %v31182_v28 = vadd.f32 %v8678_v41, %v8638_v45  ;;  %8960 = vmatpush2.bf16.msra.mxu0 %v25966_v0  ;;  %v26010_v0 = vld [vmem:[%s37922_s1 + $0x19fc] ss:$100 sps:$4 sm:$0xff]   ;;  %v26014_v40 = vld [vmem:[%s37922_s1 + $0x1930] ss:$100 sps:$4 sm:$0xff]   ;;  %v26019_v41 = vld [vmem:[%s37922_s1 + $0x104] ss:$100 sps:$4 sm:$0xff]  }
 0x2a3   : > { %9001 = vmatpush2.bf16.msra.mxu1 %v25969_v32  ;;  %v8640_v37 = vpop.f32.mrf.mxu0  ;;  %9011 = vmatprep.subr.bf16.mxu0 %v25974_v17  ;;  %v26005_v32 = vld [vmem:[%s37922_s1 + $0x290] ss:$100 sps:$4 sm:$0xff]   ;;  %v26017_v45 = vld [vmem:[%s37922_s1 + $0x100] ss:$100 sps:$4 sm:$0xff]   ;;  %v26023_v50 = vld [vmem:[%s37922_s1 + $0x38] ss:$100 sps:$4 sm:$0xff]  }
 0x2a4   : > { %v8681_v53 = vpop.f32.mrf.mxu1  ;;  %9066 = vmatprep.subr.bf16.mxu1 %v25977_v43  ;;  %v26016_v17 = vld [vmem:[%s37922_s1 + $0x1934] ss:$100 sps:$4 sm:$0xff]   ;;  %v26022_v43 = vld [vmem:[%s37922_s1 + $0x24ec] ss:$100 sps:$4 sm:$0xff]   ;;  %v26028_v46 = vld [vmem:[%s37922_s1 + $0x2424] ss:$100 sps:$4 sm:$0xff]  }
 0x2a5   : > { %8962 = vmatmul.mubr.bf16.vlgmr.msra.gmra.mxu0 %v29226_v6  ;;  %v26026_v37 = vld [vmem:[%s37922_s1 + $0x2420] ss:$100 sps:$4 sm:$0xff]   ;;  %v26031_v53 = vld [vmem:[%s37922_s1 + $0xbf4] ss:$100 sps:$4 sm:$0xff]  }
 0x2a6   : > { %9003 = vmatmul.mubr.bf16.vlgmr.msra.gmra.mxu1 %v29228_v7  ;;  %v31195_v62 = vpop.f32.mrf.mxu1  ;;  %9012 = vmatpush1.bf16.msra.mxu0 %v25972_v59  ;;  %v26020_v59 = vld [vmem:[%s37922_s1 + $0x24e8] ss:$100 sps:$4 sm:$0xff]  }
 0x2a7   : > { %9067 = vmatpush1.bf16.msra.mxu1 %v25975_v4  ;;  %9013 = vmatprep.subr.bf16.mxu0 %v25980_v55  ;;  %v26025_v4 = vld [vmem:[%s37922_s1 + $0x3c] ss:$100 sps:$4 sm:$0xff]  }
 0x2a8   : > { %v31197_v25 = vpop.f32.mrf.mxu1  ;;  %9084 = vmatprep.mubr.bf16.mxu1 %v28947_v13  ;;  %9093 = vmatprep.subr.bf16.mxu1 %v25983_v60  ;;  %v26034_v55 = vld [vmem:[%s37922_s1 + $0x235c] ss:$100 sps:$4 sm:$0xff]   ;;  %v26029_v60 = vld [vmem:[%s37922_s1 + $0xbf0] ss:$100 sps:$4 sm:$0xff]  }
 0x2a9   : > { %9043 = vmatprep.mubr.bf16.mxu0 %v29310_v33 }
 0x2aa   : > { %v8762_v10 = vpop.f32.mrf.mxu1  ;;  %9014 = vmatpush1.bf16.msra.mxu0 %v25978_v61  ;;  %v26032_v61 = vld [vmem:[%s37922_s1 + $0x2358] ss:$100 sps:$4 sm:$0xff]  }
 0x2ab   : > { %9015 = vmatprep.subr.bf16.mxu0 %v25986_v2  ;;  %v26037_v2 = vld [vmem:[%s37922_s1 + $0xb2c] ss:$100 sps:$4 sm:$0xff]  }
 0x2ac   : > { %v8763_v11 = vpop.f32.mrf.mxu1  ;;  %v26038_v10 = vld [vmem:[%s37922_s1 + $0x2290] ss:$100 sps:$4 sm:$0xff]  }
 0x2ad   : > { %v26043_v11 = vld [vmem:[%s37922_s1 + $0xa64] ss:$100 sps:$4 sm:$0xff]  }
 0x2ae   : > { %23124 = vmatmul.mubr.msk.bf16.vlgmr.msra.gmra.mxu1 %vm7941_vm0, %v30989_v63  ;;  %9016 = vmatpush1.bf16.msra.mxu0 %v25984_v9  ;;  %v25998_v63 = vld [vmem:[%s37922_s1 + $0x1b8c] ss:$100 sps:$4 sm:$0xff]  }
 0x2af   : > { %9094 = vmatpush1.bf16.msra.mxu1 %v25981_v5  ;;  %9017 = vmatprep.subr.bf16.mxu0 %v25992_v14  ;;  %v26040_v5 = vld [vmem:[%s37922_s1 + $0x2294] ss:$100 sps:$4 sm:$0xff]   ;;  %v26035_v9 = vld [vmem:[%s37922_s1 + $0xb28] ss:$100 sps:$4 sm:$0xff]   ;;  %v26041_v14 = vld [vmem:[%s37922_s1 + $0xa60] ss:$100 sps:$4 sm:$0xff]  }
 0x2b0   : > { %9095 = vmatprep.subr.bf16.mxu1 %v25989_v12  ;;  %9125 = vmatprep.mubr.bf16.mxu1 %v29159_v47  ;;  %v26046_v12 = vld [vmem:[%s37922_s1 + $0x21cc] ss:$100 sps:$4 sm:$0xff]  }
 0x2b2   : > { %9018 = vmatpush1.bf16.msra.mxu0 %v25990_v52  ;;  %v26049_v52 = vld [vmem:[%s37922_s1 + $0x99c] ss:$100 sps:$4 sm:$0xff]  }
 0x2b3   : > { %9096 = vmatpush1.bf16.msra.mxu1 %v25987_v15  ;;  %9019 = vmatprep.subr.bf16.mxu0 %v25998_v63  ;;  %v26044_v15 = vld [vmem:[%s37922_s1 + $0x21c8] ss:$100 sps:$4 sm:$0xff]   ;;  %v26047_v63 = vld [vmem:[%s37922_s1 + $0x998] ss:$100 sps:$4 sm:$0xff]  }
 0x2b4   : > { %9097 = vmatprep.subr.bf16.mxu1 %v25995_v20  ;;  %v26052_v20 = vld [vmem:[%s37922_s1 + $0x2104] ss:$100 sps:$4 sm:$0xff]  }
 0x2b6   : > { %9020 = vmatpush1.bf16.msra.mxu0 %v25996_v26  ;;  %v26055_v26 = vld [vmem:[%s37922_s1 + $0x8d4] ss:$100 sps:$4 sm:$0xff]  }
 0x2b7   : > { %9098 = vmatpush1.bf16.msra.mxu1 %v25993_v21  ;;  %9021 = vmatprep.subr.bf16.mxu0 %v26004_v48  ;;  %v26050_v21 = vld [vmem:[%s37922_s1 + $0x2100] ss:$100 sps:$4 sm:$0xff]   ;;  %v26053_v48 = vld [vmem:[%s37922_s1 + $0x8d0] ss:$100 sps:$4 sm:$0xff]  }
 0x2b8   : > { %9099 = vmatprep.subr.bf16.mxu1 %v26001_v23  ;;  %v26058_v23 = vld [vmem:[%s37922_s1 + $0x203c] ss:$100 sps:$4 sm:$0xff]  }
 0x2ba   : > { %9022 = vmatpush1.bf16.msra.mxu0 %v26002_v24  ;;  %v26061_v24 = vld [vmem:[%s37922_s1 + $0x80c] ss:$100 sps:$4 sm:$0xff]  }
 0x2bb   : > { %9100 = vmatpush1.bf16.msra.mxu1 %v25999_v49  ;;  %9023 = vmatprep.subr.bf16.mxu0 %v26010_v0  ;;  %v26056_v49 = vld [vmem:[%s37922_s1 + $0x2038] ss:$100 sps:$4 sm:$0xff]  }
 0x2bc   : > { %9101 = vmatprep.subr.bf16.mxu1 %v26007_v58  ;;  %v26064_v58 = vld [vmem:[%s37922_s1 + $0x1f74] ss:$100 sps:$4 sm:$0xff]  }
 0x2be   : > { %9024 = vmatpush1.bf16.msra.mxu0 %v26008_v34  ;;  %v26059_v34 = vld [vmem:[%s37922_s1 + $0x808] ss:$100 sps:$4 sm:$0xff]  }
 0x2bf   : > { %9102 = vmatpush1.bf16.msra.mxu1 %v26005_v32  ;;  %9025 = vmatprep.subr.bf16.mxu0 %v26016_v17 }
 0x2c0   : > { %9103 = vmatprep.subr.bf16.mxu1 %v26013_v38  ;;  %v26062_v38 = vld [vmem:[%s37922_s1 + $0x1f70] ss:$100 sps:$4 sm:$0xff]  }
 0x2c2   : > { %9026 = vmatpush1.bf16.msra.mxu0 %v26014_v40 }
 0x2c3   : > { %9104 = vmatpush1.bf16.msra.mxu1 %v26011_v29  ;;  %9027 = vmatprep.subr.bf16.mxu0 %v26022_v43  ;;  %v26067_v29 = vld [vmem:[%s37922_s1 + $0x744] ss:$100 sps:$4 sm:$0xff]  }
 0x2c4   : > { %9105 = vmatprep.subr.bf16.mxu1 %v26019_v41 }
 0x2c6   : > { %9028 = vmatpush2.bf16.msra.mxu0 %v26020_v59  ;;  %v26065_v59 = vld [vmem:[%s37922_s1 + $0x740] ss:$100 sps:$4 sm:$0xff]  }
 0x2c7   : > { %9106 = vmatpush1.bf16.msra.mxu1 %v26017_v45  ;;  %9029 = vmatprep.subr.bf16.mxu0 %v26028_v46 }
 0x2c8   : > { %9107 = vmatprep.subr.bf16.mxu1 %v26025_v4  ;;  %v26068_v4 = vld [vmem:[%s37922_s1 + $0x1230] ss:$100 sps:$4 sm:$0xff]  }
 0x2ca   : > { %9030 = vmatpush2.bf16.msra.mxu0 %v26026_v37 }
 0x2cb   : > { %9108 = vmatpush1.bf16.msra.mxu1 %v26023_v50  ;;  %9031 = vmatprep.subr.bf16.mxu0 %v26034_v55  ;;  %v26074_v50 = vld [vmem:[%s37922_s1 + $0x1168] ss:$100 sps:$4 sm:$0xff]   ;;  %v26079_v55 = vld [vmem:[%s37922_s1 + $0x1eb4] ss:$100 sps:$4 sm:$0xff]  }
 0x2cc   : > { %9109 = vmatprep.subr.bf16.mxu1 %v26031_v53 }
 0x2ce   : > { %9032 = vmatpush2.bf16.msra.mxu0 %v26032_v61  ;;  %v26077_v61 = vld [vmem:[%s37922_s1 + $0x1eb0] ss:$100 sps:$4 sm:$0xff]  }
 0x2cf   : > { %9110 = vmatpush2.bf16.msra.mxu1 %v26029_v60  ;;  %9033 = vmatprep.subr.bf16.mxu0 %v26040_v5  ;;  %v26082_v60 = vld [vmem:[%s37922_s1 + $0x10a4] ss:$100 sps:$4 sm:$0xff]  }
 0x2d0   : > { %9111 = vmatprep.subr.bf16.mxu1 %v26037_v2  ;;  %v26080_v2 = vld [vmem:[%s37922_s1 + $0x10a0] ss:$100 sps:$4 sm:$0xff]  }
 0x2d2   : > { %9034 = vmatpush2.bf16.msra.mxu0 %v26038_v10 }
 0x2d3   : > { %9112 = vmatpush2.bf16.msra.mxu1 %v26035_v9  ;;  %9035 = vmatprep.subr.bf16.mxu0 %v26046_v12  ;;  %v26085_v9 = vld [vmem:[%s37922_s1 + $0x1dec] ss:$100 sps:$4 sm:$0xff]  }
 0x2d4   : > { %9113 = vmatprep.subr.bf16.mxu1 %v26043_v11  ;;  %v26088_v11 = vld [vmem:[%s37922_s1 + $0xfdc] ss:$100 sps:$4 sm:$0xff]   ;;  %v26083_v12 = vld [vmem:[%s37922_s1 + $0x1de8] ss:$100 sps:$4 sm:$0xff]  }
 0x2d6   : > { %9036 = vmatpush2.bf16.msra.mxu0 %v26044_v15  ;;  %v26091_v15 = vld [vmem:[%s37922_s1 + $0x1d24] ss:$100 sps:$4 sm:$0xff]  }
 0x2d7   : > { %9114 = vmatpush2.bf16.msra.mxu1 %v26041_v14  ;;  %9037 = vmatprep.subr.bf16.mxu0 %v26052_v20  ;;  %v26086_v14 = vld [vmem:[%s37922_s1 + $0xfd8] ss:$100 sps:$4 sm:$0xff]   ;;  %v26089_v20 = vld [vmem:[%s37922_s1 + $0x1d20] ss:$100 sps:$4 sm:$0xff]  }
 0x2d8   : > { %9115 = vmatprep.subr.bf16.mxu1 %v26049_v52  ;;  %v26094_v52 = vld [vmem:[%s37922_s1 + $0xf14] ss:$100 sps:$4 sm:$0xff]  }
 0x2da   : > { %9038 = vmatpush2.bf16.msra.mxu0 %v26050_v21  ;;  %v26097_v21 = vld [vmem:[%s37922_s1 + $0x1c5c] ss:$100 sps:$4 sm:$0xff]  }
 0x2db   : > { %9116 = vmatpush2.bf16.msra.mxu1 %v26047_v63  ;;  %9039 = vmatprep.subr.bf16.mxu0 %v26058_v23  ;;  %v26092_v63 = vld [vmem:[%s37922_s1 + $0xf10] ss:$100 sps:$4 sm:$0xff]   ;;  %v26095_v23 = vld [vmem:[%s37922_s1 + $0x1c58] ss:$100 sps:$4 sm:$0xff]  }
 0x2dc   : > { %9117 = vmatprep.subr.bf16.mxu1 %v26055_v26  ;;  %v26100_v26 = vld [vmem:[%s37922_s1 + $0xe4c] ss:$100 sps:$4 sm:$0xff]  }
 0x2dd   : > { %v8717_v0 = vpop.f32.mrf.mxu0 }
 0x2de   : > { %v8718_v32 = vadd.f32 %v8717_v0, %v31174_v44  ;;  %9040 = vmatpush2.bf16.msra.mxu0 %v26056_v49  ;;  %v26070_v44 = vld [vmem:[%s37922_s1 + $0x1234] ss:$100 sps:$4 sm:$0xff]   ;;  %v26104_v0 = vld [vmem:[%s37922_s1 + $0xd80] ss:$100 sps:$4 sm:$0xff]  }
 0x2df   : > { %9118 = vmatpush2.bf16.msra.mxu1 %v26053_v48  ;;  %v8719_v17 = vpop.f32.mrf.mxu0  ;;  %9041 = vmatprep.subr.bf16.mxu0 %v26064_v58  ;;  %v26098_v48 = vld [vmem:[%s37922_s1 + $0xe48] ss:$100 sps:$4 sm:$0xff]   ;;  %v26103_v49 = vld [vmem:[%s37922_s1 + $0x1b94] ss:$100 sps:$4 sm:$0xff]  }
 0x2e0   : > { %9119 = vmatprep.subr.bf16.mxu1 %v26061_v24  ;;  %v31377_v40 = vadd.f32 %v31195_v62, %v8718_v32  ;;  %v8720_v41 = vadd.f32 %v8719_v17, %v31182_v28  ;;  %v26073_v28 = vld [vmem:[%s37922_s1 + $0x67c] ss:$100 sps:$4 sm:$0xff]   ;;  %v26076_v62 = vld [vmem:[%s37922_s1 + $0x116c] ss:$100 sps:$4 sm:$0xff]   ;;  %v26106_v24 = vld [vmem:[%s37922_s1 + $0xd84] ss:$100 sps:$4 sm:$0xff]  }
 0x2e1   : > { %v8721_v43 = vpop.f32.mrf.mxu0  ;;  %v26101_v58 = vld [vmem:[%s37922_s1 + $0x1b90] ss:$100 sps:$4 sm:$0xff]   ;;  %v26110_v17 = vld [vmem:[%s37922_s1 + $0xcb8] ss:$100 sps:$4 sm:$0xff]  }
 0x2e2   : > { %v31381_v45 = vadd.f32 %v31197_v25, %v8720_v41  ;;  %9042 = vmatpush2.bf16.msra.mxu0 %v26062_v38  ;;  %v26071_v25 = vld [vmem:[%s37922_s1 + $0x678] ss:$100 sps:$4 sm:$0xff]   ;;  %v26109_v32 = vld [vmem:[%s37922_s1 + $0x1acc] ss:$100 sps:$4 sm:$0xff]   ;;  %v26113_v41 = vld [vmem:[%s37922_s1 + $0x1a00] ss:$100 sps:$4 sm:$0xff]  }
 0x2e3   : > { %9120 = vmatpush2.bf16.msra.mxu1 %v26059_v34  ;;  %v8722_v46 = vpop.f32.mrf.mxu0  ;;  %9134 = vmatprep.subr.bf16.mxu0 %v26070_v44  ;;  %v26112_v34 = vld [vmem:[%s37922_s1 + $0xcbc] ss:$100 sps:$4 sm:$0xff]   ;;  %v26107_v38 = vld [vmem:[%s37922_s1 + $0x1ac8] ss:$100 sps:$4 sm:$0xff]   ;;  %v26118_v44 = vld [vmem:[%s37922_s1 + $0x1874] ss:$100 sps:$4 sm:$0xff]  }
 0x2e4   : > { %9121 = vmatprep.subr.bf16.mxu1 %v26067_v29  ;;  %v26115_v29 = vld [vmem:[%s37922_s1 + $0x1a04] ss:$100 sps:$4 sm:$0xff]   ;;  %v26116_v43 = vld [vmem:[%s37922_s1 + $0x1870] ss:$100 sps:$4 sm:$0xff]   ;;  %v26119_v46 = vld [vmem:[%s37922_s1 + $0x1938] ss:$100 sps:$4 sm:$0xff]  }
 0x2e5   : > { %9044 = vmatmul.mubr.bf16.vlgmr.msra.gmra.mxu0 %v29438_v16 }
 0x2e6   : > { %v31401_v37 = vpop.f32.mrf.mxu1  ;;  %9135 = vmatpush1.bf16.msra.mxu0 %v26068_v4  ;;  %9166 = vmatprep.mubr.bf16.mxu0 %v29168_v51  ;;  %v26124_v4 = vld [vmem:[%s37922_s1 + $0x17ac] ss:$100 sps:$4 sm:$0xff]  }
 0x2e7   : > { %9122 = vmatpush2.bf16.msra.mxu1 %v26065_v59  ;;  %9136 = vmatprep.subr.bf16.mxu0 %v26076_v62  ;;  %v26121_v59 = vld [vmem:[%s37922_s1 + $0x193c] ss:$100 sps:$4 sm:$0xff]   ;;  %v26127_v62 = vld [vmem:[%s37922_s1 + $0x24f4] ss:$100 sps:$4 sm:$0xff]  }
 0x2e8   : > { %v31404_v53 = vpop.f32.mrf.mxu1  ;;  %9123 = vmatprep.subr.bf16.mxu1 %v26073_v28  ;;  %v26122_v28 = vld [vmem:[%s37922_s1 + $0x17a8] ss:$100 sps:$4 sm:$0xff]  }
 0x2ea   : > { %v8803_v5 = vpop.f32.mrf.mxu1  ;;  %9137 = vmatpush1.bf16.msra.mxu0 %v26074_v50  ;;  %v26125_v50 = vld [vmem:[%s37922_s1 + $0x24f0] ss:$100 sps:$4 sm:$0xff]  }
 0x2eb   : > { %9124 = vmatpush2.bf16.msra.mxu1 %v26071_v25  ;;  %9138 = vmatprep.subr.bf16.mxu0 %v26082_v60  ;;  %v26130_v25 = vld [vmem:[%s37922_s1 + $0x16e4] ss:$100 sps:$4 sm:$0xff]   ;;  %v26133_v60 = vld [vmem:[%s37922_s1 + $0x242c] ss:$100 sps:$4 sm:$0xff]   ;;  %v26134_v5 = vld [vmem:[%s37922_s1 + $0x1618] ss:$100 sps:$4 sm:$0xff]  }
 0x2ec   : > { %v8804_v10 = vpop.f32.mrf.mxu1  ;;  %9175 = vmatprep.subr.bf16.mxu1 %v26079_v55  ;;  %v26128_v55 = vld [vmem:[%s37922_s1 + $0x16e0] ss:$100 sps:$4 sm:$0xff]  }
 0x2ed   : > { %v26142_v10 = vld [vmem:[%s37922_s1 + $0x1554] ss:$100 sps:$4 sm:$0xff]  }
 0x2ee   : > { %9126 = vmatmul.mubr.bf16.vlgmr.msra.gmra.mxu1 %v29226_v6  ;;  %9139 = vmatpush1.bf16.msra.mxu0 %v26080_v2  ;;  %v26131_v2 = vld [vmem:[%s37922_s1 + $0x2428] ss:$100 sps:$4 sm:$0xff]  }
 0x2ef   : > { %9176 = vmatpush1.bf16.msra.mxu1 %v26077_v61  ;;  %9140 = vmatprep.subr.bf16.mxu0 %v26088_v11  ;;  %v26136_v61 = vld [vmem:[%s37922_s1 + $0x161c] ss:$100 sps:$4 sm:$0xff]  }
 0x2f0   : > { %9177 = vmatprep.subr.bf16.mxu1 %v26085_v9  ;;  %9207 = vmatprep.mubr.bf16.mxu1 %v29310_v33  ;;  %v26139_v9 = vld [vmem:[%s37922_s1 + $0x2364] ss:$100 sps:$4 sm:$0xff]  }
 0x2f1   : > { %v26137_v11 = vld [vmem:[%s37922_s1 + $0x2360] ss:$100 sps:$4 sm:$0xff]  }
 0x2f2   : > { %9141 = vmatpush1.bf16.msra.mxu0 %v26086_v14  ;;  %v26145_v14 = vld [vmem:[%s37922_s1 + $0x229c] ss:$100 sps:$4 sm:$0xff]  }
 0x2f3   : > { %9178 = vmatpush1.bf16.msra.mxu1 %v26083_v12  ;;  %9142 = vmatprep.subr.bf16.mxu0 %v26094_v52  ;;  %v26140_v12 = vld [vmem:[%s37922_s1 + $0x1550] ss:$100 sps:$4 sm:$0xff]   ;;  %v26143_v52 = vld [vmem:[%s37922_s1 + $0x2298] ss:$100 sps:$4 sm:$0xff]  }
 0x2f4   : > { %9179 = vmatprep.subr.bf16.mxu1 %v26091_v15  ;;  %v26148_v15 = vld [vmem:[%s37922_s1 + $0x148c] ss:$100 sps:$4 sm:$0xff]  }
 0x2f6   : > { %9143 = vmatpush1.bf16.msra.mxu0 %v26092_v63  ;;  %v26151_v63 = vld [vmem:[%s37922_s1 + $0x21d4] ss:$100 sps:$4 sm:$0xff]  }
 0x2f7   : > { %9180 = vmatpush1.bf16.msra.mxu1 %v26089_v20  ;;  %9144 = vmatprep.subr.bf16.mxu0 %v26100_v26  ;;  %v26146_v20 = vld [vmem:[%s37922_s1 + $0x1488] ss:$100 sps:$4 sm:$0xff]  }
 0x2f8   : > { %9181 = vmatprep.subr.bf16.mxu1 %v26097_v21  ;;  %v26154_v21 = vld [vmem:[%s37922_s1 + $0x13c4] ss:$100 sps:$4 sm:$0xff]  }
 0x2f9   : > { %v31562_v26 = vld [vmem:[%s37923_s2 + $0x8] sm:$0xff] }
 0x2fa   : > { %9145 = vmatpush1.bf16.msra.mxu0 %v26098_v48  ;;  %v1665_v48 = vrot.slane %v31562_v26, %v30240_v27 }
 0x2fb   : > { %9182 = vmatpush1.bf16.msra.mxu1 %v26095_v23  ;;  %9146 = vmatprep.subr.bf16.mxu0 %v26106_v24  ;;  %v1661_v23 = vrot.slane %v31562_v26, %v30237_v1  ;;  %v26152_v24 = vld [vmem:[%s37922_s1 + $0x13c0] ss:$100 sps:$4 sm:$0xff]  }
 0x2fc   : > { %9183 = vmatprep.subr.bf16.mxu1 %v26103_v49  ;;  %v26149_v49 = vld [vmem:[%s37922_s1 + $0x21d0] ss:$100 sps:$4 sm:$0xff]  }
 0x2fe   : > { %9147 = vmatpush1.bf16.msra.mxu0 %v26104_v0  ;;  %v26160_v0 = vld [vmem:[%s37922_s1 + $0x12fc] ss:$100 sps:$4 sm:$0xff]  }
 0x2ff   : > { %9184 = vmatpush1.bf16.msra.mxu1 %v26101_v58  ;;  %9148 = vmatprep.subr.bf16.mxu0 %v26112_v34  ;;  %v26157_v58 = vld [vmem:[%s37922_s1 + $0x210c] ss:$100 sps:$4 sm:$0xff]  }
 0x300   : > { %9185 = vmatprep.subr.bf16.mxu1 %v26109_v32  ;;  %v8800_v32 = vadd.f32 %v31401_v37, %v1661_v23  ;;  %v26163_v37 = vld [vmem:[%s37922_s1 + $0x2044] ss:$100 sps:$4 sm:$0xff]  }
 0x302   : > { %9149 = vmatpush1.bf16.msra.mxu0 %v26110_v17 }
 0x303   : > { %9186 = vmatpush1.bf16.msra.mxu1 %v26107_v38  ;;  %9150 = vmatprep.subr.bf16.mxu0 %v26118_v44  ;;  %v8802_v38 = vadd.f32 %v31404_v53, %v1665_v48  ;;  %v26158_v44 = vld [vmem:[%s37922_s1 + $0x12f8] ss:$100 sps:$4 sm:$0xff]  }
 0x304   : > { %9187 = vmatprep.subr.bf16.mxu1 %v26115_v29  ;;  %v26155_v29 = vld [vmem:[%s37922_s1 + $0x2108] ss:$100 sps:$4 sm:$0xff]   ;;  %v26166_v53 = vld [vmem:[%s37922_s1 + $0x25bc] ss:$100 sps:$4 sm:$0xff]   ;;  %v26181_v48 = vld [vmem:[%s37922_s1 + $0x1174] ss:$100 sps:$4 sm:$0xff]  }
 0x306   : > { %9151 = vmatpush2.bf16.msra.mxu0 %v26116_v43 }
 0x307   : > { %9188 = vmatpush1.bf16.msra.mxu1 %v26113_v41  ;;  %9152 = vmatprep.subr.bf16.mxu0 %v26124_v4  ;;  %v26161_v4 = vld [vmem:[%s37922_s1 + $0x2040] ss:$100 sps:$4 sm:$0xff]  }
 0x308   : > { %9189 = vmatprep.subr.bf16.mxu1 %v26121_v59 }
 0x30a   : > { %9153 = vmatpush2.bf16.msra.mxu0 %v26122_v28 }
 0x30b   : > { %9190 = vmatpush1.bf16.msra.mxu1 %v26119_v46  ;;  %9154 = vmatprep.subr.bf16.mxu0 %v26130_v25  ;;  %v26164_v46 = vld [vmem:[%s37922_s1 + $0x25b8] ss:$100 sps:$4 sm:$0xff]  }
 0x30c   : > { %9191 = vmatprep.subr.bf16.mxu1 %v26127_v62  ;;  %v26169_v62 = vld [vmem:[%s37922_s1 + $0x1f7c] ss:$100 sps:$4 sm:$0xff]  }
 0x30d   : > { %v26172_v25 = vld [vmem:[%s37922_s1 + $0x5bc] ss:$100 sps:$4 sm:$0xff]  }
 0x30e   : > { %9155 = vmatpush2.bf16.msra.mxu0 %v26128_v55 }
 0x30f   : > { %9192 = vmatpush2.bf16.msra.mxu1 %v26125_v50  ;;  %9156 = vmatprep.subr.bf16.mxu0 %v26136_v61  ;;  %v26167_v50 = vld [vmem:[%s37922_s1 + $0x1f78] ss:$100 sps:$4 sm:$0xff]  }
 0x310   : > { %9193 = vmatprep.subr.bf16.mxu1 %v26133_v60 }
 0x312   : > { %9157 = vmatpush2.bf16.msra.mxu0 %v26134_v5 }
 0x313   : > { %9194 = vmatpush2.bf16.msra.mxu1 %v26131_v2  ;;  %9158 = vmatprep.subr.bf16.mxu0 %v26142_v10 }
 0x314   : > { %9195 = vmatprep.subr.bf16.mxu1 %v26139_v9  ;;  %v26175_v9 = vld [vmem:[%s37922_s1 + $0x123c] ss:$100 sps:$4 sm:$0xff]  }
 0x316   : > { %9159 = vmatpush2.bf16.msra.mxu0 %v26140_v12  ;;  %v26170_v12 = vld [vmem:[%s37922_s1 + $0x5b8] ss:$100 sps:$4 sm:$0xff]  }
 0x317   : > { %9196 = vmatpush2.bf16.msra.mxu1 %v26137_v11  ;;  %9160 = vmatprep.subr.bf16.mxu0 %v26148_v15 }
 0x318   : > { %9197 = vmatprep.subr.bf16.mxu1 %v26145_v14  ;;  %v26173_v14 = vld [vmem:[%s37922_s1 + $0x1238] ss:$100 sps:$4 sm:$0xff]  }
 0x31a   : > { %9161 = vmatpush2.bf16.msra.mxu0 %v26146_v20  ;;  %v26178_v20 = vld [vmem:[%s37922_s1 + $0x4f4] ss:$100 sps:$4 sm:$0xff]  }
 0x31b   : > { %9198 = vmatpush2.bf16.msra.mxu1 %v26143_v52  ;;  %9162 = vmatprep.subr.bf16.mxu0 %v26154_v21 }
 0x31c   : > { %9199 = vmatprep.subr.bf16.mxu1 %v26151_v63 }
 0x31d   : > { %v8840_v34 = vpop.f32.mrf.mxu0 }
 0x31e   : > { %v8841_v17 = vadd.f32 %v8840_v34, %v8800_v32  ;;  %9163 = vmatpush2.bf16.msra.mxu0 %v26152_v24  ;;  %v26179_v24 = vld [vmem:[%s37922_s1 + $0x1170] ss:$100 sps:$4 sm:$0xff]   ;;  %v26182_v34 = vld [vmem:[%s37922_s1 + $0x428] ss:$100 sps:$4 sm:$0xff]  }
 0x31f   : > { %9200 = vmatpush2.bf16.msra.mxu1 %v26149_v49  ;;  %v8842_v41 = vpop.f32.mrf.mxu0  ;;  %9164 = vmatprep.subr.bf16.mxu0 %v26160_v0  ;;  %v26176_v49 = vld [vmem:[%s37922_s1 + $0x4f0] ss:$100 sps:$4 sm:$0xff]  }
 0x320   : > { %9201 = vmatprep.subr.bf16.mxu1 %v26157_v58  ;;  %v8843_v43 = vadd.f32 %v8842_v41, %v8802_v38  ;;  %v31638_v58 = vld [vmem:[%s29150_s26 + $0x18] ss:$0 sps:$4 sm:$0xff]   ;;  %v26184_v0 = vld [vmem:[%s37922_s1 + $0x42c] ss:$100 sps:$4 sm:$0xff]   ;;  %v26191_v41 = vld [vmem:[%s37922_s1 + $0xfe0] ss:$100 sps:$4 sm:$0xff]  }
 0x321   : > { %v8844_v59 = vpop.f32.mrf.mxu0  ;;  %v26187_v32 = vld [vmem:[%s37922_s1 + $0x10ac] ss:$100 sps:$4 sm:$0xff]  }
 0x322   : > { %9165 = vmatpush2.bf16.msra.mxu0 %v26158_v44  ;;  %v26185_v38 = vld [vmem:[%s37922_s1 + $0x10a8] ss:$100 sps:$4 sm:$0xff]   ;;  %v26188_v44 = vld [vmem:[%s37922_s1 + $0x360] ss:$100 sps:$4 sm:$0xff]   ;;  %v26197_v59 = vld [vmem:[%s37922_s1 + $0xf18] ss:$100 sps:$4 sm:$0xff]  }
 0x323   : > { %9202 = vmatpush2.bf16.msra.mxu1 %v26155_v29  ;;  %v8845_v28 = vpop.f32.mrf.mxu0  ;;  %9230 = vmatprep.subr.bf16.mxu0 %v26166_v53  ;;  %v26193_v29 = vld [vmem:[%s37922_s1 + $0xfe4] ss:$100 sps:$4 sm:$0xff]   ;;  %v26199_v53 = vld [vmem:[%s37922_s1 + $0xf1c] ss:$100 sps:$4 sm:$0xff]  }
 0x324   : > { %9203 = vmatprep.subr.bf16.mxu1 %v26163_v37  ;;  %v26196_v37 = vld [vmem:[%s37922_s1 + $0x29c] ss:$100 sps:$4 sm:$0xff]   ;;  %v26200_v28 = vld [vmem:[%s37922_s1 + $0x1d0] ss:$100 sps:$4 sm:$0xff]  }
 0x325   : > { %9167 = vmatmul.mubr.bf16.vlgmr.msra.gmra.mxu0 %v29228_v7  ;;  %v8922_v60 = vpop.f32.mrf.mxu0 }
 0x326   : > { %v8881_v55 = vpop.f32.mrf.mxu1  ;;  %9231 = vmatpush1.bf16.msra.mxu0 %v26164_v46  ;;  %9248 = vmatprep.mubr.bf16.mxu0 %v28947_v13  ;;  %v26205_v46 = vld [vmem:[%s37922_s1 + $0xe54] ss:$100 sps:$4 sm:$0xff]  }
 0x327   : > { %v8882_v61 = vadd.f32 %v8881_v55, %v8841_v17  ;;  %9204 = vmatpush2.bf16.msra.mxu1 %v26161_v4  ;;  %v8924_v5 = vpop.f32.mrf.mxu0  ;;  %9257 = vmatprep.subr.bf16.mxu0 %v26172_v25  ;;  %v26190_v17 = vld [vmem:[%s37922_s1 + $0x364] ss:$100 sps:$4 sm:$0xff]   ;;  %v26202_v4 = vld [vmem:[%s37922_s1 + $0x1d4] ss:$100 sps:$4 sm:$0xff]   ;;  %v26208_v25 = vld [vmem:[%s37922_s1 + $0x10c] ss:$100 sps:$4 sm:$0xff]  }
 0x328   : > { %v8883_v2 = vpop.f32.mrf.mxu1  ;;  %9205 = vmatprep.subr.bf16.mxu1 %v26169_v62  ;;  %v26203_v62 = vld [vmem:[%s37922_s1 + $0xe50] ss:$100 sps:$4 sm:$0xff]   ;;  %v26206_v55 = vld [vmem:[%s37922_s1 + $0x108] ss:$100 sps:$4 sm:$0xff]  }
 0x329   : > { %v31614_v10 = vadd.f32 %v8922_v60, %v8882_v61  ;;  %v8884_v11 = vadd.f32 %v8883_v2, %v8843_v43  ;;  %v8926_v52 = vpop.f32.mrf.mxu0  ;;  %v26194_v43 = vld [vmem:[%s37922_s1 + $0x298] ss:$100 sps:$4 sm:$0xff]   ;;  %v26209_v60 = vld [vmem:[%s37922_s1 + $0xd88] ss:$100 sps:$4 sm:$0xff]  }
 0x32a   : > { %v8885_v15 = vpop.f32.mrf.mxu1  ;;  %v26214_v61 = vld [vmem:[%s37922_s1 + $0x44] ss:$100 sps:$4 sm:$0xff]   ;;  %v26226_v52 = vld [vmem:[%s37922_s1 + $0xb34] ss:$100 sps:$4 sm:$0xff]  }
 0x32b   : > { %v31625_v63 = vadd.f32 %v8924_v5, %v8884_v11  ;;  %9206 = vmatpush2.bf16.msra.mxu1 %v26167_v50  ;;  %v8927_v23 = vpop.f32.mrf.mxu0  ;;  %v26211_v50 = vld [vmem:[%s37922_s1 + $0xd8c] ss:$100 sps:$4 sm:$0xff]   ;;  %v26217_v2 = vld [vmem:[%s37922_s1 + $0xcc4] ss:$100 sps:$4 sm:$0xff]   ;;  %v26220_v11 = vld [vmem:[%s37922_s1 + $0xbfc] ss:$100 sps:$4 sm:$0xff]  }
 0x32c   : > { %v8886_v21 = vpop.f32.mrf.mxu1  ;;  %9298 = vmatprep.subr.bf16.mxu1 %v26175_v9  ;;  %v26212_v5 = vld [vmem:[%s37922_s1 + $0x40] ss:$100 sps:$4 sm:$0xff]   ;;  %v26221_v15 = vld [vmem:[%s37922_s1 + $0x1878] ss:$100 sps:$4 sm:$0xff]   ;;  %v26227_v23 = vld [vmem:[%s37922_s1 + $0x17b0] ss:$100 sps:$4 sm:$0xff]  }
 0x32d   : > { %23125 = vmatmul.mubr.msk.bf16.vlgmr.msra.gmra.mxu0 %vm7941_vm0, %v31638_v58  ;;  %v26215_v9 = vld [vmem:[%s37922_s1 + $0xcc0] ss:$100 sps:$4 sm:$0xff]   ;;  %v26224_v21 = vld [vmem:[%s37922_s1 + $0xb30] ss:$100 sps:$4 sm:$0xff]  }
 0x32e   : > { %9208 = vmatmul.mubr.bf16.vlgmr.msra.gmra.mxu1 %v29438_v16  ;;  %9258 = vmatpush1.bf16.msra.mxu0 %v26170_v12  ;;  %v26223_v12 = vld [vmem:[%s37922_s1 + $0x187c] ss:$100 sps:$4 sm:$0xff]  }
 0x32f   : > { %9299 = vmatpush1.bf16.msra.mxu1 %v26173_v14  ;;  %9259 = vmatprep.subr.bf16.mxu0 %v26178_v20  ;;  %v26218_v14 = vld [vmem:[%s37922_s1 + $0xbf8] ss:$100 sps:$4 sm:$0xff]  }
 0x330   : > { %9300 = vmatprep.subr.bf16.mxu1 %v26181_v48  ;;  %9289 = vmatprep.mubr.bf16.mxu0 %v29159_v47  ;;  %v26229_v20 = vld [vmem:[%s37922_s1 + $0x17b4] ss:$100 sps:$4 sm:$0xff]   ;;  %v26232_v48 = vld [vmem:[%s37922_s1 + $0xa6c] ss:$100 sps:$4 sm:$0xff]  }
 0x331   : > { %9330 = vmatprep.mubr.bf16.mxu1 %v29168_v51 }
 0x332   : > { %9260 = vmatpush1.bf16.msra.mxu0 %v26176_v49  ;;  %v26235_v49 = vld [vmem:[%s37922_s1 + $0x16ec] ss:$100 sps:$4 sm:$0xff]  }
 0x333   : > { %9301 = vmatpush1.bf16.msra.mxu1 %v26179_v24  ;;  %9261 = vmatprep.subr.bf16.mxu0 %v26184_v0  ;;  %v26230_v24 = vld [vmem:[%s37922_s1 + $0xa68] ss:$100 sps:$4 sm:$0xff]  }
 0x334   : > { %9302 = vmatprep.subr.bf16.mxu1 %v26187_v32  ;;  %v26233_v0 = vld [vmem:[%s37922_s1 + $0x16e8] ss:$100 sps:$4 sm:$0xff]  }
 0x335   : > { %v26238_v32 = vld [vmem:[%s37922_s1 + $0x9a4] ss:$100 sps:$4 sm:$0xff]  }
 0x336   : > { %9262 = vmatpush1.bf16.msra.mxu0 %v26182_v34  ;;  %v26241_v34 = vld [vmem:[%s37922_s1 + $0x1624] ss:$100 sps:$4 sm:$0xff]  }
 0x337   : > { %9303 = vmatpush1.bf16.msra.mxu1 %v26185_v38  ;;  %9263 = vmatprep.subr.bf16.mxu0 %v26190_v17  ;;  %v26236_v38 = vld [vmem:[%s37922_s1 + $0x9a0] ss:$100 sps:$4 sm:$0xff]  }
 0x338   : > { %9304 = vmatprep.subr.bf16.mxu1 %v26193_v29  ;;  %v26239_v17 = vld [vmem:[%s37922_s1 + $0x1620] ss:$100 sps:$4 sm:$0xff]  }
 0x339   : > { %v26244_v29 = vld [vmem:[%s37922_s1 + $0x8dc] ss:$100 sps:$4 sm:$0xff]  }
 0x33a   : > { %9264 = vmatpush1.bf16.msra.mxu0 %v26188_v44  ;;  %v26247_v44 = vld [vmem:[%s37922_s1 + $0x155c] ss:$100 sps:$4 sm:$0xff]  }
 0x33b   : > { %9305 = vmatpush1.bf16.msra.mxu1 %v26191_v41  ;;  %9265 = vmatprep.subr.bf16.mxu0 %v26196_v37  ;;  %v26242_v41 = vld [vmem:[%s37922_s1 + $0x8d8] ss:$100 sps:$4 sm:$0xff]  }
 0x33c   : > { %9306 = vmatprep.subr.bf16.mxu1 %v26199_v53  ;;  %v26245_v37 = vld [vmem:[%s37922_s1 + $0x1558] ss:$100 sps:$4 sm:$0xff]  }
 0x33d   : > { %v26250_v53 = vld [vmem:[%s37922_s1 + $0x814] ss:$100 sps:$4 sm:$0xff]  }
 0x33e   : > { %9266 = vmatpush1.bf16.msra.mxu0 %v26194_v43  ;;  %v26253_v43 = vld [vmem:[%s37922_s1 + $0x1494] ss:$100 sps:$4 sm:$0xff]  }
 0x33f   : > { %9307 = vmatpush1.bf16.msra.mxu1 %v26197_v59  ;;  %9267 = vmatprep.subr.bf16.mxu0 %v26202_v4  ;;  %v26248_v59 = vld [vmem:[%s37922_s1 + $0x810] ss:$100 sps:$4 sm:$0xff]  }
 0x340   : > { %9308 = vmatprep.subr.bf16.mxu1 %v26205_v46  ;;  %v26251_v4 = vld [vmem:[%s37922_s1 + $0x1490] ss:$100 sps:$4 sm:$0xff]  }
 0x341   : > { %v26256_v46 = vld [vmem:[%s37922_s1 + $0x74c] ss:$100 sps:$4 sm:$0xff]  }
 0x342   : > { %9268 = vmatpush1.bf16.msra.mxu0 %v26200_v28  ;;  %v26259_v28 = vld [vmem:[%s37922_s1 + $0x13cc] ss:$100 sps:$4 sm:$0xff]  }
 0x343   : > { %9309 = vmatpush1.bf16.msra.mxu1 %v26203_v62  ;;  %9269 = vmatprep.subr.bf16.mxu0 %v26208_v25  ;;  %v26254_v62 = vld [vmem:[%s37922_s1 + $0x748] ss:$100 sps:$4 sm:$0xff]  }
 0x344   : > { %9310 = vmatprep.subr.bf16.mxu1 %v26211_v50  ;;  %v26257_v25 = vld [vmem:[%s37922_s1 + $0x13c8] ss:$100 sps:$4 sm:$0xff]   ;;  %v1669_v50 = vrot.slane %v31562_v26, %v30484_v30 }
 0x346   : > { %9270 = vmatpush1.bf16.msra.mxu0 %v26206_v55  ;;  %v26262_v55 = vld [vmem:[%s37922_s1 + $0x684] ss:$100 sps:$4 sm:$0xff]  }
 0x347   : > { %9311 = vmatpush1.bf16.msra.mxu1 %v26209_v60  ;;  %9271 = vmatprep.subr.bf16.mxu0 %v26214_v61  ;;  %v26265_v60 = vld [vmem:[%s37922_s1 + $0x1304] ss:$100 sps:$4 sm:$0xff]   ;;  %v1673_v61 = vrot.slane %v31562_v26, %v30493_v36 }
 0x348   : > { %9312 = vmatprep.subr.bf16.mxu1 %v26217_v2  ;;  %v26260_v2 = vld [vmem:[%s37922_s1 + $0x680] ss:$100 sps:$4 sm:$0xff]  }
 0x349   : > { %v26271_v26 = vld [vmem:[%s37922_s1 + $0x25c4] ss:$100 sps:$4 sm:$0xff]  }
 0x34a   : > { %9272 = vmatpush1.bf16.msra.mxu0 %v26212_v5  ;;  %v26263_v5 = vld [vmem:[%s37922_s1 + $0x1300] ss:$100 sps:$4 sm:$0xff]  }
 0x34b   : > { %9313 = vmatpush1.bf16.msra.mxu1 %v26215_v9  ;;  %9273 = vmatprep.subr.bf16.mxu0 %v26220_v11 }
 0x34c   : > { %9314 = vmatprep.subr.bf16.mxu1 %v26223_v12  ;;  %v26268_v12 = vld [vmem:[%s37922_s1 + $0x1ebc] ss:$100 sps:$4 sm:$0xff]  }
 0x34e   : > { %9274 = vmatpush2.bf16.msra.mxu0 %v26218_v14 }
 0x34f   : > { %9315 = vmatpush2.bf16.msra.mxu1 %v26221_v15  ;;  %9275 = vmatprep.subr.bf16.mxu0 %v26226_v52 }
 0x350   : > { %9316 = vmatprep.subr.bf16.mxu1 %v26229_v20 }
 0x352   : > { %9276 = vmatpush2.bf16.msra.mxu0 %v26224_v21 }
 0x353   : > { %9317 = vmatpush2.bf16.msra.mxu1 %v26227_v23  ;;  %9277 = vmatprep.subr.bf16.mxu0 %v26232_v48  ;;  %v26266_v23 = vld [vmem:[%s37922_s1 + $0x1eb8] ss:$100 sps:$4 sm:$0xff]   ;;  %v26269_v48 = vld [vmem:[%s37922_s1 + $0x25c0] ss:$100 sps:$4 sm:$0xff]  }
 0x354   : > { %9318 = vmatprep.subr.bf16.mxu1 %v26235_v49 }
 0x356   : > { %9278 = vmatpush2.bf16.msra.mxu0 %v26230_v24 }
 0x357   : > { %9319 = vmatpush2.bf16.msra.mxu1 %v26233_v0  ;;  %9279 = vmatprep.subr.bf16.mxu0 %v26238_v32 }
 0x358   : > { %9320 = vmatprep.subr.bf16.mxu1 %v26241_v34 }
 0x35a   : > { %9280 = vmatpush2.bf16.msra.mxu0 %v26236_v38  ;;  %v26274_v38 = vld [vmem:[%s37922_s1 + $0x1df4] ss:$100 sps:$4 sm:$0xff]  }
 0x35b   : > { %9321 = vmatpush2.bf16.msra.mxu1 %v26239_v17  ;;  %9281 = vmatprep.subr.bf16.mxu0 %v26244_v29  ;;  %v26277_v17 = vld [vmem:[%s37922_s1 + $0x5c4] ss:$100 sps:$4 sm:$0xff]   ;;  %v26272_v29 = vld [vmem:[%s37922_s1 + $0x1df0] ss:$100 sps:$4 sm:$0xff]  }
 0x35c   : > { %9322 = vmatprep.subr.bf16.mxu1 %v26247_v44 }
 0x35e   : > { %9282 = vmatpush2.bf16.msra.mxu0 %v26242_v41 }
 0x35f   : > { %9323 = vmatpush2.bf16.msra.mxu1 %v26245_v37  ;;  %9283 = vmatprep.subr.bf16.mxu0 %v26250_v53  ;;  %v26280_v37 = vld [vmem:[%s37922_s1 + $0x1d2c] ss:$100 sps:$4 sm:$0xff]   ;;  %v26275_v53 = vld [vmem:[%s37922_s1 + $0x5c0] ss:$100 sps:$4 sm:$0xff]  }
 0x360   : > { %9324 = vmatprep.subr.bf16.mxu1 %v26253_v43  ;;  %v26278_v43 = vld [vmem:[%s37922_s1 + $0x1d28] ss:$100 sps:$4 sm:$0xff]  }
 0x362   : > { %9284 = vmatpush2.bf16.msra.mxu0 %v26248_v59 }
 0x363   : > { %9325 = vmatpush2.bf16.msra.mxu1 %v26251_v4  ;;  %9285 = vmatprep.subr.bf16.mxu0 %v26256_v46  ;;  %v26283_v46 = vld [vmem:[%s37922_s1 + $0x4fc] ss:$100 sps:$4 sm:$0xff]  }
 0x364   : > { %9326 = vmatprep.subr.bf16.mxu1 %v26259_v28  ;;  %v26286_v28 = vld [vmem:[%s37922_s1 + $0x1c64] ss:$100 sps:$4 sm:$0xff]  }
 0x365   : > { %v8963_v9 = vpop.f32.mrf.mxu0 }
 0x366   : > { %v9004_v11 = vpop.f32.mrf.mxu1  ;;  %v8964_v14 = vadd.f32 %v8963_v9, %v1669_v50  ;;  %9286 = vmatpush2.bf16.msra.mxu0 %v26254_v62  ;;  %v26281_v62 = vld [vmem:[%s37922_s1 + $0x4f8] ss:$100 sps:$4 sm:$0xff]   ;;  %v26296_v9 = vld [vmem:[%s37922_s1 + $0x1ad0] ss:$100 sps:$4 sm:$0xff]  }
 0x367   : > { %9327 = vmatpush2.bf16.msra.mxu1 %v26257_v25  ;;  %v8965_v15 = vpop.f32.mrf.mxu0  ;;  %9287 = vmatprep.subr.bf16.mxu0 %v26262_v55  ;;  %v26284_v25 = vld [vmem:[%s37922_s1 + $0x1c60] ss:$100 sps:$4 sm:$0xff]   ;;  %v26289_v50 = vld [vmem:[%s37922_s1 + $0x434] ss:$100 sps:$4 sm:$0xff]  }
 0x368   : > { %v9006_v52 = vpop.f32.mrf.mxu1  ;;  %9328 = vmatprep.subr.bf16.mxu1 %v26265_v60  ;;  %v31822_v20 = vadd.f32 %v9004_v11, %v8964_v14  ;;  %v8966_v21 = vadd.f32 %v8965_v15, %v1673_v61  ;;  %v26287_v55 = vld [vmem:[%s37922_s1 + $0x430] ss:$100 sps:$4 sm:$0xff]   ;;  %v26290_v60 = vld [vmem:[%s37922_s1 + $0x1b98] ss:$100 sps:$4 sm:$0xff]   ;;  %v26301_v11 = vld [vmem:[%s37922_s1 + $0x2a4] ss:$100 sps:$4 sm:$0xff]  }
 0x369   : > { %v8967_v49 = vpop.f32.mrf.mxu0  ;;  %v26295_v61 = vld [vmem:[%s37922_s1 + $0x36c] ss:$100 sps:$4 sm:$0xff]   ;;  %v26299_v14 = vld [vmem:[%s37922_s1 + $0x2a0] ss:$100 sps:$4 sm:$0xff]  }
 0x36a   : > { %v9008_v24 = vpop.f32.mrf.mxu1  ;;  %v31830_v0 = vadd.f32 %v9006_v52, %v8966_v21  ;;  %9288 = vmatpush2.bf16.msra.mxu0 %v26260_v2  ;;  %v26298_v2 = vld [vmem:[%s37922_s1 + $0x1ad4] ss:$100 sps:$4 sm:$0xff]   ;;  %v26302_v15 = vld [vmem:[%s37922_s1 + $0x1a08] ss:$100 sps:$4 sm:$0xff]   ;;  %v26307_v52 = vld [vmem:[%s37922_s1 + $0x1dc] ss:$100 sps:$4 sm:$0xff]  }
 0x36b   : > { %9329 = vmatpush2.bf16.msra.mxu1 %v26263_v5  ;;  %v8968_v32 = vpop.f32.mrf.mxu0  ;;  %9339 = vmatprep.subr.bf16.mxu0 %v26268_v12  ;;  %v26293_v5 = vld [vmem:[%s37922_s1 + $0x368] ss:$100 sps:$4 sm:$0xff]   ;;  %v26305_v21 = vld [vmem:[%s37922_s1 + $0x1d8] ss:$100 sps:$4 sm:$0xff]   ;;  %v26311_v24 = vld [vmem:[%s37922_s1 + $0x110] ss:$100 sps:$4 sm:$0xff]  }
 0x36c   : > { %v9009_v34 = vpop.f32.mrf.mxu1  ;;  %9394 = vmatprep.subr.bf16.mxu1 %v26271_v26  ;;  %v26304_v12 = vld [vmem:[%s37922_s1 + $0x1a0c] ss:$100 sps:$4 sm:$0xff]   ;;  %v26310_v26 = vld [vmem:[%s37922_s1 + $0x1944] ss:$100 sps:$4 sm:$0xff]   ;;  %v26316_v49 = vld [vmem:[%s37922_s1 + $0x24fc] ss:$100 sps:$4 sm:$0xff]  }
 0x36d   : > { %9290 = vmatmul.mubr.bf16.vlgmr.msra.gmra.mxu0 %v29226_v6  ;;  %v26314_v32 = vld [vmem:[%s37922_s1 + $0x24f8] ss:$100 sps:$4 sm:$0xff]   ;;  %v26319_v34 = vld [vmem:[%s37922_s1 + $0x4c] ss:$100 sps:$4 sm:$0xff]  }
 0x36e   : > { %9331 = vmatmul.mubr.bf16.vlgmr.msra.gmra.mxu1 %v29228_v7  ;;  %v31843_v44 = vpop.f32.mrf.mxu1  ;;  %9340 = vmatpush1.bf16.msra.mxu0 %v26266_v23  ;;  %v26308_v23 = vld [vmem:[%s37922_s1 + $0x1940] ss:$100 sps:$4 sm:$0xff]  }
 0x36f   : > { %9395 = vmatpush1.bf16.msra.mxu1 %v26269_v48  ;;  %9341 = vmatprep.subr.bf16.mxu0 %v26274_v38  ;;  %v26313_v48 = vld [vmem:[%s37922_s1 + $0x114] ss:$100 sps:$4 sm:$0xff]  }
 0x370   : > { %v31845_v41 = vpop.f32.mrf.mxu1  ;;  %9412 = vmatprep.mubr.bf16.mxu1 %v28947_v13  ;;  %9421 = vmatprep.subr.bf16.mxu1 %v26277_v17  ;;  %v26322_v38 = vld [vmem:[%s37922_s1 + $0x2434] ss:$100 sps:$4 sm:$0xff]   ;;  %v26317_v17 = vld [vmem:[%s37922_s1 + $0x48] ss:$100 sps:$4 sm:$0xff]  }
 0x371   : > { %9371 = vmatprep.mubr.bf16.mxu0 %v29310_v33 }
 0x372   : > { %v9090_v59 = vpop.f32.mrf.mxu1  ;;  %9342 = vmatpush1.bf16.msra.mxu0 %v26272_v29  ;;  %v26320_v29 = vld [vmem:[%s37922_s1 + $0x2430] ss:$100 sps:$4 sm:$0xff]  }
 0x373   : > { %9343 = vmatprep.subr.bf16.mxu0 %v26280_v37  ;;  %v26325_v37 = vld [vmem:[%s37922_s1 + $0xc04] ss:$100 sps:$4 sm:$0xff]  }
 0x374   : > { %v9091_v4 = vpop.f32.mrf.mxu1  ;;  %v26326_v59 = vld [vmem:[%s37922_s1 + $0x2368] ss:$100 sps:$4 sm:$0xff]  }
 0x375   : > { %v26331_v4 = vld [vmem:[%s37922_s1 + $0xb3c] ss:$100 sps:$4 sm:$0xff]  }
 0x376   : > { %23126 = vmatmul.mubr.msk.bf16.vlgmr.msra.gmra.mxu1 %vm7941_vm0, %v31638_v58  ;;  %9344 = vmatpush1.bf16.msra.mxu0 %v26278_v43  ;;  %v26292_v58 = vld [vmem:[%s37922_s1 + $0x1b9c] ss:$100 sps:$4 sm:$0xff]  }
 0x377   : > { %9422 = vmatpush1.bf16.msra.mxu1 %v26275_v53  ;;  %9345 = vmatprep.subr.bf16.mxu0 %v26286_v28  ;;  %v26328_v53 = vld [vmem:[%s37922_s1 + $0x236c] ss:$100 sps:$4 sm:$0xff]   ;;  %v26323_v43 = vld [vmem:[%s37922_s1 + $0xc00] ss:$100 sps:$4 sm:$0xff]   ;;  %v26329_v28 = vld [vmem:[%s37922_s1 + $0xb38] ss:$100 sps:$4 sm:$0xff]  }
 0x378   : > { %9423 = vmatprep.subr.bf16.mxu1 %v26283_v46  ;;  %9453 = vmatprep.mubr.bf16.mxu1 %v29159_v47  ;;  %v26334_v46 = vld [vmem:[%s37922_s1 + $0x22a4] ss:$100 sps:$4 sm:$0xff]  }
 0x37a   : > { %9346 = vmatpush1.bf16.msra.mxu0 %v26284_v25  ;;  %v26337_v25 = vld [vmem:[%s37922_s1 + $0xa74] ss:$100 sps:$4 sm:$0xff]  }
 0x37b   : > { %9424 = vmatpush1.bf16.msra.mxu1 %v26281_v62  ;;  %9347 = vmatprep.subr.bf16.mxu0 %v26292_v58  ;;  %v26332_v62 = vld [vmem:[%s37922_s1 + $0x22a0] ss:$100 sps:$4 sm:$0xff]   ;;  %v26335_v58 = vld [vmem:[%s37922_s1 + $0xa70] ss:$100 sps:$4 sm:$0xff]  }
 0x37c   : > { %9425 = vmatprep.subr.bf16.mxu1 %v26289_v50  ;;  %v26340_v50 = vld [vmem:[%s37922_s1 + $0x21dc] ss:$100 sps:$4 sm:$0xff]  }
 0x37e   : > { %9348 = vmatpush1.bf16.msra.mxu0 %v26290_v60  ;;  %v26343_v60 = vld [vmem:[%s37922_s1 + $0x9ac] ss:$100 sps:$4 sm:$0xff]  }
 0x37f   : > { %9426 = vmatpush1.bf16.msra.mxu1 %v26287_v55  ;;  %9349 = vmatprep.subr.bf16.mxu0 %v26298_v2  ;;  %v26338_v55 = vld [vmem:[%s37922_s1 + $0x21d8] ss:$100 sps:$4 sm:$0xff]   ;;  %v26341_v2 = vld [vmem:[%s37922_s1 + $0x9a8] ss:$100 sps:$4 sm:$0xff]  }
 0x380   : > { %9427 = vmatprep.subr.bf16.mxu1 %v26295_v61  ;;  %v26346_v61 = vld [vmem:[%s37922_s1 + $0x2114] ss:$100 sps:$4 sm:$0xff]  }
 0x382   : > { %9350 = vmatpush1.bf16.msra.mxu0 %v26296_v9  ;;  %v26349_v9 = vld [vmem:[%s37922_s1 + $0x8e4] ss:$100 sps:$4 sm:$0xff]  }
 0x383   : > { %9428 = vmatpush1.bf16.msra.mxu1 %v26293_v5  ;;  %9351 = vmatprep.subr.bf16.mxu0 %v26304_v12  ;;  %v26344_v5 = vld [vmem:[%s37922_s1 + $0x2110] ss:$100 sps:$4 sm:$0xff]   ;;  %v26347_v12 = vld [vmem:[%s37922_s1 + $0x8e0] ss:$100 sps:$4 sm:$0xff]  }
 0x384   : > { %9429 = vmatprep.subr.bf16.mxu1 %v26301_v11  ;;  %v26352_v11 = vld [vmem:[%s37922_s1 + $0x204c] ss:$100 sps:$4 sm:$0xff]  }
 0x386   : > { %9352 = vmatpush1.bf16.msra.mxu0 %v26302_v15  ;;  %v26355_v15 = vld [vmem:[%s37922_s1 + $0x81c] ss:$100 sps:$4 sm:$0xff]  }
 0x387   : > { %9430 = vmatpush1.bf16.msra.mxu1 %v26299_v14  ;;  %9353 = vmatprep.subr.bf16.mxu0 %v26310_v26  ;;  %v26350_v14 = vld [vmem:[%s37922_s1 + $0x2048] ss:$100 sps:$4 sm:$0xff]  }
 0x388   : > { %9431 = vmatprep.subr.bf16.mxu1 %v26307_v52  ;;  %v26358_v52 = vld [vmem:[%s37922_s1 + $0x1f84] ss:$100 sps:$4 sm:$0xff]  }
 0x38a   : > { %9354 = vmatpush1.bf16.msra.mxu0 %v26308_v23  ;;  %v26353_v23 = vld [vmem:[%s37922_s1 + $0x818] ss:$100 sps:$4 sm:$0xff]  }
 0x38b   : > { %9432 = vmatpush1.bf16.msra.mxu1 %v26305_v21  ;;  %9355 = vmatprep.subr.bf16.mxu0 %v26316_v49 }
 0x38c   : > { %9433 = vmatprep.subr.bf16.mxu1 %v26313_v48  ;;  %v26356_v48 = vld [vmem:[%s37922_s1 + $0x1f80] ss:$100 sps:$4 sm:$0xff]  }
 0x38e   : > { %9356 = vmatpush2.bf16.msra.mxu0 %v26314_v32 }
 0x38f   : > { %9434 = vmatpush1.bf16.msra.mxu1 %v26311_v24  ;;  %9357 = vmatprep.subr.bf16.mxu0 %v26322_v38  ;;  %v26361_v24 = vld [vmem:[%s37922_s1 + $0x754] ss:$100 sps:$4 sm:$0xff]  }
 0x390   : > { %9435 = vmatprep.subr.bf16.mxu1 %v26319_v34 }
 0x392   : > { %9358 = vmatpush2.bf16.msra.mxu0 %v26320_v29  ;;  %v26359_v29 = vld [vmem:[%s37922_s1 + $0x750] ss:$100 sps:$4 sm:$0xff]  }
 0x393   : > { %9436 = vmatpush1.bf16.msra.mxu1 %v26317_v17  ;;  %9359 = vmatprep.subr.bf16.mxu0 %v26328_v53 }
 0x394   : > { %9437 = vmatprep.subr.bf16.mxu1 %v26325_v37  ;;  %v26362_v37 = vld [vmem:[%s37922_s1 + $0x1240] ss:$100 sps:$4 sm:$0xff]  }
 0x396   : > { %9360 = vmatpush2.bf16.msra.mxu0 %v26326_v59 }
 0x397   : > { %9438 = vmatpush2.bf16.msra.mxu1 %v26323_v43  ;;  %9361 = vmatprep.subr.bf16.mxu0 %v26334_v46  ;;  %v26368_v43 = vld [vmem:[%s37922_s1 + $0x1178] ss:$100 sps:$4 sm:$0xff]   ;;  %v26373_v46 = vld [vmem:[%s37922_s1 + $0x1ec4] ss:$100 sps:$4 sm:$0xff]  }
 0x398   : > { %9439 = vmatprep.subr.bf16.mxu1 %v26331_v4 }
 0x39a   : > { %9362 = vmatpush2.bf16.msra.mxu0 %v26332_v62  ;;  %v26371_v62 = vld [vmem:[%s37922_s1 + $0x1ec0] ss:$100 sps:$4 sm:$0xff]  }
 0x39b   : > { %9440 = vmatpush2.bf16.msra.mxu1 %v26329_v28  ;;  %9363 = vmatprep.subr.bf16.mxu0 %v26340_v50  ;;  %v26376_v28 = vld [vmem:[%s37922_s1 + $0x10b4] ss:$100 sps:$4 sm:$0xff]  }
 0x39c   : > { %9441 = vmatprep.subr.bf16.mxu1 %v26337_v25  ;;  %v26374_v25 = vld [vmem:[%s37922_s1 + $0x10b0] ss:$100 sps:$4 sm:$0xff]  }
 0x39e   : > { %9364 = vmatpush2.bf16.msra.mxu0 %v26338_v55 }
 0x39f   : > { %9442 = vmatpush2.bf16.msra.mxu1 %v26335_v58  ;;  %9365 = vmatprep.subr.bf16.mxu0 %v26346_v61  ;;  %v26379_v58 = vld [vmem:[%s37922_s1 + $0x1dfc] ss:$100 sps:$4 sm:$0xff]  }
 0x3a0   : > { %9443 = vmatprep.subr.bf16.mxu1 %v26343_v60  ;;  %v26382_v60 = vld [vmem:[%s37922_s1 + $0xfec] ss:$100 sps:$4 sm:$0xff]   ;;  %v26377_v61 = vld [vmem:[%s37922_s1 + $0x1df8] ss:$100 sps:$4 sm:$0xff]  }
 0x3a2   : > { %9366 = vmatpush2.bf16.msra.mxu0 %v26344_v5  ;;  %v26385_v5 = vld [vmem:[%s37922_s1 + $0x1d34] ss:$100 sps:$4 sm:$0xff]  }
 0x3a3   : > { %9444 = vmatpush2.bf16.msra.mxu1 %v26341_v2  ;;  %9367 = vmatprep.subr.bf16.mxu0 %v26352_v11  ;;  %v26380_v2 = vld [vmem:[%s37922_s1 + $0xfe8] ss:$100 sps:$4 sm:$0xff]   ;;  %v26383_v11 = vld [vmem:[%s37922_s1 + $0x1d30] ss:$100 sps:$4 sm:$0xff]  }
 0x3a4   : > { %9445 = vmatprep.subr.bf16.mxu1 %v26349_v9  ;;  %v26388_v9 = vld [vmem:[%s37922_s1 + $0xf24] ss:$100 sps:$4 sm:$0xff]  }
 0x3a5   : > { %v9045_v26 = vpop.f32.mrf.mxu0 }
 0x3a6   : > { %v9046_v21 = vadd.f32 %v9045_v26, %v31822_v20  ;;  %9368 = vmatpush2.bf16.msra.mxu0 %v26350_v14  ;;  %v26364_v20 = vld [vmem:[%s37922_s1 + $0x1244] ss:$100 sps:$4 sm:$0xff]   ;;  %v26391_v14 = vld [vmem:[%s37922_s1 + $0x1c6c] ss:$100 sps:$4 sm:$0xff]   ;;  %v26392_v26 = vld [vmem:[%s37922_s1 + $0xe58] ss:$100 sps:$4 sm:$0xff]  }
 0x3a7   : > { %9446 = vmatpush2.bf16.msra.mxu1 %v26347_v12  ;;  %v9047_v49 = vpop.f32.mrf.mxu0  ;;  %9369 = vmatprep.subr.bf16.mxu0 %v26358_v52  ;;  %v26386_v12 = vld [vmem:[%s37922_s1 + $0xf20] ss:$100 sps:$4 sm:$0xff]   ;;  %v26389_v52 = vld [vmem:[%s37922_s1 + $0x1c68] ss:$100 sps:$4 sm:$0xff]  }
 0x3a8   : > { %9447 = vmatprep.subr.bf16.mxu1 %v26355_v15  ;;  %v32025_v32 = vadd.f32 %v31843_v44, %v9046_v21  ;;  %v9048_v34 = vadd.f32 %v9047_v49, %v31830_v0  ;;  %v26367_v0 = vld [vmem:[%s37922_s1 + $0x68c] ss:$100 sps:$4 sm:$0xff]   ;;  %v26370_v44 = vld [vmem:[%s37922_s1 + $0x117c] ss:$100 sps:$4 sm:$0xff]   ;;  %v26397_v21 = vld [vmem:[%s37922_s1 + $0x1ba4] ss:$100 sps:$4 sm:$0xff]  }
 0x3a9   : > { %v9049_v38 = vpop.f32.mrf.mxu0  ;;  %v26394_v15 = vld [vmem:[%s37922_s1 + $0xe5c] ss:$100 sps:$4 sm:$0xff]   ;;  %v26398_v49 = vld [vmem:[%s37922_s1 + $0xd90] ss:$100 sps:$4 sm:$0xff]  }
 0x3aa   : > { %v32029_v17 = vadd.f32 %v31845_v41, %v9048_v34  ;;  %9370 = vmatpush2.bf16.msra.mxu0 %v26356_v48  ;;  %v26365_v41 = vld [vmem:[%s37922_s1 + $0x688] ss:$100 sps:$4 sm:$0xff]   ;;  %v26395_v48 = vld [vmem:[%s37922_s1 + $0x1ba0] ss:$100 sps:$4 sm:$0xff]   ;;  %v26401_v34 = vld [vmem:[%s37922_s1 + $0x1ad8] ss:$100 sps:$4 sm:$0xff]  }
 0x3ab   : > { %9448 = vmatpush2.bf16.msra.mxu1 %v26353_v23  ;;  %v9050_v53 = vpop.f32.mrf.mxu0  ;;  %9462 = vmatprep.subr.bf16.mxu0 %v26364_v20  ;;  %v26400_v23 = vld [vmem:[%s37922_s1 + $0xd94] ss:$100 sps:$4 sm:$0xff]   ;;  %v26406_v20 = vld [vmem:[%s37922_s1 + $0xccc] ss:$100 sps:$4 sm:$0xff]  }
 0x3ac   : > { %9449 = vmatprep.subr.bf16.mxu1 %v26361_v24  ;;  %v26403_v24 = vld [vmem:[%s37922_s1 + $0x1adc] ss:$100 sps:$4 sm:$0xff]   ;;  %v26404_v38 = vld [vmem:[%s37922_s1 + $0xcc8] ss:$100 sps:$4 sm:$0xff]   ;;  %v26407_v53 = vld [vmem:[%s37922_s1 + $0x1a10] ss:$100 sps:$4 sm:$0xff]  }
 0x3ad   : > { %9372 = vmatmul.mubr.bf16.vlgmr.msra.gmra.mxu0 %v29438_v16 }
 0x3ae   : > { %v32049_v59 = vpop.f32.mrf.mxu1  ;;  %9463 = vmatpush1.bf16.msra.mxu0 %v26362_v37  ;;  %9494 = vmatprep.mubr.bf16.mxu0 %v29168_v51  ;;  %v26412_v37 = vld [vmem:[%s37922_s1 + $0x1884] ss:$100 sps:$4 sm:$0xff]  }
 0x3af   : > { %9450 = vmatpush2.bf16.msra.mxu1 %v26359_v29  ;;  %9464 = vmatprep.subr.bf16.mxu0 %v26370_v44  ;;  %v26409_v29 = vld [vmem:[%s37922_s1 + $0x1a14] ss:$100 sps:$4 sm:$0xff]   ;;  %v26415_v44 = vld [vmem:[%s37922_s1 + $0x194c] ss:$100 sps:$4 sm:$0xff]  }
 0x3b0   : > { %v32052_v4 = vpop.f32.mrf.mxu1  ;;  %9451 = vmatprep.subr.bf16.mxu1 %v26367_v0  ;;  %v26410_v0 = vld [vmem:[%s37922_s1 + $0x1880] ss:$100 sps:$4 sm:$0xff]  }
 0x3b2   : > { %v9131_v50 = vpop.f32.mrf.mxu1  ;;  %9465 = vmatpush1.bf16.msra.mxu0 %v26368_v43  ;;  %v26413_v43 = vld [vmem:[%s37922_s1 + $0x1948] ss:$100 sps:$4 sm:$0xff]  }
 0x3b3   : > { %9452 = vmatpush2.bf16.msra.mxu1 %v26365_v41  ;;  %9466 = vmatprep.subr.bf16.mxu0 %v26376_v28  ;;  %v26418_v41 = vld [vmem:[%s37922_s1 + $0x17bc] ss:$100 sps:$4 sm:$0xff]   ;;  %v26421_v28 = vld [vmem:[%s37922_s1 + $0x2504] ss:$100 sps:$4 sm:$0xff]   ;;  %v26422_v50 = vld [vmem:[%s37922_s1 + $0x16f0] ss:$100 sps:$4 sm:$0xff]  }
 0x3b4   : > { %v9132_v55 = vpop.f32.mrf.mxu1  ;;  %9503 = vmatprep.subr.bf16.mxu1 %v26373_v46  ;;  %v26416_v46 = vld [vmem:[%s37922_s1 + $0x17b8] ss:$100 sps:$4 sm:$0xff]  }
 0x3b5   : > { %v26430_v55 = vld [vmem:[%s37922_s1 + $0x162c] ss:$100 sps:$4 sm:$0xff]  }
 0x3b6   : > { %9454 = vmatmul.mubr.bf16.vlgmr.msra.gmra.mxu1 %v29226_v6  ;;  %9467 = vmatpush1.bf16.msra.mxu0 %v26374_v25  ;;  %v26419_v25 = vld [vmem:[%s37922_s1 + $0x2500] ss:$100 sps:$4 sm:$0xff]  }
 0x3b7   : > { %9504 = vmatpush1.bf16.msra.mxu1 %v26371_v62  ;;  %9468 = vmatprep.subr.bf16.mxu0 %v26382_v60  ;;  %v26424_v62 = vld [vmem:[%s37922_s1 + $0x16f4] ss:$100 sps:$4 sm:$0xff]  }
 0x3b8   : > { %9505 = vmatprep.subr.bf16.mxu1 %v26379_v58  ;;  %9535 = vmatprep.mubr.bf16.mxu1 %v29310_v33  ;;  %v26427_v58 = vld [vmem:[%s37922_s1 + $0x243c] ss:$100 sps:$4 sm:$0xff]  }
 0x3b9   : > { %v26425_v60 = vld [vmem:[%s37922_s1 + $0x2438] ss:$100 sps:$4 sm:$0xff]  }
 0x3ba   : > { %9469 = vmatpush1.bf16.msra.mxu0 %v26380_v2  ;;  %v26433_v2 = vld [vmem:[%s37922_s1 + $0x2374] ss:$100 sps:$4 sm:$0xff]  }
 0x3bb   : > { %9506 = vmatpush1.bf16.msra.mxu1 %v26377_v61  ;;  %9470 = vmatprep.subr.bf16.mxu0 %v26388_v9  ;;  %v26428_v61 = vld [vmem:[%s37922_s1 + $0x1628] ss:$100 sps:$4 sm:$0xff]   ;;  %v26431_v9 = vld [vmem:[%s37922_s1 + $0x2370] ss:$100 sps:$4 sm:$0xff]  }
 0x3bc   : > { %9507 = vmatprep.subr.bf16.mxu1 %v26385_v5  ;;  %v26436_v5 = vld [vmem:[%s37922_s1 + $0x1564] ss:$100 sps:$4 sm:$0xff]  }
 0x3be   : > { %9471 = vmatpush1.bf16.msra.mxu0 %v26386_v12  ;;  %v26439_v12 = vld [vmem:[%s37922_s1 + $0x22ac] ss:$100 sps:$4 sm:$0xff]  }
 0x3bf   : > { %9508 = vmatpush1.bf16.msra.mxu1 %v26383_v11  ;;  %9472 = vmatprep.subr.bf16.mxu0 %v26394_v15  ;;  %v26434_v11 = vld [vmem:[%s37922_s1 + $0x1560] ss:$100 sps:$4 sm:$0xff]   ;;  %v26437_v15 = vld [vmem:[%s37922_s1 + $0x22a8] ss:$100 sps:$4 sm:$0xff]  }
 0x3c0   : > { %9509 = vmatprep.subr.bf16.mxu1 %v26391_v14  ;;  %v26442_v14 = vld [vmem:[%s37922_s1 + $0x149c] ss:$100 sps:$4 sm:$0xff]  }
 0x3c2   : > { %9473 = vmatpush1.bf16.msra.mxu0 %v26392_v26  ;;  %v26445_v26 = vld [vmem:[%s37922_s1 + $0x21e4] ss:$100 sps:$4 sm:$0xff]  }
 0x3c3   : > { %9510 = vmatpush1.bf16.msra.mxu1 %v26389_v52  ;;  %9474 = vmatprep.subr.bf16.mxu0 %v26400_v23  ;;  %v26440_v52 = vld [vmem:[%s37922_s1 + $0x1498] ss:$100 sps:$4 sm:$0xff]   ;;  %v28931_v23 = vld [vmem:[%s37923_s2 + $0x8] sm:$0xff] }
 0x3c4   : > { %9511 = vmatprep.subr.bf16.mxu1 %v26397_v21  ;;  %v26448_v21 = vld [vmem:[%s37922_s1 + $0x13d4] ss:$100 sps:$4 sm:$0xff]  }
 0x3c6   : > { %9475 = vmatpush1.bf16.msra.mxu0 %v26398_v49  ;;  %v1681_v49 = vrot.slane %v28931_v23, %v30900_v57 }
 0x3c7   : > { %9512 = vmatpush1.bf16.msra.mxu1 %v26395_v48  ;;  %9476 = vmatprep.subr.bf16.mxu0 %v26406_v20  ;;  %v1677_v48 = vrot.slane %v28931_v23, %v30897_v56  ;;  %v26446_v20 = vld [vmem:[%s37922_s1 + $0x13d0] ss:$100 sps:$4 sm:$0xff]  }
 0x3c8   : > { %9513 = vmatprep.subr.bf16.mxu1 %v26403_v24  ;;  %v26443_v24 = vld [vmem:[%s37922_s1 + $0x21e0] ss:$100 sps:$4 sm:$0xff]  }
 0x3ca   : > { %9477 = vmatpush1.bf16.msra.mxu0 %v26404_v38  ;;  %v26454_v38 = vld [vmem:[%s37922_s1 + $0x130c] ss:$100 sps:$4 sm:$0xff]  }
 0x3cb   : > { %9514 = vmatpush1.bf16.msra.mxu1 %v26401_v34  ;;  %9478 = vmatprep.subr.bf16.mxu0 %v26412_v37  ;;  %v26451_v34 = vld [vmem:[%s37922_s1 + $0x211c] ss:$100 sps:$4 sm:$0xff]  }
 0x3cc   : > { %9515 = vmatprep.subr.bf16.mxu1 %v26409_v29  ;;  %v9128_v29 = vadd.f32 %v32049_v59, %v1677_v48  ;;  %v26457_v59 = vld [vmem:[%s37922_s1 + $0x2054] ss:$100 sps:$4 sm:$0xff]   ;;  %v26472_v48 = vld [vmem:[%s37922_s1 + $0x504] ss:$100 sps:$4 sm:$0xff]  }
 0x3ce   : > { %9479 = vmatpush2.bf16.msra.mxu0 %v26410_v0 }
 0x3cf   : > { %9516 = vmatpush1.bf16.msra.mxu1 %v26407_v53  ;;  %9480 = vmatprep.subr.bf16.mxu0 %v26418_v41  ;;  %v9130_v53 = vadd.f32 %v32052_v4, %v1681_v49  ;;  %v26452_v41 = vld [vmem:[%s37922_s1 + $0x1308] ss:$100 sps:$4 sm:$0xff]  }
 0x3d0   : > { %9517 = vmatprep.subr.bf16.mxu1 %v26415_v44  ;;  %v26449_v44 = vld [vmem:[%s37922_s1 + $0x2118] ss:$100 sps:$4 sm:$0xff]   ;;  %v26460_v4 = vld [vmem:[%s37922_s1 + $0x25cc] ss:$100 sps:$4 sm:$0xff]  }
 0x3d2   : > { %9481 = vmatpush2.bf16.msra.mxu0 %v26416_v46 }
 0x3d3   : > { %9518 = vmatpush1.bf16.msra.mxu1 %v26413_v43  ;;  %9482 = vmatprep.subr.bf16.mxu0 %v26424_v62  ;;  %v26455_v62 = vld [vmem:[%s37922_s1 + $0x2050] ss:$100 sps:$4 sm:$0xff]  }
 0x3d4   : > { %9519 = vmatprep.subr.bf16.mxu1 %v26421_v28 }
 0x3d6   : > { %9483 = vmatpush2.bf16.msra.mxu0 %v26422_v50 }
 0x3d7   : > { %9520 = vmatpush2.bf16.msra.mxu1 %v26419_v25  ;;  %9484 = vmatprep.subr.bf16.mxu0 %v26430_v55  ;;  %v26458_v25 = vld [vmem:[%s37922_s1 + $0x25c8] ss:$100 sps:$4 sm:$0xff]  }
 0x3d8   : > { %9521 = vmatprep.subr.bf16.mxu1 %v26427_v58  ;;  %v26463_v58 = vld [vmem:[%s37922_s1 + $0x1f8c] ss:$100 sps:$4 sm:$0xff]  }
 0x3d9   : > { %v26466_v55 = vld [vmem:[%s37922_s1 + $0x5cc] ss:$100 sps:$4 sm:$0xff]  }
 0x3da   : > { %9485 = vmatpush2.bf16.msra.mxu0 %v26428_v61 }
 0x3db   : > { %9522 = vmatpush2.bf16.msra.mxu1 %v26425_v60  ;;  %9486 = vmatprep.subr.bf16.mxu0 %v26436_v5  ;;  %v26461_v60 = vld [vmem:[%s37922_s1 + $0x1f88] ss:$100 sps:$4 sm:$0xff]  }
 0x3dc   : > { %9523 = vmatprep.subr.bf16.mxu1 %v26433_v2 }
 0x3de   : > { %9487 = vmatpush2.bf16.msra.mxu0 %v26434_v11 }
 0x3df   : > { %9524 = vmatpush2.bf16.msra.mxu1 %v26431_v9  ;;  %9488 = vmatprep.subr.bf16.mxu0 %v26442_v14 }
 0x3e0   : > { %9525 = vmatprep.subr.bf16.mxu1 %v26439_v12  ;;  %v26469_v12 = vld [vmem:[%s37922_s1 + $0x124c] ss:$100 sps:$4 sm:$0xff]  }
 0x3e2   : > { %9489 = vmatpush2.bf16.msra.mxu0 %v26440_v52  ;;  %v26464_v52 = vld [vmem:[%s37922_s1 + $0x5c8] ss:$100 sps:$4 sm:$0xff]  }
 0x3e3   : > { %9526 = vmatpush2.bf16.msra.mxu1 %v26437_v15  ;;  %9490 = vmatprep.subr.bf16.mxu0 %v26448_v21 }
 0x3e4   : > { %9527 = vmatprep.subr.bf16.mxu1 %v26445_v26  ;;  %v26467_v26 = vld [vmem:[%s37922_s1 + $0x1248] ss:$100 sps:$4 sm:$0xff]  }
 0x3e5   : > { %v9168_v37 = vpop.f32.mrf.mxu0 }
 0x3e6   : > { %v9169_v0 = vadd.f32 %v9168_v37, %v9128_v29  ;;  %9491 = vmatpush2.bf16.msra.mxu0 %v26446_v20  ;;  %v26473_v29 = vld [vmem:[%s37922_s1 + $0x1180] ss:$100 sps:$4 sm:$0xff]   ;;  %v32282_v37 = vld [vmem:[%s29150_s26 + $0x18] ss:$0 sps:$4 sm:$0xff]  }
 0x3e7   : > { %9528 = vmatpush2.bf16.msra.mxu1 %v26443_v24  ;;  %v9170_v43 = vpop.f32.mrf.mxu0  ;;  %9492 = vmatprep.subr.bf16.mxu0 %v26454_v38  ;;  %v26470_v38 = vld [vmem:[%s37922_s1 + $0x500] ss:$100 sps:$4 sm:$0xff]  }
 0x3e8   : > { %9529 = vmatprep.subr.bf16.mxu1 %v26451_v34  ;;  %v9171_v46 = vadd.f32 %v9170_v43, %v9130_v53  ;;  %v26475_v34 = vld [vmem:[%s37922_s1 + $0x1184] ss:$100 sps:$4 sm:$0xff]   ;;  %v26478_v53 = vld [vmem:[%s37922_s1 + $0x43c] ss:$100 sps:$4 sm:$0xff]   ;;  %v26484_v43 = vld [vmem:[%s37922_s1 + $0x374] ss:$100 sps:$4 sm:$0xff]  }
 0x3e9   : > { %v9172_v28 = vpop.f32.mrf.mxu0 }
 0x3ea   : > { %9493 = vmatpush2.bf16.msra.mxu0 %v26452_v41  ;;  %v26479_v41 = vld [vmem:[%s37922_s1 + $0x10b8] ss:$100 sps:$4 sm:$0xff]   ;;  %v26490_v28 = vld [vmem:[%s37922_s1 + $0x2ac] ss:$100 sps:$4 sm:$0xff]  }
 0x3eb   : > { %9530 = vmatpush2.bf16.msra.mxu1 %v26449_v44  ;;  %v9173_v50 = vpop.f32.mrf.mxu0  ;;  %9558 = vmatprep.subr.bf16.mxu0 %v26460_v4  ;;  %v26476_v44 = vld [vmem:[%s37922_s1 + $0x438] ss:$100 sps:$4 sm:$0xff]   ;;  %v26482_v4 = vld [vmem:[%s37922_s1 + $0x370] ss:$100 sps:$4 sm:$0xff]  }
 0x3ec   : > { %9531 = vmatprep.subr.bf16.mxu1 %v26457_v59  ;;  %v26487_v59 = vld [vmem:[%s37922_s1 + $0xff4] ss:$100 sps:$4 sm:$0xff]   ;;  %v26491_v50 = vld [vmem:[%s37922_s1 + $0xf28] ss:$100 sps:$4 sm:$0xff]  }
 0x3ed   : > { %9495 = vmatmul.mubr.bf16.vlgmr.msra.gmra.mxu0 %v29228_v7  ;;  %v9250_v2 = vpop.f32.mrf.mxu0 }
 0x3ee   : > { %v9209_v61 = vpop.f32.mrf.mxu1  ;;  %9559 = vmatpush1.bf16.msra.mxu0 %v26458_v25  ;;  %9576 = vmatprep.mubr.bf16.mxu0 %v28947_v13  ;;  %v26488_v25 = vld [vmem:[%s37922_s1 + $0x2a8] ss:$100 sps:$4 sm:$0xff]  }
 0x3ef   : > { %v9210_v5 = vadd.f32 %v9209_v61, %v9169_v0  ;;  %9532 = vmatpush2.bf16.msra.mxu1 %v26455_v62  ;;  %v9252_v11 = vpop.f32.mrf.mxu0  ;;  %9585 = vmatprep.subr.bf16.mxu0 %v26466_v55  ;;  %v26481_v0 = vld [vmem:[%s37922_s1 + $0x10bc] ss:$100 sps:$4 sm:$0xff]   ;;  %v26493_v62 = vld [vmem:[%s37922_s1 + $0xf2c] ss:$100 sps:$4 sm:$0xff]   ;;  %v26499_v55 = vld [vmem:[%s37922_s1 + $0xe64] ss:$100 sps:$4 sm:$0xff]  }
 0x3f0   : > { %v9211_v9 = vpop.f32.mrf.mxu1  ;;  %9533 = vmatprep.subr.bf16.mxu1 %v26463_v58  ;;  %v26496_v58 = vld [vmem:[%s37922_s1 + $0x1e4] ss:$100 sps:$4 sm:$0xff]  }
 0x3f1   : > { %v32258_v14 = vadd.f32 %v9250_v2, %v9210_v5  ;;  %v9212_v15 = vadd.f32 %v9211_v9, %v9171_v46  ;;  %v9254_v23 = vpop.f32.mrf.mxu0  ;;  %v26485_v46 = vld [vmem:[%s37922_s1 + $0xff0] ss:$100 sps:$4 sm:$0xff]   ;;  %v26497_v61 = vld [vmem:[%s37922_s1 + $0xe60] ss:$100 sps:$4 sm:$0xff]   ;;  %v26500_v9 = vld [vmem:[%s37922_s1 + $0x118] ss:$100 sps:$4 sm:$0xff]  }
 0x3f2   : > { %v9213_v21 = vpop.f32.mrf.mxu1  ;;  %v26502_v2 = vld [vmem:[%s37922_s1 + $0x11c] ss:$100 sps:$4 sm:$0xff]   ;;  %v26517_v23 = vld [vmem:[%s37922_s1 + $0x188c] ss:$100 sps:$4 sm:$0xff]  }
 0x3f3   : > { %v32269_v49 = vadd.f32 %v9252_v11, %v9212_v15  ;;  %9534 = vmatpush2.bf16.msra.mxu1 %v26461_v60  ;;  %v9255_v20 = vpop.f32.mrf.mxu0  ;;  %v26494_v60 = vld [vmem:[%s37922_s1 + $0x1e0] ss:$100 sps:$4 sm:$0xff]   ;;  %v26503_v11 = vld [vmem:[%s37922_s1 + $0xd98] ss:$100 sps:$4 sm:$0xff]   ;;  %v26514_v21 = vld [vmem:[%s37922_s1 + $0xc0c] ss:$100 sps:$4 sm:$0xff]  }
 0x3f4   : > { %v9214_v24 = vpop.f32.mrf.mxu1  ;;  %9626 = vmatprep.subr.bf16.mxu1 %v26469_v12  ;;  %v26505_v5 = vld [vmem:[%s37922_s1 + $0xd9c] ss:$100 sps:$4 sm:$0xff]   ;;  %v26508_v12 = vld [vmem:[%s37922_s1 + $0x54] ss:$100 sps:$4 sm:$0xff]   ;;  %v26520_v20 = vld [vmem:[%s37922_s1 + $0xb44] ss:$100 sps:$4 sm:$0xff]  }
 0x3f5   : > { %23127 = vmatmul.mubr.msk.bf16.vlgmr.msra.gmra.mxu0 %vm7941_vm0, %v32282_v37  ;;  %v26511_v15 = vld [vmem:[%s37922_s1 + $0xcd4] ss:$100 sps:$4 sm:$0xff]   ;;  %v26515_v24 = vld [vmem:[%s37922_s1 + $0x1888] ss:$100 sps:$4 sm:$0xff]  }
 0x3f6   : > { %9536 = vmatmul.mubr.bf16.vlgmr.msra.gmra.mxu1 %v29438_v16  ;;  %9586 = vmatpush1.bf16.msra.mxu0 %v26464_v52  ;;  %v26506_v52 = vld [vmem:[%s37922_s1 + $0x50] ss:$100 sps:$4 sm:$0xff]  }
 0x3f7   : > { %9627 = vmatpush1.bf16.msra.mxu1 %v26467_v26  ;;  %9587 = vmatprep.subr.bf16.mxu0 %v26472_v48  ;;  %v26509_v26 = vld [vmem:[%s37922_s1 + $0xcd0] ss:$100 sps:$4 sm:$0xff]   ;;  %v26512_v48 = vld [vmem:[%s37922_s1 + $0xc08] ss:$100 sps:$4 sm:$0xff]  }
 0x3f8   : > { %9628 = vmatprep.subr.bf16.mxu1 %v26475_v34  ;;  %9617 = vmatprep.mubr.bf16.mxu0 %v29159_v47  ;;  %v26523_v34 = vld [vmem:[%s37922_s1 + $0x17c4] ss:$100 sps:$4 sm:$0xff]  }
 0x3f9   : > { %9658 = vmatprep.mubr.bf16.mxu1 %v29168_v51 }
 0x3fa   : > { %9588 = vmatpush1.bf16.msra.mxu0 %v26470_v38  ;;  %v26518_v38 = vld [vmem:[%s37922_s1 + $0xb40] ss:$100 sps:$4 sm:$0xff]  }
 0x3fb   : > { %9629 = vmatpush1.bf16.msra.mxu1 %v26473_v29  ;;  %9589 = vmatprep.subr.bf16.mxu0 %v26478_v53  ;;  %v26521_v29 = vld [vmem:[%s37922_s1 + $0x17c0] ss:$100 sps:$4 sm:$0xff]  }
 0x3fc   : > { %9630 = vmatprep.subr.bf16.mxu1 %v26481_v0  ;;  %v26526_v53 = vld [vmem:[%s37922_s1 + $0xa7c] ss:$100 sps:$4 sm:$0xff]  }
 0x3fd   : > { %v26529_v0 = vld [vmem:[%s37922_s1 + $0x16fc] ss:$100 sps:$4 sm:$0xff]  }
 0x3fe   : > { %9590 = vmatpush1.bf16.msra.mxu0 %v26476_v44  ;;  %v26524_v44 = vld [vmem:[%s37922_s1 + $0xa78] ss:$100 sps:$4 sm:$0xff]  }
 0x3ff   : > { %9631 = vmatpush1.bf16.msra.mxu1 %v26479_v41  ;;  %9591 = vmatprep.subr.bf16.mxu0 %v26484_v43  ;;  %v26527_v41 = vld [vmem:[%s37922_s1 + $0x16f8] ss:$100 sps:$4 sm:$0xff]  }
 0x400   : > { %9632 = vmatprep.subr.bf16.mxu1 %v26487_v59  ;;  %v26532_v43 = vld [vmem:[%s37922_s1 + $0x9b4] ss:$100 sps:$4 sm:$0xff]  }
 0x401   : > { %v26535_v59 = vld [vmem:[%s37922_s1 + $0x1634] ss:$100 sps:$4 sm:$0xff]  }
 0x402   : > { %9592 = vmatpush1.bf16.msra.mxu0 %v26482_v4  ;;  %v26530_v4 = vld [vmem:[%s37922_s1 + $0x9b0] ss:$100 sps:$4 sm:$0xff]  }
 0x403   : > { %9633 = vmatpush1.bf16.msra.mxu1 %v26485_v46  ;;  %9593 = vmatprep.subr.bf16.mxu0 %v26490_v28  ;;  %v26533_v46 = vld [vmem:[%s37922_s1 + $0x1630] ss:$100 sps:$4 sm:$0xff]  }
 0x404   : > { %9634 = vmatprep.subr.bf16.mxu1 %v26493_v62  ;;  %v26538_v28 = vld [vmem:[%s37922_s1 + $0x8ec] ss:$100 sps:$4 sm:$0xff]  }
 0x405   : > { %v26541_v62 = vld [vmem:[%s37922_s1 + $0x156c] ss:$100 sps:$4 sm:$0xff]  }
 0x406   : > { %9594 = vmatpush1.bf16.msra.mxu0 %v26488_v25  ;;  %v26536_v25 = vld [vmem:[%s37922_s1 + $0x8e8] ss:$100 sps:$4 sm:$0xff]  }
 0x407   : > { %9635 = vmatpush1.bf16.msra.mxu1 %v26491_v50  ;;  %9595 = vmatprep.subr.bf16.mxu0 %v26496_v58  ;;  %v26539_v50 = vld [vmem:[%s37922_s1 + $0x1568] ss:$100 sps:$4 sm:$0xff]  }
 0x408   : > { %9636 = vmatprep.subr.bf16.mxu1 %v26499_v55  ;;  %v26544_v58 = vld [vmem:[%s37922_s1 + $0x824] ss:$100 sps:$4 sm:$0xff]  }
 0x409   : > { %v26547_v55 = vld [vmem:[%s37922_s1 + $0x14a4] ss:$100 sps:$4 sm:$0xff]  }
 0x40a   : > { %9596 = vmatpush1.bf16.msra.mxu0 %v26494_v60  ;;  %v26542_v60 = vld [vmem:[%s37922_s1 + $0x820] ss:$100 sps:$4 sm:$0xff]  }
 0x40b   : > { %9637 = vmatpush1.bf16.msra.mxu1 %v26497_v61  ;;  %9597 = vmatprep.subr.bf16.mxu0 %v26502_v2  ;;  %v26545_v61 = vld [vmem:[%s37922_s1 + $0x14a0] ss:$100 sps:$4 sm:$0xff]  }
 0x40c   : > { %9638 = vmatprep.subr.bf16.mxu1 %v26505_v5  ;;  %v26550_v2 = vld [vmem:[%s37922_s1 + $0x75c] ss:$100 sps:$4 sm:$0xff]  }
 0x40d   : > { %v26553_v5 = vld [vmem:[%s37922_s1 + $0x13dc] ss:$100 sps:$4 sm:$0xff]  }
 0x40e   : > { %9598 = vmatpush1.bf16.msra.mxu0 %v26500_v9  ;;  %v1612_v9 = vld [vmem:[%s37923_s2 + $0x10] sm:$0xff] }
 0x40f   : > { %9639 = vmatpush1.bf16.msra.mxu1 %v26503_v11  ;;  %9599 = vmatprep.subr.bf16.mxu0 %v26508_v12  ;;  %v26548_v11 = vld [vmem:[%s37922_s1 + $0x758] ss:$100 sps:$4 sm:$0xff]  }
 0x410   : > { %9640 = vmatprep.subr.bf16.mxu1 %v26511_v15  ;;  %v26551_v12 = vld [vmem:[%s37922_s1 + $0x13d8] ss:$100 sps:$4 sm:$0xff]   ;;  %v1685_v15 = vrot.slane %v1612_v9, %v29826_v31 }
 0x412   : > { %9600 = vmatpush1.bf16.msra.mxu0 %v26506_v52  ;;  %v26556_v52 = vld [vmem:[%s37922_s1 + $0x694] ss:$100 sps:$4 sm:$0xff]  }
 0x413   : > { %9641 = vmatpush1.bf16.msra.mxu1 %v26509_v26  ;;  %9601 = vmatprep.subr.bf16.mxu0 %v26514_v21  ;;  %v26559_v26 = vld [vmem:[%s37922_s1 + $0x1314] ss:$100 sps:$4 sm:$0xff]   ;;  %v1689_v21 = vrot.slane %v1612_v9, %v29835_v35 }
 0x414   : > { %9642 = vmatprep.subr.bf16.mxu1 %v26517_v23  ;;  %v26554_v23 = vld [vmem:[%s37922_s1 + $0x690] ss:$100 sps:$4 sm:$0xff]   ;;  %v26572_v9 = vld [vmem:[%s37922_s1 + $0x1d38] ss:$100 sps:$4 sm:$0xff]  }
 0x416   : > { %9602 = vmatpush2.bf16.msra.mxu0 %v26512_v48  ;;  %v26557_v48 = vld [vmem:[%s37922_s1 + $0x1310] ss:$100 sps:$4 sm:$0xff]  }
 0x417   : > { %9643 = vmatpush2.bf16.msra.mxu1 %v26515_v24  ;;  %9603 = vmatprep.subr.bf16.mxu0 %v26520_v20 }
 0x418   : > { %9644 = vmatprep.subr.bf16.mxu1 %v26523_v34  ;;  %v26562_v34 = vld [vmem:[%s37922_s1 + $0x1ecc] ss:$100 sps:$4 sm:$0xff]  }
 0x41a   : > { %9604 = vmatpush2.bf16.msra.mxu0 %v26518_v38 }
 0x41b   : > { %9645 = vmatpush2.bf16.msra.mxu1 %v26521_v29  ;;  %9605 = vmatprep.subr.bf16.mxu0 %v26526_v53 }
 0x41c   : > { %9646 = vmatprep.subr.bf16.mxu1 %v26529_v0  ;;  %v26565_v0 = vld [vmem:[%s37922_s1 + $0x25d4] ss:$100 sps:$4 sm:$0xff]  }
 0x41e   : > { %9606 = vmatpush2.bf16.msra.mxu0 %v26524_v44 }
 0x41f   : > { %9647 = vmatpush2.bf16.msra.mxu1 %v26527_v41  ;;  %9607 = vmatprep.subr.bf16.mxu0 %v26532_v43  ;;  %v26560_v43 = vld [vmem:[%s37922_s1 + $0x1ec8] ss:$100 sps:$4 sm:$0xff]  }
 0x420   : > { %9648 = vmatprep.subr.bf16.mxu1 %v26535_v59  ;;  %v26563_v59 = vld [vmem:[%s37922_s1 + $0x25d0] ss:$100 sps:$4 sm:$0xff]  }
 0x422   : > { %9608 = vmatpush2.bf16.msra.mxu0 %v26530_v4 }
 0x423   : > { %9649 = vmatpush2.bf16.msra.mxu1 %v26533_v46  ;;  %9609 = vmatprep.subr.bf16.mxu0 %v26538_v28 }
 0x424   : > { %9650 = vmatprep.subr.bf16.mxu1 %v26541_v62 }
 0x426   : > { %9610 = vmatpush2.bf16.msra.mxu0 %v26536_v25 }
 0x427   : > { %9651 = vmatpush2.bf16.msra.mxu1 %v26539_v50  ;;  %9611 = vmatprep.subr.bf16.mxu0 %v26544_v58  ;;  %v26568_v50 = vld [vmem:[%s37922_s1 + $0x1e04] ss:$100 sps:$4 sm:$0xff]   ;;  %v26571_v58 = vld [vmem:[%s37922_s1 + $0x5d4] ss:$100 sps:$4 sm:$0xff]  }
 0x428   : > { %9652 = vmatprep.subr.bf16.mxu1 %v26547_v55  ;;  %v26566_v55 = vld [vmem:[%s37922_s1 + $0x1e00] ss:$100 sps:$4 sm:$0xff]  }
 0x42a   : > { %9612 = vmatpush2.bf16.msra.mxu0 %v26542_v60 }
 0x42b   : > { %9653 = vmatpush2.bf16.msra.mxu1 %v26545_v61  ;;  %9613 = vmatprep.subr.bf16.mxu0 %v26550_v2  ;;  %v26574_v2 = vld [vmem:[%s37922_s1 + $0x1d3c] ss:$100 sps:$4 sm:$0xff]  }
 0x42c   : > { %9654 = vmatprep.subr.bf16.mxu1 %v26553_v5  ;;  %v26569_v5 = vld [vmem:[%s37922_s1 + $0x5d0] ss:$100 sps:$4 sm:$0xff]  }
 0x42d   : > { %v9291_v24 = vpop.f32.mrf.mxu0 }
 0x42e   : > { %v9332_v20 = vpop.f32.mrf.mxu1  ;;  %v9292_v38 = vadd.f32 %v9291_v24, %v1685_v15  ;;  %9614 = vmatpush2.bf16.msra.mxu0 %v26548_v11  ;;  %v26577_v15 = vld [vmem:[%s37922_s1 + $0x50c] ss:$100 sps:$4 sm:$0xff]  }
 0x42f   : > { %9655 = vmatpush2.bf16.msra.mxu1 %v26551_v12  ;;  %v9293_v29 = vpop.f32.mrf.mxu0  ;;  %9615 = vmatprep.subr.bf16.mxu0 %v26556_v52  ;;  %v26580_v52 = vld [vmem:[%s37922_s1 + $0x1c74] ss:$100 sps:$4 sm:$0xff]   ;;  %v26584_v24 = vld [vmem:[%s37922_s1 + $0x1ba8] ss:$100 sps:$4 sm:$0xff]  }
 0x430   : > { %v9334_v53 = vpop.f32.mrf.mxu1  ;;  %9656 = vmatprep.subr.bf16.mxu1 %v26559_v26  ;;  %v32467_v44 = vadd.f32 %v9332_v20, %v9292_v38  ;;  %v9294_v41 = vadd.f32 %v9293_v29, %v1689_v21  ;;  %v26575_v26 = vld [vmem:[%s37922_s1 + $0x508] ss:$100 sps:$4 sm:$0xff]   ;;  %v26578_v21 = vld [vmem:[%s37922_s1 + $0x1c70] ss:$100 sps:$4 sm:$0xff]   ;;  %v26589_v20 = vld [vmem:[%s37922_s1 + $0x37c] ss:$100 sps:$4 sm:$0xff]  }
 0x431   : > { %v9295_v4 = vpop.f32.mrf.mxu0  ;;  %v26587_v38 = vld [vmem:[%s37922_s1 + $0x378] ss:$100 sps:$4 sm:$0xff]   ;;  %v26590_v29 = vld [vmem:[%s37922_s1 + $0x1ae0] ss:$100 sps:$4 sm:$0xff]  }
 0x432   : > { %v9336_v46 = vpop.f32.mrf.mxu1  ;;  %v32475_v28 = vadd.f32 %v9334_v53, %v9294_v41  ;;  %9616 = vmatpush2.bf16.msra.mxu0 %v26554_v23  ;;  %v26583_v23 = vld [vmem:[%s37922_s1 + $0x444] ss:$100 sps:$4 sm:$0xff]   ;;  %v26595_v53 = vld [vmem:[%s37922_s1 + $0x2b4] ss:$100 sps:$4 sm:$0xff]  }
 0x433   : > { %9657 = vmatpush2.bf16.msra.mxu1 %v26557_v48  ;;  %v9296_v62 = vpop.f32.mrf.mxu0  ;;  %9667 = vmatprep.subr.bf16.mxu0 %v26562_v34  ;;  %v26586_v48 = vld [vmem:[%s37922_s1 + $0x1bac] ss:$100 sps:$4 sm:$0xff]   ;;  %v26592_v34 = vld [vmem:[%s37922_s1 + $0x1ae4] ss:$100 sps:$4 sm:$0xff]   ;;  %v26604_v4 = vld [vmem:[%s37922_s1 + $0x1954] ss:$100 sps:$4 sm:$0xff]  }
 0x434   : > { %v9337_v25 = vpop.f32.mrf.mxu1  ;;  %9722 = vmatprep.subr.bf16.mxu1 %v26565_v0  ;;  %v26598_v0 = vld [vmem:[%s37922_s1 + $0x1a1c] ss:$100 sps:$4 sm:$0xff]   ;;  %v26593_v41 = vld [vmem:[%s37922_s1 + $0x2b0] ss:$100 sps:$4 sm:$0xff]   ;;  %v26599_v46 = vld [vmem:[%s37922_s1 + $0x1e8] ss:$100 sps:$4 sm:$0xff]  }
 0x435   : > { %9618 = vmatmul.mubr.bf16.vlgmr.msra.gmra.mxu0 %v29226_v6  ;;  %v26602_v62 = vld [vmem:[%s37922_s1 + $0x1950] ss:$100 sps:$4 sm:$0xff]   ;;  %v26607_v25 = vld [vmem:[%s37922_s1 + $0x124] ss:$100 sps:$4 sm:$0xff]  }
 0x436   : > { %9659 = vmatmul.mubr.bf16.vlgmr.msra.gmra.mxu1 %v29228_v7  ;;  %v32488_v60 = vpop.f32.mrf.mxu1  ;;  %9668 = vmatpush1.bf16.msra.mxu0 %v26560_v43  ;;  %v26596_v43 = vld [vmem:[%s37922_s1 + $0x1a18] ss:$100 sps:$4 sm:$0xff]  }
 0x437   : > { %9723 = vmatpush1.bf16.msra.mxu1 %v26563_v59  ;;  %9669 = vmatprep.subr.bf16.mxu0 %v26568_v50  ;;  %v26601_v59 = vld [vmem:[%s37922_s1 + $0x1ec] ss:$100 sps:$4 sm:$0xff]  }
 0x438   : > { %v32490_v61 = vpop.f32.mrf.mxu1  ;;  %9740 = vmatprep.mubr.bf16.mxu1 %v28947_v13  ;;  %9749 = vmatprep.subr.bf16.mxu1 %v26571_v58  ;;  %v26610_v50 = vld [vmem:[%s37922_s1 + $0x250c] ss:$100 sps:$4 sm:$0xff]   ;;  %v26605_v58 = vld [vmem:[%s37922_s1 + $0x120] ss:$100 sps:$4 sm:$0xff]  }
 0x439   : > { %9699 = vmatprep.mubr.bf16.mxu0 %v29310_v33 }
 0x43a   : > { %v9418_v11 = vpop.f32.mrf.mxu1  ;;  %9670 = vmatpush1.bf16.msra.mxu0 %v26566_v55  ;;  %v26608_v55 = vld [vmem:[%s37922_s1 + $0x2508] ss:$100 sps:$4 sm:$0xff]  }
 0x43b   : > { %9671 = vmatprep.subr.bf16.mxu0 %v26574_v2  ;;  %v26613_v2 = vld [vmem:[%s37922_s1 + $0x5c] ss:$100 sps:$4 sm:$0xff]  }
 0x43c   : > { %v9419_v12 = vpop.f32.mrf.mxu1  ;;  %v26614_v11 = vld [vmem:[%s37922_s1 + $0x2440] ss:$100 sps:$4 sm:$0xff]  }
 0x43d   : > { %v26619_v12 = vld [vmem:[%s37922_s1 + $0xc14] ss:$100 sps:$4 sm:$0xff]  }
 0x43e   : > { %23128 = vmatmul.mubr.msk.bf16.vlgmr.msra.gmra.mxu1 %vm7941_vm0, %v32282_v37  ;;  %9672 = vmatpush1.bf16.msra.mxu0 %v26572_v9  ;;  %v26581_v37 = vld [vmem:[%s37922_s1 + $0x440] ss:$100 sps:$4 sm:$0xff]   ;;  %v26611_v9 = vld [vmem:[%s37922_s1 + $0x58] ss:$100 sps:$4 sm:$0xff]  }
 0x43f   : > { %9750 = vmatpush1.bf16.msra.mxu1 %v26569_v5  ;;  %9673 = vmatprep.subr.bf16.mxu0 %v26580_v52  ;;  %v26616_v5 = vld [vmem:[%s37922_s1 + $0x2444] ss:$100 sps:$4 sm:$0xff]   ;;  %v26617_v52 = vld [vmem:[%s37922_s1 + $0xc10] ss:$100 sps:$4 sm:$0xff]  }
 0x440   : > { %9751 = vmatprep.subr.bf16.mxu1 %v26577_v15  ;;  %9781 = vmatprep.mubr.bf16.mxu1 %v29159_v47  ;;  %v26622_v15 = vld [vmem:[%s37922_s1 + $0x237c] ss:$100 sps:$4 sm:$0xff]  }
 0x442   : > { %9674 = vmatpush1.bf16.msra.mxu0 %v26578_v21  ;;  %v26625_v21 = vld [vmem:[%s37922_s1 + $0xb4c] ss:$100 sps:$4 sm:$0xff]  }
 0x443   : > { %9752 = vmatpush1.bf16.msra.mxu1 %v26575_v26  ;;  %9675 = vmatprep.subr.bf16.mxu0 %v26586_v48  ;;  %v26620_v26 = vld [vmem:[%s37922_s1 + $0x2378] ss:$100 sps:$4 sm:$0xff]   ;;  %v26623_v48 = vld [vmem:[%s37922_s1 + $0xb48] ss:$100 sps:$4 sm:$0xff]  }
 0x444   : > { %9753 = vmatprep.subr.bf16.mxu1 %v26583_v23  ;;  %v26628_v23 = vld [vmem:[%s37922_s1 + $0x22b4] ss:$100 sps:$4 sm:$0xff]  }
 0x446   : > { %9676 = vmatpush1.bf16.msra.mxu0 %v26584_v24  ;;  %v26631_v24 = vld [vmem:[%s37922_s1 + $0xa84] ss:$100 sps:$4 sm:$0xff]  }
 0x447   : > { %9754 = vmatpush1.bf16.msra.mxu1 %v26581_v37  ;;  %9677 = vmatprep.subr.bf16.mxu0 %v26592_v34  ;;  %v26626_v37 = vld [vmem:[%s37922_s1 + $0x22b0] ss:$100 sps:$4 sm:$0xff]   ;;  %v26629_v34 = vld [vmem:[%s37922_s1 + $0xa80] ss:$100 sps:$4 sm:$0xff]  }
 0x448   : > { %9755 = vmatprep.subr.bf16.mxu1 %v26589_v20  ;;  %v26634_v20 = vld [vmem:[%s37922_s1 + $0x21ec] ss:$100 sps:$4 sm:$0xff]  }
 0x44a   : > { %9678 = vmatpush1.bf16.msra.mxu0 %v26590_v29  ;;  %v26637_v29 = vld [vmem:[%s37922_s1 + $0x9bc] ss:$100 sps:$4 sm:$0xff]  }
 0x44b   : > { %9756 = vmatpush1.bf16.msra.mxu1 %v26587_v38  ;;  %9679 = vmatprep.subr.bf16.mxu0 %v26598_v0  ;;  %v26632_v38 = vld [vmem:[%s37922_s1 + $0x21e8] ss:$100 sps:$4 sm:$0xff]   ;;  %v26635_v0 = vld [vmem:[%s37922_s1 + $0x9b8] ss:$100 sps:$4 sm:$0xff]  }
 0x44c   : > { %9757 = vmatprep.subr.bf16.mxu1 %v26595_v53  ;;  %v26640_v53 = vld [vmem:[%s37922_s1 + $0x2124] ss:$100 sps:$4 sm:$0xff]  }
 0x44e   : > { %9680 = vmatpush1.bf16.msra.mxu0 %v26596_v43  ;;  %v26643_v43 = vld [vmem:[%s37922_s1 + $0x8f4] ss:$100 sps:$4 sm:$0xff]  }
 0x44f   : > { %9758 = vmatpush1.bf16.msra.mxu1 %v26593_v41  ;;  %9681 = vmatprep.subr.bf16.mxu0 %v26604_v4  ;;  %v26638_v41 = vld [vmem:[%s37922_s1 + $0x2120] ss:$100 sps:$4 sm:$0xff]   ;;  %v26641_v4 = vld [vmem:[%s37922_s1 + $0x8f0] ss:$100 sps:$4 sm:$0xff]  }
 0x450   : > { %9759 = vmatprep.subr.bf16.mxu1 %v26601_v59  ;;  %v26646_v59 = vld [vmem:[%s37922_s1 + $0x205c] ss:$100 sps:$4 sm:$0xff]  }
 0x452   : > { %9682 = vmatpush1.bf16.msra.mxu0 %v26602_v62  ;;  %v26649_v62 = vld [vmem:[%s37922_s1 + $0x82c] ss:$100 sps:$4 sm:$0xff]  }
 0x453   : > { %9760 = vmatpush1.bf16.msra.mxu1 %v26599_v46  ;;  %9683 = vmatprep.subr.bf16.mxu0 %v26610_v50  ;;  %v26644_v46 = vld [vmem:[%s37922_s1 + $0x2058] ss:$100 sps:$4 sm:$0xff]  }
 0x454   : > { %9761 = vmatprep.subr.bf16.mxu1 %v26607_v25  ;;  %v26652_v25 = vld [vmem:[%s37922_s1 + $0x1f94] ss:$100 sps:$4 sm:$0xff]  }
 0x456   : > { %9684 = vmatpush2.bf16.msra.mxu0 %v26608_v55 }
 0x457   : > { %9762 = vmatpush1.bf16.msra.mxu1 %v26605_v58  ;;  %9685 = vmatprep.subr.bf16.mxu0 %v26616_v5  ;;  %v26647_v58 = vld [vmem:[%s37922_s1 + $0x828] ss:$100 sps:$4 sm:$0xff]  }
 0x458   : > { %9763 = vmatprep.subr.bf16.mxu1 %v26613_v2  ;;  %v26650_v2 = vld [vmem:[%s37922_s1 + $0x1f90] ss:$100 sps:$4 sm:$0xff]   ;;  %v26655_v5 = vld [vmem:[%s37922_s1 + $0x764] ss:$100 sps:$4 sm:$0xff]  }
 0x45a   : > { %9686 = vmatpush2.bf16.msra.mxu0 %v26614_v11  ;;  %v26658_v11 = vld [vmem:[%s37922_s1 + $0x1254] ss:$100 sps:$4 sm:$0xff]  }
 0x45b   : > { %9764 = vmatpush1.bf16.msra.mxu1 %v26611_v9  ;;  %9687 = vmatprep.subr.bf16.mxu0 %v26622_v15 }
 0x45c   : > { %9765 = vmatprep.subr.bf16.mxu1 %v26619_v12 }
 0x45e   : > { %9688 = vmatpush2.bf16.msra.mxu0 %v26620_v26 }
 0x45f   : > { %9766 = vmatpush2.bf16.msra.mxu1 %v26617_v52  ;;  %9689 = vmatprep.subr.bf16.mxu0 %v26628_v23  ;;  %v26653_v52 = vld [vmem:[%s37922_s1 + $0x760] ss:$100 sps:$4 sm:$0xff]  }
 0x460   : > { %9767 = vmatprep.subr.bf16.mxu1 %v26625_v21  ;;  %v26656_v21 = vld [vmem:[%s37922_s1 + $0x1250] ss:$100 sps:$4 sm:$0xff]  }
 0x462   : > { %9690 = vmatpush2.bf16.msra.mxu0 %v26626_v37 }
 0x463   : > { %9768 = vmatpush2.bf16.msra.mxu1 %v26623_v48  ;;  %9691 = vmatprep.subr.bf16.mxu0 %v26634_v20  ;;  %v26662_v48 = vld [vmem:[%s37922_s1 + $0x1188] ss:$100 sps:$4 sm:$0xff]  }
 0x464   : > { %9769 = vmatprep.subr.bf16.mxu1 %v26631_v24  ;;  %v26667_v24 = vld [vmem:[%s37922_s1 + $0x1ed4] ss:$100 sps:$4 sm:$0xff]  }
 0x466   : > { %9692 = vmatpush2.bf16.msra.mxu0 %v26632_v38  ;;  %v26665_v38 = vld [vmem:[%s37922_s1 + $0x1ed0] ss:$100 sps:$4 sm:$0xff]  }
 0x467   : > { %9770 = vmatpush2.bf16.msra.mxu1 %v26629_v34  ;;  %9693 = vmatprep.subr.bf16.mxu0 %v26640_v53  ;;  %v26670_v34 = vld [vmem:[%s37922_s1 + $0x10c4] ss:$100 sps:$4 sm:$0xff]  }
 0x468   : > { %9771 = vmatprep.subr.bf16.mxu1 %v26637_v29  ;;  %v26668_v53 = vld [vmem:[%s37922_s1 + $0x10c0] ss:$100 sps:$4 sm:$0xff]  }
 0x46a   : > { %9694 = vmatpush2.bf16.msra.mxu0 %v26638_v41  ;;  %v26673_v41 = vld [vmem:[%s37922_s1 + $0x1e0c] ss:$100 sps:$4 sm:$0xff]  }
 0x46b   : > { %9772 = vmatpush2.bf16.msra.mxu1 %v26635_v0  ;;  %9695 = vmatprep.subr.bf16.mxu0 %v26646_v59  ;;  %v26671_v59 = vld [vmem:[%s37922_s1 + $0x1e08] ss:$100 sps:$4 sm:$0xff]  }
 0x46c   : > { %9773 = vmatprep.subr.bf16.mxu1 %v26643_v43  ;;  %v26676_v43 = vld [vmem:[%s37922_s1 + $0xffc] ss:$100 sps:$4 sm:$0xff]  }
 0x46d   : > { %v9373_v50 = vpop.f32.mrf.mxu0 }
 0x46e   : > { %v9374_v55 = vadd.f32 %v9373_v50, %v32467_v44  ;;  %9696 = vmatpush2.bf16.msra.mxu0 %v26644_v46  ;;  %v26679_v46 = vld [vmem:[%s37922_s1 + $0x1d44] ss:$100 sps:$4 sm:$0xff]   ;;  %v26680_v50 = vld [vmem:[%s37922_s1 + $0xf30] ss:$100 sps:$4 sm:$0xff]  }
 0x46f   : > { %9774 = vmatpush2.bf16.msra.mxu1 %v26641_v4  ;;  %v9375_v9 = vpop.f32.mrf.mxu0  ;;  %9697 = vmatprep.subr.bf16.mxu0 %v26652_v25  ;;  %v26674_v4 = vld [vmem:[%s37922_s1 + $0xff8] ss:$100 sps:$4 sm:$0xff]   ;;  %v26677_v25 = vld [vmem:[%s37922_s1 + $0x1d40] ss:$100 sps:$4 sm:$0xff]  }
 0x470   : > { %9775 = vmatprep.subr.bf16.mxu1 %v26649_v62  ;;  %v32670_v12 = vadd.f32 %v32488_v60, %v9374_v55  ;;  %v9376_v44 = vadd.f32 %v9375_v9, %v32475_v28  ;;  %v26661_v60 = vld [vmem:[%s37922_s1 + $0x69c] ss:$100 sps:$4 sm:$0xff]   ;;  %v26664_v28 = vld [vmem:[%s37922_s1 + $0x118c] ss:$100 sps:$4 sm:$0xff]   ;;  %v26682_v62 = vld [vmem:[%s37922_s1 + $0xf34] ss:$100 sps:$4 sm:$0xff]  }
 0x471   : > { %v9377_v15 = vpop.f32.mrf.mxu0  ;;  %v26688_v55 = vld [vmem:[%s37922_s1 + $0xe6c] ss:$100 sps:$4 sm:$0xff]   ;;  %v26691_v9 = vld [vmem:[%s37922_s1 + $0x1bb4] ss:$100 sps:$4 sm:$0xff]  }
 0x472   : > { %v32677_v26 = vadd.f32 %v32490_v61, %v9376_v44  ;;  %9698 = vmatpush2.bf16.msra.mxu0 %v26650_v2  ;;  %v26659_v61 = vld [vmem:[%s37922_s1 + $0x698] ss:$100 sps:$4 sm:$0xff]   ;;  %v26689_v44 = vld [vmem:[%s37922_s1 + $0x1bb0] ss:$100 sps:$4 sm:$0xff]   ;;  %v26692_v15 = vld [vmem:[%s37922_s1 + $0xda0] ss:$100 sps:$4 sm:$0xff]  }
 0x473   : > { %9776 = vmatpush2.bf16.msra.mxu1 %v26647_v58  ;;  %v9378_v23 = vpop.f32.mrf.mxu0  ;;  %9790 = vmatprep.subr.bf16.mxu0 %v26658_v11  ;;  %v26685_v58 = vld [vmem:[%s37922_s1 + $0x1c7c] ss:$100 sps:$4 sm:$0xff]   ;;  %v26694_v11 = vld [vmem:[%s37922_s1 + $0xda4] ss:$100 sps:$4 sm:$0xff]  }
 0x474   : > { %9777 = vmatprep.subr.bf16.mxu1 %v26655_v5  ;;  %v26683_v2 = vld [vmem:[%s37922_s1 + $0x1c78] ss:$100 sps:$4 sm:$0xff]   ;;  %v26686_v5 = vld [vmem:[%s37922_s1 + $0xe68] ss:$100 sps:$4 sm:$0xff]  }
 0x475   : > { %9700 = vmatmul.mubr.bf16.vlgmr.msra.gmra.mxu0 %v29438_v16  ;;  %v26698_v23 = vld [vmem:[%s37922_s1 + $0xcd8] ss:$100 sps:$4 sm:$0xff]  }
 0x476   : > { %v32694_v37 = vpop.f32.mrf.mxu1  ;;  %9791 = vmatpush1.bf16.msra.mxu0 %v26656_v21  ;;  %9822 = vmatprep.mubr.bf16.mxu0 %v29168_v51  ;;  %v26700_v21 = vld [vmem:[%s37922_s1 + $0xcdc] ss:$100 sps:$4 sm:$0xff]  }
 0x477   : > { %9778 = vmatpush2.bf16.msra.mxu1 %v26653_v52  ;;  %9792 = vmatprep.subr.bf16.mxu0 %v26664_v28  ;;  %v26697_v52 = vld [vmem:[%s37922_s1 + $0x1aec] ss:$100 sps:$4 sm:$0xff]   ;;  %v26703_v28 = vld [vmem:[%s37922_s1 + $0x1a24] ss:$100 sps:$4 sm:$0xff]  }
 0x478   : > { %v32700_v20 = vpop.f32.mrf.mxu1  ;;  %9779 = vmatprep.subr.bf16.mxu1 %v26661_v60  ;;  %v26695_v60 = vld [vmem:[%s37922_s1 + $0x1ae8] ss:$100 sps:$4 sm:$0xff]  }
 0x47a   : > { %v9459_v29 = vpop.f32.mrf.mxu1  ;;  %9793 = vmatpush1.bf16.msra.mxu0 %v26662_v48  ;;  %v26701_v48 = vld [vmem:[%s37922_s1 + $0x1a20] ss:$100 sps:$4 sm:$0xff]  }
 0x47b   : > { %9780 = vmatpush2.bf16.msra.mxu1 %v26659_v61  ;;  %9794 = vmatprep.subr.bf16.mxu0 %v26670_v34  ;;  %v26706_v61 = vld [vmem:[%s37922_s1 + $0x1894] ss:$100 sps:$4 sm:$0xff]   ;;  %v26709_v34 = vld [vmem:[%s37922_s1 + $0x195c] ss:$100 sps:$4 sm:$0xff]  }
 0x47c   : > { %v9460_v0 = vpop.f32.mrf.mxu1  ;;  %9831 = vmatprep.subr.bf16.mxu1 %v26667_v24  ;;  %v26704_v24 = vld [vmem:[%s37922_s1 + $0x1890] ss:$100 sps:$4 sm:$0xff]   ;;  %v26707_v29 = vld [vmem:[%s37922_s1 + $0x1958] ss:$100 sps:$4 sm:$0xff]  }
 0x47d   : > { %v26715_v0 = vld [vmem:[%s37922_s1 + $0x2514] ss:$100 sps:$4 sm:$0xff]  }
 0x47e   : > { %9782 = vmatmul.mubr.bf16.vlgmr.msra.gmra.mxu1 %v29226_v6  ;;  %9795 = vmatpush1.bf16.msra.mxu0 %v26668_v53  ;;  %v26710_v53 = vld [vmem:[%s37922_s1 + $0x17c8] ss:$100 sps:$4 sm:$0xff]  }
 0x47f   : > { %9832 = vmatpush1.bf16.msra.mxu1 %v26665_v38  ;;  %9796 = vmatprep.subr.bf16.mxu0 %v26676_v43  ;;  %v26712_v38 = vld [vmem:[%s37922_s1 + $0x17cc] ss:$100 sps:$4 sm:$0xff]  }
 0x480   : > { %9833 = vmatprep.subr.bf16.mxu1 %v26673_v41  ;;  %9863 = vmatprep.mubr.bf16.mxu1 %v29310_v33  ;;  %v26718_v41 = vld [vmem:[%s37922_s1 + $0x1704] ss:$100 sps:$4 sm:$0xff]   ;;  %v26713_v43 = vld [vmem:[%s37922_s1 + $0x2510] ss:$100 sps:$4 sm:$0xff]  }
 0x482   : > { %9797 = vmatpush1.bf16.msra.mxu0 %v26674_v4  ;;  %v26721_v4 = vld [vmem:[%s37922_s1 + $0x244c] ss:$100 sps:$4 sm:$0xff]  }
 0x483   : > { %9834 = vmatpush1.bf16.msra.mxu1 %v26671_v59  ;;  %9798 = vmatprep.subr.bf16.mxu0 %v26682_v62  ;;  %v26716_v59 = vld [vmem:[%s37922_s1 + $0x1700] ss:$100 sps:$4 sm:$0xff]   ;;  %v26719_v62 = vld [vmem:[%s37922_s1 + $0x2448] ss:$100 sps:$4 sm:$0xff]  }
 0x484   : > { %9835 = vmatprep.subr.bf16.mxu1 %v26679_v46  ;;  %v26724_v46 = vld [vmem:[%s37922_s1 + $0x163c] ss:$100 sps:$4 sm:$0xff]  }
 0x486   : > { %9799 = vmatpush1.bf16.msra.mxu0 %v26680_v50  ;;  %v26727_v50 = vld [vmem:[%s37922_s1 + $0x2384] ss:$100 sps:$4 sm:$0xff]  }
 0x487   : > { %9836 = vmatpush1.bf16.msra.mxu1 %v26677_v25  ;;  %9800 = vmatprep.subr.bf16.mxu0 %v26688_v55  ;;  %v26722_v25 = vld [vmem:[%s37922_s1 + $0x1638] ss:$100 sps:$4 sm:$0xff]   ;;  %v26725_v55 = vld [vmem:[%s37922_s1 + $0x2380] ss:$100 sps:$4 sm:$0xff]  }
 0x488   : > { %9837 = vmatprep.subr.bf16.mxu1 %v26685_v58  ;;  %v26730_v58 = vld [vmem:[%s37922_s1 + $0x1574] ss:$100 sps:$4 sm:$0xff]  }
 0x48a   : > { %9801 = vmatpush1.bf16.msra.mxu0 %v26686_v5  ;;  %v26733_v5 = vld [vmem:[%s37922_s1 + $0x22bc] ss:$100 sps:$4 sm:$0xff]  }
 0x48b   : > { %9838 = vmatpush1.bf16.msra.mxu1 %v26683_v2  ;;  %9802 = vmatprep.subr.bf16.mxu0 %v26694_v11  ;;  %v26728_v2 = vld [vmem:[%s37922_s1 + $0x1570] ss:$100 sps:$4 sm:$0xff]   ;;  %v26731_v11 = vld [vmem:[%s37922_s1 + $0x22b8] ss:$100 sps:$4 sm:$0xff]  }
 0x48c   : > { %9839 = vmatprep.subr.bf16.mxu1 %v26691_v9  ;;  %v26736_v9 = vld [vmem:[%s37922_s1 + $0x14ac] ss:$100 sps:$4 sm:$0xff]  }
 0x48e   : > { %9803 = vmatpush1.bf16.msra.mxu0 %v26692_v15  ;;  %v26739_v15 = vld [vmem:[%s37922_s1 + $0x21f4] ss:$100 sps:$4 sm:$0xff]  }
 0x48f   : > { %9840 = vmatpush1.bf16.msra.mxu1 %v26689_v44  ;;  %9804 = vmatprep.subr.bf16.mxu0 %v26700_v21  ;;  %v26734_v44 = vld [vmem:[%s37922_s1 + $0x14a8] ss:$100 sps:$4 sm:$0xff]   ;;  %v32855_v21 = vld [vmem:[%s37923_s2 + $0x10] sm:$0xff] }
 0x490   : > { %9841 = vmatprep.subr.bf16.mxu1 %v26697_v52  ;;  %v26742_v52 = vld [vmem:[%s37922_s1 + $0x13e4] ss:$100 sps:$4 sm:$0xff]  }
 0x492   : > { %9805 = vmatpush1.bf16.msra.mxu0 %v26698_v23  ;;  %v26737_v23 = vld [vmem:[%s37922_s1 + $0x21f0] ss:$100 sps:$4 sm:$0xff]  }
 0x493   : > { %9842 = vmatpush1.bf16.msra.mxu1 %v26695_v60  ;;  %9806 = vmatprep.subr.bf16.mxu0 %v26706_v61  ;;  %v1693_v60 = vrot.slane %v32855_v21, %v30237_v1  ;;  %v1697_v61 = vrot.slane %v32855_v21, %v30240_v27 }
 0x494   : > { %9843 = vmatprep.subr.bf16.mxu1 %v26703_v28  ;;  %v26740_v28 = vld [vmem:[%s37922_s1 + $0x13e0] ss:$100 sps:$4 sm:$0xff]  }
 0x496   : > { %9807 = vmatpush2.bf16.msra.mxu0 %v26704_v24  ;;  %v26748_v24 = vld [vmem:[%s37922_s1 + $0x131c] ss:$100 sps:$4 sm:$0xff]  }
 0x497   : > { %9844 = vmatpush1.bf16.msra.mxu1 %v26701_v48  ;;  %9808 = vmatprep.subr.bf16.mxu0 %v26712_v38  ;;  %v26745_v48 = vld [vmem:[%s37922_s1 + $0x212c] ss:$100 sps:$4 sm:$0xff]  }
 0x498   : > { %9845 = vmatprep.subr.bf16.mxu1 %v26709_v34  ;;  %v9456_v34 = vadd.f32 %v32694_v37, %v1693_v60  ;;  %v26743_v38 = vld [vmem:[%s37922_s1 + $0x2128] ss:$100 sps:$4 sm:$0xff]  }
 0x499   : > { %v26751_v37 = vld [vmem:[%s37922_s1 + $0x2064] ss:$100 sps:$4 sm:$0xff]  }
 0x49a   : > { %9809 = vmatpush2.bf16.msra.mxu0 %v26710_v53 }
 0x49b   : > { %9846 = vmatpush1.bf16.msra.mxu1 %v26707_v29  ;;  %9810 = vmatprep.subr.bf16.mxu0 %v26718_v41  ;;  %v26746_v29 = vld [vmem:[%s37922_s1 + $0x1318] ss:$100 sps:$4 sm:$0xff]  }
 0x49c   : > { %9847 = vmatprep.subr.bf16.mxu1 %v26715_v0  ;;  %v9458_v0 = vadd.f32 %v32700_v20, %v1697_v61  ;;  %v26752_v20 = vld [vmem:[%s37922_s1 + $0x25d8] ss:$100 sps:$4 sm:$0xff]  }
 0x49e   : > { %9811 = vmatpush2.bf16.msra.mxu0 %v26716_v59  ;;  %v26754_v59 = vld [vmem:[%s37922_s1 + $0x25dc] ss:$100 sps:$4 sm:$0xff]  }
 0x49f   : > { %9848 = vmatpush2.bf16.msra.mxu1 %v26713_v43  ;;  %9812 = vmatprep.subr.bf16.mxu0 %v26724_v46  ;;  %v26749_v46 = vld [vmem:[%s37922_s1 + $0x2060] ss:$100 sps:$4 sm:$0xff]  }
 0x4a0   : > { %9849 = vmatprep.subr.bf16.mxu1 %v26721_v4 }
 0x4a2   : > { %9813 = vmatpush2.bf16.msra.mxu0 %v26722_v25 }
 0x4a3   : > { %9850 = vmatpush2.bf16.msra.mxu1 %v26719_v62  ;;  %9814 = vmatprep.subr.bf16.mxu0 %v26730_v58  ;;  %v26755_v58 = vld [vmem:[%s37922_s1 + $0x1f98] ss:$100 sps:$4 sm:$0xff]  }
 0x4a4   : > { %9851 = vmatprep.subr.bf16.mxu1 %v26727_v50  ;;  %v26757_v50 = vld [vmem:[%s37922_s1 + $0x1f9c] ss:$100 sps:$4 sm:$0xff]  }
 0x4a6   : > { %9815 = vmatpush2.bf16.msra.mxu0 %v26728_v2 }
 0x4a7   : > { %9852 = vmatpush2.bf16.msra.mxu1 %v26725_v55  ;;  %9816 = vmatprep.subr.bf16.mxu0 %v26736_v9  ;;  %v26758_v55 = vld [vmem:[%s37922_s1 + $0xc18] ss:$100 sps:$4 sm:$0xff]  }
 0x4a8   : > { %9853 = vmatprep.subr.bf16.mxu1 %v26733_v5 }
 0x4aa   : > { %9817 = vmatpush2.bf16.msra.mxu0 %v26734_v44 }
 0x4ab   : > { %9854 = vmatpush2.bf16.msra.mxu1 %v26731_v11  ;;  %9818 = vmatprep.subr.bf16.mxu0 %v26742_v52 }
 0x4ac   : > { %9855 = vmatprep.subr.bf16.mxu1 %v26739_v15  ;;  %v26759_v15 = vld [vmem:[%s37922_s1 + $0x1898] ss:$100 sps:$4 sm:$0xff]  }
 0x4ad   : > { %v9496_v53 = vpop.f32.mrf.mxu0 }
 0x4ae   : > { %v9497_v41 = vadd.f32 %v9496_v53, %v9456_v34  ;;  %9819 = vmatpush2.bf16.msra.mxu0 %v26740_v28  ;;  %v26761_v28 = vld [vmem:[%s37922_s1 + $0x1258] ss:$100 sps:$4 sm:$0xff]   ;;  %v26763_v53 = vld [vmem:[%s37922_s1 + $0x17d0] ss:$100 sps:$4 sm:$0xff]  }
 0x4af   : > { %9856 = vmatpush2.bf16.msra.mxu1 %v26737_v23  ;;  %v9498_v43 = vpop.f32.mrf.mxu0  ;;  %9820 = vmatprep.subr.bf16.mxu0 %v26748_v24  ;;  %v26760_v23 = vld [vmem:[%s37922_s1 + $0x5d8] ss:$100 sps:$4 sm:$0xff]   ;;  %v26762_v24 = vld [vmem:[%s37922_s1 + $0xb50] ss:$100 sps:$4 sm:$0xff]  }
 0x4b0   : > { %9857 = vmatprep.subr.bf16.mxu1 %v26745_v48  ;;  %v9499_v4 = vadd.f32 %v9498_v43, %v9458_v0  ;;  %v26764_v0 = vld [vmem:[%s37922_s1 + $0x510] ss:$100 sps:$4 sm:$0xff]   ;;  %v32931_v43 = vld [vmem:[%s29150_s26 + $0x18] ss:$0 sps:$4 sm:$0xff]  }
 0x4b1   : > { %v9500_v62 = vpop.f32.mrf.mxu0 }
 0x4b2   : > { %9821 = vmatpush2.bf16.msra.mxu0 %v26746_v29  ;;  %v26771_v62 = vld [vmem:[%s37922_s1 + $0x1640] ss:$100 sps:$4 sm:$0xff]  }
 0x4b3   : > { %9858 = vmatpush2.bf16.msra.mxu1 %v26743_v38  ;;  %v9501_v25 = vpop.f32.mrf.mxu0  ;;  %9886 = vmatprep.subr.bf16.mxu0 %v26754_v59  ;;  %v26767_v59 = vld [vmem:[%s37922_s1 + $0x1708] ss:$100 sps:$4 sm:$0xff]  }
 0x4b4   : > { %9859 = vmatprep.subr.bf16.mxu1 %v26751_v37  ;;  %v26766_v37 = vld [vmem:[%s37922_s1 + $0xa88] ss:$100 sps:$4 sm:$0xff]   ;;  %v26774_v25 = vld [vmem:[%s37922_s1 + $0x8f8] ss:$100 sps:$4 sm:$0xff]  }
 0x4b5   : > { %9823 = vmatmul.mubr.bf16.vlgmr.msra.gmra.mxu0 %v29228_v7  ;;  %v9578_v5 = vpop.f32.mrf.mxu0 }
 0x4b6   : > { %v9537_v2 = vpop.f32.mrf.mxu1  ;;  %9887 = vmatpush1.bf16.msra.mxu0 %v26752_v20  ;;  %9904 = vmatprep.mubr.bf16.mxu0 %v28947_v13  ;;  %v26770_v20 = vld [vmem:[%s37922_s1 + $0x9c0] ss:$100 sps:$4 sm:$0xff]  }
 0x4b7   : > { %v9538_v9 = vadd.f32 %v9537_v2, %v9497_v41  ;;  %9860 = vmatpush2.bf16.msra.mxu1 %v26749_v46  ;;  %v9580_v44 = vpop.f32.mrf.mxu0  ;;  %24620 = vmatprep.subr.bf16.mxu0 %v26758_v55  ;;  %v26765_v41 = vld [vmem:[%s37922_s1 + $0x1190] ss:$100 sps:$4 sm:$0xff]   ;;  %v26769_v46 = vld [vmem:[%s37922_s1 + $0x10c8] ss:$100 sps:$4 sm:$0xff]   ;;  %v26777_v55 = vld [vmem:[%s37922_s1 + $0xf38] ss:$100 sps:$4 sm:$0xff]  }
 0x4b8   : > { %v9539_v11 = vpop.f32.mrf.mxu1  ;;  %9861 = vmatprep.subr.bf16.mxu1 %v26757_v50  ;;  %v26775_v50 = vld [vmem:[%s37922_s1 + $0x1578] ss:$100 sps:$4 sm:$0xff]   ;;  %v26778_v2 = vld [vmem:[%s37922_s1 + $0x830] ss:$100 sps:$4 sm:$0xff]  }
 0x4b9   : > { %v32907_v52 = vadd.f32 %v9578_v5, %v9538_v9  ;;  %v9540_v60 = vadd.f32 %v9539_v11, %v9499_v4  ;;  %v9582_v48 = vpop.f32.mrf.mxu0  ;;  %v26768_v4 = vld [vmem:[%s37922_s1 + $0x448] ss:$100 sps:$4 sm:$0xff]   ;;  %v26779_v5 = vld [vmem:[%s37922_s1 + $0x14b0] ss:$100 sps:$4 sm:$0xff]  }
 0x4ba   : > { %v9541_v61 = vpop.f32.mrf.mxu1  ;;  %v26780_v9 = vld [vmem:[%s37922_s1 + $0x1f0] ss:$100 sps:$4 sm:$0xff]   ;;  %v26788_v48 = vld [vmem:[%s37922_s1 + $0x60] ss:$100 sps:$4 sm:$0xff]  }
 0x4bb   : > { %v32918_v34 = vadd.f32 %v9580_v44, %v9540_v60  ;;  %9862 = vmatpush2.bf16.msra.mxu1 %v26755_v58  ;;  %v9583_v29 = vpop.f32.mrf.mxu0  ;;  %v26776_v58 = vld [vmem:[%s37922_s1 + $0x2b8] ss:$100 sps:$4 sm:$0xff]   ;;  %v26781_v11 = vld [vmem:[%s37922_s1 + $0xe70] ss:$100 sps:$4 sm:$0xff]   ;;  %v26782_v44 = vld [vmem:[%s37922_s1 + $0x768] ss:$100 sps:$4 sm:$0xff]  }
 0x4bc   : > { %v9542_v38 = vpop.f32.mrf.mxu1  ;;  %24642 = vmatprep.subr.bf16.mxu1 %v26759_v15  ;;  %v26783_v15 = vld [vmem:[%s37922_s1 + $0x13e8] ss:$100 sps:$4 sm:$0xff]   ;;  %v26787_v61 = vld [vmem:[%s37922_s1 + $0x1320] ss:$100 sps:$4 sm:$0xff]   ;;  %v26791_v29 = vld [vmem:[%s37922_s1 + $0x1ed8] ss:$100 sps:$4 sm:$0xff]  }
 0x4bd   : > { %23129 = vmatmul.mubr.msk.bf16.vlgmr.msra.gmra.mxu0 %vm7941_vm0, %v32931_v43  ;;  %v26784_v60 = vld [vmem:[%s37922_s1 + $0x128] ss:$100 sps:$4 sm:$0xff]   ;;  %v26790_v38 = vld [vmem:[%s37922_s1 + $0x2518] ss:$100 sps:$4 sm:$0xff]  }
 0x4be   : > { %9864 = vmatmul.mubr.bf16.vlgmr.msra.gmra.mxu1 %v29438_v16  ;;  %24621 = vmatpush3.bf16.msra.mxu0 %v26760_v23  ;;  %v26785_v23 = vld [vmem:[%s37922_s1 + $0xda8] ss:$100 sps:$4 sm:$0xff]  }
 0x4bf   : > { %24643 = vmatpush3.bf16.msra.mxu1 %v26761_v28  ;;  %24622 = vmatprep.subr.bf16.mxu0 %v26762_v24  ;;  %v26786_v28 = vld [vmem:[%s37922_s1 + $0x6a0] ss:$100 sps:$4 sm:$0xff]  }
 0x4c0   : > { %24644 = vmatprep.subr.bf16.mxu1 %v26763_v53  ;;  %9945 = vmatprep.mubr.bf16.mxu0 %v29159_v47  ;;  %v26772_v47 = vld [vmem:[%s37922_s1 + $0x380] ss:$100 sps:$4 sm:$0xff]  }
 0x4c1   : > { %9985 = vmatprep.mubr.bf16.mxu1 %v29168_v51  ;;  %v26773_v51 = vld [vmem:[%s37922_s1 + $0x1000] ss:$100 sps:$4 sm:$0xff]  }
 0x4c2   : > { %24623 = vmatpush3.bf16.msra.mxu0 %v26764_v0  ;;  %v26789_v24 = vld [vmem:[%s37922_s1 + $0xce0] ss:$100 sps:$4 sm:$0xff]   ;;  %v28948_v0 = vmov 0.0  }
 0x4c3   : > { %24645 = vmatpush3.bf16.msra.mxu1 %v26765_v41  ;;  %24624 = vmatprep.subr.bf16.mxu0 %v26766_v37  ;;  %v26792_v53 = vld [vmem:[%s37922_s1 + $0x25e0] ss:$100 sps:$4 sm:$0xff]   ;;  %v26793_v41 = vld [vmem:[%s37922_s1 + $0x2450] ss:$100 sps:$4 sm:$0xff]   ;;  %v26797_v37 = vld [vmem:[%s37924_s3 + $0x18c] ss:$28 sps:$4 sm:$0xff]  }
 0x4c4   : > { %24646 = vmatprep.subr.bf16.mxu1 %v26767_v59  ;;  %v26794_v59 = vld [vmem:[%s37922_s1 + $0x1e10] ss:$100 sps:$4 sm:$0xff]  }
 0x4c6   : > { %24625 = vmatpush3.bf16.msra.mxu0 %v26768_v4  ;;  %v26798_v4 = vld [vmem:[%s37922_s1 + $0x2388] ss:$100 sps:$4 sm:$0xff]  }
 0x4c7   : > { %24647 = vmatpush3.bf16.msra.mxu1 %v26769_v46  ;;  %24626 = vmatprep.subr.bf16.mxu0 %v26770_v20  ;;  %v26799_v46 = vld [vmem:[%s37922_s1 + $0x1d48] ss:$100 sps:$4 sm:$0xff]   ;;  %v26802_v20 = vld [vmem:[%s37924_s3 + $0x154] ss:$28 sps:$4 sm:$0xff]  }
 0x4c8   : > { %24648 = vmatprep.subr.bf16.mxu1 %v26771_v62  ;;  %v26800_v62 = vld [vmem:[%s37924_s3 + $0x150] ss:$28 sps:$4 sm:$0xff]  }
 0x4ca   : > { %24627 = vmatpush3.bf16.msra.mxu0 %v26772_v47 }
 0x4cb   : > { %24649 = vmatpush3.bf16.msra.mxu1 %v26773_v51  ;;  %24628 = vmatprep.subr.bf16.mxu0 %v26774_v25  ;;  %v26807_v51 = vld [vmem:[%s37924_s3 + $0x11c] ss:$28 sps:$4 sm:$0xff]  }
 0x4cc   : > { %24650 = vmatprep.subr.bf16.mxu1 %v26775_v50  ;;  %v26808_v25 = vld [vmem:[%s37922_s1 + $0x21f8] ss:$100 sps:$4 sm:$0xff]  }
 0x4cd   : > { %v26809_v50 = vld [vmem:[%s37922_s1 + $0x1bb8] ss:$100 sps:$4 sm:$0xff]  }
 0x4ce   : > { %24629 = vmatpush3.bf16.msra.mxu0 %v26776_v58  ;;  %v26812_v58 = vld [vmem:[%s37924_s3 + $0xe4] ss:$28 sps:$4 sm:$0xff]  }
 0x4cf   : > { %24651 = vmatpush3.bf16.msra.mxu1 %v26777_v55  ;;  %24630 = vmatprep.subr.bf16.mxu0 %v26778_v2  ;;  %v26813_v55 = vld [vmem:[%s37922_s1 + $0x2130] ss:$100 sps:$4 sm:$0xff]   ;;  %v26810_v2 = vld [vmem:[%s37924_s3 + $0xe0] ss:$28 sps:$4 sm:$0xff]  }
 0x4d0   : > { %24652 = vmatprep.subr.bf16.mxu1 %v26779_v5  ;;  %v26814_v5 = vld [vmem:[%s37922_s1 + $0x1af0] ss:$100 sps:$4 sm:$0xff]  }
 0x4d2   : > { %24631 = vmatpush3.bf16.msra.mxu0 %v26780_v9  ;;  %v26817_v9 = vld [vmem:[%s37924_s3 + $0xac] ss:$28 sps:$4 sm:$0xff]  }
 0x4d3   : > { %24653 = vmatpush3.bf16.msra.mxu1 %v26781_v11  ;;  %24632 = vmatprep.subr.bf16.mxu0 %v26782_v44  ;;  %v26818_v11 = vld [vmem:[%s37922_s1 + $0x2068] ss:$100 sps:$4 sm:$0xff]  }
 0x4d4   : > { %24654 = vmatprep.subr.bf16.mxu1 %v26783_v15  ;;  %v26815_v44 = vld [vmem:[%s37924_s3 + $0xa8] ss:$28 sps:$4 sm:$0xff]  }
 0x4d5   : > { %v26819_v15 = vld [vmem:[%s37922_s1 + $0x1a28] ss:$100 sps:$4 sm:$0xff]  }
 0x4d6   : > { %24633 = vmatpush3.bf16.msra.mxu0 %v26784_v60  ;;  %v1701_v60 = vrot.slane %v32855_v21, %v30484_v30 }
 0x4d7   : > { %24655 = vmatpush3.bf16.msra.mxu1 %v26785_v23  ;;  %24634 = vmatprep.subr.bf16.mxu0 %v26786_v28  ;;  %v26822_v23 = vld [vmem:[%s37924_s3 + $0x74] ss:$28 sps:$4 sm:$0xff]   ;;  %v26823_v28 = vld [vmem:[%s37922_s1 + $0x1fa0] ss:$100 sps:$4 sm:$0xff]  }
 0x4d8   : > { %24656 = vmatprep.subr.bf16.mxu1 %v26787_v61  ;;  %v1705_v61 = vrot.slane %v32855_v21, %v30493_v36  ;;  %v26830_v21 = vld [vmem:[%s37924_s3 + $0x50c] ss:$28 sps:$4 sm:$0xff]  }
 0x4da   : > { %24635 = vmatpush3.bf16.msra.mxu0 %v26788_v48  ;;  %v26820_v48 = vld [vmem:[%s37924_s3 + $0x70] ss:$28 sps:$4 sm:$0xff]  }
 0x4db   : > { %24657 = vmatpush3.bf16.msra.mxu1 %v26789_v24  ;;  %24664 = vmatprep.subr.bf16.mxu0 %v26790_v38  ;;  %v26824_v24 = vld [vmem:[%s37922_s1 + $0x1960] ss:$100 sps:$4 sm:$0xff]  }
 0x4dc   : > { %24957 = vmatprep.subr.bf16.mxu1 %v28948_v0 }
 0x4dd   : > { %9946 = vmatmul.mubr.bf16.vlgmr.msra.gmra.mxu0 %v29226_v6  ;;  %v26795_v6 = vld [vmem:[%s37924_s3 + $0x188] ss:$28 sps:$4 sm:$0xff]  }
 0x4de   : > { %9986 = vmatmul.mubr.bf16.vlgmr.msra.gmra.mxu1 %v29228_v7  ;;  %24665 = vmatpush3.bf16.msra.mxu0 %v26791_v29  ;;  %v10074_v7 = vmax.f32 %v30070_v22, 0.0  ;;  %v26804_v22 = vld [vmem:[%s37922_s1 + $0x1c80] ss:$100 sps:$4 sm:$0xff]  }
 0x4df   : > { %24958 = vmatpush3.bf16.msra.mxu1 %v26792_v53  ;;  %24666 = vmatprep.subr.bf16.mxu0 %v26793_v41  ;;  %v26827_v53 = vld [vmem:[%s37924_s3 + $0x3c] ss:$28 sps:$4 sm:$0xff]  }
 0x4e0   : > { %24959 = vmatprep.mubr.msk.bf16.mxu1 %vm28949_vm1, %v28948_v0  ;;  %18788 = vmatprep.subr.bf16.mxu1 %v26797_v37  ;;  %v33052_v47 = vpack.c.bf16 %v10074_v7, %v10074_v7  ;;  %v26825_v7 = vld [vmem:[%s37924_s3 + $0x38] ss:$28 sps:$4 sm:$0xff]  }
 0x4e1   : > { %10025 = vmatprep.mubr.bf16.mxu0 %v29310_v33  ;;  %v26803_v33 = vld [vmem:[%s37922_s1 + $0x22c0] ss:$100 sps:$4 sm:$0xff]  }
 0x4e2   : > { %24667 = vmatpush3.bf16.msra.mxu0 %v26794_v59 }
 0x4e3   : > { %24668 = vmatprep.subr.bf16.mxu0 %v26798_v4 }
 0x4e6   : > { %24960 = vmatmul.mubr.msk.bf16.vlgmr.msra.gmra.mxu1 %vm7941_vm0, %v32931_v43  ;;  %24669 = vmatpush3.bf16.msra.mxu0 %v26799_v46  ;;  %v26805_v43 = vld [vmem:[%s37924_s3 + $0x118] ss:$28 sps:$4 sm:$0xff]   ;;  %v26828_v46 = vld [vmem:[%s37924_s3 + $0x508] ss:$28 sps:$4 sm:$0xff]  }
 0x4e7   : > { %18789 = vmatpush1.bf16.msra.mxu1 %v26795_v6  ;;  %18820 = vmatprep.mubr.bf16.mxu1 %v33052_v47 }
 0x4e8   : > { %18790 = vmatprep.subr.bf16.mxu1 %v26802_v20  ;;  %24670 = vmatprep.subr.bf16.mxu0 %v26803_v33  ;;  %v10076_v20 = vmax.f32 %v30320_v18, 0.0  ;;  %v26831_v18 = vld [vmem:[%s37924_s3] ss:$28 sps:$4 sm:$0xff]  }
 0x4ea   : > { %24671 = vmatpush3.bf16.msra.mxu0 %v26804_v22 }
 0x4eb   : > { %18791 = vmatpush1.bf16.msra.mxu1 %v26800_v62  ;;  %24672 = vmatprep.subr.bf16.mxu0 %v26808_v25 }
 0x4ec   : > { %18792 = vmatprep.subr.bf16.mxu1 %v26807_v51 }
 0x4ee   : > { %24673 = vmatpush3.bf16.msra.mxu0 %v26809_v50  ;;  %v26836_v50 = vld [vmem:[%s37924_s3 + $0x4d4] ss:$28 sps:$4 sm:$0xff]  }
 0x4ef   : > { %18793 = vmatpush1.bf16.msra.mxu1 %v26805_v43  ;;  %24674 = vmatprep.subr.bf16.mxu0 %v26813_v55  ;;  %v26833_v43 = vld [vmem:[%s37924_s3 + $0x4] ss:$28 sps:$4 sm:$0xff]   ;;  %v33141_v55 = vpack.c.bf16 %v10076_v20, %v10076_v20  ;;  %v26864_v20 = vld [vmem:[%s37924_s3 + $0x3b8] ss:$28 sps:$4 sm:$0xff]  }
 0x4f0   : > { %18794 = vmatprep.subr.bf16.mxu1 %v26812_v58  ;;  %v26834_v58 = vld [vmem:[%s37924_s3 + $0x4d0] ss:$28 sps:$4 sm:$0xff]  }
 0x4f2   : > { %24675 = vmatpush3.bf16.msra.mxu0 %v26814_v5  ;;  %v26839_v5 = vld [vmem:[%s37924_s3 + $0x34c] ss:$28 sps:$4 sm:$0xff]  }
 0x4f3   : > { %18795 = vmatpush1.bf16.msra.mxu1 %v26810_v2  ;;  %24676 = vmatprep.subr.bf16.mxu0 %v26818_v11  ;;  %v26842_v11 = vld [vmem:[%s37924_s3 + $0x49c] ss:$28 sps:$4 sm:$0xff]  }
 0x4f4   : > { %18796 = vmatprep.subr.bf16.mxu1 %v26817_v9 }
 0x4f5   : > { %v9619_v38 = vpop.f32.mrf.mxu0 }
 0x4f6   : > { %v9660_v29 = vpop.f32.mrf.mxu1  ;;  %v9620_v41 = vadd.f32 %v9619_v38, %v1701_v60  ;;  %24677 = vmatpush3.bf16.msra.mxu0 %v26819_v15  ;;  %v26845_v60 = vld [vmem:[%s37924_s3 + $0x314] ss:$28 sps:$4 sm:$0xff]   ;;  %v26854_v38 = vld [vmem:[%s37924_s3 + $0x42c] ss:$28 sps:$4 sm:$0xff]  }
 0x4f7   : > { %18797 = vmatpush1.bf16.msra.mxu1 %v26815_v44  ;;  %v9621_v37 = vpop.f32.mrf.mxu0  ;;  %24678 = vmatprep.subr.bf16.mxu0 %v26823_v28  ;;  %v26840_v44 = vld [vmem:[%s37924_s3 + $0x498] ss:$28 sps:$4 sm:$0xff]   ;;  %v26848_v28 = vld [vmem:[%s37924_s3 + $0x464] ss:$28 sps:$4 sm:$0xff]  }
 0x4f8   : > { %v9662_v59 = vpop.f32.mrf.mxu1  ;;  %18798 = vmatprep.subr.bf16.mxu1 %v26822_v23  ;;  %v33118_v4 = vadd.f32 %v9660_v29, %v9620_v41  ;;  %v9622_v6 = vadd.f32 %v9621_v37, %v1705_v61  ;;  %v26843_v61 = vld [vmem:[%s37924_s3 + $0x310] ss:$28 sps:$4 sm:$0xff]   ;;  %v26849_v29 = vld [vmem:[%s37924_s3 + $0x2d8] ss:$28 sps:$4 sm:$0xff]   ;;  %v26857_v41 = vld [vmem:[%s37924_s3 + $0x2a4] ss:$28 sps:$4 sm:$0xff]  }
 0x4f9   : > { %v9623_v62 = vpop.f32.mrf.mxu0  ;;  %v26860_v37 = vld [vmem:[%s37924_s3 + $0x3f4] ss:$28 sps:$4 sm:$0xff]  }
 0x4fa   : > { %v9664_v33 = vpop.f32.mrf.mxu1  ;;  %v33127_v22 = vadd.f32 %v9662_v59, %v9622_v6  ;;  %24679 = vmatpush3.bf16.msra.mxu0 %v26824_v24  ;;  %v26851_v24 = vld [vmem:[%s37924_s3 + $0x2dc] ss:$28 sps:$4 sm:$0xff]   ;;  %v10073_v59 = vmax.f32 %v30066_v19, 0.0  ;;  %v26858_v6 = vld [vmem:[%s37924_s3 + $0x3f0] ss:$28 sps:$4 sm:$0xff]  }
 0x4fb   : > { %18799 = vmatpush1.bf16.msra.mxu1 %v26820_v48  ;;  %v9624_v51 = vpop.f32.mrf.mxu0  ;;  %18829 = vmatprep.subr.bf16.mxu0 %v26830_v21  ;;  %v26846_v48 = vld [vmem:[%s37924_s3 + $0x460] ss:$28 sps:$4 sm:$0xff]   ;;  %v26869_v62 = vld [vmem:[%s37924_s3 + $0x234] ss:$28 sps:$4 sm:$0xff]  }
 0x4fc   : > { %v9665_v25 = vpop.f32.mrf.mxu1  ;;  %18800 = vmatprep.subr.bf16.mxu1 %v26827_v53  ;;  %v26852_v53 = vld [vmem:[%s37924_s3 + $0x428] ss:$28 sps:$4 sm:$0xff]   ;;  %v26855_v21 = vld [vmem:[%s37924_s3 + $0x2a0] ss:$28 sps:$4 sm:$0xff]   ;;  %v26867_v51 = vld [vmem:[%s37924_s3 + $0x230] ss:$28 sps:$4 sm:$0xff]  }
 0x4fd   : > { %10026 = vmatmul.mubr.bf16.vlgmr.msra.gmra.mxu0 %v29438_v16  ;;  %v26837_v16 = vld [vmem:[%s37924_s3 + $0x348] ss:$28 sps:$4 sm:$0xff]   ;;  %v26866_v19 = vld [vmem:[%s37924_s3 + $0x3bc] ss:$28 sps:$4 sm:$0xff]  }
 0x4fe   : > { %v33144_v2 = vpop.f32.mrf.mxu1  ;;  %18830 = vmatpush1.bf16.msra.mxu0 %v26828_v46  ;;  %18861 = vmatprep.mubr.bf16.mxu0 %v33141_v55  ;;  %v26861_v46 = vld [vmem:[%s37924_s3 + $0x268] ss:$28 sps:$4 sm:$0xff]   ;;  %v26870_v25 = vld [vmem:[%s37924_s3 + $0x380] ss:$28 sps:$4 sm:$0xff]  }
 0x4ff   : > { %18801 = vmatpush1.bf16.msra.mxu1 %v26825_v7  ;;  %18831 = vmatprep.subr.bf16.mxu0 %v26836_v50  ;;  %v26863_v7 = vld [vmem:[%s37924_s3 + $0x26c] ss:$28 sps:$4 sm:$0xff]   ;;  %v26872_v33 = vld [vmem:[%s37924_s3 + $0x384] ss:$28 sps:$4 sm:$0xff]  }
 0x500   : > { %v33150_v9 = vpop.f32.mrf.mxu1  ;;  %18802 = vmatprep.subr.bf16.mxu1 %v26833_v43  ;;  %v26875_v43 = vld [vmem:[%s37924_s3 + $0x1fc] ss:$28 sps:$4 sm:$0xff]   ;;  %v26878_v50 = vld [vmem:[%s37924_s3 + $0x6cc] ss:$28 sps:$4 sm:$0xff]  }
 0x502   : > { %v9746_v15 = vpop.f32.mrf.mxu1  ;;  %18832 = vmatpush1.bf16.msra.mxu0 %v26834_v58  ;;  %v26876_v58 = vld [vmem:[%s37924_s3 + $0x6c8] ss:$28 sps:$4 sm:$0xff]  }
 0x503   : > { %18803 = vmatpush1.bf16.msra.mxu1 %v26831_v18  ;;  %18833 = vmatprep.subr.bf16.mxu0 %v26842_v11  ;;  %v26873_v18 = vld [vmem:[%s37924_s3 + $0x1f8] ss:$28 sps:$4 sm:$0xff]   ;;  %v26887_v15 = vld [vmem:[%s37924_s3 + $0x88c] ss:$28 sps:$4 sm:$0xff]  }
 0x504   : > { %v9747_v23 = vpop.f32.mrf.mxu1  ;;  %18804 = vmatprep.subr.bf16.mxu1 %v26839_v5  ;;  %v26881_v5 = vld [vmem:[%s37924_s3 + $0x1c4] ss:$28 sps:$4 sm:$0xff]   ;;  %v26884_v11 = vld [vmem:[%s37924_s3 + $0x694] ss:$28 sps:$4 sm:$0xff]  }
 0x505   : > { %v10078_v23 = vmax.f32 %v30730_v42, 0.0  ;;  %v26896_v42 = vld [vmem:[%s37924_s3 + $0x624] ss:$28 sps:$4 sm:$0xff]  }
 0x506   : > { %18834 = vmatpush1.bf16.msra.mxu0 %v26840_v44  ;;  %v26882_v44 = vld [vmem:[%s37924_s3 + $0x690] ss:$28 sps:$4 sm:$0xff]  }
 0x507   : > { %18805 = vmatpush2.bf16.msra.mxu1 %v26837_v16  ;;  %18835 = vmatprep.subr.bf16.mxu0 %v26848_v28  ;;  %v26879_v16 = vld [vmem:[%s37924_s3 + $0x1c0] ss:$28 sps:$4 sm:$0xff]   ;;  %v26885_v28 = vld [vmem:[%s37924_s3 + $0x888] ss:$28 sps:$4 sm:$0xff]  }
 0x508   : > { %18806 = vmatprep.subr.bf16.mxu1 %v26845_v60  ;;  %v26890_v60 = vld [vmem:[%s37924_s3 + $0x65c] ss:$28 sps:$4 sm:$0xff]  }
 0x50a   : > { %18836 = vmatpush1.bf16.msra.mxu0 %v26846_v48  ;;  %v33259_v48 = vpack.c.bf16 %v10073_v59, %v10073_v59  ;;  %v26897_v59 = vld [vmem:[%s37924_s3 + $0x818] ss:$28 sps:$4 sm:$0xff]  }
 0x50b   : > { %18807 = vmatpush2.bf16.msra.mxu1 %v26843_v61  ;;  %18837 = vmatprep.subr.bf16.mxu0 %v26854_v38  ;;  %v26888_v61 = vld [vmem:[%s37924_s3 + $0x658] ss:$28 sps:$4 sm:$0xff]   ;;  %v33264_v38 = vpack.c.bf16 %v10078_v23, %v10078_v23 }
 0x50c   : > { %18808 = vmatprep.subr.bf16.mxu1 %v26851_v24  ;;  %v26893_v24 = vld [vmem:[%s37924_s3 + $0x854] ss:$28 sps:$4 sm:$0xff]  }
 0x50e   : > { %18838 = vmatpush1.bf16.msra.mxu0 %v26852_v53  ;;  %v26894_v53 = vld [vmem:[%s37924_s3 + $0x620] ss:$28 sps:$4 sm:$0xff]  }
 0x50f   : > { %18809 = vmatpush2.bf16.msra.mxu1 %v26849_v29  ;;  %18839 = vmatprep.subr.bf16.mxu0 %v26860_v37  ;;  %v26891_v29 = vld [vmem:[%s37924_s3 + $0x850] ss:$28 sps:$4 sm:$0xff]  }
 0x510   : > { %18810 = vmatprep.subr.bf16.mxu1 %v26857_v41  ;;  %v26899_v41 = vld [vmem:[%s37924_s3 + $0x81c] ss:$28 sps:$4 sm:$0xff]   ;;  %v26902_v37 = vld [vmem:[%s37924_s3 + $0x5ec] ss:$28 sps:$4 sm:$0xff]  }
 0x512   : > { %18840 = vmatpush1.bf16.msra.mxu0 %v26858_v6  ;;  %v26905_v6 = vld [vmem:[%s37924_s3 + $0x7e4] ss:$28 sps:$4 sm:$0xff]  }
 0x513   : > { %18811 = vmatpush2.bf16.msra.mxu1 %v26855_v21  ;;  %18841 = vmatprep.subr.bf16.mxu0 %v26866_v19  ;;  %v26900_v21 = vld [vmem:[%s37924_s3 + $0x5e8] ss:$28 sps:$4 sm:$0xff]   ;;  %v26908_v19 = vld [vmem:[%s37924_s3 + $0x5b4] ss:$28 sps:$4 sm:$0xff]  }
 0x514   : > { %18812 = vmatprep.subr.bf16.mxu1 %v26863_v7  ;;  %v26903_v7 = vld [vmem:[%s37924_s3 + $0x7e0] ss:$28 sps:$4 sm:$0xff]  }
 0x516   : > { %18842 = vmatpush1.bf16.msra.mxu0 %v26864_v20  ;;  %v26911_v20 = vld [vmem:[%s37924_s3 + $0x7ac] ss:$28 sps:$4 sm:$0xff]  }
 0x517   : > { %18813 = vmatpush2.bf16.msra.mxu1 %v26861_v46  ;;  %18843 = vmatprep.subr.bf16.mxu0 %v26872_v33  ;;  %v26906_v46 = vld [vmem:[%s37924_s3 + $0x5b0] ss:$28 sps:$4 sm:$0xff]   ;;  %v26914_v33 = vld [vmem:[%s37924_s3 + $0x57c] ss:$28 sps:$4 sm:$0xff]  }
 0x518   : > { %18814 = vmatprep.subr.bf16.mxu1 %v26869_v62  ;;  %v26909_v62 = vld [vmem:[%s37924_s3 + $0x7a8] ss:$28 sps:$4 sm:$0xff]  }
 0x51a   : > { %18844 = vmatpush1.bf16.msra.mxu0 %v26870_v25  ;;  %v26917_v25 = vld [vmem:[%s37924_s3 + $0x774] ss:$28 sps:$4 sm:$0xff]  }
 0x51b   : > { %18815 = vmatpush2.bf16.msra.mxu1 %v26867_v51  ;;  %18845 = vmatprep.subr.bf16.mxu0 %v26878_v50  ;;  %v26912_v51 = vld [vmem:[%s37924_s3 + $0x578] ss:$28 sps:$4 sm:$0xff]   ;;  %v26920_v50 = vld [vmem:[%s37924_s3 + $0x544] ss:$28 sps:$4 sm:$0xff]  }
 0x51c   : > { %18816 = vmatprep.subr.bf16.mxu1 %v26875_v43  ;;  %v26915_v43 = vld [vmem:[%s37924_s3 + $0x770] ss:$28 sps:$4 sm:$0xff]  }
 0x51e   : > { %18846 = vmatpush2.bf16.msra.mxu0 %v26876_v58 }
 0x51f   : > { %18817 = vmatpush2.bf16.msra.mxu1 %v26873_v18  ;;  %18847 = vmatprep.subr.bf16.mxu0 %v26884_v11  ;;  %v10080_v11 = vmax.f32 %v30976_v54, 0.0  ;;  %v26926_v54 = vld [vmem:[%s37924_s3 + $0xc0c] ss:$28 sps:$4 sm:$0xff]  }
 0x520   : > { %18818 = vmatprep.subr.bf16.mxu1 %v26881_v5  ;;  %v10075_v5 = vmax.f32 %v30309_v8, 0.0  ;;  %v26921_v8 = vld [vmem:[%s37924_s3 + $0x738] ss:$28 sps:$4 sm:$0xff]  }
 0x522   : > { %18848 = vmatpush2.bf16.msra.mxu0 %v26882_v44  ;;  %v26918_v44 = vld [vmem:[%s37924_s3 + $0x540] ss:$28 sps:$4 sm:$0xff]  }
 0x523   : > { %18819 = vmatpush2.bf16.msra.mxu1 %v26879_v16  ;;  %18849 = vmatprep.subr.bf16.mxu0 %v26890_v60 }
 0x524   : > { %18870 = vmatprep.subr.bf16.mxu1 %v26887_v15  ;;  %v26923_v15 = vld [vmem:[%s37924_s3 + $0x73c] ss:$28 sps:$4 sm:$0xff]  }
 0x526   : > { %18821 = vmatmul.mubr.bf16.vlgmr.msra.gmra.mxu1 %v33259_v48  ;;  %18850 = vmatpush2.bf16.msra.mxu0 %v26888_v61 }
 0x527   : > { %18871 = vmatpush1.bf16.msra.mxu1 %v26885_v28  ;;  %18902 = vmatprep.mubr.bf16.mxu1 %v33264_v38 }
 0x528   : > { %18872 = vmatprep.subr.bf16.mxu1 %v26893_v24  ;;  %18851 = vmatprep.subr.bf16.mxu0 %v26896_v42  ;;  %v33350_v24 = vpack.c.bf16 %v10075_v5, %v10075_v5  ;;  %v26932_v42 = vld [vmem:[%s37924_s3 + $0xbd4] ss:$28 sps:$4 sm:$0xff]   ;;  %v26948_v5 = vld [vmem:[%s37924_s3 + $0xb28] ss:$28 sps:$4 sm:$0xff]  }
 0x52a   : > { %18852 = vmatpush2.bf16.msra.mxu0 %v26894_v53 }
 0x52b   : > { %18873 = vmatpush1.bf16.msra.mxu1 %v26891_v29  ;;  %18853 = vmatprep.subr.bf16.mxu0 %v26902_v37  ;;  %v33358_v29 = vpack.c.bf16 %v10080_v11, %v10080_v11  ;;  %v26951_v11 = vld [vmem:[%s37924_s3 + $0x9a0] ss:$28 sps:$4 sm:$0xff]  }
 0x52c   : > { %18874 = vmatprep.subr.bf16.mxu1 %v26899_v41  ;;  %v26930_v41 = vld [vmem:[%s37924_s3 + $0xbd0] ss:$28 sps:$4 sm:$0xff]  }
 0x52e   : > { %18854 = vmatpush2.bf16.msra.mxu0 %v26900_v21  ;;  %v26933_v21 = vld [vmem:[%s37924_s3 + $0xa48] ss:$28 sps:$4 sm:$0xff]  }
 0x52f   : > { %18875 = vmatpush1.bf16.msra.mxu1 %v26897_v59  ;;  %18855 = vmatprep.subr.bf16.mxu0 %v26908_v19  ;;  %v26935_v59 = vld [vmem:[%s37924_s3 + $0xa4c] ss:$28 sps:$4 sm:$0xff]   ;;  %v26936_v19 = vld [vmem:[%s37924_s3 + $0xb98] ss:$28 sps:$4 sm:$0xff]  }
 0x530   : > { %18876 = vmatprep.subr.bf16.mxu1 %v26905_v6  ;;  %v26938_v6 = vld [vmem:[%s37924_s3 + $0xb9c] ss:$28 sps:$4 sm:$0xff]  }
 0x532   : > { %18856 = vmatpush2.bf16.msra.mxu0 %v26906_v46 }
 0x533   : > { %18877 = vmatpush1.bf16.msra.mxu1 %v26903_v7  ;;  %18857 = vmatprep.subr.bf16.mxu0 %v26914_v33  ;;  %v26944_v33 = vld [vmem:[%s37924_s3 + $0xb64] ss:$28 sps:$4 sm:$0xff]  }
 0x534   : > { %18878 = vmatprep.subr.bf16.mxu1 %v26911_v20  ;;  %v26941_v20 = vld [vmem:[%s37924_s3 + $0xa14] ss:$28 sps:$4 sm:$0xff]  }
 0x535   : > { %v9701_v18 = vpop.f32.mrf.mxu0 }
 0x536   : > { %v9702_v58 = vadd.f32 %v9701_v18, %v33118_v4  ;;  %18858 = vmatpush2.bf16.msra.mxu0 %v26912_v51  ;;  %v26942_v51 = vld [vmem:[%s37924_s3 + $0xb60] ss:$28 sps:$4 sm:$0xff]   ;;  %v26950_v18 = vld [vmem:[%s37924_s3 + $0xb2c] ss:$28 sps:$4 sm:$0xff]  }
 0x537   : > { %18879 = vmatpush1.bf16.msra.mxu1 %v26909_v62  ;;  %v9703_v16 = vpop.f32.mrf.mxu0  ;;  %18859 = vmatprep.subr.bf16.mxu0 %v26920_v50  ;;  %v26939_v62 = vld [vmem:[%s37924_s3 + $0xa10] ss:$28 sps:$4 sm:$0xff]   ;;  %v10082_v50 = vmax.f32 %v31381_v45, 0.0 }
 0x538   : > { %18880 = vmatprep.subr.bf16.mxu1 %v26917_v25  ;;  %v33332_v60 = vadd.f32 %v33144_v2, %v9702_v58  ;;  %v9704_v4 = vadd.f32 %v9703_v16, %v33127_v22  ;;  %v26924_v22 = vld [vmem:[%s37924_s3 + $0xc08] ss:$28 sps:$4 sm:$0xff]   ;;  %v26947_v25 = vld [vmem:[%s37924_s3 + $0x9dc] ss:$28 sps:$4 sm:$0xff]   ;;  %v26956_v45 = vld [vmem:[%s37924_s3 + $0xaf4] ss:$28 sps:$4 sm:$0xff]  }
 0x539   : > { %v9705_v23 = vpop.f32.mrf.mxu0  ;;  %v26929_v2 = vld [vmem:[%s37924_s3 + $0x704] ss:$28 sps:$4 sm:$0xff]   ;;  %v26945_v58 = vld [vmem:[%s37924_s3 + $0x9d8] ss:$28 sps:$4 sm:$0xff]   ;;  %v26954_v16 = vld [vmem:[%s37924_s3 + $0xaf0] ss:$28 sps:$4 sm:$0xff]  }
 0x53a   : > { %v33342_v28 = vadd.f32 %v33150_v9, %v9704_v4  ;;  %18860 = vmatpush2.bf16.msra.mxu0 %v26918_v44  ;;  %v26927_v9 = vld [vmem:[%s37924_s3 + $0x700] ss:$28 sps:$4 sm:$0xff]   ;;  %v26959_v44 = vld [vmem:[%s37924_s3 + $0x96c] ss:$28 sps:$4 sm:$0xff]  }
 0x53b   : > { %18881 = vmatpush1.bf16.msra.mxu1 %v26915_v43  ;;  %v9706_v61 = vpop.f32.mrf.mxu0  ;;  %18911 = vmatprep.subr.bf16.mxu0 %v26926_v54  ;;  %v10077_v43 = vmax.f32 %v30726_v39, 0.0  ;;  %v26953_v39 = vld [vmem:[%s37924_s3 + $0x9a4] ss:$28 sps:$4 sm:$0xff]   ;;  %v26965_v54 = vld [vmem:[%s37924_s3 + $0x934] ss:$28 sps:$4 sm:$0xff]  }
 0x53c   : > { %18882 = vmatprep.subr.bf16.mxu1 %v26923_v15  ;;  %v26962_v15 = vld [vmem:[%s37924_s3 + $0xabc] ss:$28 sps:$4 sm:$0xff]   ;;  %v26957_v4 = vld [vmem:[%s37924_s3 + $0x968] ss:$28 sps:$4 sm:$0xff]   ;;  %v26963_v61 = vld [vmem:[%s37924_s3 + $0x930] ss:$28 sps:$4 sm:$0xff]  }
 0x53d   : > { %18862 = vmatmul.mubr.bf16.vlgmr.msra.gmra.mxu0 %v33350_v24  ;;  %v26968_v23 = vld [vmem:[%s37924_s3 + $0xa84] ss:$28 sps:$4 sm:$0xff]  }
 0x53e   : > { %v33360_v53 = vpop.f32.mrf.mxu1  ;;  %18912 = vmatpush1.bf16.msra.mxu0 %v26924_v22  ;;  %18943 = vmatprep.mubr.bf16.mxu0 %v33358_v29  ;;  %v26966_v22 = vld [vmem:[%s37924_s3 + $0xa80] ss:$28 sps:$4 sm:$0xff]  }
 0x53f   : > { %18883 = vmatpush1.bf16.msra.mxu1 %v26921_v8  ;;  %18913 = vmatprep.subr.bf16.mxu0 %v26932_v42  ;;  %v26960_v8 = vld [vmem:[%s37924_s3 + $0xab8] ss:$28 sps:$4 sm:$0xff]  }
 0x540   : > { %v33367_v37 = vpop.f32.mrf.mxu1  ;;  %18884 = vmatprep.subr.bf16.mxu1 %v26929_v2  ;;  %v26971_v2 = vld [vmem:[%s37924_s3 + $0x8fc] ss:$28 sps:$4 sm:$0xff]  }
 0x541   : > { %v26969_v42 = vld [vmem:[%s37924_s3 + $0x8f8] ss:$28 sps:$4 sm:$0xff]  }
 0x542   : > { %v9787_v7 = vpop.f32.mrf.mxu1  ;;  %18914 = vmatpush1.bf16.msra.mxu0 %v26930_v41  ;;  %v26972_v41 = vld [vmem:[%s37924_s3 + $0xdc8] ss:$28 sps:$4 sm:$0xff]  }
 0x543   : > { %18885 = vmatpush1.bf16.msra.mxu1 %v26927_v9  ;;  %18915 = vmatprep.subr.bf16.mxu0 %v26938_v6  ;;  %v26974_v9 = vld [vmem:[%s37924_s3 + $0xdcc] ss:$28 sps:$4 sm:$0xff]   ;;  %v26975_v6 = vld [vmem:[%s37924_s3 + $0x8c0] ss:$28 sps:$4 sm:$0xff]  }
 0x544   : > { %v9788_v46 = vpop.f32.mrf.mxu1  ;;  %18886 = vmatprep.subr.bf16.mxu1 %v26935_v59  ;;  %v26977_v59 = vld [vmem:[%s37924_s3 + $0x8c4] ss:$28 sps:$4 sm:$0xff]   ;;  %v26978_v7 = vld [vmem:[%s37924_s3 + $0xd90] ss:$28 sps:$4 sm:$0xff]  }
 0x545   : > { %v26986_v46 = vld [vmem:[%s37924_s3 + $0xd5c] ss:$28 sps:$4 sm:$0xff]  }
 0x546   : > { %18916 = vmatpush1.bf16.msra.mxu0 %v26936_v19  ;;  %v26983_v19 = vld [vmem:[%s37924_s3 + $0xf8c] ss:$28 sps:$4 sm:$0xff]  }
 0x547   : > { %18887 = vmatpush2.bf16.msra.mxu1 %v26933_v21  ;;  %18917 = vmatprep.subr.bf16.mxu0 %v26944_v33  ;;  %v26980_v21 = vld [vmem:[%s37924_s3 + $0xd94] ss:$28 sps:$4 sm:$0xff]  }
 0x548   : > { %18888 = vmatprep.subr.bf16.mxu1 %v26941_v20  ;;  %v26981_v20 = vld [vmem:[%s37924_s3 + $0xf88] ss:$28 sps:$4 sm:$0xff]   ;;  %v26984_v33 = vld [vmem:[%s37924_s3 + $0xd58] ss:$28 sps:$4 sm:$0xff]  }
 0x54a   : > { %18918 = vmatpush1.bf16.msra.mxu0 %v26942_v51  ;;  %v26989_v51 = vld [vmem:[%s37924_s3 + $0xf54] ss:$28 sps:$4 sm:$0xff]  }
 0x54b   : > { %18889 = vmatpush2.bf16.msra.mxu1 %v26939_v62  ;;  %18919 = vmatprep.subr.bf16.mxu0 %v26950_v18  ;;  %v33476_v62 = vpack.c.bf16 %v10077_v43, %v10077_v43  ;;  %v26987_v18 = vld [vmem:[%s37924_s3 + $0xf50] ss:$28 sps:$4 sm:$0xff]   ;;  %v26992_v43 = vld [vmem:[%s37924_s3 + $0xd24] ss:$28 sps:$4 sm:$0xff]  }
 0x54c   : > { %18890 = vmatprep.subr.bf16.mxu1 %v26947_v25  ;;  %v33484_v25 = vpack.c.bf16 %v10082_v50, %v10082_v50  ;;  %v26995_v50 = vld [vmem:[%s37924_s3 + $0xf1c] ss:$28 sps:$4 sm:$0xff]  }
 0x54e   : > { %18920 = vmatpush1.bf16.msra.mxu0 %v26948_v5  ;;  %v26998_v5 = vld [vmem:[%s37924_s3 + $0xcec] ss:$28 sps:$4 sm:$0xff]  }
 0x54f   : > { %18891 = vmatpush2.bf16.msra.mxu1 %v26945_v58  ;;  %18921 = vmatprep.subr.bf16.mxu0 %v26956_v45  ;;  %v26990_v58 = vld [vmem:[%s37924_s3 + $0xd20] ss:$28 sps:$4 sm:$0xff]   ;;  %v26996_v45 = vld [vmem:[%s37924_s3 + $0xce8] ss:$28 sps:$4 sm:$0xff]  }
 0x550   : > { %18892 = vmatprep.subr.bf16.mxu1 %v26953_v39  ;;  %v26993_v39 = vld [vmem:[%s37924_s3 + $0xf18] ss:$28 sps:$4 sm:$0xff]  }
 0x552   : > { %18922 = vmatpush1.bf16.msra.mxu0 %v26954_v16  ;;  %v26999_v16 = vld [vmem:[%s37924_s3 + $0xee0] ss:$28 sps:$4 sm:$0xff]  }
 0x553   : > { %18893 = vmatpush2.bf16.msra.mxu1 %v26951_v11  ;;  %18923 = vmatprep.subr.bf16.mxu0 %v26962_v15  ;;  %v27001_v11 = vld [vmem:[%s37924_s3 + $0xee4] ss:$28 sps:$4 sm:$0xff]   ;;  %v27002_v15 = vld [vmem:[%s37924_s3 + $0xcb0] ss:$28 sps:$4 sm:$0xff]  }
 0x554   : > { %18894 = vmatprep.subr.bf16.mxu1 %v26959_v44  ;;  %v27004_v44 = vld [vmem:[%s37924_s3 + $0xcb4] ss:$28 sps:$4 sm:$0xff]  }
 0x556   : > { %18924 = vmatpush1.bf16.msra.mxu0 %v26960_v8  ;;  %v28935_v8 = vld [vmem:[%s37923_s2 + $0x10] sm:$0xff] }
 0x557   : > { %18895 = vmatpush2.bf16.msra.mxu1 %v26957_v4  ;;  %18925 = vmatprep.subr.bf16.mxu0 %v26968_v23  ;;  %v27007_v4 = vld [vmem:[%s37924_s3 + $0xeac] ss:$28 sps:$4 sm:$0xff]  }
 0x558   : > { %18896 = vmatprep.subr.bf16.mxu1 %v26965_v54  ;;  %v1709_v54 = vrot.slane %v28935_v8, %v30897_v56  ;;  %v27005_v23 = vld [vmem:[%s37924_s3 + $0xea8] ss:$28 sps:$4 sm:$0xff]  }
 0x55a   : > { %18926 = vmatpush1.bf16.msra.mxu0 %v26966_v22  ;;  %v1713_v22 = vrot.slane %v28935_v8, %v30900_v57  ;;  %v27016_v57 = vld [vmem:[%s37924_s3 + $0xc44] ss:$28 sps:$4 sm:$0xff]   ;;  %v27031_v8 = vld [vmem:[%s37924_s3 + $0x114c] ss:$28 sps:$4 sm:$0xff]  }
 0x55b   : > { %18897 = vmatpush2.bf16.msra.mxu1 %v26963_v61  ;;  %18927 = vmatprep.subr.bf16.mxu0 %v26974_v9  ;;  %v27010_v61 = vld [vmem:[%s37924_s3 + $0xc7c] ss:$28 sps:$4 sm:$0xff]   ;;  %v27013_v9 = vld [vmem:[%s37924_s3 + $0xe74] ss:$28 sps:$4 sm:$0xff]  }
 0x55c   : > { %18898 = vmatprep.subr.bf16.mxu1 %v26971_v2  ;;  %v27008_v2 = vld [vmem:[%s37924_s3 + $0xc78] ss:$28 sps:$4 sm:$0xff]  }
 0x55e   : > { %18928 = vmatpush2.bf16.msra.mxu0 %v26972_v41  ;;  %v27011_v41 = vld [vmem:[%s37924_s3 + $0xe70] ss:$28 sps:$4 sm:$0xff]  }
 0x55f   : > { %18899 = vmatpush2.bf16.msra.mxu1 %v26969_v42  ;;  %18929 = vmatprep.subr.bf16.mxu0 %v26980_v21  ;;  %v9784_v42 = vadd.f32 %v33360_v53, %v1709_v54  ;;  %v9786_v21 = vadd.f32 %v33367_v37, %v1713_v22  ;;  %v27017_v37 = vld [vmem:[%s37924_s3 + $0xe38] ss:$28 sps:$4 sm:$0xff]  }
 0x560   : > { %18900 = vmatprep.subr.bf16.mxu1 %v26977_v59  ;;  %v27034_v22 = vld [vmem:[%s37924_s3 + $0x129c] ss:$28 sps:$4 sm:$0xff]  }
 0x562   : > { %18930 = vmatpush2.bf16.msra.mxu0 %v26978_v7  ;;  %v10079_v7 = vmax.f32 %v30965_v3, 0.0  ;;  %v27022_v3 = vld [vmem:[%s37924_s3 + $0x130c] ss:$28 sps:$4 sm:$0xff]  }
 0x563   : > { %18901 = vmatpush2.bf16.msra.mxu1 %v26975_v6  ;;  %18931 = vmatprep.subr.bf16.mxu0 %v26986_v46  ;;  %v27014_v46 = vld [vmem:[%s37924_s3 + $0xc40] ss:$28 sps:$4 sm:$0xff]  }
 0x564   : > { %18952 = vmatprep.subr.bf16.mxu1 %v26983_v19  ;;  %v10084_v19 = vmax.f32 %v31625_v63, 0.0 }
 0x566   : > { %18903 = vmatmul.mubr.bf16.vlgmr.msra.gmra.mxu1 %v33476_v62  ;;  %18932 = vmatpush2.bf16.msra.mxu0 %v26984_v33 }
 0x567   : > { %18953 = vmatpush1.bf16.msra.mxu1 %v26981_v20  ;;  %18984 = vmatprep.mubr.bf16.mxu1 %v33484_v25  ;;  %v27019_v20 = vld [vmem:[%s37924_s3 + $0xe3c] ss:$28 sps:$4 sm:$0xff]  }
 0x568   : > { %18954 = vmatprep.subr.bf16.mxu1 %v26989_v51  ;;  %18933 = vmatprep.subr.bf16.mxu0 %v26992_v43  ;;  %v27025_v43 = vld [vmem:[%s37924_s3 + $0xe04] ss:$28 sps:$4 sm:$0xff]  }
 0x56a   : > { %18934 = vmatpush2.bf16.msra.mxu0 %v26990_v58  ;;  %v33569_v58 = vpack.c.bf16 %v10079_v7, %v10079_v7  ;;  %v10086_v7 = vmax.f32 %v32029_v17, 0.0  ;;  %v27086_v17 = vld [vmem:[%s37924_s3 + $0x1420] ss:$28 sps:$4 sm:$0xff]  }
 0x56b   : > { %18955 = vmatpush1.bf16.msra.mxu1 %v26987_v18  ;;  %18935 = vmatprep.subr.bf16.mxu0 %v26998_v5  ;;  %v27020_v18 = vld [vmem:[%s37924_s3 + $0x1308] ss:$28 sps:$4 sm:$0xff]   ;;  %v27028_v5 = vld [vmem:[%s37924_s3 + $0x12d4] ss:$28 sps:$4 sm:$0xff]  }
 0x56c   : > { %18956 = vmatprep.subr.bf16.mxu1 %v26995_v50  ;;  %v27023_v50 = vld [vmem:[%s37924_s3 + $0xe00] ss:$28 sps:$4 sm:$0xff]  }
 0x56e   : > { %18936 = vmatpush2.bf16.msra.mxu0 %v26996_v45 }
 0x56f   : > { %18957 = vmatpush1.bf16.msra.mxu1 %v26993_v39  ;;  %18937 = vmatprep.subr.bf16.mxu0 %v27004_v44  ;;  %v33577_v39 = vpack.c.bf16 %v10084_v19, %v10084_v19  ;;  %v27040_v19 = vld [vmem:[%s37924_s3 + $0x1264] ss:$28 sps:$4 sm:$0xff]  }
 0x570   : > { %18958 = vmatprep.subr.bf16.mxu1 %v27001_v11 }
 0x572   : > { %18938 = vmatpush2.bf16.msra.mxu0 %v27002_v15 }
 0x573   : > { %18959 = vmatpush1.bf16.msra.mxu1 %v26999_v16  ;;  %18939 = vmatprep.subr.bf16.mxu0 %v27010_v61  ;;  %v27026_v16 = vld [vmem:[%s37924_s3 + $0x12d0] ss:$28 sps:$4 sm:$0xff]   ;;  %v27029_v61 = vld [vmem:[%s37924_s3 + $0x1148] ss:$28 sps:$4 sm:$0xff]  }
 0x574   : > { %18960 = vmatprep.subr.bf16.mxu1 %v27007_v4 }
 0x575   : > { %v9824_v59 = vpop.f32.mrf.mxu0 }
 0x576   : > { %v9825_v6 = vadd.f32 %v9824_v59, %v9784_v42  ;;  %18940 = vmatpush2.bf16.msra.mxu0 %v27008_v2  ;;  %v27032_v42 = vld [vmem:[%s37924_s3 + $0x1298] ss:$28 sps:$4 sm:$0xff]  }
 0x577   : > { %18961 = vmatpush1.bf16.msra.mxu1 %v27005_v23  ;;  %v9826_v53 = vpop.f32.mrf.mxu0  ;;  %18941 = vmatprep.subr.bf16.mxu0 %v27016_v57 }
 0x578   : > { %18962 = vmatprep.subr.bf16.mxu1 %v27013_v9  ;;  %v9827_v33 = vadd.f32 %v9826_v53, %v9786_v21  ;;  %v27037_v21 = vld [vmem:[%s37924_s3 + $0x1114] ss:$28 sps:$4 sm:$0xff]  }
 0x579   : > { %v9828_v63 = vpop.f32.mrf.mxu0  ;;  %v27035_v53 = vld [vmem:[%s37924_s3 + $0x1110] ss:$28 sps:$4 sm:$0xff]  }
 0x57a   : > { %18942 = vmatpush2.bf16.msra.mxu0 %v27014_v46  ;;  %v27038_v46 = vld [vmem:[%s37924_s3 + $0x1260] ss:$28 sps:$4 sm:$0xff]  }
 0x57b   : > { %18963 = vmatpush1.bf16.msra.mxu1 %v27011_v41  ;;  %v9829_v51 = vpop.f32.mrf.mxu0  ;;  %18993 = vmatprep.subr.bf16.mxu0 %v27022_v3  ;;  %v27044_v3 = vld [vmem:[%s37924_s3 + $0x1228] ss:$28 sps:$4 sm:$0xff]  }
 0x57c   : > { %18964 = vmatprep.subr.bf16.mxu1 %v27019_v20  ;;  %v27043_v20 = vld [vmem:[%s37924_s3 + $0x10dc] ss:$28 sps:$4 sm:$0xff]   ;;  %v27049_v63 = vld [vmem:[%s37924_s3 + $0x10a4] ss:$28 sps:$4 sm:$0xff]   ;;  %v27052_v51 = vld [vmem:[%s37924_s3 + $0x11f4] ss:$28 sps:$4 sm:$0xff]  }
 0x57d   : > { %v9906_v11 = vpop.f32.mrf.mxu0  ;;  %18944 = vmatmul.mubr.bf16.vlgmr.msra.gmra.mxu0 %v33569_v58 }
 0x57e   : > { %v9865_v45 = vpop.f32.mrf.mxu1  ;;  %18994 = vmatpush1.bf16.msra.mxu0 %v27020_v18  ;;  %19025 = vmatprep.mubr.bf16.mxu0 %v33577_v39  ;;  %v27047_v18 = vld [vmem:[%s37924_s3 + $0x10a0] ss:$28 sps:$4 sm:$0xff]  }
 0x57f   : > { %v9866_v44 = vadd.f32 %v9865_v45, %v9825_v6  ;;  %18965 = vmatpush1.bf16.msra.mxu1 %v27017_v37  ;;  %v9908_v4 = vpop.f32.mrf.mxu0  ;;  %18995 = vmatprep.subr.bf16.mxu0 %v27028_v5  ;;  %v10081_v6 = vmax.f32 %v31377_v40, 0.0  ;;  %v27041_v37 = vld [vmem:[%s37924_s3 + $0x10d8] ss:$28 sps:$4 sm:$0xff]   ;;  %v27053_v45 = vld [vmem:[%s37924_s3 + $0x1068] ss:$28 sps:$4 sm:$0xff]  }
 0x580   : > { %v9867_v15 = vpop.f32.mrf.mxu1  ;;  %18966 = vmatprep.subr.bf16.mxu1 %v27025_v43  ;;  %v27050_v43 = vld [vmem:[%s37924_s3 + $0x11f0] ss:$28 sps:$4 sm:$0xff]   ;;  %v27058_v5 = vld [vmem:[%s37924_s3 + $0x11bc] ss:$28 sps:$4 sm:$0xff]  }
 0x581   : > { %v33587_v54 = vadd.f32 %v9906_v11, %v9866_v44  ;;  %v9868_v23 = vadd.f32 %v9867_v15, %v9827_v33  ;;  %v9910_v9 = vpop.f32.mrf.mxu0  ;;  %v27046_v33 = vld [vmem:[%s37924_s3 + $0x122c] ss:$28 sps:$4 sm:$0xff]   ;;  %v27056_v11 = vld [vmem:[%s37924_s3 + $0x11b8] ss:$28 sps:$4 sm:$0xff]   ;;  %v27064_v44 = vld [vmem:[%s37924_s3 + $0x1184] ss:$28 sps:$4 sm:$0xff]  }
 0x582   : > { %v9869_v2 = vpop.f32.mrf.mxu1  ;;  %18996 = vmatpush1.bf16.msra.mxu0 %v27026_v16  ;;  %v27061_v16 = vld [vmem:[%s37924_s3 + $0x1034] ss:$28 sps:$4 sm:$0xff]  }
 0x583   : > { %v33598_v41 = vadd.f32 %v9908_v4, %v9868_v23  ;;  %18967 = vmatpush1.bf16.msra.mxu1 %v27023_v50  ;;  %v9911_v59 = vpop.f32.mrf.mxu0  ;;  %18997 = vmatprep.subr.bf16.mxu0 %v27034_v22  ;;  %v27055_v50 = vld [vmem:[%s37924_s3 + $0x106c] ss:$28 sps:$4 sm:$0xff]   ;;  %v27062_v4 = vld [vmem:[%s37924_s3 + $0x1180] ss:$28 sps:$4 sm:$0xff]   ;;  %v27076_v9 = vld [vmem:[%s37924_s3 + $0x1494] ss:$28 sps:$4 sm:$0xff]  }
 0x584   : > { %v9870_v57 = vpop.f32.mrf.mxu1  ;;  %18968 = vmatprep.subr.bf16.mxu1 %v27031_v8  ;;  %v27059_v15 = vld [vmem:[%s37924_s3 + $0x1030] ss:$28 sps:$4 sm:$0xff]   ;;  %v27067_v8 = vld [vmem:[%s37924_s3 + $0xffc] ss:$28 sps:$4 sm:$0xff]   ;;  %v27068_v22 = vld [vmem:[%s37924_s3 + $0x14c8] ss:$28 sps:$4 sm:$0xff]  }
 0x585   : > { %v27070_v23 = vld [vmem:[%s37924_s3 + $0x14cc] ss:$28 sps:$4 sm:$0xff]   ;;  %v27073_v2 = vld [vmem:[%s37924_s3 + $0xfc4] ss:$28 sps:$4 sm:$0xff]   ;;  %v21885_v59 = vld [vmem:[%s37923_s2 + $0x18] ss:$0 sm:$0xff] }
 0x586   : > { %18998 = vmatpush1.bf16.msra.mxu0 %v27032_v42  ;;  %v27083_v40 = vld [vmem:[%s37924_s3 + $0x1650] ss:$28 sps:$4 sm:$0xff]  }
 0x587   : > { %18969 = vmatpush2.bf16.msra.mxu1 %v27029_v61  ;;  %18999 = vmatprep.subr.bf16.mxu0 %v27040_v19  ;;  %v27065_v61 = vld [vmem:[%s37924_s3 + $0xff8] ss:$28 sps:$4 sm:$0xff]  }
 0x588   : > { %18970 = vmatprep.subr.bf16.mxu1 %v27037_v21  ;;  %v27071_v21 = vld [vmem:[%s37924_s3 + $0xfc0] ss:$28 sps:$4 sm:$0xff]  }
 0x58a   : > { %19000 = vmatpush1.bf16.msra.mxu0 %v27038_v46  ;;  %v27074_v46 = vld [vmem:[%s37924_s3 + $0x1490] ss:$28 sps:$4 sm:$0xff]  }
 0x58b   : > { %18971 = vmatpush2.bf16.msra.mxu1 %v27035_v53  ;;  %19001 = vmatprep.subr.bf16.mxu0 %v27046_v33 }
 0x58c   : > { %18972 = vmatprep.subr.bf16.mxu1 %v27043_v20  ;;  %v27079_v20 = vld [vmem:[%s37924_s3 + $0x168c] ss:$28 sps:$4 sm:$0xff]  }
 0x58e   : > { %19002 = vmatpush1.bf16.msra.mxu0 %v27044_v3  ;;  %v27077_v3 = vld [vmem:[%s37924_s3 + $0x1688] ss:$28 sps:$4 sm:$0xff]  }
 0x58f   : > { %18973 = vmatpush2.bf16.msra.mxu1 %v27041_v37  ;;  %19003 = vmatprep.subr.bf16.mxu0 %v27052_v51 }
 0x590   : > { %18974 = vmatprep.subr.bf16.mxu1 %v27049_v63  ;;  %v27082_v63 = vld [vmem:[%s37924_s3 + $0x145c] ss:$28 sps:$4 sm:$0xff]  }
 0x592   : > { %19004 = vmatpush1.bf16.msra.mxu0 %v27050_v43  ;;  %v27080_v43 = vld [vmem:[%s37924_s3 + $0x1458] ss:$28 sps:$4 sm:$0xff]  }
 0x593   : > { %18975 = vmatpush2.bf16.msra.mxu1 %v27047_v18  ;;  %19005 = vmatprep.subr.bf16.mxu0 %v27058_v5  ;;  %v33704_v5 = vpack.c.bf16 %v10081_v6, %v10081_v6  ;;  %v27088_v6 = vld [vmem:[%s37924_s3 + $0x1424] ss:$28 sps:$4 sm:$0xff]  }
 0x594   : > { %18976 = vmatprep.subr.bf16.mxu1 %v27055_v50 }
 0x596   : > { %19006 = vmatpush1.bf16.msra.mxu0 %v27056_v11 }
 0x597   : > { %18977 = vmatpush2.bf16.msra.mxu1 %v27053_v45  ;;  %19007 = vmatprep.subr.bf16.mxu0 %v27064_v44  ;;  %v33712_v44 = vpack.c.bf16 %v10086_v7, %v10086_v7 }
 0x598   : > { %18978 = vmatprep.subr.bf16.mxu1 %v27061_v16  ;;  %v27085_v16 = vld [vmem:[%s37924_s3 + $0x1654] ss:$28 sps:$4 sm:$0xff]  }
 0x59a   : > { %19008 = vmatpush1.bf16.msra.mxu0 %v27062_v4 }
 0x59b   : > { %18979 = vmatpush2.bf16.msra.mxu1 %v27059_v15  ;;  %19009 = vmatprep.subr.bf16.mxu0 %v27070_v23  ;;  %v27094_v23 = vld [vmem:[%s37924_s3 + $0x13ec] ss:$28 sps:$4 sm:$0xff]  }
 0x59c   : > { %18980 = vmatprep.subr.bf16.mxu1 %v27067_v8  ;;  %v27091_v8 = vld [vmem:[%s37924_s3 + $0x161c] ss:$28 sps:$4 sm:$0xff]  }
 0x59d   : > { %v24636_v42 = vpop.f32.mrf.mxu0 }
 0x59e   : > { %v24658_v57 = vpop.f32.mrf.mxu1  ;;  %19010 = vmatpush2.bf16.msra.mxu0 %v27068_v22  ;;  %v27089_v22 = vld [vmem:[%s37924_s3 + $0x1618] ss:$28 sps:$4 sm:$0xff]  }
 0x59f   : > { %18981 = vmatpush2.bf16.msra.mxu1 %v27065_v61  ;;  %v24637_v19 = vpop.f32.mrf.mxu0  ;;  %19011 = vmatprep.subr.bf16.mxu0 %v27076_v9  ;;  %v27092_v9 = vld [vmem:[%s37924_s3 + $0x13e8] ss:$28 sps:$4 sm:$0xff]  }
 0x5a0   : > { %v24659_v53 = vpop.f32.mrf.mxu1  ;;  %18982 = vmatprep.subr.bf16.mxu1 %v27073_v2  ;;  %v24638_v33 = vadd.f32 %v24637_v19, %v24636_v42  ;;  %v27097_v42 = vld [vmem:[%s37924_s3 + $0x15e4] ss:$28 sps:$4 sm:$0xff]   ;;  %v27103_v19 = vld [vmem:[%s37924_s3 + $0x15ac] ss:$28 sps:$4 sm:$0xff]  }
 0x5a1   : > { %v24660_v37 = vadd.f32 %v24659_v53, %v24658_v57  ;;  %v24639_v51 = vpop.f32.mrf.mxu0  ;;  %v27095_v57 = vld [vmem:[%s37924_s3 + $0x15e0] ss:$28 sps:$4 sm:$0xff]   ;;  %v27101_v53 = vld [vmem:[%s37924_s3 + $0x15a8] ss:$28 sps:$4 sm:$0xff]  }
 0x5a2   : > { %v24661_v18 = vpop.f32.mrf.mxu1  ;;  %v9948_v50 = vadd.f32 %v24638_v33, %v21885_v59  ;;  %19012 = vmatpush2.bf16.msra.mxu0 %v27074_v46  ;;  %v27100_v59 = vld [vmem:[%s37924_s3 + $0x13b4] ss:$28 sps:$4 sm:$0xff]   ;;  %v27106_v46 = vld [vmem:[%s37924_s3 + $0x137c] ss:$28 sps:$4 sm:$0xff]   ;;  %v10088_v51 = vmax.f32 %v32269_v49, 0.0 }
 0x5a3   : > { %18983 = vmatpush2.bf16.msra.mxu1 %v27071_v21  ;;  %v24640_v45 = vpop.f32.mrf.mxu0  ;;  %19013 = vmatprep.subr.bf16.mxu0 %v27082_v63  ;;  %v27098_v21 = vld [vmem:[%s37924_s3 + $0x13b0] ss:$28 sps:$4 sm:$0xff]   ;;  %v10083_v63 = vmax.f32 %v31614_v10, 0.0  ;;  %v27110_v18 = vld [vmem:[%s37924_s3 + $0x1340] ss:$28 sps:$4 sm:$0xff]  }
 0x5a4   : > { %v24662_v11 = vpop.f32.mrf.mxu1  ;;  %19034 = vmatprep.subr.bf16.mxu1 %v27079_v20  ;;  %v33714_v15 = vadd.f32 %v24660_v37, %v9948_v50  ;;  %v27104_v20 = vld [vmem:[%s37924_s3 + $0x1378] ss:$28 sps:$4 sm:$0xff]   ;;  %v27107_v37 = vld [vmem:[%s37924_s3 + $0x1570] ss:$28 sps:$4 sm:$0xff]   ;;  %v27116_v49 = vld [vmem:[%s37924_s3 + $0x1a08] ss:$28 sps:$4 sm:$0xff]  }
 0x5a5   : > { %v27109_v33 = vld [vmem:[%s37924_s3 + $0x1574] ss:$28 sps:$4 sm:$0xff]   ;;  %v27118_v10 = vld [vmem:[%s37924_s3 + $0x1a0c] ss:$28 sps:$4 sm:$0xff]   ;;  %v27121_v45 = vld [vmem:[%s37924_s3 + $0x1504] ss:$28 sps:$4 sm:$0xff]   ;;  %v33794_v11 = vpack.c.bf16 %v10083_v63, %v10083_v63 }
 0x5a6   : > { %18985 = vmatmul.mubr.bf16.vlgmr.msra.gmra.mxu1 %v33704_v5  ;;  %v33723_v4 = vpop.f32.mrf.mxu1  ;;  %19014 = vmatpush2.bf16.msra.mxu0 %v27080_v43  ;;  %v27115_v43 = vld [vmem:[%s37924_s3 + $0x153c] ss:$28 sps:$4 sm:$0xff]   ;;  %v27148_v63 = vld [vmem:[%s37924_s3 + $0x18f4] ss:$28 sps:$4 sm:$0xff]  }
 0x5a7   : > { %19035 = vmatpush1.bf16.msra.mxu1 %v27077_v3  ;;  %19066 = vmatprep.mubr.bf16.mxu1 %v33712_v44  ;;  %v27112_v3 = vld [vmem:[%s37924_s3 + $0x1344] ss:$28 sps:$4 sm:$0xff]   ;;  %v27113_v50 = vld [vmem:[%s37924_s3 + $0x1538] ss:$28 sps:$4 sm:$0xff]  }
 0x5a8   : > { %v24961_v7 = vpop.f32.mrf.mxu1  ;;  %19036 = vmatprep.subr.bf16.mxu1 %v27085_v16  ;;  %19015 = vmatprep.subr.bf16.mxu0 %v27088_v6  ;;  %v27119_v16 = vld [vmem:[%s37924_s3 + $0x1500] ss:$28 sps:$4 sm:$0xff]   ;;  %v33802_v6 = vpack.c.bf16 %v10088_v51, %v10088_v51 }
 0x5a9   : > { %v27122_v7 = vld [vmem:[%s37924_s3 + $0x19d0] ss:$28 sps:$4 sm:$0xff]   ;;  %v27143_v51 = vld [vmem:[%s37924_s3 + $0x17a0] ss:$28 sps:$4 sm:$0xff]  }
 0x5aa   : > { %v10070_v61 = vpop.f32.mrf.mxu1  ;;  %19016 = vmatpush2.bf16.msra.mxu0 %v27086_v17 }
 0x5ab   : > { %19037 = vmatpush1.bf16.msra.mxu1 %v27083_v40  ;;  %19017 = vmatprep.subr.bf16.mxu0 %v27094_v23  ;;  %v27124_v40 = vld [vmem:[%s37924_s3 + $0x19d4] ss:$28 sps:$4 sm:$0xff]   ;;  %v27127_v23 = vld [vmem:[%s37924_s3 + $0x184c] ss:$28 sps:$4 sm:$0xff]  }
 0x5ac   : > { %v24962_v2 = vpop.f32.mrf.mxu1  ;;  %19038 = vmatprep.subr.bf16.mxu1 %v27091_v8 }
 0x5ad   : > { %v27130_v2 = vld [vmem:[%s37924_s3 + $0x199c] ss:$28 sps:$4 sm:$0xff]  }
 0x5ae   : > { %19018 = vmatpush2.bf16.msra.mxu0 %v27092_v9 }
 0x5af   : > { %19039 = vmatpush1.bf16.msra.mxu1 %v27089_v22  ;;  %19019 = vmatprep.subr.bf16.mxu0 %v27100_v59  ;;  %v27125_v22 = vld [vmem:[%s37924_s3 + $0x1848] ss:$28 sps:$4 sm:$0xff]  }
 0x5b0   : > { %19040 = vmatprep.subr.bf16.mxu1 %v27097_v42  ;;  %v27128_v42 = vld [vmem:[%s37924_s3 + $0x1998] ss:$28 sps:$4 sm:$0xff]  }
 0x5b2   : > { %19020 = vmatpush2.bf16.msra.mxu0 %v27098_v21  ;;  %v27133_v21 = vld [vmem:[%s37924_s3 + $0x1814] ss:$28 sps:$4 sm:$0xff]  }
 0x5b3   : > { %19041 = vmatpush1.bf16.msra.mxu1 %v27095_v57  ;;  %19021 = vmatprep.subr.bf16.mxu0 %v27106_v46  ;;  %v27134_v46 = vld [vmem:[%s37924_s3 + $0x1960] ss:$28 sps:$4 sm:$0xff]  }
 0x5b4   : > { %19042 = vmatprep.subr.bf16.mxu1 %v27103_v19 }
 0x5b6   : > { %19022 = vmatpush2.bf16.msra.mxu0 %v27104_v20  ;;  %v27142_v20 = vld [vmem:[%s37924_s3 + $0x192c] ss:$28 sps:$4 sm:$0xff]  }
 0x5b7   : > { %19043 = vmatpush1.bf16.msra.mxu1 %v27101_v53  ;;  %19023 = vmatprep.subr.bf16.mxu0 %v27112_v3  ;;  %v27136_v53 = vld [vmem:[%s37924_s3 + $0x1964] ss:$28 sps:$4 sm:$0xff]  }
 0x5b8   : > { %19044 = vmatprep.subr.bf16.mxu1 %v27109_v33  ;;  %v27137_v33 = vld [vmem:[%s37924_s3 + $0x17d8] ss:$28 sps:$4 sm:$0xff]   ;;  %v27145_v3 = vld [vmem:[%s37924_s3 + $0x17a4] ss:$28 sps:$4 sm:$0xff]  }
 0x5ba   : > { %19024 = vmatpush2.bf16.msra.mxu0 %v27110_v18  ;;  %v27146_v18 = vld [vmem:[%s37924_s3 + $0x18f0] ss:$28 sps:$4 sm:$0xff]  }
 0x5bb   : > { %19045 = vmatpush1.bf16.msra.mxu1 %v27107_v37  ;;  %19075 = vmatprep.subr.bf16.mxu0 %v27118_v10  ;;  %v27140_v37 = vld [vmem:[%s37924_s3 + $0x1928] ss:$28 sps:$4 sm:$0xff]  }
 0x5bc   : > { %19046 = vmatprep.subr.bf16.mxu1 %v27115_v43  ;;  %v27151_v43 = vld [vmem:[%s37924_s3 + $0x176c] ss:$28 sps:$4 sm:$0xff]  }
 0x5bd   : > { %v24680_v17 = vpop.f32.mrf.mxu0  ;;  %19026 = vmatmul.mubr.bf16.vlgmr.msra.gmra.mxu0 %v33794_v11  ;;  %v27149_v10 = vld [vmem:[%s37924_s3 + $0x1768] ss:$28 sps:$4 sm:$0xff]  }
 0x5be   : > { %19076 = vmatpush1.bf16.msra.mxu0 %v27116_v49  ;;  %19107 = vmatprep.mubr.bf16.mxu0 %v33802_v6  ;;  %v27152_v49 = vld [vmem:[%s37924_s3 + $0x18b8] ss:$28 sps:$4 sm:$0xff]  }
 0x5bf   : > { %19047 = vmatpush1.bf16.msra.mxu1 %v27113_v50  ;;  %v24681_v8 = vpop.f32.mrf.mxu0  ;;  %19077 = vmatprep.subr.bf16.mxu0 %v27124_v40  ;;  %v27154_v50 = vld [vmem:[%s37924_s3 + $0x18bc] ss:$28 sps:$4 sm:$0xff]   ;;  %v27155_v40 = vld [vmem:[%s37924_s3 + $0x1730] ss:$28 sps:$4 sm:$0xff]  }
 0x5c0   : > { %v24682_v61 = vadd.f32 %v24681_v8, %v24680_v17  ;;  %19048 = vmatprep.subr.bf16.mxu1 %v27121_v45  ;;  %v27157_v45 = vld [vmem:[%s37924_s3 + $0x1734] ss:$28 sps:$4 sm:$0xff]   ;;  %v27158_v17 = vld [vmem:[%s37924_s3 + $0x1880] ss:$28 sps:$4 sm:$0xff]   ;;  %v27166_v8 = vld [vmem:[%s37924_s3 + $0x1bcc] ss:$28 sps:$4 sm:$0xff]  }
 0x5c1   : > { %v24683_v9 = vpop.f32.mrf.mxu0 }
 0x5c2   : > { %v10028_v57 = vadd.f32 %v24682_v61, %v33714_v15  ;;  %19078 = vmatpush1.bf16.msra.mxu0 %v27122_v7  ;;  %v27131_v15 = vld [vmem:[%s37924_s3 + $0x1810] ss:$28 sps:$4 sm:$0xff]   ;;  %v27163_v7 = vld [vmem:[%s37924_s3 + $0x16fc] ss:$28 sps:$4 sm:$0xff]   ;;  %v27164_v61 = vld [vmem:[%s37924_s3 + $0x1bc8] ss:$28 sps:$4 sm:$0xff]  }
 0x5c3   : > { %19049 = vmatpush1.bf16.msra.mxu1 %v27119_v16  ;;  %v24684_v59 = vpop.f32.mrf.mxu0  ;;  %19079 = vmatprep.subr.bf16.mxu0 %v27130_v2  ;;  %v27160_v16 = vld [vmem:[%s37924_s3 + $0x1884] ss:$28 sps:$4 sm:$0xff]   ;;  %v27172_v2 = vld [vmem:[%s37924_s3 + $0x1b94] ss:$28 sps:$4 sm:$0xff]  }
 0x5c4   : > { %19050 = vmatprep.subr.bf16.mxu1 %v27127_v23  ;;  %v33826_v19 = vadd.f32 %v33723_v4, %v10028_v57  ;;  %v27139_v4 = vld [vmem:[%s37924_s3 + $0x17dc] ss:$28 sps:$4 sm:$0xff]   ;;  %v27170_v57 = vld [vmem:[%s37924_s3 + $0x1b90] ss:$28 sps:$4 sm:$0xff]  }
 0x5c5   : > { %v27161_v23 = vld [vmem:[%s37924_s3 + $0x16f8] ss:$28 sps:$4 sm:$0xff]   ;;  %v27167_v9 = vld [vmem:[%s37924_s3 + $0x16c0] ss:$28 sps:$4 sm:$0xff]   ;;  %v27175_v59 = vld [vmem:[%s37924_s3 + $0x1d8c] ss:$28 sps:$4 sm:$0xff]  }
 0x5c6   : > { %19080 = vmatpush1.bf16.msra.mxu0 %v27128_v42  ;;  %v10085_v42 = vmax.f32 %v32025_v32, 0.0  ;;  %v27178_v32 = vld [vmem:[%s37924_s3 + $0x1b5c] ss:$28 sps:$4 sm:$0xff]  }
 0x5c7   : > { %19051 = vmatpush2.bf16.msra.mxu1 %v27125_v22  ;;  %19081 = vmatprep.subr.bf16.mxu0 %v27136_v53  ;;  %v27169_v22 = vld [vmem:[%s37924_s3 + $0x16c4] ss:$28 sps:$4 sm:$0xff]  }
 0x5c8   : > { %19052 = vmatprep.subr.bf16.mxu1 %v27133_v21  ;;  %v10090_v21 = vmax.f32 %v32677_v26, 0.0  ;;  %v27173_v53 = vld [vmem:[%s37924_s3 + $0x1d88] ss:$28 sps:$4 sm:$0xff]   ;;  %v27181_v26 = vld [vmem:[%s37924_s3 + $0x1d54] ss:$28 sps:$4 sm:$0xff]  }
 0x5ca   : > { %19082 = vmatpush1.bf16.msra.mxu0 %v27134_v46  ;;  %v33923_v46 = vpack.c.bf16 %v10085_v42, %v10085_v42  ;;  %v27203_v42 = vld [vmem:[%s37924_s3 + $0x1c70] ss:$28 sps:$4 sm:$0xff]  }
 0x5cb   : > { %19053 = vmatpush2.bf16.msra.mxu1 %v27131_v15  ;;  %19083 = vmatprep.subr.bf16.mxu0 %v27142_v20  ;;  %v27176_v15 = vld [vmem:[%s37924_s3 + $0x1b58] ss:$28 sps:$4 sm:$0xff]   ;;  %v27179_v20 = vld [vmem:[%s37924_s3 + $0x1d50] ss:$28 sps:$4 sm:$0xff]  }
 0x5cc   : > { %19054 = vmatprep.subr.bf16.mxu1 %v27139_v4  ;;  %v33928_v4 = vpack.c.bf16 %v10090_v21, %v10090_v21  ;;  %v10087_v21 = vmax.f32 %v32258_v14, 0.0  ;;  %v27212_v14 = vld [vmem:[%s37924_s3 + $0x2108] ss:$28 sps:$4 sm:$0xff]  }
 0x5ce   : > { %19084 = vmatpush1.bf16.msra.mxu0 %v27140_v37 }
 0x5cf   : > { %19055 = vmatpush2.bf16.msra.mxu1 %v27137_v33  ;;  %19085 = vmatprep.subr.bf16.mxu0 %v27148_v63  ;;  %v27184_v33 = vld [vmem:[%s37924_s3 + $0x1b24] ss:$28 sps:$4 sm:$0xff]  }
 0x5d0   : > { %19056 = vmatprep.subr.bf16.mxu1 %v27145_v3  ;;  %v27182_v3 = vld [vmem:[%s37924_s3 + $0x1b20] ss:$28 sps:$4 sm:$0xff]  }
 0x5d2   : > { %19086 = vmatpush1.bf16.msra.mxu0 %v27146_v18  ;;  %v27190_v18 = vld [vmem:[%s37924_s3 + $0x1aec] ss:$28 sps:$4 sm:$0xff]  }
 0x5d3   : > { %19057 = vmatpush2.bf16.msra.mxu1 %v27143_v51  ;;  %19087 = vmatprep.subr.bf16.mxu0 %v27154_v50  ;;  %v27187_v51 = vld [vmem:[%s37924_s3 + $0x1d1c] ss:$28 sps:$4 sm:$0xff]  }
 0x5d4   : > { %19058 = vmatprep.subr.bf16.mxu1 %v27151_v43  ;;  %v27185_v50 = vld [vmem:[%s37924_s3 + $0x1d18] ss:$28 sps:$4 sm:$0xff]  }
 0x5d6   : > { %19088 = vmatpush1.bf16.msra.mxu0 %v27152_v49  ;;  %v27188_v49 = vld [vmem:[%s37924_s3 + $0x1ae8] ss:$28 sps:$4 sm:$0xff]  }
 0x5d7   : > { %19059 = vmatpush2.bf16.msra.mxu1 %v27149_v10  ;;  %19089 = vmatprep.subr.bf16.mxu0 %v27160_v16  ;;  %v27191_v16 = vld [vmem:[%s37924_s3 + $0x1ce0] ss:$28 sps:$4 sm:$0xff]  }
 0x5d8   : > { %19060 = vmatprep.subr.bf16.mxu1 %v27157_v45  ;;  %v27193_v45 = vld [vmem:[%s37924_s3 + $0x1ce4] ss:$28 sps:$4 sm:$0xff]  }
 0x5da   : > { %19090 = vmatpush1.bf16.msra.mxu0 %v27158_v17  ;;  %v27194_v17 = vld [vmem:[%s37924_s3 + $0x1ab0] ss:$28 sps:$4 sm:$0xff]  }
 0x5db   : > { %19061 = vmatpush2.bf16.msra.mxu1 %v27155_v40  ;;  %19091 = vmatprep.subr.bf16.mxu0 %v27166_v8  ;;  %v27196_v40 = vld [vmem:[%s37924_s3 + $0x1ab4] ss:$28 sps:$4 sm:$0xff]   ;;  %v27197_v8 = vld [vmem:[%s37924_s3 + $0x1ca8] ss:$28 sps:$4 sm:$0xff]  }
 0x5dc   : > { %19062 = vmatprep.subr.bf16.mxu1 %v27163_v7  ;;  %v27199_v7 = vld [vmem:[%s37924_s3 + $0x1cac] ss:$28 sps:$4 sm:$0xff]  }
 0x5de   : > { %19092 = vmatpush2.bf16.msra.mxu0 %v27164_v61  ;;  %v27200_v61 = vld [vmem:[%s37924_s3 + $0x1a78] ss:$28 sps:$4 sm:$0xff]  }
 0x5df   : > { %19063 = vmatpush2.bf16.msra.mxu1 %v27161_v23  ;;  %19093 = vmatprep.subr.bf16.mxu0 %v27172_v2  ;;  %v27202_v23 = vld [vmem:[%s37924_s3 + $0x1a7c] ss:$28 sps:$4 sm:$0xff]   ;;  %v11691_v2 = vld [vmem:[%s37925_s4] sm:$0x7f] }
 0x5e0   : > { %19064 = vmatprep.subr.bf16.mxu1 %v27169_v22  ;;  %v27205_v22 = vld [vmem:[%s37924_s3 + $0x1c74] ss:$28 sps:$4 sm:$0xff]  }
 0x5e2   : > { %19094 = vmatpush2.bf16.msra.mxu0 %v27170_v57  ;;  %v27206_v57 = vld [vmem:[%s37924_s3 + $0x1a40] ss:$28 sps:$4 sm:$0xff]  }
 0x5e3   : > { %19065 = vmatpush2.bf16.msra.mxu1 %v27167_v9  ;;  %19095 = vmatprep.subr.bf16.mxu0 %v27178_v32  ;;  %v27208_v9 = vld [vmem:[%s37924_s3 + $0x1a44] ss:$28 sps:$4 sm:$0xff]   ;;  %v27214_v32 = vld [vmem:[%s37924_s3 + $0x210c] ss:$28 sps:$4 sm:$0xff]  }
 0x5e4   : > { %19116 = vmatprep.subr.bf16.mxu1 %v27175_v59  ;;  %v27211_v59 = vld [vmem:[%s37924_s3 + $0x1c3c] ss:$28 sps:$4 sm:$0xff]  }
 0x5e6   : > { %v18822_v37 = vpop.f32.mrf.mxu1  ;;  %19067 = vmatmul.mubr.bf16.vlgmr.msra.gmra.mxu1 %v33923_v46  ;;  %19096 = vmatpush2.bf16.msra.mxu0 %v27176_v15  ;;  %v10092_v15 = vmax.f32 %v32918_v34, 0.0  ;;  %v27215_v34 = vld [vmem:[%s37924_s3 + $0x1c00] ss:$28 sps:$4 sm:$0xff]  }
 0x5e7   : > { %19117 = vmatpush1.bf16.msra.mxu1 %v27173_v53  ;;  %19148 = vmatprep.mubr.bf16.mxu1 %v33928_v4  ;;  %v27209_v53 = vld [vmem:[%s37924_s3 + $0x1c38] ss:$28 sps:$4 sm:$0xff]  }
 0x5e8   : > { %v18824_v63 = vpop.f32.mrf.mxu1  ;;  %19118 = vmatprep.subr.bf16.mxu1 %v27181_v26  ;;  %19097 = vmatprep.subr.bf16.mxu0 %v27184_v33  ;;  %v11696_v26 = vrot.slane %v11691_v2, %v29826_v31  ;;  %v27217_v33 = vld [vmem:[%s37924_s3 + $0x1c04] ss:$28 sps:$4 sm:$0xff]  }
 0x5ea   : > { %v18826_v43 = vpop.f32.mrf.mxu1  ;;  %19098 = vmatpush2.bf16.msra.mxu0 %v27182_v3  ;;  %v34011_v3 = vpack.c.bf16 %v10087_v21, %v10087_v21  ;;  %v27236_v21 = vld [vmem:[%s37924_s3 + $0x2028] ss:$28 sps:$4 sm:$0xff]  }
 0x5eb   : > { %19119 = vmatpush1.bf16.msra.mxu1 %v27179_v20  ;;  %19099 = vmatprep.subr.bf16.mxu0 %v27190_v18  ;;  %v11700_v20 = vrot.slane %v11691_v2, %v29835_v35  ;;  %v34019_v18 = vpack.c.bf16 %v10092_v15, %v10092_v15  ;;  %v18823_v43 = vadd.f32 %v18822_v37, %v11696_v26  ;;  %v27221_v37 = vld [vmem:[%s37924_s3 + $0x1f48] ss:$28 sps:$4 sm:$0xff]   ;;  %v27227_v2 = vld [vmem:[%s37924_s3 + $0x1f10] ss:$28 sps:$4 sm:$0xff]   ;;  %v27239_v15 = vld [vmem:[%s37924_s3 + $0x1ea0] ss:$28 sps:$4 sm:$0xff]  }
 0x5ec   : > { %v18827_v10 = vpop.f32.mrf.mxu1  ;;  %19120 = vmatprep.subr.bf16.mxu1 %v27187_v51  ;;  %v27220_v51 = vld [vmem:[%s37924_s3 + $0x20d4] ss:$28 sps:$4 sm:$0xff]  }
 0x5ed   : > { %v27242_v26 = vld [vmem:[%s37924_s3 + $0x1ff0] ss:$28 sps:$4 sm:$0xff]  }
 0x5ee   : > { %19100 = vmatpush2.bf16.msra.mxu0 %v27188_v49  ;;  %v18825_v49 = vadd.f32 %v18824_v63, %v11700_v20  ;;  %v27226_v63 = vld [vmem:[%s37924_s3 + $0x209c] ss:$28 sps:$4 sm:$0xff]   ;;  %v27247_v20 = vld [vmem:[%s37924_s3 + $0x1e6c] ss:$28 sps:$4 sm:$0xff]  }
 0x5ef   : > { %19121 = vmatpush1.bf16.msra.mxu1 %v27185_v50  ;;  %19101 = vmatprep.subr.bf16.mxu0 %v27196_v40  ;;  %v27218_v50 = vld [vmem:[%s37924_s3 + $0x20d0] ss:$28 sps:$4 sm:$0xff]  }
 0x5f0   : > { %19122 = vmatprep.subr.bf16.mxu1 %v27193_v45 }
 0x5f2   : > { %19102 = vmatpush2.bf16.msra.mxu0 %v27194_v17 }
 0x5f3   : > { %19123 = vmatpush1.bf16.msra.mxu1 %v27191_v16  ;;  %19103 = vmatprep.subr.bf16.mxu0 %v27202_v23  ;;  %v27223_v16 = vld [vmem:[%s37924_s3 + $0x1f4c] ss:$28 sps:$4 sm:$0xff]   ;;  %v27229_v23 = vld [vmem:[%s37924_s3 + $0x1f14] ss:$28 sps:$4 sm:$0xff]  }
 0x5f4   : > { %19124 = vmatprep.subr.bf16.mxu1 %v27199_v7  ;;  %v27224_v7 = vld [vmem:[%s37924_s3 + $0x2098] ss:$28 sps:$4 sm:$0xff]  }
 0x5f6   : > { %19104 = vmatpush2.bf16.msra.mxu0 %v27200_v61 }
 0x5f7   : > { %19125 = vmatpush1.bf16.msra.mxu1 %v27197_v8  ;;  %19105 = vmatprep.subr.bf16.mxu0 %v27208_v9  ;;  %v27230_v9 = vld [vmem:[%s37924_s3 + $0x2060] ss:$28 sps:$4 sm:$0xff]  }
 0x5f8   : > { %19126 = vmatprep.subr.bf16.mxu1 %v27205_v22  ;;  %v27232_v22 = vld [vmem:[%s37924_s3 + $0x2064] ss:$28 sps:$4 sm:$0xff]  }
 0x5fa   : > { %19106 = vmatpush2.bf16.msra.mxu0 %v27206_v57  ;;  %v27238_v57 = vld [vmem:[%s37924_s3 + $0x202c] ss:$28 sps:$4 sm:$0xff]  }
 0x5fb   : > { %19127 = vmatpush1.bf16.msra.mxu1 %v27203_v42  ;;  %19157 = vmatprep.subr.bf16.mxu0 %v27214_v32  ;;  %v27235_v42 = vld [vmem:[%s37924_s3 + $0x1edc] ss:$28 sps:$4 sm:$0xff]   ;;  %v27244_v32 = vld [vmem:[%s37924_s3 + $0x1ff4] ss:$28 sps:$4 sm:$0xff]  }
 0x5fc   : > { %19128 = vmatprep.subr.bf16.mxu1 %v27211_v59  ;;  %v27233_v59 = vld [vmem:[%s37924_s3 + $0x1ed8] ss:$28 sps:$4 sm:$0xff]  }
 0x5fd   : > { %v18863_v10 = vpop.f32.mrf.mxu0  ;;  %19108 = vmatmul.mubr.bf16.vlgmr.msra.gmra.mxu0 %v34011_v3 }
 0x5fe   : > { %v34025_v45 = vadd.f32 %v18863_v10, %v18823_v43  ;;  %19158 = vmatpush1.bf16.msra.mxu0 %v27212_v14  ;;  %19189 = vmatprep.mubr.bf16.mxu0 %v34019_v18  ;;  %v27250_v14 = vld [vmem:[%s37924_s3 + $0x1fbc] ss:$28 sps:$4 sm:$0xff]   ;;  %v27256_v43 = vld [vmem:[%s37924_s3 + $0x1f84] ss:$28 sps:$4 sm:$0xff]  }
 0x5ff   : > { %19129 = vmatpush1.bf16.msra.mxu1 %v27209_v53  ;;  %v18865_v40 = vpop.f32.mrf.mxu0  ;;  %19159 = vmatprep.subr.bf16.mxu0 %v27220_v51  ;;  %v27241_v53 = vld [vmem:[%s37924_s3 + $0x1ea4] ss:$28 sps:$4 sm:$0xff]   ;;  %v27253_v51 = vld [vmem:[%s37924_s3 + $0x1e34] ss:$28 sps:$4 sm:$0xff]  }
 0x600   : > { %19130 = vmatprep.subr.bf16.mxu1 %v27217_v33  ;;  %v34037_v17 = vadd.f32 %v18865_v40, %v18825_v49  ;;  %v27245_v33 = vld [vmem:[%s37924_s3 + $0x1e68] ss:$28 sps:$4 sm:$0xff]   ;;  %v27254_v10 = vld [vmem:[%s37924_s3 + $0x1f80] ss:$28 sps:$4 sm:$0xff]   ;;  %v27257_v40 = vld [vmem:[%s37924_s3 + $0x1df8] ss:$28 sps:$4 sm:$0xff]  }
 0x601   : > { %v18867_v8 = vpop.f32.mrf.mxu0  ;;  %v27259_v49 = vld [vmem:[%s37924_s3 + $0x1dfc] ss:$28 sps:$4 sm:$0xff]  }
 0x602   : > { %19160 = vmatpush1.bf16.msra.mxu0 %v27218_v50  ;;  %v27251_v50 = vld [vmem:[%s37924_s3 + $0x1e30] ss:$28 sps:$4 sm:$0xff]   ;;  %v27263_v8 = vld [vmem:[%s37924_s3 + $0x1dc0] ss:$28 sps:$4 sm:$0xff]  }
 0x603   : > { %19131 = vmatpush1.bf16.msra.mxu1 %v27215_v34  ;;  %v18868_v61 = vpop.f32.mrf.mxu0  ;;  %19161 = vmatprep.subr.bf16.mxu0 %v27226_v63  ;;  %v27248_v34 = vld [vmem:[%s37924_s3 + $0x1fb8] ss:$28 sps:$4 sm:$0xff]   ;;  %v27265_v63 = vld [vmem:[%s37924_s3 + $0x1dc4] ss:$28 sps:$4 sm:$0xff]  }
 0x604   : > { %19132 = vmatprep.subr.bf16.mxu1 %v27223_v16  ;;  %v27262_v16 = vld [vmem:[%s37924_s3 + $0x22cc] ss:$28 sps:$4 sm:$0xff]  }
 0x605   : > { %v27266_v61 = vld [vmem:[%s37924_s3 + $0x2290] ss:$28 sps:$4 sm:$0xff]  }
 0x606   : > { %19162 = vmatpush1.bf16.msra.mxu0 %v27224_v7  ;;  %v27268_v7 = vld [vmem:[%s37924_s3 + $0x2294] ss:$28 sps:$4 sm:$0xff]  }
 0x607   : > { %19133 = vmatpush2.bf16.msra.mxu1 %v27221_v37  ;;  %19163 = vmatprep.subr.bf16.mxu0 %v27232_v22  ;;  %v27260_v37 = vld [vmem:[%s37924_s3 + $0x22c8] ss:$28 sps:$4 sm:$0xff]  }
 0x608   : > { %19134 = vmatprep.subr.bf16.mxu1 %v27229_v23  ;;  %v10089_v23 = vmax.f32 %v32670_v12, 0.0  ;;  %v27271_v22 = vld [vmem:[%s37924_s3 + $0x248c] ss:$28 sps:$4 sm:$0xff]  }
 0x609   : > { %v27269_v12 = vld [vmem:[%s37924_s3 + $0x2488] ss:$28 sps:$4 sm:$0xff]  }
 0x60a   : > { %19164 = vmatpush1.bf16.msra.mxu0 %v27230_v9  ;;  %v27274_v9 = vld [vmem:[%s37924_s3 + $0x225c] ss:$28 sps:$4 sm:$0xff]  }
 0x60b   : > { %19135 = vmatpush2.bf16.msra.mxu1 %v27227_v2  ;;  %19165 = vmatprep.subr.bf16.mxu0 %v27238_v57  ;;  %v10094_v2 = vmax.f32 %v33342_v28, 0.0  ;;  %v27272_v57 = vld [vmem:[%s37924_s3 + $0x2258] ss:$28 sps:$4 sm:$0xff]  }
 0x60c   : > { %19136 = vmatprep.subr.bf16.mxu1 %v27235_v42  ;;  %v34137_v42 = vpack.c.bf16 %v10089_v23, %v10089_v23  ;;  %v27277_v28 = vld [vmem:[%s37924_s3 + $0x2454] ss:$28 sps:$4 sm:$0xff]   ;;  %v27304_v23 = vld [vmem:[%s37924_s3 + $0x2144] ss:$28 sps:$4 sm:$0xff]  }
 0x60e   : > { %19166 = vmatpush1.bf16.msra.mxu0 %v27236_v21  ;;  %v27280_v21 = vld [vmem:[%s37924_s3 + $0x2224] ss:$28 sps:$4 sm:$0xff]  }
 0x60f   : > { %19137 = vmatpush2.bf16.msra.mxu1 %v27233_v59  ;;  %19167 = vmatprep.subr.bf16.mxu0 %v27244_v32  ;;  %v34145_v59 = vpack.c.bf16 %v10094_v2, %v10094_v2  ;;  %v27307_v2 = vld [vmem:[%s37924_s3 + $0x233c] ss:$28 sps:$4 sm:$0xff]  }
 0x610   : > { %19138 = vmatprep.subr.bf16.mxu1 %v27241_v53 }
 0x612   : > { %19168 = vmatpush1.bf16.msra.mxu0 %v27242_v26 }
 0x613   : > { %19139 = vmatpush2.bf16.msra.mxu1 %v27239_v15  ;;  %19169 = vmatprep.subr.bf16.mxu0 %v27250_v14  ;;  %v27275_v15 = vld [vmem:[%s37924_s3 + $0x2450] ss:$28 sps:$4 sm:$0xff]   ;;  %v27283_v14 = vld [vmem:[%s37924_s3 + $0x241c] ss:$28 sps:$4 sm:$0xff]  }
 0x614   : > { %19140 = vmatprep.subr.bf16.mxu1 %v27247_v20  ;;  %v27278_v20 = vld [vmem:[%s37924_s3 + $0x2220] ss:$28 sps:$4 sm:$0xff]  }
 0x616   : > { %19170 = vmatpush1.bf16.msra.mxu0 %v27248_v34 }
 0x617   : > { %19141 = vmatpush2.bf16.msra.mxu1 %v27245_v33  ;;  %19171 = vmatprep.subr.bf16.mxu0 %v27256_v43  ;;  %v27286_v33 = vld [vmem:[%s37924_s3 + $0x21ec] ss:$28 sps:$4 sm:$0xff]  }
 0x618   : > { %19142 = vmatprep.subr.bf16.mxu1 %v27253_v51  ;;  %v27281_v51 = vld [vmem:[%s37924_s3 + $0x2418] ss:$28 sps:$4 sm:$0xff]  }
 0x61a   : > { %19172 = vmatpush1.bf16.msra.mxu0 %v27254_v10  ;;  %v27292_v10 = vld [vmem:[%s37924_s3 + $0x21b4] ss:$28 sps:$4 sm:$0xff]  }
 0x61b   : > { %19143 = vmatpush2.bf16.msra.mxu1 %v27251_v50  ;;  %19173 = vmatprep.subr.bf16.mxu0 %v27262_v16  ;;  %v27284_v50 = vld [vmem:[%s37924_s3 + $0x21e8] ss:$28 sps:$4 sm:$0xff]   ;;  %v27290_v16 = vld [vmem:[%s37924_s3 + $0x21b0] ss:$28 sps:$4 sm:$0xff]  }
 0x61c   : > { %19144 = vmatprep.subr.bf16.mxu1 %v27259_v49  ;;  %v27287_v49 = vld [vmem:[%s37924_s3 + $0x23e0] ss:$28 sps:$4 sm:$0xff]  }
 0x61e   : > { %19174 = vmatpush2.bf16.msra.mxu0 %v27260_v37  ;;  %v27298_v37 = vld [vmem:[%s37924_s3 + $0x217c] ss:$28 sps:$4 sm:$0xff]  }
 0x61f   : > { %19145 = vmatpush2.bf16.msra.mxu1 %v27257_v40  ;;  %19175 = vmatprep.subr.bf16.mxu0 %v27268_v7  ;;  %v27295_v40 = vld [vmem:[%s37924_s3 + $0x23ac] ss:$28 sps:$4 sm:$0xff]   ;;  %v27296_v7 = vld [vmem:[%s37924_s3 + $0x2178] ss:$28 sps:$4 sm:$0xff]  }
 0x620   : > { %19146 = vmatprep.subr.bf16.mxu1 %v27265_v63  ;;  %v27293_v63 = vld [vmem:[%s37924_s3 + $0x23a8] ss:$28 sps:$4 sm:$0xff]  }
 0x622   : > { %19176 = vmatpush2.bf16.msra.mxu0 %v27266_v61  ;;  %v27299_v61 = vld [vmem:[%s37924_s3 + $0x2370] ss:$28 sps:$4 sm:$0xff]  }
 0x623   : > { %19147 = vmatpush2.bf16.msra.mxu1 %v27263_v8  ;;  %19177 = vmatprep.subr.bf16.mxu0 %v27274_v9  ;;  %v27301_v8 = vld [vmem:[%s37924_s3 + $0x2374] ss:$28 sps:$4 sm:$0xff]   ;;  %v10091_v9 = vmax.f32 %v32907_v52, 0.0  ;;  %v27313_v52 = vld [vmem:[%s37924_s3 + $0x2304] ss:$28 sps:$4 sm:$0xff]  }
 0x624   : > { %19198 = vmatprep.subr.bf16.mxu1 %v27271_v22  ;;  %v27302_v22 = vld [vmem:[%s37924_s3 + $0x2140] ss:$28 sps:$4 sm:$0xff]  }
 0x626   : > { %v18904_v53 = vpop.f32.mrf.mxu1  ;;  %19149 = vmatmul.mubr.bf16.vlgmr.msra.gmra.mxu1 %v34137_v42  ;;  %19178 = vmatpush2.bf16.msra.mxu0 %v27272_v57  ;;  %v10096_v57 = vmax.f32 %v33598_v41, 0.0  ;;  %v27316_v41 = vld [vmem:[%s37924_s3 + $0x27d4] ss:$28 sps:$4 sm:$0xff]  }
 0x627   : > { %v18905_v32 = vadd.f32 %v18904_v53, %v34025_v45  ;;  %19199 = vmatpush1.bf16.msra.mxu1 %v27269_v12  ;;  %19230 = vmatprep.mubr.bf16.mxu1 %v34145_v59  ;;  %v27310_v12 = vld [vmem:[%s37924_s3 + $0x280c] ss:$28 sps:$4 sm:$0xff]   ;;  %v34222_v53 = vpack.c.bf16 %v10091_v9, %v10091_v9 }
 0x628   : > { %v18906_v26 = vpop.f32.mrf.mxu1  ;;  %19200 = vmatprep.subr.bf16.mxu1 %v27277_v28  ;;  %19179 = vmatprep.subr.bf16.mxu0 %v27280_v21  ;;  %v27305_v28 = vld [vmem:[%s37924_s3 + $0x2338] ss:$28 sps:$4 sm:$0xff]   ;;  %v27308_v21 = vld [vmem:[%s37924_s3 + $0x2808] ss:$28 sps:$4 sm:$0xff]   ;;  %v27338_v9 = vld [vmem:[%s37924_s3 + $0x26f0] ss:$28 sps:$4 sm:$0xff]  }
 0x629   : > { %v18907_v45 = vadd.f32 %v18906_v26, %v34037_v17  ;;  %v27289_v17 = vld [vmem:[%s37924_s3 + $0x23e4] ss:$28 sps:$4 sm:$0xff]  }
 0x62a   : > { %v18908_v34 = vpop.f32.mrf.mxu1  ;;  %19180 = vmatpush2.bf16.msra.mxu0 %v27278_v20  ;;  %v27311_v20 = vld [vmem:[%s37924_s3 + $0x2300] ss:$28 sps:$4 sm:$0xff]  }
 0x62b   : > { %19201 = vmatpush1.bf16.msra.mxu1 %v27275_v15  ;;  %19181 = vmatprep.subr.bf16.mxu0 %v27286_v33  ;;  %v34230_v15 = vpack.c.bf16 %v10096_v57, %v10096_v57  ;;  %v27314_v33 = vld [vmem:[%s37924_s3 + $0x27d0] ss:$28 sps:$4 sm:$0xff]   ;;  %v27346_v57 = vld [vmem:[%s37924_s3 + $0x26bc] ss:$28 sps:$4 sm:$0xff]  }
 0x62c   : > { %v18909_v43 = vpop.f32.mrf.mxu1  ;;  %19202 = vmatprep.subr.bf16.mxu1 %v27283_v14  ;;  %v27319_v34 = vld [vmem:[%s37924_s3 + $0x264c] ss:$28 sps:$4 sm:$0xff]  }
 0x62d   : > { %v27322_v43 = vld [vmem:[%s37924_s3 + $0x279c] ss:$28 sps:$4 sm:$0xff]  }
 0x62e   : > { %19182 = vmatpush2.bf16.msra.mxu0 %v27284_v50 }
 0x62f   : > { %19203 = vmatpush1.bf16.msra.mxu1 %v27281_v51  ;;  %19183 = vmatprep.subr.bf16.mxu0 %v27292_v10  ;;  %v27320_v10 = vld [vmem:[%s37924_s3 + $0x2798] ss:$28 sps:$4 sm:$0xff]  }
 0x630   : > { %19204 = vmatprep.subr.bf16.mxu1 %v27289_v17  ;;  %v27317_v17 = vld [vmem:[%s37924_s3 + $0x2648] ss:$28 sps:$4 sm:$0xff]  }
 0x632   : > { %19184 = vmatpush2.bf16.msra.mxu0 %v27290_v16 }
 0x633   : > { %19205 = vmatpush1.bf16.msra.mxu1 %v27287_v49  ;;  %19185 = vmatprep.subr.bf16.mxu0 %v27298_v37  ;;  %v27325_v49 = vld [vmem:[%s37924_s3 + $0x2614] ss:$28 sps:$4 sm:$0xff]   ;;  %v27326_v37 = vld [vmem:[%s37924_s3 + $0x2760] ss:$28 sps:$4 sm:$0xff]  }
 0x634   : > { %19206 = vmatprep.subr.bf16.mxu1 %v27295_v40  ;;  %v27323_v40 = vld [vmem:[%s37924_s3 + $0x2610] ss:$28 sps:$4 sm:$0xff]  }
 0x636   : > { %19186 = vmatpush2.bf16.msra.mxu0 %v27296_v7  ;;  %v27334_v7 = vld [vmem:[%s37924_s3 + $0x272c] ss:$28 sps:$4 sm:$0xff]  }
 0x637   : > { %19207 = vmatpush1.bf16.msra.mxu1 %v27293_v63  ;;  %19187 = vmatprep.subr.bf16.mxu0 %v27304_v23  ;;  %v27331_v63 = vld [vmem:[%s37924_s3 + $0x25dc] ss:$28 sps:$4 sm:$0xff]   ;;  %v27332_v23 = vld [vmem:[%s37924_s3 + $0x2728] ss:$28 sps:$4 sm:$0xff]  }
 0x638   : > { %19208 = vmatprep.subr.bf16.mxu1 %v27301_v8  ;;  %v27329_v8 = vld [vmem:[%s37924_s3 + $0x25d8] ss:$28 sps:$4 sm:$0xff]  }
 0x63a   : > { %19188 = vmatpush2.bf16.msra.mxu0 %v27302_v22  ;;  %v27340_v22 = vld [vmem:[%s37924_s3 + $0x26f4] ss:$28 sps:$4 sm:$0xff]  }
 0x63b   : > { %19209 = vmatpush1.bf16.msra.mxu1 %v27299_v61  ;;  %19239 = vmatprep.subr.bf16.mxu0 %v27310_v12  ;;  %v27337_v61 = vld [vmem:[%s37924_s3 + $0x25a4] ss:$28 sps:$4 sm:$0xff]   ;;  %v27343_v12 = vld [vmem:[%s37924_s3 + $0x256c] ss:$28 sps:$4 sm:$0xff]  }
 0x63c   : > { %19210 = vmatprep.subr.bf16.mxu1 %v27307_v2  ;;  %v27335_v2 = vld [vmem:[%s37924_s3 + $0x25a0] ss:$28 sps:$4 sm:$0xff]  }
 0x63d   : > { %v18945_v26 = vpop.f32.mrf.mxu0  ;;  %19190 = vmatmul.mubr.bf16.vlgmr.msra.gmra.mxu0 %v34222_v53 }
 0x63e   : > { %v34236_v14 = vadd.f32 %v18945_v26, %v18905_v32  ;;  %19240 = vmatpush1.bf16.msra.mxu0 %v27308_v21  ;;  %19271 = vmatprep.mubr.bf16.mxu0 %v34230_v15  ;;  %v27344_v21 = vld [vmem:[%s37924_s3 + $0x26b8] ss:$28 sps:$4 sm:$0xff]   ;;  %v27347_v26 = vld [vmem:[%s37924_s3 + $0x2530] ss:$28 sps:$4 sm:$0xff]  }
 0x63f   : > { %19211 = vmatpush1.bf16.msra.mxu1 %v27305_v28  ;;  %v18947_v51 = vpop.f32.mrf.mxu0  ;;  %19241 = vmatprep.subr.bf16.mxu0 %v27316_v41  ;;  %v27341_v28 = vld [vmem:[%s37924_s3 + $0x2568] ss:$28 sps:$4 sm:$0xff]  }
 0x640   : > { %19212 = vmatprep.subr.bf16.mxu1 %v27313_v52  ;;  %v34248_v32 = vadd.f32 %v18947_v51, %v18907_v45  ;;  %v27328_v45 = vld [vmem:[%s37924_s3 + $0x2764] ss:$28 sps:$4 sm:$0xff]   ;;  %v27349_v52 = vld [vmem:[%s37924_s3 + $0x2534] ss:$28 sps:$4 sm:$0xff]  }
 0x641   : > { %v18949_v50 = vpop.f32.mrf.mxu0  ;;  %v27352_v41 = vld [vmem:[%s37924_s3 + $0x2684] ss:$28 sps:$4 sm:$0xff]   ;;  %v27353_v51 = vld [vmem:[%s37924_s3 + $0x24f8] ss:$28 sps:$4 sm:$0xff]  }
 0x642   : > { %19242 = vmatpush1.bf16.msra.mxu0 %v27314_v33  ;;  %v27355_v33 = vld [vmem:[%s37924_s3 + $0x24fc] ss:$28 sps:$4 sm:$0xff]   ;;  %v27361_v50 = vld [vmem:[%s37924_s3 + $0x24c4] ss:$28 sps:$4 sm:$0xff]  }
 0x643   : > { %19213 = vmatpush1.bf16.msra.mxu1 %v27311_v20  ;;  %v18950_v16 = vpop.f32.mrf.mxu0  ;;  %19243 = vmatprep.subr.bf16.mxu0 %v27322_v43  ;;  %v27350_v20 = vld [vmem:[%s37924_s3 + $0x2680] ss:$28 sps:$4 sm:$0xff]   ;;  %v27356_v43 = vld [vmem:[%s37924_s3 + $0x29c8] ss:$28 sps:$4 sm:$0xff]  }
 0x644   : > { %19214 = vmatprep.subr.bf16.mxu1 %v27319_v34  ;;  %v27358_v34 = vld [vmem:[%s37924_s3 + $0x29cc] ss:$28 sps:$4 sm:$0xff]  }
 0x645   : > { %v27362_v16 = vld [vmem:[%s37924_s3 + $0x2990] ss:$28 sps:$4 sm:$0xff]  }
 0x646   : > { %19244 = vmatpush1.bf16.msra.mxu0 %v27320_v10  ;;  %v27359_v10 = vld [vmem:[%s37924_s3 + $0x24c0] ss:$28 sps:$4 sm:$0xff]  }
 0x647   : > { %19215 = vmatpush2.bf16.msra.mxu1 %v27317_v17  ;;  %19245 = vmatprep.subr.bf16.mxu0 %v27328_v45  ;;  %v27364_v17 = vld [vmem:[%s37924_s3 + $0x2994] ss:$28 sps:$4 sm:$0xff]   ;;  %v27367_v45 = vld [vmem:[%s37924_s3 + $0x2aac] ss:$28 sps:$4 sm:$0xff]  }
 0x648   : > { %19216 = vmatprep.subr.bf16.mxu1 %v27325_v49  ;;  %v10093_v49 = vmax.f32 %v33332_v60, 0.0  ;;  %v27365_v60 = vld [vmem:[%s37924_s3 + $0x2aa8] ss:$28 sps:$4 sm:$0xff]  }
 0x64a   : > { %19246 = vmatpush1.bf16.msra.mxu0 %v27326_v37  ;;  %v34350_v37 = vpack.c.bf16 %v10093_v49, %v10093_v49  ;;  %v27400_v49 = vld [vmem:[%s37924_s3 + $0x2844] ss:$28 sps:$4 sm:$0xff]  }
 0x64b   : > { %19217 = vmatpush2.bf16.msra.mxu1 %v27323_v40  ;;  %19247 = vmatprep.subr.bf16.mxu0 %v27334_v7  ;;  %v27370_v40 = vld [vmem:[%s37924_s3 + $0x295c] ss:$28 sps:$4 sm:$0xff]   ;;  %v27373_v7 = vld [vmem:[%s37924_s3 + $0x2a74] ss:$28 sps:$4 sm:$0xff]  }
 0x64c   : > { %19218 = vmatprep.subr.bf16.mxu1 %v27331_v63  ;;  %v27368_v63 = vld [vmem:[%s37924_s3 + $0x2958] ss:$28 sps:$4 sm:$0xff]  }
 0x64e   : > { %19248 = vmatpush1.bf16.msra.mxu0 %v27332_v23 }
 0x64f   : > { %19219 = vmatpush2.bf16.msra.mxu1 %v27329_v8  ;;  %19249 = vmatprep.subr.bf16.mxu0 %v27340_v22  ;;  %v27376_v8 = vld [vmem:[%s37924_s3 + $0x2924] ss:$28 sps:$4 sm:$0xff]   ;;  %v27371_v22 = vld [vmem:[%s37924_s3 + $0x2a70] ss:$28 sps:$4 sm:$0xff]  }
 0x650   : > { %19220 = vmatprep.subr.bf16.mxu1 %v27337_v61 }
 0x652   : > { %19250 = vmatpush1.bf16.msra.mxu0 %v27338_v9  ;;  %v27374_v9 = vld [vmem:[%s37924_s3 + $0x2920] ss:$28 sps:$4 sm:$0xff]  }
 0x653   : > { %19221 = vmatpush2.bf16.msra.mxu1 %v27335_v2  ;;  %19251 = vmatprep.subr.bf16.mxu0 %v27346_v57  ;;  %v27382_v57 = vld [vmem:[%s37924_s3 + $0x28ec] ss:$28 sps:$4 sm:$0xff]  }
 0x654   : > { %19222 = vmatprep.subr.bf16.mxu1 %v27343_v12  ;;  %v27379_v12 = vld [vmem:[%s37924_s3 + $0x2a3c] ss:$28 sps:$4 sm:$0xff]  }
 0x656   : > { %19252 = vmatpush1.bf16.msra.mxu0 %v27344_v21  ;;  %v27377_v21 = vld [vmem:[%s37924_s3 + $0x2a38] ss:$28 sps:$4 sm:$0xff]  }
 0x657   : > { %19223 = vmatpush2.bf16.msra.mxu1 %v27341_v28  ;;  %19253 = vmatprep.subr.bf16.mxu0 %v27352_v41  ;;  %v27380_v41 = vld [vmem:[%s37924_s3 + $0x28e8] ss:$28 sps:$4 sm:$0xff]  }
 0x658   : > { %19224 = vmatprep.subr.bf16.mxu1 %v27349_v52 }
 0x65a   : > { %19254 = vmatpush1.bf16.msra.mxu0 %v27350_v20  ;;  %v27383_v20 = vld [vmem:[%s37924_s3 + $0x2a00] ss:$28 sps:$4 sm:$0xff]  }
 0x65b   : > { %19225 = vmatpush2.bf16.msra.mxu1 %v27347_v26  ;;  %19255 = vmatprep.subr.bf16.mxu0 %v27358_v34  ;;  %v27388_v26 = vld [vmem:[%s37924_s3 + $0x28b4] ss:$28 sps:$4 sm:$0xff]  }
 0x65c   : > { %19226 = vmatprep.subr.bf16.mxu1 %v27355_v33  ;;  %v10097_v33 = vmax.f32 %v33826_v19, 0.0  ;;  %v27386_v34 = vld [vmem:[%s37924_s3 + $0x28b0] ss:$28 sps:$4 sm:$0xff]  }
 0x65d   : > { %v27389_v19 = vld [vmem:[%s37924_s3 + $0x190] ss:$28 sps:$4 sm:$0xff]  }
 0x65e   : > { %19256 = vmatpush2.bf16.msra.mxu0 %v27356_v43  ;;  %v27394_v43 = vld [vmem:[%s37924_s3 + $0x287c] ss:$28 sps:$4 sm:$0xff]  }
 0x65f   : > { %19227 = vmatpush2.bf16.msra.mxu1 %v27353_v51  ;;  %19257 = vmatprep.subr.bf16.mxu0 %v27364_v17  ;;  %v27391_v51 = vld [vmem:[%s37924_s3 + $0x194] ss:$28 sps:$4 sm:$0xff]  }
 0x660   : > { %19228 = vmatprep.subr.bf16.mxu1 %v27361_v50  ;;  %v34409_v50 = vpack.c.bf16 %v10097_v33, %v10097_v33  ;;  %v27392_v17 = vld [vmem:[%s37924_s3 + $0x2878] ss:$28 sps:$4 sm:$0xff]  }
 0x662   : > { %19258 = vmatpush2.bf16.msra.mxu0 %v27362_v16  ;;  %v27395_v16 = vld [vmem:[%s37924_s3 + $0x158] ss:$28 sps:$4 sm:$0xff]  }
 0x663   : > { %19229 = vmatpush2.bf16.msra.mxu1 %v27359_v10  ;;  %19259 = vmatprep.subr.bf16.mxu0 %v27370_v40  ;;  %v27397_v10 = vld [vmem:[%s37924_s3 + $0x15c] ss:$28 sps:$4 sm:$0xff]   ;;  %v27403_v40 = vld [vmem:[%s37924_s3 + $0x124] ss:$28 sps:$4 sm:$0xff]  }
 0x664   : > { %19288 = vmatprep.subr.bf16.mxu1 %v27367_v45  ;;  %v27398_v45 = vld [vmem:[%s37924_s3 + $0x2840] ss:$28 sps:$4 sm:$0xff]  }
 0x666   : > { %v18986_v23 = vpop.f32.mrf.mxu1  ;;  %19231 = vmatmul.mubr.bf16.vlgmr.msra.gmra.mxu1 %v34350_v37  ;;  %19260 = vmatpush2.bf16.msra.mxu0 %v27368_v63  ;;  %v27406_v63 = vld [vmem:[%s37924_s3 + $0x514] ss:$28 sps:$4 sm:$0xff]  }
 0x667   : > { %v34363_v61 = vadd.f32 %v18986_v23, %v34236_v14  ;;  %19289 = vmatpush1.bf16.msra.mxu1 %v27365_v60  ;;  %19312 = vmatprep.mubr.bf16.mxu1 %v28947_v13  ;;  %v10095_v60 = vmax.f32 %v33587_v54, 0.0  ;;  %v27409_v54 = vld [vmem:[%s37924_s3 + $0xec] ss:$28 sps:$4 sm:$0xff]  }
 0x668   : > { %v18988_v2 = vpop.f32.mrf.mxu1  ;;  %19290 = vmatprep.subr.bf16.mxu1 %v27373_v7  ;;  %19261 = vmatprep.subr.bf16.mxu0 %v27376_v8  ;;  %v27401_v7 = vld [vmem:[%s37924_s3 + $0x120] ss:$28 sps:$4 sm:$0xff]   ;;  %v27404_v8 = vld [vmem:[%s37924_s3 + $0x510] ss:$28 sps:$4 sm:$0xff]  }
 0x669   : > { %v34376_v14 = vadd.f32 %v18988_v2, %v34248_v32  ;;  %v27385_v32 = vld [vmem:[%s37924_s3 + $0x2a04] ss:$28 sps:$4 sm:$0xff]   ;;  %v34442_v23 = vpack.c.bf16 %v10095_v60, %v10095_v60  ;;  %v27439_v60 = vld [vmem:[%s37924_s3 + $0x354] ss:$28 sps:$4 sm:$0xff]  }
 0x66a   : > { %v18990_v28 = vpop.f32.mrf.mxu1  ;;  %19262 = vmatpush2.bf16.msra.mxu0 %v27374_v9  ;;  %v27407_v9 = vld [vmem:[%s37924_s3 + $0xe8] ss:$28 sps:$4 sm:$0xff]  }
 0x66b   : > { %19291 = vmatpush1.bf16.msra.mxu1 %v27371_v22  ;;  %19263 = vmatprep.subr.bf16.mxu0 %v27382_v57  ;;  %v27412_v22 = vld [vmem:[%s37924_s3 + $0x4dc] ss:$28 sps:$4 sm:$0xff]   ;;  %v27415_v28 = vld [vmem:[%s37924_s3 + $0xb4] ss:$28 sps:$4 sm:$0xff]  }
 0x66c   : > { %v18991_v52 = vpop.f32.mrf.mxu1  ;;  %19292 = vmatprep.subr.bf16.mxu1 %v27379_v12  ;;  %v27410_v57 = vld [vmem:[%s37924_s3 + $0x4d8] ss:$28 sps:$4 sm:$0xff]  }
 0x66d   : > { %v27418_v52 = vld [vmem:[%s37924_s3 + $0x4a4] ss:$28 sps:$4 sm:$0xff]  }
 0x66e   : > { %19264 = vmatpush2.bf16.msra.mxu0 %v27380_v41 }
 0x66f   : > { %19293 = vmatpush1.bf16.msra.mxu1 %v27377_v21  ;;  %19265 = vmatprep.subr.bf16.mxu0 %v27388_v26  ;;  %v27416_v26 = vld [vmem:[%s37924_s3 + $0x4a0] ss:$28 sps:$4 sm:$0xff]  }
 0x670   : > { %19294 = vmatprep.subr.bf16.mxu1 %v27385_v32  ;;  %v27413_v32 = vld [vmem:[%s37924_s3 + $0xb0] ss:$28 sps:$4 sm:$0xff]  }
 0x672   : > { %19266 = vmatpush2.bf16.msra.mxu0 %v27386_v34  ;;  %v27419_v34 = vld [vmem:[%s37924_s3 + $0x78] ss:$28 sps:$4 sm:$0xff]  }
 0x673   : > { %19295 = vmatpush1.bf16.msra.mxu1 %v27383_v20  ;;  %19267 = vmatprep.subr.bf16.mxu0 %v27394_v43  ;;  %v27421_v20 = vld [vmem:[%s37924_s3 + $0x7c] ss:$28 sps:$4 sm:$0xff]   ;;  %v27427_v43 = vld [vmem:[%s37924_s3 + $0x44] ss:$28 sps:$4 sm:$0xff]  }
 0x674   : > { %19321 = vmatprep.subr.bf16.mxu1 %v27391_v51  ;;  %v27422_v51 = vld [vmem:[%s37924_s3 + $0x468] ss:$28 sps:$4 sm:$0xff]  }
 0x676   : > { %24503 = vmatmul.mubr.msk.bf16.vlgmr.msra.gmra.mxu1 %vm18784_vm2, %v34409_v50  ;;  %19268 = vmatpush2.bf16.msra.mxu0 %v27392_v17  ;;  %v27425_v17 = vld [vmem:[%s37924_s3 + $0x40] ss:$28 sps:$4 sm:$0xff]  }
 0x677   : > { %19322 = vmatpush1.bf16.msra.mxu1 %v27389_v19  ;;  %19353 = vmatprep.mubr.bf16.mxu1 %v33052_v47  ;;  %v27430_v19 = vld [vmem:[%s37924_s3 + $0x434] ss:$28 sps:$4 sm:$0xff]  }
 0x678   : > { %19323 = vmatprep.subr.bf16.mxu1 %v27397_v10  ;;  %19269 = vmatprep.subr.bf16.mxu0 %v27400_v49  ;;  %v27428_v10 = vld [vmem:[%s37924_s3 + $0x430] ss:$28 sps:$4 sm:$0xff]  }
 0x679   : > { %v27433_v49 = vld [vmem:[%s37924_s3 + $0xc] ss:$28 sps:$4 sm:$0xff]  }
 0x67a   : > { %19270 = vmatpush2.bf16.msra.mxu0 %v27398_v45  ;;  %v27431_v45 = vld [vmem:[%s37924_s3 + $0x8] ss:$28 sps:$4 sm:$0xff]  }
 0x67b   : > { %19324 = vmatpush1.bf16.msra.mxu1 %v27395_v16  ;;  %19362 = vmatprep.subr.bf16.mxu0 %v27406_v63  ;;  %v27436_v16 = vld [vmem:[%s37924_s3 + $0x3fc] ss:$28 sps:$4 sm:$0xff]   ;;  %v27442_v63 = vld [vmem:[%s37924_s3 + $0x3c4] ss:$28 sps:$4 sm:$0xff]  }
 0x67c   : > { %19325 = vmatprep.subr.bf16.mxu1 %v27403_v40  ;;  %v27434_v40 = vld [vmem:[%s37924_s3 + $0x3f8] ss:$28 sps:$4 sm:$0xff]  }
 0x67d   : > { %v19027_v2 = vpop.f32.mrf.mxu0  ;;  %19272 = vmatmul.mubr.bf16.vlgmr.msra.gmra.mxu0 %v34442_v23 }
 0x67e   : > { %v34455_v12 = vadd.f32 %v19027_v2, %v34363_v61  ;;  %19363 = vmatpush1.bf16.msra.mxu0 %v27404_v8  ;;  %19394 = vmatprep.mubr.bf16.mxu0 %v33141_v55  ;;  %v27440_v8 = vld [vmem:[%s37924_s3 + $0x3c0] ss:$28 sps:$4 sm:$0xff]   ;;  %v27443_v2 = vld [vmem:[%s37924_s3 + $0x318] ss:$28 sps:$4 sm:$0xff]  }
 0x67f   : > { %19326 = vmatpush1.bf16.msra.mxu1 %v27401_v7  ;;  %v19029_v21 = vpop.f32.mrf.mxu0  ;;  %19364 = vmatprep.subr.bf16.mxu0 %v27412_v22  ;;  %v27437_v7 = vld [vmem:[%s37924_s3 + $0x350] ss:$28 sps:$4 sm:$0xff]  }
 0x680   : > { %19327 = vmatprep.subr.bf16.mxu1 %v27409_v54  ;;  %v34468_v61 = vadd.f32 %v19029_v21, %v34376_v14  ;;  %v27424_v14 = vld [vmem:[%s37924_s3 + $0x46c] ss:$28 sps:$4 sm:$0xff]   ;;  %v27445_v54 = vld [vmem:[%s37924_s3 + $0x31c] ss:$28 sps:$4 sm:$0xff]  }
 0x681   : > { %v19031_v41 = vpop.f32.mrf.mxu0  ;;  %v27448_v22 = vld [vmem:[%s37924_s3 + $0x38c] ss:$28 sps:$4 sm:$0xff]   ;;  %v27449_v21 = vld [vmem:[%s37924_s3 + $0x2e0] ss:$28 sps:$4 sm:$0xff]  }
 0x682   : > { %19365 = vmatpush1.bf16.msra.mxu0 %v27410_v57  ;;  %v27451_v57 = vld [vmem:[%s37924_s3 + $0x2e4] ss:$28 sps:$4 sm:$0xff]   ;;  %v27457_v41 = vld [vmem:[%s37924_s3 + $0x2ac] ss:$28 sps:$4 sm:$0xff]  }
 0x683   : > { %19328 = vmatpush1.bf16.msra.mxu1 %v27407_v9  ;;  %v19032_v33 = vpop.f32.mrf.mxu0  ;;  %19366 = vmatprep.subr.bf16.mxu0 %v27418_v52  ;;  %v27446_v9 = vld [vmem:[%s37924_s3 + $0x388] ss:$28 sps:$4 sm:$0xff]   ;;  %v27452_v52 = vld [vmem:[%s37924_s3 + $0x6d0] ss:$28 sps:$4 sm:$0xff]  }
 0x684   : > { %19329 = vmatprep.subr.bf16.mxu1 %v27415_v28  ;;  %v27454_v28 = vld [vmem:[%s37924_s3 + $0x6d4] ss:$28 sps:$4 sm:$0xff]  }
 0x685   : > { %v27463_v33 = vld [vmem:[%s37924_s3 + $0x274] ss:$28 sps:$4 sm:$0xff]  }
 0x686   : > { %19367 = vmatpush1.bf16.msra.mxu0 %v27416_v26  ;;  %v27455_v26 = vld [vmem:[%s37924_s3 + $0x2a8] ss:$28 sps:$4 sm:$0xff]  }
 0x687   : > { %19330 = vmatpush1.bf16.msra.mxu1 %v27413_v32  ;;  %19368 = vmatprep.subr.bf16.mxu0 %v27424_v14  ;;  %v27460_v32 = vld [vmem:[%s37924_s3 + $0x69c] ss:$28 sps:$4 sm:$0xff]   ;;  %v27466_v14 = vld [vmem:[%s37924_s3 + $0x664] ss:$28 sps:$4 sm:$0xff]  }
 0x688   : > { %19331 = vmatprep.subr.bf16.mxu1 %v27421_v20  ;;  %v27458_v20 = vld [vmem:[%s37924_s3 + $0x698] ss:$28 sps:$4 sm:$0xff]  }
 0x68a   : > { %19369 = vmatpush1.bf16.msra.mxu0 %v27422_v51  ;;  %v27464_v51 = vld [vmem:[%s37924_s3 + $0x660] ss:$28 sps:$4 sm:$0xff]  }
 0x68b   : > { %19332 = vmatpush1.bf16.msra.mxu1 %v27419_v34  ;;  %19370 = vmatprep.subr.bf16.mxu0 %v27430_v19  ;;  %v27461_v34 = vld [vmem:[%s37924_s3 + $0x270] ss:$28 sps:$4 sm:$0xff]  }
 0x68c   : > { %19333 = vmatprep.subr.bf16.mxu1 %v27427_v43  ;;  %v27469_v43 = vld [vmem:[%s37924_s3 + $0x23c] ss:$28 sps:$4 sm:$0xff]   ;;  %v27472_v19 = vld [vmem:[%s37924_s3 + $0x62c] ss:$28 sps:$4 sm:$0xff]  }
 0x68e   : > { %19371 = vmatpush1.bf16.msra.mxu0 %v27428_v10 }
 0x68f   : > { %19334 = vmatpush1.bf16.msra.mxu1 %v27425_v17  ;;  %19372 = vmatprep.subr.bf16.mxu0 %v27436_v16 }
 0x690   : > { %19335 = vmatprep.subr.bf16.mxu1 %v27433_v49  ;;  %v27467_v49 = vld [vmem:[%s37924_s3 + $0x238] ss:$28 sps:$4 sm:$0xff]  }
 0x692   : > { %19373 = vmatpush1.bf16.msra.mxu0 %v27434_v40  ;;  %v27475_v40 = vld [vmem:[%s37924_s3 + $0x204] ss:$28 sps:$4 sm:$0xff]  }
 0x693   : > { %19336 = vmatpush1.bf16.msra.mxu1 %v27431_v45  ;;  %19374 = vmatprep.subr.bf16.mxu0 %v27442_v63  ;;  %v27470_v45 = vld [vmem:[%s37924_s3 + $0x628] ss:$28 sps:$4 sm:$0xff]  }
 0x694   : > { %19337 = vmatprep.subr.bf16.mxu1 %v27439_v60 }
 0x696   : > { %19375 = vmatpush1.bf16.msra.mxu0 %v27440_v8 }
 0x697   : > { %19338 = vmatpush2.bf16.msra.mxu1 %v27437_v7  ;;  %19376 = vmatprep.subr.bf16.mxu0 %v27448_v22  ;;  %v27473_v7 = vld [vmem:[%s37924_s3 + $0x200] ss:$28 sps:$4 sm:$0xff]  }
 0x698   : > { %19339 = vmatprep.subr.bf16.mxu1 %v27445_v54  ;;  %v27476_v54 = vld [vmem:[%s37924_s3 + $0x5f0] ss:$28 sps:$4 sm:$0xff]   ;;  %v27484_v22 = vld [vmem:[%s37924_s3 + $0x5bc] ss:$28 sps:$4 sm:$0xff]  }
 0x69a   : > { %19377 = vmatpush1.bf16.msra.mxu0 %v27446_v9  ;;  %v27482_v9 = vld [vmem:[%s37924_s3 + $0x5b8] ss:$28 sps:$4 sm:$0xff]  }
 0x69b   : > { %19340 = vmatpush2.bf16.msra.mxu1 %v27443_v2  ;;  %19378 = vmatprep.subr.bf16.mxu0 %v27454_v28  ;;  %v27479_v2 = vld [vmem:[%s37924_s3 + $0x1c8] ss:$28 sps:$4 sm:$0xff]  }
 0x69c   : > { %19341 = vmatprep.subr.bf16.mxu1 %v27451_v57  ;;  %v27487_v57 = vld [vmem:[%s37924_s3 + $0x894] ss:$28 sps:$4 sm:$0xff]   ;;  %v27490_v28 = vld [vmem:[%s37924_s3 + $0x584] ss:$28 sps:$4 sm:$0xff]  }
 0x69e   : > { %19379 = vmatpush2.bf16.msra.mxu0 %v27452_v52  ;;  %v27488_v52 = vld [vmem:[%s37924_s3 + $0x580] ss:$28 sps:$4 sm:$0xff]  }
 0x69f   : > { %19342 = vmatpush2.bf16.msra.mxu1 %v27449_v21  ;;  %19380 = vmatprep.subr.bf16.mxu0 %v27460_v32  ;;  %v27485_v21 = vld [vmem:[%s37924_s3 + $0x890] ss:$28 sps:$4 sm:$0xff]  }
 0x6a0   : > { %19343 = vmatprep.subr.bf16.mxu1 %v27457_v41  ;;  %v27493_v41 = vld [vmem:[%s37924_s3 + $0x85c] ss:$28 sps:$4 sm:$0xff]   ;;  %v27496_v32 = vld [vmem:[%s37924_s3 + $0x54c] ss:$28 sps:$4 sm:$0xff]  }
 0x6a2   : > { %19381 = vmatpush2.bf16.msra.mxu0 %v27458_v20  ;;  %v27494_v20 = vld [vmem:[%s37924_s3 + $0x548] ss:$28 sps:$4 sm:$0xff]  }
 0x6a3   : > { %19344 = vmatpush2.bf16.msra.mxu1 %v27455_v26  ;;  %19382 = vmatprep.subr.bf16.mxu0 %v27466_v14  ;;  %v27491_v26 = vld [vmem:[%s37924_s3 + $0x858] ss:$28 sps:$4 sm:$0xff]  }
 0x6a4   : > { %19345 = vmatprep.subr.bf16.mxu1 %v27463_v33  ;;  %v27499_v33 = vld [vmem:[%s37924_s3 + $0x824] ss:$28 sps:$4 sm:$0xff]   ;;  %v27502_v14 = vld [vmem:[%s37924_s3 + $0xc14] ss:$28 sps:$4 sm:$0xff]  }
 0x6a6   : > { %v19068_v17 = vpop.f32.mrf.mxu1  ;;  %19383 = vmatpush2.bf16.msra.mxu0 %v27464_v51  ;;  %v27500_v51 = vld [vmem:[%s37924_s3 + $0xc10] ss:$28 sps:$4 sm:$0xff]  }
 0x6a7   : > { %v19069_v10 = vadd.f32 %v19068_v17, %v34455_v12  ;;  %19346 = vmatpush2.bf16.msra.mxu1 %v27461_v34  ;;  %19384 = vmatprep.subr.bf16.mxu0 %v27472_v19  ;;  %v27478_v12 = vld [vmem:[%s37924_s3 + $0x5f4] ss:$28 sps:$4 sm:$0xff]   ;;  %v27497_v34 = vld [vmem:[%s37924_s3 + $0x820] ss:$28 sps:$4 sm:$0xff]  }
 0x6a8   : > { %v19070_v16 = vpop.f32.mrf.mxu1  ;;  %19347 = vmatprep.subr.bf16.mxu1 %v27469_v43  ;;  %v27505_v43 = vld [vmem:[%s37924_s3 + $0x7ec] ss:$28 sps:$4 sm:$0xff]   ;;  %v27508_v19 = vld [vmem:[%s37924_s3 + $0xbdc] ss:$28 sps:$4 sm:$0xff]  }
 0x6a9   : > { %v19071_v60 = vadd.f32 %v19070_v16, %v34468_v61  ;;  %v27481_v61 = vld [vmem:[%s37924_s3 + $0x1cc] ss:$28 sps:$4 sm:$0xff]  }
 0x6aa   : > { %v19072_v63 = vpop.f32.mrf.mxu1  ;;  %19385 = vmatpush2.bf16.msra.mxu0 %v27470_v45  ;;  %v27506_v45 = vld [vmem:[%s37924_s3 + $0xbd8] ss:$28 sps:$4 sm:$0xff]  }
 0x6ab   : > { %19348 = vmatpush2.bf16.msra.mxu1 %v27467_v49  ;;  %19386 = vmatprep.subr.bf16.mxu0 %v27478_v12  ;;  %v27503_v49 = vld [vmem:[%s37924_s3 + $0x7e8] ss:$28 sps:$4 sm:$0xff]  }
 0x6ac   : > { %v19073_v8 = vpop.f32.mrf.mxu1  ;;  %19349 = vmatprep.subr.bf16.mxu1 %v27475_v40  ;;  %v27511_v40 = vld [vmem:[%s37924_s3 + $0x7b4] ss:$28 sps:$4 sm:$0xff]   ;;  %v27514_v63 = vld [vmem:[%s37924_s3 + $0xba4] ss:$28 sps:$4 sm:$0xff]  }
 0x6ad   : > { %v27509_v8 = vld [vmem:[%s37924_s3 + $0x7b0] ss:$28 sps:$4 sm:$0xff]  }
 0x6ae   : > { %19387 = vmatpush2.bf16.msra.mxu0 %v27476_v54  ;;  %v27512_v54 = vld [vmem:[%s37924_s3 + $0xba0] ss:$28 sps:$4 sm:$0xff]  }
 0x6af   : > { %19350 = vmatpush2.bf16.msra.mxu1 %v27473_v7  ;;  %19388 = vmatprep.subr.bf16.mxu0 %v27484_v22 }
 0x6b0   : > { %19351 = vmatprep.subr.bf16.mxu1 %v27481_v61  ;;  %v27517_v61 = vld [vmem:[%s37924_s3 + $0x77c] ss:$28 sps:$4 sm:$0xff]  }
 0x6b2   : > { %19389 = vmatpush2.bf16.msra.mxu0 %v27482_v9  ;;  %v27518_v9 = vld [vmem:[%s37924_s3 + $0xb68] ss:$28 sps:$4 sm:$0xff]  }
 0x6b3   : > { %19352 = vmatpush2.bf16.msra.mxu1 %v27479_v2  ;;  %19390 = vmatprep.subr.bf16.mxu0 %v27490_v28  ;;  %v27515_v2 = vld [vmem:[%s37924_s3 + $0x778] ss:$28 sps:$4 sm:$0xff]  }
 0x6b4   : > { %19403 = vmatprep.subr.bf16.mxu1 %v27487_v57  ;;  %v27523_v57 = vld [vmem:[%s37924_s3 + $0x744] ss:$28 sps:$4 sm:$0xff]   ;;  %v27526_v28 = vld [vmem:[%s37924_s3 + $0xb34] ss:$28 sps:$4 sm:$0xff]  }
 0x6b6   : > { %19354 = vmatmul.mubr.bf16.vlgmr.msra.gmra.mxu1 %v33259_v48  ;;  %19391 = vmatpush2.bf16.msra.mxu0 %v27488_v52  ;;  %v27524_v52 = vld [vmem:[%s37924_s3 + $0xb30] ss:$28 sps:$4 sm:$0xff]  }
 0x6b7   : > { %19404 = vmatpush1.bf16.msra.mxu1 %v27485_v21  ;;  %19435 = vmatprep.mubr.bf16.mxu1 %v33264_v38  ;;  %v27521_v21 = vld [vmem:[%s37924_s3 + $0x740] ss:$28 sps:$4 sm:$0xff]  }
 0x6b8   : > { %19405 = vmatprep.subr.bf16.mxu1 %v27493_v41  ;;  %19392 = vmatprep.subr.bf16.mxu0 %v27496_v32  ;;  %v27529_v41 = vld [vmem:[%s37924_s3 + $0x70c] ss:$28 sps:$4 sm:$0xff]   ;;  %v27532_v32 = vld [vmem:[%s37924_s3 + $0xafc] ss:$28 sps:$4 sm:$0xff]  }
 0x6ba   : > { %19393 = vmatpush2.bf16.msra.mxu0 %v27494_v20  ;;  %v27530_v20 = vld [vmem:[%s37924_s3 + $0xaf8] ss:$28 sps:$4 sm:$0xff]  }
 0x6bb   : > { %19406 = vmatpush1.bf16.msra.mxu1 %v27491_v26  ;;  %19444 = vmatprep.subr.bf16.mxu0 %v27502_v14  ;;  %v27527_v26 = vld [vmem:[%s37924_s3 + $0x708] ss:$28 sps:$4 sm:$0xff]  }
 0x6bc   : > { %19407 = vmatprep.subr.bf16.mxu1 %v27499_v33  ;;  %v27535_v33 = vld [vmem:[%s37924_s3 + $0xa54] ss:$28 sps:$4 sm:$0xff]   ;;  %v27538_v14 = vld [vmem:[%s37924_s3 + $0xac4] ss:$28 sps:$4 sm:$0xff]  }
 0x6bd   : > { %v19109_v17 = vpop.f32.mrf.mxu0  ;;  %19395 = vmatmul.mubr.bf16.vlgmr.msra.gmra.mxu0 %v33350_v24 }
 0x6be   : > { %v34658_v16 = vadd.f32 %v19109_v17, %v19069_v10  ;;  %19445 = vmatpush1.bf16.msra.mxu0 %v27500_v51  ;;  %19476 = vmatprep.mubr.bf16.mxu0 %v33358_v29  ;;  %v27536_v51 = vld [vmem:[%s37924_s3 + $0xac0] ss:$28 sps:$4 sm:$0xff]   ;;  %v27539_v17 = vld [vmem:[%s37924_s3 + $0xa18] ss:$28 sps:$4 sm:$0xff]  }
 0x6bf   : > { %19408 = vmatpush1.bf16.msra.mxu1 %v27497_v34  ;;  %v19111_v12 = vpop.f32.mrf.mxu0  ;;  %19446 = vmatprep.subr.bf16.mxu0 %v27508_v19  ;;  %v27533_v34 = vld [vmem:[%s37924_s3 + $0xa50] ss:$28 sps:$4 sm:$0xff]  }
 0x6c0   : > { %19409 = vmatprep.subr.bf16.mxu1 %v27505_v43  ;;  %v34670_v10 = vadd.f32 %v19111_v12, %v19071_v60  ;;  %v27520_v60 = vld [vmem:[%s37924_s3 + $0xb6c] ss:$28 sps:$4 sm:$0xff]   ;;  %v27541_v43 = vld [vmem:[%s37924_s3 + $0xa1c] ss:$28 sps:$4 sm:$0xff]  }
 0x6c1   : > { %v19113_v7 = vpop.f32.mrf.mxu0  ;;  %v27544_v19 = vld [vmem:[%s37924_s3 + $0xa8c] ss:$28 sps:$4 sm:$0xff]   ;;  %v27545_v12 = vld [vmem:[%s37924_s3 + $0x9e0] ss:$28 sps:$4 sm:$0xff]  }
 0x6c2   : > { %19447 = vmatpush1.bf16.msra.mxu0 %v27506_v45  ;;  %v27547_v45 = vld [vmem:[%s37924_s3 + $0x9e4] ss:$28 sps:$4 sm:$0xff]   ;;  %v27553_v7 = vld [vmem:[%s37924_s3 + $0x9ac] ss:$28 sps:$4 sm:$0xff]  }
 0x6c3   : > { %19410 = vmatpush1.bf16.msra.mxu1 %v27503_v49  ;;  %v19114_v22 = vpop.f32.mrf.mxu0  ;;  %19448 = vmatprep.subr.bf16.mxu0 %v27514_v63  ;;  %v27542_v49 = vld [vmem:[%s37924_s3 + $0xa88] ss:$28 sps:$4 sm:$0xff]   ;;  %v27548_v63 = vld [vmem:[%s37924_s3 + $0xdd0] ss:$28 sps:$4 sm:$0xff]  }
 0x6c4   : > { %19411 = vmatprep.subr.bf16.mxu1 %v27511_v40  ;;  %v27550_v40 = vld [vmem:[%s37924_s3 + $0xdd4] ss:$28 sps:$4 sm:$0xff]  }
 0x6c5   : > { %v27559_v22 = vld [vmem:[%s37924_s3 + $0x974] ss:$28 sps:$4 sm:$0xff]  }
 0x6c6   : > { %19449 = vmatpush1.bf16.msra.mxu0 %v27512_v54  ;;  %v27551_v54 = vld [vmem:[%s37924_s3 + $0x9a8] ss:$28 sps:$4 sm:$0xff]  }
 0x6c7   : > { %19412 = vmatpush1.bf16.msra.mxu1 %v27509_v8  ;;  %19450 = vmatprep.subr.bf16.mxu0 %v27520_v60  ;;  %v27556_v8 = vld [vmem:[%s37924_s3 + $0xd9c] ss:$28 sps:$4 sm:$0xff]   ;;  %v27562_v60 = vld [vmem:[%s37924_s3 + $0xd64] ss:$28 sps:$4 sm:$0xff]  }
 0x6c8   : > { %19413 = vmatprep.subr.bf16.mxu1 %v27517_v61  ;;  %v27554_v61 = vld [vmem:[%s37924_s3 + $0xd98] ss:$28 sps:$4 sm:$0xff]  }
 0x6ca   : > { %19451 = vmatpush1.bf16.msra.mxu0 %v27518_v9  ;;  %v27560_v9 = vld [vmem:[%s37924_s3 + $0xd60] ss:$28 sps:$4 sm:$0xff]  }
 0x6cb   : > { %19414 = vmatpush1.bf16.msra.mxu1 %v27515_v2  ;;  %19452 = vmatprep.subr.bf16.mxu0 %v27526_v28  ;;  %v27557_v2 = vld [vmem:[%s37924_s3 + $0x970] ss:$28 sps:$4 sm:$0xff]  }
 0x6cc   : > { %19415 = vmatprep.subr.bf16.mxu1 %v27523_v57  ;;  %v27565_v57 = vld [vmem:[%s37924_s3 + $0x93c] ss:$28 sps:$4 sm:$0xff]   ;;  %v27568_v28 = vld [vmem:[%s37924_s3 + $0xd2c] ss:$28 sps:$4 sm:$0xff]  }
 0x6ce   : > { %19453 = vmatpush1.bf16.msra.mxu0 %v27524_v52 }
 0x6cf   : > { %19416 = vmatpush1.bf16.msra.mxu1 %v27521_v21  ;;  %19454 = vmatprep.subr.bf16.mxu0 %v27532_v32 }
 0x6d0   : > { %19417 = vmatprep.subr.bf16.mxu1 %v27529_v41  ;;  %v27563_v41 = vld [vmem:[%s37924_s3 + $0x938] ss:$28 sps:$4 sm:$0xff]  }
 0x6d2   : > { %19455 = vmatpush1.bf16.msra.mxu0 %v27530_v20  ;;  %v27571_v20 = vld [vmem:[%s37924_s3 + $0x904] ss:$28 sps:$4 sm:$0xff]  }
 0x6d3   : > { %19418 = vmatpush1.bf16.msra.mxu1 %v27527_v26  ;;  %19456 = vmatprep.subr.bf16.mxu0 %v27538_v14  ;;  %v27566_v26 = vld [vmem:[%s37924_s3 + $0xd28] ss:$28 sps:$4 sm:$0xff]  }
 0x6d4   : > { %19419 = vmatprep.subr.bf16.mxu1 %v27535_v33 }
 0x6d6   : > { %19457 = vmatpush1.bf16.msra.mxu0 %v27536_v51 }
 0x6d7   : > { %19420 = vmatpush2.bf16.msra.mxu1 %v27533_v34  ;;  %19458 = vmatprep.subr.bf16.mxu0 %v27544_v19  ;;  %v27569_v34 = vld [vmem:[%s37924_s3 + $0x900] ss:$28 sps:$4 sm:$0xff]  }
 0x6d8   : > { %19421 = vmatprep.subr.bf16.mxu1 %v27541_v43  ;;  %v27572_v43 = vld [vmem:[%s37924_s3 + $0xcf0] ss:$28 sps:$4 sm:$0xff]   ;;  %v27580_v19 = vld [vmem:[%s37924_s3 + $0xcbc] ss:$28 sps:$4 sm:$0xff]  }
 0x6da   : > { %19459 = vmatpush1.bf16.msra.mxu0 %v27542_v49  ;;  %v27578_v49 = vld [vmem:[%s37924_s3 + $0xcb8] ss:$28 sps:$4 sm:$0xff]  }
 0x6db   : > { %19422 = vmatpush2.bf16.msra.mxu1 %v27539_v17  ;;  %19460 = vmatprep.subr.bf16.mxu0 %v27550_v40  ;;  %v27575_v17 = vld [vmem:[%s37924_s3 + $0x8c8] ss:$28 sps:$4 sm:$0xff]  }
 0x6dc   : > { %19423 = vmatprep.subr.bf16.mxu1 %v27547_v45  ;;  %v27583_v45 = vld [vmem:[%s37924_s3 + $0xf94] ss:$28 sps:$4 sm:$0xff]   ;;  %v27586_v40 = vld [vmem:[%s37924_s3 + $0xc84] ss:$28 sps:$4 sm:$0xff]  }
 0x6de   : > { %19461 = vmatpush2.bf16.msra.mxu0 %v27548_v63  ;;  %v27584_v63 = vld [vmem:[%s37924_s3 + $0xc80] ss:$28 sps:$4 sm:$0xff]  }
 0x6df   : > { %19424 = vmatpush2.bf16.msra.mxu1 %v27545_v12  ;;  %19462 = vmatprep.subr.bf16.mxu0 %v27556_v8  ;;  %v27581_v12 = vld [vmem:[%s37924_s3 + $0xf90] ss:$28 sps:$4 sm:$0xff]  }
 0x6e0   : > { %19425 = vmatprep.subr.bf16.mxu1 %v27553_v7  ;;  %v27589_v7 = vld [vmem:[%s37924_s3 + $0xf5c] ss:$28 sps:$4 sm:$0xff]   ;;  %v27592_v8 = vld [vmem:[%s37924_s3 + $0xc4c] ss:$28 sps:$4 sm:$0xff]  }
 0x6e2   : > { %19463 = vmatpush2.bf16.msra.mxu0 %v27554_v61  ;;  %v27590_v61 = vld [vmem:[%s37924_s3 + $0xc48] ss:$28 sps:$4 sm:$0xff]  }
 0x6e3   : > { %19426 = vmatpush2.bf16.msra.mxu1 %v27551_v54  ;;  %19464 = vmatprep.subr.bf16.mxu0 %v27562_v60  ;;  %v27587_v54 = vld [vmem:[%s37924_s3 + $0xf58] ss:$28 sps:$4 sm:$0xff]  }
 0x6e4   : > { %19427 = vmatprep.subr.bf16.mxu1 %v27559_v22  ;;  %v27595_v22 = vld [vmem:[%s37924_s3 + $0xf24] ss:$28 sps:$4 sm:$0xff]   ;;  %v27598_v60 = vld [vmem:[%s37924_s3 + $0x1314] ss:$28 sps:$4 sm:$0xff]  }
 0x6e6   : > { %v19150_v21 = vpop.f32.mrf.mxu1  ;;  %19465 = vmatpush2.bf16.msra.mxu0 %v27560_v9  ;;  %v27596_v9 = vld [vmem:[%s37924_s3 + $0x1310] ss:$28 sps:$4 sm:$0xff]  }
 0x6e7   : > { %v19151_v52 = vadd.f32 %v19150_v21, %v34658_v16  ;;  %19428 = vmatpush2.bf16.msra.mxu1 %v27557_v2  ;;  %19466 = vmatprep.subr.bf16.mxu0 %v27568_v28  ;;  %v27574_v16 = vld [vmem:[%s37924_s3 + $0xcf4] ss:$28 sps:$4 sm:$0xff]   ;;  %v27593_v2 = vld [vmem:[%s37924_s3 + $0xf20] ss:$28 sps:$4 sm:$0xff]  }
 0x6e8   : > { %v19152_v32 = vpop.f32.mrf.mxu1  ;;  %19429 = vmatprep.subr.bf16.mxu1 %v27565_v57  ;;  %v27601_v57 = vld [vmem:[%s37924_s3 + $0xeec] ss:$28 sps:$4 sm:$0xff]   ;;  %v27604_v28 = vld [vmem:[%s37924_s3 + $0x12dc] ss:$28 sps:$4 sm:$0xff]  }
 0x6e9   : > { %v19153_v33 = vadd.f32 %v19152_v32, %v34670_v10  ;;  %v27577_v10 = vld [vmem:[%s37924_s3 + $0x8cc] ss:$28 sps:$4 sm:$0xff]  }
 0x6ea   : > { %v19154_v14 = vpop.f32.mrf.mxu1  ;;  %19467 = vmatpush2.bf16.msra.mxu0 %v27566_v26  ;;  %v27602_v26 = vld [vmem:[%s37924_s3 + $0x12d8] ss:$28 sps:$4 sm:$0xff]  }
 0x6eb   : > { %19430 = vmatpush2.bf16.msra.mxu1 %v27563_v41  ;;  %19468 = vmatprep.subr.bf16.mxu0 %v27574_v16  ;;  %v27599_v41 = vld [vmem:[%s37924_s3 + $0xee8] ss:$28 sps:$4 sm:$0xff]  }
 0x6ec   : > { %v19155_v51 = vpop.f32.mrf.mxu1  ;;  %19431 = vmatprep.subr.bf16.mxu1 %v27571_v20  ;;  %v27607_v20 = vld [vmem:[%s37924_s3 + $0xeb4] ss:$28 sps:$4 sm:$0xff]   ;;  %v27610_v14 = vld [vmem:[%s37924_s3 + $0x12a4] ss:$28 sps:$4 sm:$0xff]  }
 0x6ed   : > { %v27605_v51 = vld [vmem:[%s37924_s3 + $0xeb0] ss:$28 sps:$4 sm:$0xff]  }
 0x6ee   : > { %19469 = vmatpush2.bf16.msra.mxu0 %v27572_v43  ;;  %v27608_v43 = vld [vmem:[%s37924_s3 + $0x12a0] ss:$28 sps:$4 sm:$0xff]  }
 0x6ef   : > { %19432 = vmatpush2.bf16.msra.mxu1 %v27569_v34  ;;  %19470 = vmatprep.subr.bf16.mxu0 %v27580_v19 }
 0x6f0   : > { %19433 = vmatprep.subr.bf16.mxu1 %v27577_v10  ;;  %v27613_v10 = vld [vmem:[%s37924_s3 + $0xe7c] ss:$28 sps:$4 sm:$0xff]  }
 0x6f2   : > { %19471 = vmatpush2.bf16.msra.mxu0 %v27578_v49  ;;  %v27614_v49 = vld [vmem:[%s37924_s3 + $0x1268] ss:$28 sps:$4 sm:$0xff]  }
 0x6f3   : > { %19434 = vmatpush2.bf16.msra.mxu1 %v27575_v17  ;;  %19472 = vmatprep.subr.bf16.mxu0 %v27586_v40  ;;  %v27611_v17 = vld [vmem:[%s37924_s3 + $0xe78] ss:$28 sps:$4 sm:$0xff]  }
 0x6f4   : > { %19485 = vmatprep.subr.bf16.mxu1 %v27583_v45  ;;  %v27619_v45 = vld [vmem:[%s37924_s3 + $0xe44] ss:$28 sps:$4 sm:$0xff]   ;;  %v27622_v40 = vld [vmem:[%s37924_s3 + $0x1234] ss:$28 sps:$4 sm:$0xff]  }
 0x6f6   : > { %19436 = vmatmul.mubr.bf16.vlgmr.msra.gmra.mxu1 %v33476_v62  ;;  %19473 = vmatpush2.bf16.msra.mxu0 %v27584_v63  ;;  %v27620_v63 = vld [vmem:[%s37924_s3 + $0x1230] ss:$28 sps:$4 sm:$0xff]  }
 0x6f7   : > { %19486 = vmatpush1.bf16.msra.mxu1 %v27581_v12  ;;  %19517 = vmatprep.mubr.bf16.mxu1 %v33484_v25  ;;  %v27617_v12 = vld [vmem:[%s37924_s3 + $0xe40] ss:$28 sps:$4 sm:$0xff]  }
 0x6f8   : > { %19487 = vmatprep.subr.bf16.mxu1 %v27589_v7  ;;  %19474 = vmatprep.subr.bf16.mxu0 %v27592_v8  ;;  %v27625_v7 = vld [vmem:[%s37924_s3 + $0xe0c] ss:$28 sps:$4 sm:$0xff]   ;;  %v27628_v8 = vld [vmem:[%s37924_s3 + $0x11fc] ss:$28 sps:$4 sm:$0xff]  }
 0x6fa   : > { %19475 = vmatpush2.bf16.msra.mxu0 %v27590_v61  ;;  %v27626_v61 = vld [vmem:[%s37924_s3 + $0x11f8] ss:$28 sps:$4 sm:$0xff]  }
 0x6fb   : > { %19488 = vmatpush1.bf16.msra.mxu1 %v27587_v54  ;;  %19526 = vmatprep.subr.bf16.mxu0 %v27598_v60  ;;  %v27623_v54 = vld [vmem:[%s37924_s3 + $0xe08] ss:$28 sps:$4 sm:$0xff]  }
 0x6fc   : > { %19489 = vmatprep.subr.bf16.mxu1 %v27595_v22  ;;  %v27631_v22 = vld [vmem:[%s37924_s3 + $0x1154] ss:$28 sps:$4 sm:$0xff]   ;;  %v27634_v60 = vld [vmem:[%s37924_s3 + $0x11c4] ss:$28 sps:$4 sm:$0xff]  }
 0x6fd   : > { %v19191_v21 = vpop.f32.mrf.mxu0  ;;  %19477 = vmatmul.mubr.bf16.vlgmr.msra.gmra.mxu0 %v33569_v58 }
 0x6fe   : > { %v34860_v32 = vadd.f32 %v19191_v21, %v19151_v52  ;;  %19527 = vmatpush1.bf16.msra.mxu0 %v27596_v9  ;;  %19558 = vmatprep.mubr.bf16.mxu0 %v33577_v39  ;;  %v27632_v9 = vld [vmem:[%s37924_s3 + $0x11c0] ss:$28 sps:$4 sm:$0xff]   ;;  %v27635_v21 = vld [vmem:[%s37924_s3 + $0x1118] ss:$28 sps:$4 sm:$0xff]  }
 0x6ff   : > { %19490 = vmatpush1.bf16.msra.mxu1 %v27593_v2  ;;  %v19193_v16 = vpop.f32.mrf.mxu0  ;;  %19528 = vmatprep.subr.bf16.mxu0 %v27604_v28  ;;  %v27629_v2 = vld [vmem:[%s37924_s3 + $0x1150] ss:$28 sps:$4 sm:$0xff]  }
 0x700   : > { %19491 = vmatprep.subr.bf16.mxu1 %v27601_v57  ;;  %v34872_v52 = vadd.f32 %v19193_v16, %v19153_v33  ;;  %v27616_v33 = vld [vmem:[%s37924_s3 + $0x126c] ss:$28 sps:$4 sm:$0xff]   ;;  %v27637_v57 = vld [vmem:[%s37924_s3 + $0x111c] ss:$28 sps:$4 sm:$0xff]  }
 0x701   : > { %v19195_v34 = vpop.f32.mrf.mxu0  ;;  %v27640_v28 = vld [vmem:[%s37924_s3 + $0x118c] ss:$28 sps:$4 sm:$0xff]   ;;  %v27641_v16 = vld [vmem:[%s37924_s3 + $0x10e0] ss:$28 sps:$4 sm:$0xff]  }
 0x702   : > { %19529 = vmatpush1.bf16.msra.mxu0 %v27602_v26  ;;  %v27643_v26 = vld [vmem:[%s37924_s3 + $0x10e4] ss:$28 sps:$4 sm:$0xff]   ;;  %v27649_v34 = vld [vmem:[%s37924_s3 + $0x10ac] ss:$28 sps:$4 sm:$0xff]  }
 0x703   : > { %19492 = vmatpush1.bf16.msra.mxu1 %v27599_v41  ;;  %v19196_v19 = vpop.f32.mrf.mxu0  ;;  %19530 = vmatprep.subr.bf16.mxu0 %v27610_v14  ;;  %v27638_v41 = vld [vmem:[%s37924_s3 + $0x1188] ss:$28 sps:$4 sm:$0xff]   ;;  %v27644_v14 = vld [vmem:[%s37924_s3 + $0x14d0] ss:$28 sps:$4 sm:$0xff]  }
 0x704   : > { %19493 = vmatprep.subr.bf16.mxu1 %v27607_v20  ;;  %v27646_v20 = vld [vmem:[%s37924_s3 + $0x14d4] ss:$28 sps:$4 sm:$0xff]  }
 0x705   : > { %v27655_v19 = vld [vmem:[%s37924_s3 + $0x1074] ss:$28 sps:$4 sm:$0xff]  }
 0x706   : > { %19531 = vmatpush1.bf16.msra.mxu0 %v27608_v43  ;;  %v27647_v43 = vld [vmem:[%s37924_s3 + $0x10a8] ss:$28 sps:$4 sm:$0xff]  }
 0x707   : > { %19494 = vmatpush1.bf16.msra.mxu1 %v27605_v51  ;;  %19532 = vmatprep.subr.bf16.mxu0 %v27616_v33  ;;  %v27652_v51 = vld [vmem:[%s37924_s3 + $0x149c] ss:$28 sps:$4 sm:$0xff]   ;;  %v27658_v33 = vld [vmem:[%s37924_s3 + $0x1464] ss:$28 sps:$4 sm:$0xff]  }
 0x708   : > { %19495 = vmatprep.subr.bf16.mxu1 %v27613_v10  ;;  %v27650_v10 = vld [vmem:[%s37924_s3 + $0x1498] ss:$28 sps:$4 sm:$0xff]  }
 0x70a   : > { %19533 = vmatpush1.bf16.msra.mxu0 %v27614_v49  ;;  %v27656_v49 = vld [vmem:[%s37924_s3 + $0x1460] ss:$28 sps:$4 sm:$0xff]  }
 0x70b   : > { %19496 = vmatpush1.bf16.msra.mxu1 %v27611_v17  ;;  %19534 = vmatprep.subr.bf16.mxu0 %v27622_v40  ;;  %v27653_v17 = vld [vmem:[%s37924_s3 + $0x1070] ss:$28 sps:$4 sm:$0xff]  }
 0x70c   : > { %19497 = vmatprep.subr.bf16.mxu1 %v27619_v45  ;;  %v27661_v45 = vld [vmem:[%s37924_s3 + $0x103c] ss:$28 sps:$4 sm:$0xff]   ;;  %v27664_v40 = vld [vmem:[%s37924_s3 + $0x142c] ss:$28 sps:$4 sm:$0xff]  }
 0x70e   : > { %19535 = vmatpush1.bf16.msra.mxu0 %v27620_v63 }
 0x70f   : > { %19498 = vmatpush1.bf16.msra.mxu1 %v27617_v12  ;;  %19536 = vmatprep.subr.bf16.mxu0 %v27628_v8 }
 0x710   : > { %19499 = vmatprep.subr.bf16.mxu1 %v27625_v7  ;;  %v27659_v7 = vld [vmem:[%s37924_s3 + $0x1038] ss:$28 sps:$4 sm:$0xff]  }
 0x712   : > { %19537 = vmatpush1.bf16.msra.mxu0 %v27626_v61  ;;  %v27667_v61 = vld [vmem:[%s37924_s3 + $0x1004] ss:$28 sps:$4 sm:$0xff]  }
 0x713   : > { %19500 = vmatpush1.bf16.msra.mxu1 %v27623_v54  ;;  %19538 = vmatprep.subr.bf16.mxu0 %v27634_v60  ;;  %v27662_v54 = vld [vmem:[%s37924_s3 + $0x1428] ss:$28 sps:$4 sm:$0xff]  }
 0x714   : > { %19501 = vmatprep.subr.bf16.mxu1 %v27631_v22 }
 0x716   : > { %19539 = vmatpush1.bf16.msra.mxu0 %v27632_v9 }
 0x717   : > { %19502 = vmatpush2.bf16.msra.mxu1 %v27629_v2  ;;  %19540 = vmatprep.subr.bf16.mxu0 %v27640_v28  ;;  %v27665_v2 = vld [vmem:[%s37924_s3 + $0x1000] ss:$28 sps:$4 sm:$0xff]  }
 0x718   : > { %19503 = vmatprep.subr.bf16.mxu1 %v27637_v57  ;;  %v27668_v57 = vld [vmem:[%s37924_s3 + $0x13f0] ss:$28 sps:$4 sm:$0xff]   ;;  %v27676_v28 = vld [vmem:[%s37924_s3 + $0x13bc] ss:$28 sps:$4 sm:$0xff]  }
 0x71a   : > { %19541 = vmatpush1.bf16.msra.mxu0 %v27638_v41  ;;  %v27674_v41 = vld [vmem:[%s37924_s3 + $0x13b8] ss:$28 sps:$4 sm:$0xff]  }
 0x71b   : > { %19504 = vmatpush2.bf16.msra.mxu1 %v27635_v21  ;;  %19542 = vmatprep.subr.bf16.mxu0 %v27646_v20  ;;  %v27671_v21 = vld [vmem:[%s37924_s3 + $0xfc8] ss:$28 sps:$4 sm:$0xff]  }
 0x71c   : > { %19505 = vmatprep.subr.bf16.mxu1 %v27643_v26  ;;  %v27679_v26 = vld [vmem:[%s37924_s3 + $0x1694] ss:$28 sps:$4 sm:$0xff]   ;;  %v27682_v20 = vld [vmem:[%s37924_s3 + $0x1384] ss:$28 sps:$4 sm:$0xff]  }
 0x71e   : > { %19543 = vmatpush2.bf16.msra.mxu0 %v27644_v14  ;;  %v27680_v14 = vld [vmem:[%s37924_s3 + $0x1380] ss:$28 sps:$4 sm:$0xff]  }
 0x71f   : > { %19506 = vmatpush2.bf16.msra.mxu1 %v27641_v16  ;;  %19544 = vmatprep.subr.bf16.mxu0 %v27652_v51  ;;  %v27677_v16 = vld [vmem:[%s37924_s3 + $0x1690] ss:$28 sps:$4 sm:$0xff]  }
 0x720   : > { %19507 = vmatprep.subr.bf16.mxu1 %v27649_v34  ;;  %v27685_v34 = vld [vmem:[%s37924_s3 + $0x165c] ss:$28 sps:$4 sm:$0xff]   ;;  %v27688_v51 = vld [vmem:[%s37924_s3 + $0x134c] ss:$28 sps:$4 sm:$0xff]  }
 0x722   : > { %19545 = vmatpush2.bf16.msra.mxu0 %v27650_v10  ;;  %v27683_v10 = vld [vmem:[%s37924_s3 + $0x1658] ss:$28 sps:$4 sm:$0xff]  }
 0x723   : > { %19508 = vmatpush2.bf16.msra.mxu1 %v27647_v43  ;;  %19546 = vmatprep.subr.bf16.mxu0 %v27658_v33  ;;  %v27686_v33 = vld [vmem:[%s37924_s3 + $0x1348] ss:$28 sps:$4 sm:$0xff]  }
 0x724   : > { %19509 = vmatprep.subr.bf16.mxu1 %v27655_v19 }
 0x726   : > { %v19232_v12 = vpop.f32.mrf.mxu1  ;;  %19547 = vmatpush2.bf16.msra.mxu0 %v27656_v49  ;;  %v27694_v49 = vld [vmem:[%s37924_s3 + $0x1a14] ss:$28 sps:$4 sm:$0xff]  }
 0x727   : > { %v34983_v63 = vadd.f32 %v19232_v12, %v34860_v32  ;;  %19510 = vmatpush2.bf16.msra.mxu1 %v27653_v17  ;;  %19548 = vmatprep.subr.bf16.mxu0 %v27664_v40  ;;  %v27670_v32 = vld [vmem:[%s37924_s3 + $0x13f4] ss:$28 sps:$4 sm:$0xff]   ;;  %v27691_v17 = vld [vmem:[%s37924_s3 + $0x1624] ss:$28 sps:$4 sm:$0xff]  }
 0x728   : > { %v19234_v8 = vpop.f32.mrf.mxu1  ;;  %19511 = vmatprep.subr.bf16.mxu1 %v27661_v45  ;;  %v27689_v40 = vld [vmem:[%s37924_s3 + $0x1620] ss:$28 sps:$4 sm:$0xff]  }
 0x729   : > { %v34995_v22 = vadd.f32 %v19234_v8, %v34872_v52  ;;  %v27673_v52 = vld [vmem:[%s37924_s3 + $0xfcc] ss:$28 sps:$4 sm:$0xff]  }
 0x72a   : > { %v19236_v60 = vpop.f32.mrf.mxu1  ;;  %19549 = vmatpush2.bf16.msra.mxu0 %v27662_v54  ;;  %v27697_v8 = vld [vmem:[%s37924_s3 + $0x15ec] ss:$28 sps:$4 sm:$0xff]   ;;  %v27700_v54 = vld [vmem:[%s37924_s3 + $0x19dc] ss:$28 sps:$4 sm:$0xff]  }
 0x72b   : > { %19512 = vmatpush2.bf16.msra.mxu1 %v27659_v7  ;;  %19550 = vmatprep.subr.bf16.mxu0 %v27670_v32  ;;  %v27692_v7 = vld [vmem:[%s37924_s3 + $0x1a10] ss:$28 sps:$4 sm:$0xff]   ;;  %v27695_v32 = vld [vmem:[%s37924_s3 + $0x15e8] ss:$28 sps:$4 sm:$0xff]  }
 0x72c   : > { %v19237_v9 = vpop.f32.mrf.mxu1  ;;  %19513 = vmatprep.subr.bf16.mxu1 %v27667_v61 }
 0x72d   : > { %v27703_v9 = vld [vmem:[%s37924_s3 + $0x15b4] ss:$28 sps:$4 sm:$0xff]  }
 0x72e   : > { %19551 = vmatpush2.bf16.msra.mxu0 %v27668_v57 }
 0x72f   : > { %19514 = vmatpush2.bf16.msra.mxu1 %v27665_v2  ;;  %19552 = vmatprep.subr.bf16.mxu0 %v27676_v28  ;;  %v27698_v2 = vld [vmem:[%s37924_s3 + $0x19d8] ss:$28 sps:$4 sm:$0xff]  }
 0x730   : > { %19515 = vmatprep.subr.bf16.mxu1 %v27673_v52  ;;  %v27706_v52 = vld [vmem:[%s37924_s3 + $0x19a4] ss:$28 sps:$4 sm:$0xff]  }
 0x732   : > { %19553 = vmatpush2.bf16.msra.mxu0 %v27674_v41  ;;  %v27701_v41 = vld [vmem:[%s37924_s3 + $0x15b0] ss:$28 sps:$4 sm:$0xff]  }
 0x733   : > { %19516 = vmatpush2.bf16.msra.mxu1 %v27671_v21  ;;  %19554 = vmatprep.subr.bf16.mxu0 %v27682_v20  ;;  %v27704_v20 = vld [vmem:[%s37924_s3 + $0x19a0] ss:$28 sps:$4 sm:$0xff]  }
 0x734   : > { %19567 = vmatprep.subr.bf16.mxu1 %v27679_v26 }
 0x736   : > { %v19314_v43 = vpop.f32.mrf.mxu1  ;;  %19518 = vmatmul.mubr.bf16.vlgmr.msra.gmra.mxu1 %v33704_v5  ;;  %19555 = vmatpush2.bf16.msra.mxu0 %v27680_v14 }
 0x737   : > { %19568 = vmatpush1.bf16.msra.mxu1 %v27677_v16  ;;  %19599 = vmatprep.mubr.bf16.mxu1 %v33712_v44  ;;  %v27709_v16 = vld [vmem:[%s37924_s3 + $0x157c] ss:$28 sps:$4 sm:$0xff]  }
 0x738   : > { %v19316_v19 = vpop.f32.mrf.mxu1  ;;  %19569 = vmatprep.subr.bf16.mxu1 %v27685_v34  ;;  %19556 = vmatprep.subr.bf16.mxu0 %v27688_v51  ;;  %v27707_v34 = vld [vmem:[%s37924_s3 + $0x1578] ss:$28 sps:$4 sm:$0xff]   ;;  %v27710_v51 = vld [vmem:[%s37924_s3 + $0x1968] ss:$28 sps:$4 sm:$0xff]  }
 0x73a   : > { %v19318_v45 = vpop.f32.mrf.mxu1  ;;  %19557 = vmatpush2.bf16.msra.mxu0 %v27686_v33  ;;  %v27716_v33 = vld [vmem:[%s37924_s3 + $0x1930] ss:$28 sps:$4 sm:$0xff]  }
 0x73b   : > { %19570 = vmatpush1.bf16.msra.mxu1 %v27683_v10  ;;  %19608 = vmatprep.subr.bf16.mxu0 %v27694_v49  ;;  %v27718_v10 = vld [vmem:[%s37924_s3 + $0x1934] ss:$28 sps:$4 sm:$0xff]   ;;  %v27724_v49 = vld [vmem:[%s37924_s3 + $0x18fc] ss:$28 sps:$4 sm:$0xff]   ;;  %v27719_v45 = vld [vmem:[%s37924_s3 + $0x1508] ss:$28 sps:$4 sm:$0xff]  }
 0x73c   : > { %v19319_v12 = vpop.f32.mrf.mxu1  ;;  %19571 = vmatprep.subr.bf16.mxu1 %v27691_v17  ;;  %v27721_v17 = vld [vmem:[%s37924_s3 + $0x150c] ss:$28 sps:$4 sm:$0xff]  }
 0x73d   : > { %v19273_v61 = vpop.f32.mrf.mxu0  ;;  %19559 = vmatmul.mubr.bf16.vlgmr.msra.gmra.mxu0 %v33794_v11  ;;  %v27727_v12 = vld [vmem:[%s37924_s3 + $0x1854] ss:$28 sps:$4 sm:$0xff]  }
 0x73e   : > { %v19274_v60 = vadd.f32 %v19273_v61, %v34983_v63  ;;  %19609 = vmatpush1.bf16.msra.mxu0 %v27692_v7  ;;  %19640 = vmatprep.mubr.bf16.mxu0 %v33802_v6  ;;  %v27730_v7 = vld [vmem:[%s37924_s3 + $0x18c4] ss:$28 sps:$4 sm:$0xff]   ;;  %v27733_v61 = vld [vmem:[%s37924_s3 + $0x181c] ss:$28 sps:$4 sm:$0xff]  }
 0x73f   : > { %19572 = vmatpush1.bf16.msra.mxu1 %v27689_v40  ;;  %v19275_v57 = vpop.f32.mrf.mxu0  ;;  %19610 = vmatprep.subr.bf16.mxu0 %v27700_v54  ;;  %v27722_v40 = vld [vmem:[%s37924_s3 + $0x18f8] ss:$28 sps:$4 sm:$0xff]   ;;  %v27728_v54 = vld [vmem:[%s37924_s3 + $0x18c0] ss:$28 sps:$4 sm:$0xff]  }
 0x740   : > { %19573 = vmatprep.subr.bf16.mxu1 %v27697_v8  ;;  %v35077_v28 = vadd.f32 %v19314_v43, %v19274_v60  ;;  %v19276_v63 = vadd.f32 %v19275_v57, %v34995_v22  ;;  %v27712_v22 = vld [vmem:[%s37924_s3 + $0x196c] ss:$28 sps:$4 sm:$0xff]   ;;  %v27715_v43 = vld [vmem:[%s37924_s3 + $0x1544] ss:$28 sps:$4 sm:$0xff]   ;;  %v27731_v60 = vld [vmem:[%s37924_s3 + $0x1818] ss:$28 sps:$4 sm:$0xff]  }
 0x741   : > { %v19277_v21 = vpop.f32.mrf.mxu0  ;;  %v27725_v8 = vld [vmem:[%s37924_s3 + $0x1850] ss:$28 sps:$4 sm:$0xff]  }
 0x742   : > { %v35083_v26 = vadd.f32 %v19316_v19, %v19276_v63  ;;  %19611 = vmatpush1.bf16.msra.mxu0 %v27698_v2  ;;  %v27713_v19 = vld [vmem:[%s37924_s3 + $0x1540] ss:$28 sps:$4 sm:$0xff]   ;;  %v27734_v2 = vld [vmem:[%s37924_s3 + $0x1888] ss:$28 sps:$4 sm:$0xff]   ;;  %v27742_v57 = vld [vmem:[%s37924_s3 + $0x1bd4] ss:$28 sps:$4 sm:$0xff]  }
 0x743   : > { %19574 = vmatpush1.bf16.msra.mxu1 %v27695_v32  ;;  %v19278_v14 = vpop.f32.mrf.mxu0  ;;  %19612 = vmatprep.subr.bf16.mxu0 %v27706_v52  ;;  %v27736_v32 = vld [vmem:[%s37924_s3 + $0x188c] ss:$28 sps:$4 sm:$0xff]   ;;  %v27737_v52 = vld [vmem:[%s37924_s3 + $0x17e0] ss:$28 sps:$4 sm:$0xff]  }
 0x744   : > { %19575 = vmatprep.subr.bf16.mxu1 %v27703_v9  ;;  %v27739_v9 = vld [vmem:[%s37924_s3 + $0x17e4] ss:$28 sps:$4 sm:$0xff]   ;;  %v27740_v63 = vld [vmem:[%s37924_s3 + $0x1bd0] ss:$28 sps:$4 sm:$0xff]  }
 0x745   : > { %v27745_v21 = vld [vmem:[%s37924_s3 + $0x17ac] ss:$28 sps:$4 sm:$0xff]   ;;  %v27751_v14 = vld [vmem:[%s37924_s3 + $0x1774] ss:$28 sps:$4 sm:$0xff]  }
 0x746   : > { %19613 = vmatpush1.bf16.msra.mxu0 %v27704_v20  ;;  %v27743_v20 = vld [vmem:[%s37924_s3 + $0x17a8] ss:$28 sps:$4 sm:$0xff]  }
 0x747   : > { %19576 = vmatpush1.bf16.msra.mxu1 %v27701_v41  ;;  %19614 = vmatprep.subr.bf16.mxu0 %v27712_v22  ;;  %v27748_v41 = vld [vmem:[%s37924_s3 + $0x1b9c] ss:$28 sps:$4 sm:$0xff]   ;;  %v27754_v22 = vld [vmem:[%s37924_s3 + $0x1b64] ss:$28 sps:$4 sm:$0xff]  }
 0x748   : > { %19577 = vmatprep.subr.bf16.mxu1 %v27709_v16  ;;  %v27746_v16 = vld [vmem:[%s37924_s3 + $0x1b98] ss:$28 sps:$4 sm:$0xff]  }
 0x74a   : > { %19615 = vmatpush1.bf16.msra.mxu0 %v27710_v51  ;;  %v27752_v51 = vld [vmem:[%s37924_s3 + $0x1b60] ss:$28 sps:$4 sm:$0xff]  }
 0x74b   : > { %19578 = vmatpush1.bf16.msra.mxu1 %v27707_v34  ;;  %19616 = vmatprep.subr.bf16.mxu0 %v27718_v10  ;;  %v27749_v34 = vld [vmem:[%s37924_s3 + $0x1770] ss:$28 sps:$4 sm:$0xff]  }
 0x74c   : > { %19579 = vmatprep.subr.bf16.mxu1 %v27715_v43  ;;  %v27757_v43 = vld [vmem:[%s37924_s3 + $0x173c] ss:$28 sps:$4 sm:$0xff]   ;;  %v27760_v10 = vld [vmem:[%s37924_s3 + $0x1b2c] ss:$28 sps:$4 sm:$0xff]  }
 0x74e   : > { %19617 = vmatpush1.bf16.msra.mxu0 %v27716_v33  ;;  %v27758_v33 = vld [vmem:[%s37924_s3 + $0x1b28] ss:$28 sps:$4 sm:$0xff]  }
 0x74f   : > { %19580 = vmatpush1.bf16.msra.mxu1 %v27713_v19  ;;  %19618 = vmatprep.subr.bf16.mxu0 %v27724_v49  ;;  %v27755_v19 = vld [vmem:[%s37924_s3 + $0x1738] ss:$28 sps:$4 sm:$0xff]  }
 0x750   : > { %19581 = vmatprep.subr.bf16.mxu1 %v27721_v17  ;;  %v27763_v17 = vld [vmem:[%s37924_s3 + $0x1704] ss:$28 sps:$4 sm:$0xff]   ;;  %v27766_v49 = vld [vmem:[%s37924_s3 + $0x1af4] ss:$28 sps:$4 sm:$0xff]  }
 0x752   : > { %19619 = vmatpush1.bf16.msra.mxu0 %v27722_v40  ;;  %v27764_v40 = vld [vmem:[%s37924_s3 + $0x1af0] ss:$28 sps:$4 sm:$0xff]  }
 0x753   : > { %19582 = vmatpush1.bf16.msra.mxu1 %v27719_v45  ;;  %19620 = vmatprep.subr.bf16.mxu0 %v27730_v7  ;;  %v27761_v45 = vld [vmem:[%s37924_s3 + $0x1700] ss:$28 sps:$4 sm:$0xff]  }
 0x754   : > { %19583 = vmatprep.subr.bf16.mxu1 %v27727_v12  ;;  %v27769_v12 = vld [vmem:[%s37924_s3 + $0x16cc] ss:$28 sps:$4 sm:$0xff]   ;;  %v27772_v7 = vld [vmem:[%s37924_s3 + $0x1abc] ss:$28 sps:$4 sm:$0xff]  }
 0x756   : > { %19621 = vmatpush1.bf16.msra.mxu0 %v27728_v54  ;;  %v27770_v54 = vld [vmem:[%s37924_s3 + $0x1ab8] ss:$28 sps:$4 sm:$0xff]  }
 0x757   : > { %19584 = vmatpush2.bf16.msra.mxu1 %v27725_v8  ;;  %19622 = vmatprep.subr.bf16.mxu0 %v27736_v32  ;;  %v27767_v8 = vld [vmem:[%s37924_s3 + $0x16c8] ss:$28 sps:$4 sm:$0xff]  }
 0x758   : > { %19585 = vmatprep.subr.bf16.mxu1 %v27733_v61  ;;  %v27775_v61 = vld [vmem:[%s37924_s3 + $0x1d94] ss:$28 sps:$4 sm:$0xff]   ;;  %v27778_v32 = vld [vmem:[%s37924_s3 + $0x1a84] ss:$28 sps:$4 sm:$0xff]  }
 0x75a   : > { %19623 = vmatpush1.bf16.msra.mxu0 %v27734_v2  ;;  %v27776_v2 = vld [vmem:[%s37924_s3 + $0x1a80] ss:$28 sps:$4 sm:$0xff]  }
 0x75b   : > { %19586 = vmatpush2.bf16.msra.mxu1 %v27731_v60  ;;  %19624 = vmatprep.subr.bf16.mxu0 %v27742_v57  ;;  %v27773_v60 = vld [vmem:[%s37924_s3 + $0x1d90] ss:$28 sps:$4 sm:$0xff]  }
 0x75c   : > { %19587 = vmatprep.subr.bf16.mxu1 %v27739_v9  ;;  %v27781_v9 = vld [vmem:[%s37924_s3 + $0x1d5c] ss:$28 sps:$4 sm:$0xff]   ;;  %v27784_v57 = vld [vmem:[%s37924_s3 + $0x1a4c] ss:$28 sps:$4 sm:$0xff]  }
 0x75e   : > { %19625 = vmatpush2.bf16.msra.mxu0 %v27740_v63  ;;  %v27779_v63 = vld [vmem:[%s37924_s3 + $0x1d58] ss:$28 sps:$4 sm:$0xff]  }
 0x75f   : > { %19588 = vmatpush2.bf16.msra.mxu1 %v27737_v52  ;;  %19626 = vmatprep.subr.bf16.mxu0 %v27748_v41  ;;  %v27782_v41 = vld [vmem:[%s37924_s3 + $0x1a48] ss:$28 sps:$4 sm:$0xff]  }
 0x760   : > { %19589 = vmatprep.subr.bf16.mxu1 %v27745_v21 }
 0x762   : > { %19627 = vmatpush2.bf16.msra.mxu0 %v27746_v16  ;;  %v27790_v16 = vld [vmem:[%s37924_s3 + $0x2114] ss:$28 sps:$4 sm:$0xff]  }
 0x763   : > { %19590 = vmatpush2.bf16.msra.mxu1 %v27743_v20  ;;  %19628 = vmatprep.subr.bf16.mxu0 %v27754_v22  ;;  %v27787_v20 = vld [vmem:[%s37924_s3 + $0x1d24] ss:$28 sps:$4 sm:$0xff]  }
 0x764   : > { %19591 = vmatprep.subr.bf16.mxu1 %v27751_v14  ;;  %v28936_v14 = vld [vmem:[%s37925_s4] sm:$0x7f] }
 0x765   : > { %v11704_v22 = vrot.slane %v28936_v14, %v30237_v1  ;;  %v27793_v1 = vld [vmem:[%s37924_s3 + $0x1cec] ss:$28 sps:$4 sm:$0xff]  }
 0x766   : > { %19629 = vmatpush2.bf16.msra.mxu0 %v27752_v51  ;;  %v27785_v51 = vld [vmem:[%s37924_s3 + $0x1d20] ss:$28 sps:$4 sm:$0xff]  }
 0x767   : > { %19592 = vmatpush2.bf16.msra.mxu1 %v27749_v34  ;;  %19630 = vmatprep.subr.bf16.mxu0 %v27760_v10 }
 0x768   : > { %19593 = vmatprep.subr.bf16.mxu1 %v27757_v43  ;;  %v11708_v43 = vrot.slane %v28936_v14, %v30240_v27  ;;  %v27791_v27 = vld [vmem:[%s37924_s3 + $0x1ce8] ss:$28 sps:$4 sm:$0xff]   ;;  %v27812_v14 = vld [vmem:[%s37924_s3 + $0x2030] ss:$28 sps:$4 sm:$0xff]  }
 0x76a   : > { %19631 = vmatpush2.bf16.msra.mxu0 %v27758_v33  ;;  %v27796_v33 = vld [vmem:[%s37924_s3 + $0x20dc] ss:$28 sps:$4 sm:$0xff]  }
 0x76b   : > { %19594 = vmatpush2.bf16.msra.mxu1 %v27755_v19  ;;  %19632 = vmatprep.subr.bf16.mxu0 %v27766_v49  ;;  %v27788_v19 = vld [vmem:[%s37924_s3 + $0x2110] ss:$28 sps:$4 sm:$0xff]  }
 0x76c   : > { %19595 = vmatprep.subr.bf16.mxu1 %v27763_v17 }
 0x76e   : > { %19633 = vmatpush2.bf16.msra.mxu0 %v27764_v40 }
 0x76f   : > { %19596 = vmatpush2.bf16.msra.mxu1 %v27761_v45  ;;  %19634 = vmatprep.subr.bf16.mxu0 %v27772_v7  ;;  %v27799_v7 = vld [vmem:[%s37924_s3 + $0x1cb4] ss:$28 sps:$4 sm:$0xff]  }
 0x770   : > { %19597 = vmatprep.subr.bf16.mxu1 %v27769_v12  ;;  %v27794_v12 = vld [vmem:[%s37924_s3 + $0x20d8] ss:$28 sps:$4 sm:$0xff]  }
 0x772   : > { %19635 = vmatpush2.bf16.msra.mxu0 %v27770_v54  ;;  %v27802_v54 = vld [vmem:[%s37924_s3 + $0x20a4] ss:$28 sps:$4 sm:$0xff]  }
 0x773   : > { %19598 = vmatpush2.bf16.msra.mxu1 %v27767_v8  ;;  %19636 = vmatprep.subr.bf16.mxu0 %v27778_v32 }
 0x774   : > { %19649 = vmatprep.subr.bf16.mxu1 %v27775_v61 }
 0x776   : > { %v19355_v52 = vpop.f32.mrf.mxu1  ;;  %19600 = vmatmul.mubr.bf16.vlgmr.msra.gmra.mxu1 %v33923_v46  ;;  %19637 = vmatpush2.bf16.msra.mxu0 %v27776_v2  ;;  %v27800_v2 = vld [vmem:[%s37924_s3 + $0x20a0] ss:$28 sps:$4 sm:$0xff]  }
 0x777   : > { %19650 = vmatpush1.bf16.msra.mxu1 %v27773_v60  ;;  %19681 = vmatprep.mubr.bf16.mxu1 %v33928_v4  ;;  %v19356_v17 = vadd.f32 %v19355_v52, %v11704_v22  ;;  %v27797_v60 = vld [vmem:[%s37924_s3 + $0x1cb0] ss:$28 sps:$4 sm:$0xff]  }
 0x778   : > { %v19357_v21 = vpop.f32.mrf.mxu1  ;;  %19651 = vmatprep.subr.bf16.mxu1 %v27781_v9  ;;  %19638 = vmatprep.subr.bf16.mxu0 %v27784_v57  ;;  %v27805_v9 = vld [vmem:[%s37924_s3 + $0x1c7c] ss:$28 sps:$4 sm:$0xff]   ;;  %v27808_v52 = vld [vmem:[%s37924_s3 + $0x206c] ss:$28 sps:$4 sm:$0xff]  }
 0x779   : > { %v19358_v45 = vadd.f32 %v19357_v21, %v11708_v43  ;;  %v27806_v21 = vld [vmem:[%s37924_s3 + $0x2068] ss:$28 sps:$4 sm:$0xff]   ;;  %v27818_v43 = vld [vmem:[%s37924_s3 + $0x1ff8] ss:$28 sps:$4 sm:$0xff]  }
 0x77a   : > { %v19359_v34 = vpop.f32.mrf.mxu1  ;;  %19639 = vmatpush2.bf16.msra.mxu0 %v27782_v41  ;;  %v27811_v41 = vld [vmem:[%s37924_s3 + $0x1c44] ss:$28 sps:$4 sm:$0xff]   ;;  %v27817_v22 = vld [vmem:[%s37924_s3 + $0x1c0c] ss:$28 sps:$4 sm:$0xff]  }
 0x77b   : > { %19652 = vmatpush1.bf16.msra.mxu1 %v27779_v63  ;;  %19690 = vmatprep.subr.bf16.mxu0 %v27790_v16  ;;  %v27803_v63 = vld [vmem:[%s37924_s3 + $0x1c78] ss:$28 sps:$4 sm:$0xff]   ;;  %v27809_v16 = vld [vmem:[%s37924_s3 + $0x1c40] ss:$28 sps:$4 sm:$0xff]  }
 0x77c   : > { %v19360_v10 = vpop.f32.mrf.mxu1  ;;  %19653 = vmatprep.subr.bf16.mxu1 %v27787_v20  ;;  %v27814_v20 = vld [vmem:[%s37924_s3 + $0x2034] ss:$28 sps:$4 sm:$0xff]   ;;  %v27820_v34 = vld [vmem:[%s37924_s3 + $0x1ffc] ss:$28 sps:$4 sm:$0xff]  }
 0x77d   : > { %v19396_v49 = vpop.f32.mrf.mxu0  ;;  %19641 = vmatmul.mubr.bf16.vlgmr.msra.gmra.mxu0 %v34011_v3  ;;  %v27823_v10 = vld [vmem:[%s37924_s3 + $0x1f54] ss:$28 sps:$4 sm:$0xff]  }
 0x77e   : > { %v35273_v40 = vadd.f32 %v19396_v49, %v19356_v17  ;;  %19691 = vmatpush1.bf16.msra.mxu0 %v27788_v19  ;;  %19722 = vmatprep.mubr.bf16.mxu0 %v34019_v18  ;;  %v27826_v19 = vld [vmem:[%s37924_s3 + $0x1fc4] ss:$28 sps:$4 sm:$0xff]   ;;  %v27829_v17 = vld [vmem:[%s37924_s3 + $0x1f1c] ss:$28 sps:$4 sm:$0xff]   ;;  %v27832_v49 = vld [vmem:[%s37924_s3 + $0x1f8c] ss:$28 sps:$4 sm:$0xff]  }
 0x77f   : > { %19654 = vmatpush1.bf16.msra.mxu1 %v27785_v51  ;;  %v19398_v8 = vpop.f32.mrf.mxu0  ;;  %19692 = vmatprep.subr.bf16.mxu0 %v27796_v33  ;;  %v27815_v51 = vld [vmem:[%s37924_s3 + $0x1c08] ss:$28 sps:$4 sm:$0xff]   ;;  %v27824_v33 = vld [vmem:[%s37924_s3 + $0x1fc0] ss:$28 sps:$4 sm:$0xff]  }
 0x780   : > { %19655 = vmatprep.subr.bf16.mxu1 %v27793_v1  ;;  %v35285_v61 = vadd.f32 %v19398_v8, %v19358_v45  ;;  %v27821_v1 = vld [vmem:[%s37924_s3 + $0x1f50] ss:$28 sps:$4 sm:$0xff]   ;;  %v27830_v45 = vld [vmem:[%s37924_s3 + $0x1f88] ss:$28 sps:$4 sm:$0xff]   ;;  %v27833_v8 = vld [vmem:[%s37924_s3 + $0x1ee0] ss:$28 sps:$4 sm:$0xff]  }
 0x781   : > { %v19400_v32 = vpop.f32.mrf.mxu0 }
 0x782   : > { %19693 = vmatpush1.bf16.msra.mxu0 %v27794_v12  ;;  %v27835_v12 = vld [vmem:[%s37924_s3 + $0x1ee4] ss:$28 sps:$4 sm:$0xff]   ;;  %v27841_v32 = vld [vmem:[%s37924_s3 + $0x1eac] ss:$28 sps:$4 sm:$0xff]  }
 0x783   : > { %19656 = vmatpush1.bf16.msra.mxu1 %v27791_v27  ;;  %v19401_v57 = vpop.f32.mrf.mxu0  ;;  %19694 = vmatprep.subr.bf16.mxu0 %v27802_v54  ;;  %v27827_v27 = vld [vmem:[%s37924_s3 + $0x1f18] ss:$28 sps:$4 sm:$0xff]   ;;  %v27836_v54 = vld [vmem:[%s37924_s3 + $0x22d0] ss:$28 sps:$4 sm:$0xff]  }
 0x784   : > { %19657 = vmatprep.subr.bf16.mxu1 %v27799_v7  ;;  %v27838_v7 = vld [vmem:[%s37924_s3 + $0x22d4] ss:$28 sps:$4 sm:$0xff]  }
 0x785   : > { %v27847_v57 = vld [vmem:[%s37924_s3 + $0x1e74] ss:$28 sps:$4 sm:$0xff]  }
 0x786   : > { %19695 = vmatpush1.bf16.msra.mxu0 %v27800_v2  ;;  %v27839_v2 = vld [vmem:[%s37924_s3 + $0x1ea8] ss:$28 sps:$4 sm:$0xff]  }
 0x787   : > { %19658 = vmatpush1.bf16.msra.mxu1 %v27797_v60  ;;  %19696 = vmatprep.subr.bf16.mxu0 %v27808_v52  ;;  %v27844_v60 = vld [vmem:[%s37924_s3 + $0x229c] ss:$28 sps:$4 sm:$0xff]   ;;  %v27850_v52 = vld [vmem:[%s37924_s3 + $0x2264] ss:$28 sps:$4 sm:$0xff]  }
 0x788   : > { %19659 = vmatprep.subr.bf16.mxu1 %v27805_v9  ;;  %v27842_v9 = vld [vmem:[%s37924_s3 + $0x2298] ss:$28 sps:$4 sm:$0xff]  }
 0x78a   : > { %19697 = vmatpush1.bf16.msra.mxu0 %v27806_v21  ;;  %v27848_v21 = vld [vmem:[%s37924_s3 + $0x2260] ss:$28 sps:$4 sm:$0xff]  }
 0x78b   : > { %19660 = vmatpush1.bf16.msra.mxu1 %v27803_v63  ;;  %19698 = vmatprep.subr.bf16.mxu0 %v27814_v20  ;;  %v27845_v63 = vld [vmem:[%s37924_s3 + $0x1e70] ss:$28 sps:$4 sm:$0xff]  }
 0x78c   : > { %19661 = vmatprep.subr.bf16.mxu1 %v27811_v41  ;;  %v27853_v41 = vld [vmem:[%s37924_s3 + $0x1e3c] ss:$28 sps:$4 sm:$0xff]   ;;  %v27856_v20 = vld [vmem:[%s37924_s3 + $0x222c] ss:$28 sps:$4 sm:$0xff]  }
 0x78e   : > { %19699 = vmatpush1.bf16.msra.mxu0 %v27812_v14  ;;  %v27854_v14 = vld [vmem:[%s37924_s3 + $0x2228] ss:$28 sps:$4 sm:$0xff]  }
 0x78f   : > { %19662 = vmatpush1.bf16.msra.mxu1 %v27809_v16  ;;  %19700 = vmatprep.subr.bf16.mxu0 %v27820_v34  ;;  %v27851_v16 = vld [vmem:[%s37924_s3 + $0x1e38] ss:$28 sps:$4 sm:$0xff]  }
 0x790   : > { %19663 = vmatprep.subr.bf16.mxu1 %v27817_v22  ;;  %v27859_v22 = vld [vmem:[%s37924_s3 + $0x1e04] ss:$28 sps:$4 sm:$0xff]   ;;  %v27862_v34 = vld [vmem:[%s37924_s3 + $0x21f4] ss:$28 sps:$4 sm:$0xff]  }
 0x792   : > { %19701 = vmatpush1.bf16.msra.mxu0 %v27818_v43  ;;  %v27860_v43 = vld [vmem:[%s37924_s3 + $0x21f0] ss:$28 sps:$4 sm:$0xff]  }
 0x793   : > { %19664 = vmatpush1.bf16.msra.mxu1 %v27815_v51  ;;  %19702 = vmatprep.subr.bf16.mxu0 %v27826_v19  ;;  %v27857_v51 = vld [vmem:[%s37924_s3 + $0x1e00] ss:$28 sps:$4 sm:$0xff]  }
 0x794   : > { %19665 = vmatprep.subr.bf16.mxu1 %v27823_v10  ;;  %v27865_v10 = vld [vmem:[%s37924_s3 + $0x1dcc] ss:$28 sps:$4 sm:$0xff]   ;;  %v27868_v19 = vld [vmem:[%s37924_s3 + $0x21bc] ss:$28 sps:$4 sm:$0xff]  }
 0x796   : > { %19703 = vmatpush1.bf16.msra.mxu0 %v27824_v33  ;;  %v27866_v33 = vld [vmem:[%s37924_s3 + $0x21b8] ss:$28 sps:$4 sm:$0xff]  }
 0x797   : > { %19666 = vmatpush2.bf16.msra.mxu1 %v27821_v1  ;;  %19704 = vmatprep.subr.bf16.mxu0 %v27832_v49  ;;  %v27863_v1 = vld [vmem:[%s37924_s3 + $0x1dc8] ss:$28 sps:$4 sm:$0xff]  }
 0x798   : > { %19667 = vmatprep.subr.bf16.mxu1 %v27829_v17  ;;  %v27871_v17 = vld [vmem:[%s37924_s3 + $0x2494] ss:$28 sps:$4 sm:$0xff]   ;;  %v27874_v49 = vld [vmem:[%s37924_s3 + $0x2184] ss:$28 sps:$4 sm:$0xff]  }
 0x79a   : > { %19705 = vmatpush1.bf16.msra.mxu0 %v27830_v45  ;;  %v27872_v45 = vld [vmem:[%s37924_s3 + $0x2180] ss:$28 sps:$4 sm:$0xff]  }
 0x79b   : > { %19668 = vmatpush2.bf16.msra.mxu1 %v27827_v27  ;;  %19706 = vmatprep.subr.bf16.mxu0 %v27838_v7  ;;  %v27869_v27 = vld [vmem:[%s37924_s3 + $0x2490] ss:$28 sps:$4 sm:$0xff]  }
 0x79c   : > { %19669 = vmatprep.subr.bf16.mxu1 %v27835_v12  ;;  %v27877_v12 = vld [vmem:[%s37924_s3 + $0x245c] ss:$28 sps:$4 sm:$0xff]   ;;  %v27880_v7 = vld [vmem:[%s37924_s3 + $0x214c] ss:$28 sps:$4 sm:$0xff]  }
 0x79e   : > { %19707 = vmatpush2.bf16.msra.mxu0 %v27836_v54 }
 0x79f   : > { %19670 = vmatpush2.bf16.msra.mxu1 %v27833_v8  ;;  %19708 = vmatprep.subr.bf16.mxu0 %v27844_v60 }
 0x7a0   : > { %19671 = vmatprep.subr.bf16.mxu1 %v27841_v32  ;;  %v27875_v32 = vld [vmem:[%s37924_s3 + $0x2458] ss:$28 sps:$4 sm:$0xff]  }
 0x7a2   : > { %19709 = vmatpush2.bf16.msra.mxu0 %v27842_v9  ;;  %v27883_v9 = vld [vmem:[%s37924_s3 + $0x2424] ss:$28 sps:$4 sm:$0xff]  }
 0x7a3   : > { %19672 = vmatpush2.bf16.msra.mxu1 %v27839_v2  ;;  %19710 = vmatprep.subr.bf16.mxu0 %v27850_v52  ;;  %v27878_v2 = vld [vmem:[%s37924_s3 + $0x2148] ss:$28 sps:$4 sm:$0xff]  }
 0x7a4   : > { %19673 = vmatprep.subr.bf16.mxu1 %v27847_v57  ;;  %v27886_v57 = vld [vmem:[%s37924_s3 + $0x2814] ss:$28 sps:$4 sm:$0xff]  }
 0x7a6   : > { %19711 = vmatpush2.bf16.msra.mxu0 %v27848_v21 }
 0x7a7   : > { %19674 = vmatpush2.bf16.msra.mxu1 %v27845_v63  ;;  %19712 = vmatprep.subr.bf16.mxu0 %v27856_v20  ;;  %v27881_v63 = vld [vmem:[%s37924_s3 + $0x2420] ss:$28 sps:$4 sm:$0xff]  }
 0x7a8   : > { %19675 = vmatprep.subr.bf16.mxu1 %v27853_v41  ;;  %v27884_v41 = vld [vmem:[%s37924_s3 + $0x2810] ss:$28 sps:$4 sm:$0xff]   ;;  %v27892_v20 = vld [vmem:[%s37924_s3 + $0x27dc] ss:$28 sps:$4 sm:$0xff]  }
 0x7aa   : > { %19713 = vmatpush2.bf16.msra.mxu0 %v27854_v14  ;;  %v27887_v14 = vld [vmem:[%s37924_s3 + $0x23e8] ss:$28 sps:$4 sm:$0xff]  }
 0x7ab   : > { %19676 = vmatpush2.bf16.msra.mxu1 %v27851_v16  ;;  %19714 = vmatprep.subr.bf16.mxu0 %v27862_v34  ;;  %v27890_v34 = vld [vmem:[%s37924_s3 + $0x27d8] ss:$28 sps:$4 sm:$0xff]  }
 0x7ac   : > { %19677 = vmatprep.subr.bf16.mxu1 %v27859_v22 }
 0x7ae   : > { %19715 = vmatpush2.bf16.msra.mxu0 %v27860_v43 }
 0x7af   : > { %19678 = vmatpush2.bf16.msra.mxu1 %v27857_v51  ;;  %19716 = vmatprep.subr.bf16.mxu0 %v27868_v19  ;;  %v27895_v51 = vld [vmem:[%s37924_s3 + $0x23b4] ss:$28 sps:$4 sm:$0xff]  }
 0x7b0   : > { %19679 = vmatprep.subr.bf16.mxu1 %v27865_v10  ;;  %v27898_v10 = vld [vmem:[%s37924_s3 + $0x27a4] ss:$28 sps:$4 sm:$0xff]  }
 0x7b2   : > { %19717 = vmatpush2.bf16.msra.mxu0 %v27866_v33  ;;  %v27893_v33 = vld [vmem:[%s37924_s3 + $0x23b0] ss:$28 sps:$4 sm:$0xff]  }
 0x7b3   : > { %19680 = vmatpush2.bf16.msra.mxu1 %v27863_v1  ;;  %19718 = vmatprep.subr.bf16.mxu0 %v27874_v49  ;;  %v27901_v49 = vld [vmem:[%s37924_s3 + $0x237c] ss:$28 sps:$4 sm:$0xff]  }
 0x7b4   : > { %19731 = vmatprep.subr.bf16.mxu1 %v27871_v17  ;;  %v27896_v17 = vld [vmem:[%s37924_s3 + $0x27a0] ss:$28 sps:$4 sm:$0xff]  }
 0x7b6   : > { %v19437_v8 = vpop.f32.mrf.mxu1  ;;  %19682 = vmatmul.mubr.bf16.vlgmr.msra.gmra.mxu1 %v34137_v42  ;;  %19719 = vmatpush2.bf16.msra.mxu0 %v27872_v45  ;;  %v27904_v45 = vld [vmem:[%s37924_s3 + $0x276c] ss:$28 sps:$4 sm:$0xff]  }
 0x7b7   : > { %v19438_v54 = vadd.f32 %v19437_v8, %v35273_v40  ;;  %19732 = vmatpush1.bf16.msra.mxu1 %v27869_v27  ;;  %19763 = vmatprep.mubr.bf16.mxu1 %v34145_v59  ;;  %v27907_v8 = vld [vmem:[%s37924_s3 + $0x2344] ss:$28 sps:$4 sm:$0xff]  }
 0x7b8   : > { %v19439_v60 = vpop.f32.mrf.mxu1  ;;  %19733 = vmatprep.subr.bf16.mxu1 %v27877_v12  ;;  %19720 = vmatprep.subr.bf16.mxu0 %v27880_v7  ;;  %v27899_v12 = vld [vmem:[%s37924_s3 + $0x2378] ss:$28 sps:$4 sm:$0xff]   ;;  %v27902_v7 = vld [vmem:[%s37924_s3 + $0x2768] ss:$28 sps:$4 sm:$0xff]  }
 0x7b9   : > { %v19440_v40 = vadd.f32 %v19439_v60, %v35285_v61  ;;  %v27889_v61 = vld [vmem:[%s37924_s3 + $0x23ec] ss:$28 sps:$4 sm:$0xff]  }
 0x7ba   : > { %v19441_v52 = vpop.f32.mrf.mxu1  ;;  %19721 = vmatpush2.bf16.msra.mxu0 %v27878_v2  ;;  %v27908_v60 = vld [vmem:[%s37924_s3 + $0x2730] ss:$28 sps:$4 sm:$0xff]  }
 0x7bb   : > { %19734 = vmatpush1.bf16.msra.mxu1 %v27875_v32  ;;  %19772 = vmatprep.subr.bf16.mxu0 %v27886_v57  ;;  %v27905_v32 = vld [vmem:[%s37924_s3 + $0x2340] ss:$28 sps:$4 sm:$0xff]   ;;  %v27913_v2 = vld [vmem:[%s37924_s3 + $0x230c] ss:$28 sps:$4 sm:$0xff]   ;;  %v27914_v57 = vld [vmem:[%s37924_s3 + $0x26f8] ss:$28 sps:$4 sm:$0xff]  }
 0x7bc   : > { %v19442_v21 = vpop.f32.mrf.mxu1  ;;  %19735 = vmatprep.subr.bf16.mxu1 %v27883_v9  ;;  %v27916_v9 = vld [vmem:[%s37924_s3 + $0x26fc] ss:$28 sps:$4 sm:$0xff]   ;;  %v27919_v52 = vld [vmem:[%s37924_s3 + $0x2654] ss:$28 sps:$4 sm:$0xff]  }
 0x7bd   : > { %v19478_v16 = vpop.f32.mrf.mxu0  ;;  %19723 = vmatmul.mubr.bf16.vlgmr.msra.gmra.mxu0 %v34222_v53  ;;  %v27917_v21 = vld [vmem:[%s37924_s3 + $0x2650] ss:$28 sps:$4 sm:$0xff]  }
 0x7be   : > { %v35475_v22 = vadd.f32 %v19478_v16, %v19438_v54  ;;  %19773 = vmatpush1.bf16.msra.mxu0 %v27884_v41  ;;  %19804 = vmatprep.mubr.bf16.mxu0 %v34230_v15  ;;  %v27910_v54 = vld [vmem:[%s37924_s3 + $0x2734] ss:$28 sps:$4 sm:$0xff]   ;;  %v27920_v41 = vld [vmem:[%s37924_s3 + $0x26c0] ss:$28 sps:$4 sm:$0xff]  }
 0x7bf   : > { %19736 = vmatpush1.bf16.msra.mxu1 %v27881_v63  ;;  %v19480_v43 = vpop.f32.mrf.mxu0  ;;  %19774 = vmatprep.subr.bf16.mxu0 %v27892_v20  ;;  %v27922_v63 = vld [vmem:[%s37924_s3 + $0x26c4] ss:$28 sps:$4 sm:$0xff]   ;;  %v27928_v20 = vld [vmem:[%s37924_s3 + $0x268c] ss:$28 sps:$4 sm:$0xff]   ;;  %v27923_v16 = vld [vmem:[%s37924_s3 + $0x2618] ss:$28 sps:$4 sm:$0xff]  }
 0x7c0   : > { %19737 = vmatprep.subr.bf16.mxu1 %v27889_v61  ;;  %v35487_v19 = vadd.f32 %v19480_v43, %v19440_v40  ;;  %v27911_v40 = vld [vmem:[%s37924_s3 + $0x2308] ss:$28 sps:$4 sm:$0xff]   ;;  %v27925_v61 = vld [vmem:[%s37924_s3 + $0x261c] ss:$28 sps:$4 sm:$0xff]  }
 0x7c1   : > { %v19482_v1 = vpop.f32.mrf.mxu0  ;;  %v27929_v43 = vld [vmem:[%s37924_s3 + $0x25e0] ss:$28 sps:$4 sm:$0xff]  }
 0x7c2   : > { %19775 = vmatpush1.bf16.msra.mxu0 %v27890_v34  ;;  %v27931_v34 = vld [vmem:[%s37924_s3 + $0x25e4] ss:$28 sps:$4 sm:$0xff]   ;;  %v27937_v1 = vld [vmem:[%s37924_s3 + $0x25ac] ss:$28 sps:$4 sm:$0xff]  }
 0x7c3   : > { %19738 = vmatpush1.bf16.msra.mxu1 %v27887_v14  ;;  %v19483_v27 = vpop.f32.mrf.mxu0  ;;  %19776 = vmatprep.subr.bf16.mxu0 %v27898_v10  ;;  %v27926_v14 = vld [vmem:[%s37924_s3 + $0x2688] ss:$28 sps:$4 sm:$0xff]   ;;  %v27932_v10 = vld [vmem:[%s37924_s3 + $0x29d0] ss:$28 sps:$4 sm:$0xff]  }
 0x7c4   : > { %19739 = vmatprep.subr.bf16.mxu1 %v27895_v51  ;;  %v27934_v51 = vld [vmem:[%s37924_s3 + $0x29d4] ss:$28 sps:$4 sm:$0xff]  }
 0x7c5   : > { %v27943_v27 = vld [vmem:[%s37924_s3 + $0x2574] ss:$28 sps:$4 sm:$0xff]  }
 0x7c6   : > { %19777 = vmatpush1.bf16.msra.mxu0 %v27896_v17  ;;  %v27935_v17 = vld [vmem:[%s37924_s3 + $0x25a8] ss:$28 sps:$4 sm:$0xff]  }
 0x7c7   : > { %19740 = vmatpush1.bf16.msra.mxu1 %v27893_v33  ;;  %19778 = vmatprep.subr.bf16.mxu0 %v27904_v45  ;;  %v27940_v33 = vld [vmem:[%s37924_s3 + $0x299c] ss:$28 sps:$4 sm:$0xff]   ;;  %v27946_v45 = vld [vmem:[%s37924_s3 + $0x2964] ss:$28 sps:$4 sm:$0xff]  }
 0x7c8   : > { %19741 = vmatprep.subr.bf16.mxu1 %v27901_v49  ;;  %v27938_v49 = vld [vmem:[%s37924_s3 + $0x2998] ss:$28 sps:$4 sm:$0xff]  }
 0x7ca   : > { %19779 = vmatpush1.bf16.msra.mxu0 %v27902_v7  ;;  %v27944_v7 = vld [vmem:[%s37924_s3 + $0x2960] ss:$28 sps:$4 sm:$0xff]  }
 0x7cb   : > { %19742 = vmatpush1.bf16.msra.mxu1 %v27899_v12  ;;  %19780 = vmatprep.subr.bf16.mxu0 %v27910_v54  ;;  %v27941_v12 = vld [vmem:[%s37924_s3 + $0x2570] ss:$28 sps:$4 sm:$0xff]  }
 0x7cc   : > { %19743 = vmatprep.subr.bf16.mxu1 %v27907_v8  ;;  %v27949_v8 = vld [vmem:[%s37924_s3 + $0x253c] ss:$28 sps:$4 sm:$0xff]   ;;  %v27952_v54 = vld [vmem:[%s37924_s3 + $0x292c] ss:$28 sps:$4 sm:$0xff]  }
 0x7ce   : > { %19781 = vmatpush1.bf16.msra.mxu0 %v27908_v60  ;;  %v27950_v60 = vld [vmem:[%s37924_s3 + $0x2928] ss:$28 sps:$4 sm:$0xff]  }
 0x7cf   : > { %19744 = vmatpush1.bf16.msra.mxu1 %v27905_v32  ;;  %19782 = vmatprep.subr.bf16.mxu0 %v27916_v9  ;;  %v27947_v32 = vld [vmem:[%s37924_s3 + $0x2538] ss:$28 sps:$4 sm:$0xff]  }
 0x7d0   : > { %19745 = vmatprep.subr.bf16.mxu1 %v27913_v2  ;;  %v27955_v2 = vld [vmem:[%s37924_s3 + $0x2504] ss:$28 sps:$4 sm:$0xff]   ;;  %v27958_v9 = vld [vmem:[%s37924_s3 + $0x28f4] ss:$28 sps:$4 sm:$0xff]  }
 0x7d2   : > { %19783 = vmatpush1.bf16.msra.mxu0 %v27914_v57  ;;  %v27956_v57 = vld [vmem:[%s37924_s3 + $0x28f0] ss:$28 sps:$4 sm:$0xff]  }
 0x7d3   : > { %19746 = vmatpush1.bf16.msra.mxu1 %v27911_v40  ;;  %19784 = vmatprep.subr.bf16.mxu0 %v27922_v63  ;;  %v27953_v40 = vld [vmem:[%s37924_s3 + $0x2500] ss:$28 sps:$4 sm:$0xff]  }
 0x7d4   : > { %19747 = vmatprep.subr.bf16.mxu1 %v27919_v52  ;;  %v27961_v52 = vld [vmem:[%s37924_s3 + $0x24cc] ss:$28 sps:$4 sm:$0xff]   ;;  %v27964_v63 = vld [vmem:[%s37924_s3 + $0x28bc] ss:$28 sps:$4 sm:$0xff]  }
 0x7d6   : > { %19785 = vmatpush1.bf16.msra.mxu0 %v27920_v41  ;;  %v27962_v41 = vld [vmem:[%s37924_s3 + $0x28b8] ss:$28 sps:$4 sm:$0xff]  }
 0x7d7   : > { %19748 = vmatpush2.bf16.msra.mxu1 %v27917_v21  ;;  %19786 = vmatprep.subr.bf16.mxu0 %v27928_v20  ;;  %v27959_v21 = vld [vmem:[%s37924_s3 + $0x24c8] ss:$28 sps:$4 sm:$0xff]  }
 0x7d8   : > { %19749 = vmatprep.subr.bf16.mxu1 %v27925_v61  ;;  %v27967_v61 = vld [vmem:[%s37924_s3 + $0x2ab4] ss:$28 sps:$4 sm:$0xff]   ;;  %v27970_v20 = vld [vmem:[%s37924_s3 + $0x2884] ss:$28 sps:$4 sm:$0xff]  }
 0x7da   : > { %19787 = vmatpush1.bf16.msra.mxu0 %v27926_v14  ;;  %v27968_v14 = vld [vmem:[%s37924_s3 + $0x2880] ss:$28 sps:$4 sm:$0xff]  }
 0x7db   : > { %19750 = vmatpush2.bf16.msra.mxu1 %v27923_v16  ;;  %19788 = vmatprep.subr.bf16.mxu0 %v27934_v51  ;;  %v27965_v16 = vld [vmem:[%s37924_s3 + $0x2ab0] ss:$28 sps:$4 sm:$0xff]  }
 0x7dc   : > { %19751 = vmatprep.subr.bf16.mxu1 %v27931_v34  ;;  %v27973_v34 = vld [vmem:[%s37924_s3 + $0x2a7c] ss:$28 sps:$4 sm:$0xff]   ;;  %v27976_v51 = vld [vmem:[%s37924_s3 + $0x284c] ss:$28 sps:$4 sm:$0xff]  }
 0x7de   : > { %19789 = vmatpush2.bf16.msra.mxu0 %v27932_v10 }
 0x7df   : > { %19752 = vmatpush2.bf16.msra.mxu1 %v27929_v43  ;;  %19790 = vmatprep.subr.bf16.mxu0 %v27940_v33 }
 0x7e0   : > { %19753 = vmatprep.subr.bf16.mxu1 %v27937_v1  ;;  %v27971_v1 = vld [vmem:[%s37924_s3 + $0x2a78] ss:$28 sps:$4 sm:$0xff]  }
 0x7e2   : > { %19791 = vmatpush2.bf16.msra.mxu0 %v27938_v49  ;;  %v27979_v49 = vld [vmem:[%s37924_s3 + $0x2a44] ss:$28 sps:$4 sm:$0xff]  }
 0x7e3   : > { %19754 = vmatpush2.bf16.msra.mxu1 %v27935_v17  ;;  %19792 = vmatprep.subr.bf16.mxu0 %v27946_v45  ;;  %v27974_v17 = vld [vmem:[%s37924_s3 + $0x2848] ss:$28 sps:$4 sm:$0xff]  }
 0x7e4   : > { %19755 = vmatprep.subr.bf16.mxu1 %v27943_v27  ;;  %v27982_v27 = vld [vmem:[%s37924_s3 + $0x19c] ss:$28 sps:$4 sm:$0xff]  }
 0x7e6   : > { %19793 = vmatpush2.bf16.msra.mxu0 %v27944_v7 }
 0x7e7   : > { %19756 = vmatpush2.bf16.msra.mxu1 %v27941_v12  ;;  %19794 = vmatprep.subr.bf16.mxu0 %v27952_v54  ;;  %v27977_v12 = vld [vmem:[%s37924_s3 + $0x2a40] ss:$28 sps:$4 sm:$0xff]  }
 0x7e8   : > { %19757 = vmatprep.subr.bf16.mxu1 %v27949_v8  ;;  %v27980_v8 = vld [vmem:[%s37924_s3 + $0x198] ss:$28 sps:$4 sm:$0xff]   ;;  %v27988_v54 = vld [vmem:[%s37924_s3 + $0x164] ss:$28 sps:$4 sm:$0xff]  }
 0x7ea   : > { %19795 = vmatpush2.bf16.msra.mxu0 %v27950_v60  ;;  %v27983_v60 = vld [vmem:[%s37924_s3 + $0x2a08] ss:$28 sps:$4 sm:$0xff]  }
 0x7eb   : > { %19758 = vmatpush2.bf16.msra.mxu1 %v27947_v32  ;;  %19796 = vmatprep.subr.bf16.mxu0 %v27958_v9  ;;  %v27986_v9 = vld [vmem:[%s37924_s3 + $0x160] ss:$28 sps:$4 sm:$0xff]  }
 0x7ec   : > { %19759 = vmatprep.subr.bf16.mxu1 %v27955_v2 }
 0x7ee   : > { %19797 = vmatpush2.bf16.msra.mxu0 %v27956_v57 }
 0x7ef   : > { %19760 = vmatpush2.bf16.msra.mxu1 %v27953_v40  ;;  %19798 = vmatprep.subr.bf16.mxu0 %v27964_v63  ;;  %v27991_v40 = vld [vmem:[%s37924_s3 + $0x51c] ss:$28 sps:$4 sm:$0xff]  }
 0x7f0   : > { %19761 = vmatprep.subr.bf16.mxu1 %v27961_v52  ;;  %v27994_v52 = vld [vmem:[%s37924_s3 + $0x12c] ss:$28 sps:$4 sm:$0xff]  }
 0x7f2   : > { %19799 = vmatpush2.bf16.msra.mxu0 %v27962_v41  ;;  %v27989_v41 = vld [vmem:[%s37924_s3 + $0x518] ss:$28 sps:$4 sm:$0xff]  }
 0x7f3   : > { %19762 = vmatpush2.bf16.msra.mxu1 %v27959_v21  ;;  %19800 = vmatprep.subr.bf16.mxu0 %v27970_v20  ;;  %v27997_v20 = vld [vmem:[%s37924_s3 + $0x4e4] ss:$28 sps:$4 sm:$0xff]  }
 0x7f4   : > { %19821 = vmatprep.subr.bf16.mxu1 %v27967_v61  ;;  %v27992_v61 = vld [vmem:[%s37924_s3 + $0x128] ss:$28 sps:$4 sm:$0xff]  }
 0x7f6   : > { %v19519_v43 = vpop.f32.mrf.mxu1  ;;  %19764 = vmatmul.mubr.bf16.vlgmr.msra.gmra.mxu1 %v34350_v37  ;;  %19801 = vmatpush2.bf16.msra.mxu0 %v27968_v14  ;;  %v28000_v14 = vld [vmem:[%s37924_s3 + $0xf4] ss:$28 sps:$4 sm:$0xff]  }
 0x7f7   : > { %v19520_v10 = vadd.f32 %v19519_v43, %v35475_v22  ;;  %19822 = vmatpush1.bf16.msra.mxu1 %v27965_v16  ;;  %19845 = vmatprep.mubr.bf16.mxu1 %v28947_v13  ;;  %v28003_v43 = vld [vmem:[%s37924_s3 + $0x4ac] ss:$28 sps:$4 sm:$0xff]  }
 0x7f8   : > { %v19521_v33 = vpop.f32.mrf.mxu1  ;;  %19823 = vmatprep.subr.bf16.mxu1 %v27973_v34  ;;  %19802 = vmatprep.subr.bf16.mxu0 %v27976_v51  ;;  %v27995_v34 = vld [vmem:[%s37924_s3 + $0x4e0] ss:$28 sps:$4 sm:$0xff]   ;;  %v27998_v51 = vld [vmem:[%s37924_s3 + $0xf0] ss:$28 sps:$4 sm:$0xff]  }
 0x7f9   : > { %v19522_v22 = vadd.f32 %v19521_v33, %v35487_v19  ;;  %v27985_v19 = vld [vmem:[%s37924_s3 + $0x2a0c] ss:$28 sps:$4 sm:$0xff]   ;;  %v28004_v33 = vld [vmem:[%s37924_s3 + $0xb8] ss:$28 sps:$4 sm:$0xff]  }
 0x7fa   : > { %v19523_v45 = vpop.f32.mrf.mxu1  ;;  %19803 = vmatpush2.bf16.msra.mxu0 %v27974_v17  ;;  %v28009_v17 = vld [vmem:[%s37924_s3 + $0x474] ss:$28 sps:$4 sm:$0xff]  }
 0x7fb   : > { %19824 = vmatpush1.bf16.msra.mxu1 %v27971_v1  ;;  %19854 = vmatprep.subr.bf16.mxu0 %v27982_v27  ;;  %v28001_v1 = vld [vmem:[%s37924_s3 + $0x4a8] ss:$28 sps:$4 sm:$0xff]   ;;  %v28010_v27 = vld [vmem:[%s37924_s3 + $0x80] ss:$28 sps:$4 sm:$0xff]  }
 0x7fc   : > { %v19524_v7 = vpop.f32.mrf.mxu1  ;;  %19825 = vmatprep.subr.bf16.mxu1 %v27979_v49  ;;  %v28012_v49 = vld [vmem:[%s37924_s3 + $0x84] ss:$28 sps:$4 sm:$0xff]   ;;  %v28015_v45 = vld [vmem:[%s37924_s3 + $0x43c] ss:$28 sps:$4 sm:$0xff]  }
 0x7fd   : > { %v19560_v32 = vpop.f32.mrf.mxu0  ;;  %19805 = vmatmul.mubr.bf16.vlgmr.msra.gmra.mxu0 %v34442_v23  ;;  %v28013_v7 = vld [vmem:[%s37924_s3 + $0x438] ss:$28 sps:$4 sm:$0xff]  }
 0x7fe   : > { %v35677_v2 = vadd.f32 %v19560_v32, %v19520_v10  ;;  %19855 = vmatpush1.bf16.msra.mxu0 %v27980_v8  ;;  %19886 = vmatprep.mubr.bf16.mxu0 %v33052_v47  ;;  %v28006_v10 = vld [vmem:[%s37924_s3 + $0xbc] ss:$28 sps:$4 sm:$0xff]   ;;  %v28016_v8 = vld [vmem:[%s37924_s3 + $0x48] ss:$28 sps:$4 sm:$0xff]  }
 0x7ff   : > { %19826 = vmatpush1.bf16.msra.mxu1 %v27977_v12  ;;  %v19562_v57 = vpop.f32.mrf.mxu0  ;;  %19856 = vmatprep.subr.bf16.mxu0 %v27988_v54  ;;  %v28018_v12 = vld [vmem:[%s37924_s3 + $0x4c] ss:$28 sps:$4 sm:$0xff]   ;;  %v28024_v54 = vld [vmem:[%s37924_s3 + $0x14] ss:$28 sps:$4 sm:$0xff]   ;;  %v28019_v32 = vld [vmem:[%s37924_s3 + $0x400] ss:$28 sps:$4 sm:$0xff]  }
 0x800   : > { %19827 = vmatprep.subr.bf16.mxu1 %v27985_v19  ;;  %v35689_v63 = vadd.f32 %v19562_v57, %v19522_v22  ;;  %v28007_v22 = vld [vmem:[%s37924_s3 + $0x470] ss:$28 sps:$4 sm:$0xff]   ;;  %v28021_v19 = vld [vmem:[%s37924_s3 + $0x404] ss:$28 sps:$4 sm:$0xff]  }
 0x801   : > { %v19564_v21 = vpop.f32.mrf.mxu0  ;;  %v28025_v57 = vld [vmem:[%s37924_s3 + $0x3c8] ss:$28 sps:$4 sm:$0xff]  }
 0x802   : > { %19857 = vmatpush1.bf16.msra.mxu0 %v27986_v9  ;;  %v28027_v9 = vld [vmem:[%s37924_s3 + $0x3cc] ss:$28 sps:$4 sm:$0xff]   ;;  %v28033_v21 = vld [vmem:[%s37924_s3 + $0x394] ss:$28 sps:$4 sm:$0xff]  }
 0x803   : > { %19828 = vmatpush1.bf16.msra.mxu1 %v27983_v60  ;;  %v19565_v16 = vpop.f32.mrf.mxu0  ;;  %19858 = vmatprep.subr.bf16.mxu0 %v27994_v52  ;;  %v28022_v60 = vld [vmem:[%s37924_s3 + $0x10] ss:$28 sps:$4 sm:$0xff]   ;;  %v28028_v52 = vld [vmem:[%s37924_s3 + $0x358] ss:$28 sps:$4 sm:$0xff]  }
 0x804   : > { %19895 = vmatprep.subr.bf16.mxu1 %v27991_v40  ;;  %v28030_v40 = vld [vmem:[%s37924_s3 + $0x35c] ss:$28 sps:$4 sm:$0xff]  }
 0x805   : > { %v28039_v16 = vld [vmem:[%s37924_s3 + $0x6dc] ss:$28 sps:$4 sm:$0xff]  }
 0x806   : > { %24504 = vmatmul.mubr.msk.bf16.vlgmr.msra.gmra.mxu1 %vm18784_vm2, %v34409_v50  ;;  %19859 = vmatpush1.bf16.msra.mxu0 %v27992_v61  ;;  %v28031_v61 = vld [vmem:[%s37924_s3 + $0x390] ss:$28 sps:$4 sm:$0xff]  }
 0x807   : > { %19896 = vmatpush1.bf16.msra.mxu1 %v27989_v41  ;;  %19927 = vmatprep.mubr.bf16.mxu1 %v33141_v55  ;;  %v28036_v41 = vld [vmem:[%s37924_s3 + $0x324] ss:$28 sps:$4 sm:$0xff]  }
 0x808   : > { %19897 = vmatprep.subr.bf16.mxu1 %v27997_v20  ;;  %19860 = vmatprep.subr.bf16.mxu0 %v28000_v14  ;;  %v28034_v20 = vld [vmem:[%s37924_s3 + $0x320] ss:$28 sps:$4 sm:$0xff]   ;;  %v28042_v14 = vld [vmem:[%s37924_s3 + $0x2ec] ss:$28 sps:$4 sm:$0xff]  }
 0x80a   : > { %19861 = vmatpush1.bf16.msra.mxu0 %v27998_v51  ;;  %v28040_v51 = vld [vmem:[%s37924_s3 + $0x2e8] ss:$28 sps:$4 sm:$0xff]  }
 0x80b   : > { %19898 = vmatpush1.bf16.msra.mxu1 %v27995_v34  ;;  %19862 = vmatprep.subr.bf16.mxu0 %v28006_v10  ;;  %v28037_v34 = vld [vmem:[%s37924_s3 + $0x6d8] ss:$28 sps:$4 sm:$0xff]  }
 0x80c   : > { %19899 = vmatprep.subr.bf16.mxu1 %v28003_v43  ;;  %v28045_v43 = vld [vmem:[%s37924_s3 + $0x6a4] ss:$28 sps:$4 sm:$0xff]   ;;  %v28048_v10 = vld [vmem:[%s37924_s3 + $0x2b4] ss:$28 sps:$4 sm:$0xff]  }
 0x80e   : > { %19863 = vmatpush1.bf16.msra.mxu0 %v28004_v33  ;;  %v28046_v33 = vld [vmem:[%s37924_s3 + $0x2b0] ss:$28 sps:$4 sm:$0xff]  }
 0x80f   : > { %19900 = vmatpush1.bf16.msra.mxu1 %v28001_v1  ;;  %19864 = vmatprep.subr.bf16.mxu0 %v28012_v49  ;;  %v28043_v1 = vld [vmem:[%s37924_s3 + $0x6a0] ss:$28 sps:$4 sm:$0xff]  }
 0x810   : > { %19901 = vmatprep.subr.bf16.mxu1 %v28009_v17  ;;  %v28051_v17 = vld [vmem:[%s37924_s3 + $0x66c] ss:$28 sps:$4 sm:$0xff]   ;;  %v28054_v49 = vld [vmem:[%s37924_s3 + $0x27c] ss:$28 sps:$4 sm:$0xff]  }
 0x812   : > { %19865 = vmatpush1.bf16.msra.mxu0 %v28010_v27  ;;  %v28052_v27 = vld [vmem:[%s37924_s3 + $0x278] ss:$28 sps:$4 sm:$0xff]  }
 0x813   : > { %19902 = vmatpush1.bf16.msra.mxu1 %v28007_v22  ;;  %19866 = vmatprep.subr.bf16.mxu0 %v28018_v12  ;;  %v28049_v22 = vld [vmem:[%s37924_s3 + $0x668] ss:$28 sps:$4 sm:$0xff]  }
 0x814   : > { %19903 = vmatprep.subr.bf16.mxu1 %v28015_v45  ;;  %v28057_v45 = vld [vmem:[%s37924_s3 + $0x634] ss:$28 sps:$4 sm:$0xff]   ;;  %v28060_v12 = vld [vmem:[%s37924_s3 + $0x244] ss:$28 sps:$4 sm:$0xff]  }
 0x816   : > { %19867 = vmatpush1.bf16.msra.mxu0 %v28016_v8  ;;  %v28058_v8 = vld [vmem:[%s37924_s3 + $0x240] ss:$28 sps:$4 sm:$0xff]  }
 0x817   : > { %19904 = vmatpush1.bf16.msra.mxu1 %v28013_v7  ;;  %19868 = vmatprep.subr.bf16.mxu0 %v28024_v54  ;;  %v28055_v7 = vld [vmem:[%s37924_s3 + $0x630] ss:$28 sps:$4 sm:$0xff]  }
 0x818   : > { %19905 = vmatprep.subr.bf16.mxu1 %v28021_v19  ;;  %v28063_v19 = vld [vmem:[%s37924_s3 + $0x5fc] ss:$28 sps:$4 sm:$0xff]   ;;  %v28066_v54 = vld [vmem:[%s37924_s3 + $0x20c] ss:$28 sps:$4 sm:$0xff]  }
 0x81a   : > { %19869 = vmatpush1.bf16.msra.mxu0 %v28022_v60  ;;  %v28064_v60 = vld [vmem:[%s37924_s3 + $0x208] ss:$28 sps:$4 sm:$0xff]  }
 0x81b   : > { %19906 = vmatpush1.bf16.msra.mxu1 %v28019_v32  ;;  %19870 = vmatprep.subr.bf16.mxu0 %v28030_v40  ;;  %v28061_v32 = vld [vmem:[%s37924_s3 + $0x5f8] ss:$28 sps:$4 sm:$0xff]  }
 0x81c   : > { %19907 = vmatprep.subr.bf16.mxu1 %v28027_v9  ;;  %v28069_v9 = vld [vmem:[%s37924_s3 + $0x5c4] ss:$28 sps:$4 sm:$0xff]   ;;  %v28072_v40 = vld [vmem:[%s37924_s3 + $0x1d4] ss:$28 sps:$4 sm:$0xff]  }
 0x81e   : > { %19871 = vmatpush2.bf16.msra.mxu0 %v28028_v52 }
 0x81f   : > { %19908 = vmatpush1.bf16.msra.mxu1 %v28025_v57  ;;  %19872 = vmatprep.subr.bf16.mxu0 %v28036_v41 }
 0x820   : > { %19909 = vmatprep.subr.bf16.mxu1 %v28033_v21  ;;  %v28067_v21 = vld [vmem:[%s37924_s3 + $0x5c0] ss:$28 sps:$4 sm:$0xff]  }
 0x822   : > { %19873 = vmatpush2.bf16.msra.mxu0 %v28034_v20  ;;  %v28075_v20 = vld [vmem:[%s37924_s3 + $0x58c] ss:$28 sps:$4 sm:$0xff]  }
 0x823   : > { %19910 = vmatpush1.bf16.msra.mxu1 %v28031_v61  ;;  %19874 = vmatprep.subr.bf16.mxu0 %v28042_v14  ;;  %v28070_v61 = vld [vmem:[%s37924_s3 + $0x1d0] ss:$28 sps:$4 sm:$0xff]  }
 0x824   : > { %19911 = vmatprep.subr.bf16.mxu1 %v28039_v16 }
 0x826   : > { %19875 = vmatpush2.bf16.msra.mxu0 %v28040_v51 }
 0x827   : > { %19912 = vmatpush2.bf16.msra.mxu1 %v28037_v34  ;;  %19876 = vmatprep.subr.bf16.mxu0 %v28048_v10  ;;  %v28073_v34 = vld [vmem:[%s37924_s3 + $0x588] ss:$28 sps:$4 sm:$0xff]  }
 0x828   : > { %19913 = vmatprep.subr.bf16.mxu1 %v28045_v43  ;;  %v28076_v43 = vld [vmem:[%s37924_s3 + $0x898] ss:$28 sps:$4 sm:$0xff]   ;;  %v28084_v10 = vld [vmem:[%s37924_s3 + $0x864] ss:$28 sps:$4 sm:$0xff]  }
 0x82a   : > { %19877 = vmatpush2.bf16.msra.mxu0 %v28046_v33  ;;  %v28079_v33 = vld [vmem:[%s37924_s3 + $0x550] ss:$28 sps:$4 sm:$0xff]  }
 0x82b   : > { %19914 = vmatpush2.bf16.msra.mxu1 %v28043_v1  ;;  %19878 = vmatprep.subr.bf16.mxu0 %v28054_v49  ;;  %v28082_v49 = vld [vmem:[%s37924_s3 + $0x860] ss:$28 sps:$4 sm:$0xff]  }
 0x82c   : > { %19915 = vmatprep.subr.bf16.mxu1 %v28051_v17 }
 0x82e   : > { %19879 = vmatpush2.bf16.msra.mxu0 %v28052_v27 }
 0x82f   : > { %19916 = vmatpush2.bf16.msra.mxu1 %v28049_v22  ;;  %19880 = vmatprep.subr.bf16.mxu0 %v28060_v12  ;;  %v28087_v22 = vld [vmem:[%s37924_s3 + $0xc1c] ss:$28 sps:$4 sm:$0xff]  }
 0x830   : > { %19917 = vmatprep.subr.bf16.mxu1 %v28057_v45  ;;  %v28090_v45 = vld [vmem:[%s37924_s3 + $0x82c] ss:$28 sps:$4 sm:$0xff]  }
 0x832   : > { %19881 = vmatpush2.bf16.msra.mxu0 %v28058_v8  ;;  %v28085_v8 = vld [vmem:[%s37924_s3 + $0xc18] ss:$28 sps:$4 sm:$0xff]  }
 0x833   : > { %19918 = vmatpush2.bf16.msra.mxu1 %v28055_v7  ;;  %19882 = vmatprep.subr.bf16.mxu0 %v28066_v54  ;;  %v28093_v54 = vld [vmem:[%s37924_s3 + $0xbe4] ss:$28 sps:$4 sm:$0xff]  }
 0x834   : > { %19919 = vmatprep.subr.bf16.mxu1 %v28063_v19  ;;  %v28088_v19 = vld [vmem:[%s37924_s3 + $0x828] ss:$28 sps:$4 sm:$0xff]  }
 0x836   : > { %v19601_v57 = vpop.f32.mrf.mxu1  ;;  %19883 = vmatpush2.bf16.msra.mxu0 %v28064_v60  ;;  %v28096_v60 = vld [vmem:[%s37924_s3 + $0x7f4] ss:$28 sps:$4 sm:$0xff]  }
 0x837   : > { %v19602_v52 = vadd.f32 %v19601_v57, %v35677_v2  ;;  %19920 = vmatpush2.bf16.msra.mxu1 %v28061_v32  ;;  %19884 = vmatprep.subr.bf16.mxu0 %v28072_v40  ;;  %v28078_v2 = vld [vmem:[%s37924_s3 + $0x89c] ss:$28 sps:$4 sm:$0xff]   ;;  %v28094_v40 = vld [vmem:[%s37924_s3 + $0x7f0] ss:$28 sps:$4 sm:$0xff]  }
 0x838   : > { %v19603_v41 = vpop.f32.mrf.mxu1  ;;  %19921 = vmatprep.subr.bf16.mxu1 %v28069_v9  ;;  %v28091_v9 = vld [vmem:[%s37924_s3 + $0xbe0] ss:$28 sps:$4 sm:$0xff]   ;;  %v28099_v57 = vld [vmem:[%s37924_s3 + $0xbac] ss:$28 sps:$4 sm:$0xff]  }
 0x839   : > { %v19604_v16 = vadd.f32 %v19603_v41, %v35689_v63  ;;  %v28081_v63 = vld [vmem:[%s37924_s3 + $0x554] ss:$28 sps:$4 sm:$0xff]  }
 0x83a   : > { %v19605_v14 = vpop.f32.mrf.mxu1  ;;  %19885 = vmatpush2.bf16.msra.mxu0 %v28070_v61  ;;  %v28100_v41 = vld [vmem:[%s37924_s3 + $0x7b8] ss:$28 sps:$4 sm:$0xff]  }
 0x83b   : > { %19922 = vmatpush2.bf16.msra.mxu1 %v28067_v21  ;;  %19936 = vmatprep.subr.bf16.mxu0 %v28078_v2  ;;  %v28097_v21 = vld [vmem:[%s37924_s3 + $0xba8] ss:$28 sps:$4 sm:$0xff]   ;;  %v28105_v61 = vld [vmem:[%s37924_s3 + $0xb74] ss:$28 sps:$4 sm:$0xff]   ;;  %v28106_v2 = vld [vmem:[%s37924_s3 + $0x780] ss:$28 sps:$4 sm:$0xff]  }
 0x83c   : > { %v19606_v51 = vpop.f32.mrf.mxu1  ;;  %19923 = vmatprep.subr.bf16.mxu1 %v28075_v20  ;;  %v28108_v20 = vld [vmem:[%s37924_s3 + $0x784] ss:$28 sps:$4 sm:$0xff]   ;;  %v28111_v14 = vld [vmem:[%s37924_s3 + $0xb3c] ss:$28 sps:$4 sm:$0xff]  }
 0x83d   : > { %v19642_v1 = vpop.f32.mrf.mxu0  ;;  %19887 = vmatmul.mubr.bf16.vlgmr.msra.gmra.mxu0 %v33259_v48  ;;  %v28109_v51 = vld [vmem:[%s37924_s3 + $0xb38] ss:$28 sps:$4 sm:$0xff]  }
 0x83e   : > { %v35880_v17 = vadd.f32 %v19642_v1, %v19602_v52  ;;  %19937 = vmatpush1.bf16.msra.mxu0 %v28076_v43  ;;  %19968 = vmatprep.mubr.bf16.mxu0 %v33264_v38  ;;  %v28102_v52 = vld [vmem:[%s37924_s3 + $0x7bc] ss:$28 sps:$4 sm:$0xff]   ;;  %v28112_v43 = vld [vmem:[%s37924_s3 + $0x748] ss:$28 sps:$4 sm:$0xff]  }
 0x83f   : > { %19924 = vmatpush2.bf16.msra.mxu1 %v28073_v34  ;;  %v19644_v27 = vpop.f32.mrf.mxu0  ;;  %19938 = vmatprep.subr.bf16.mxu0 %v28084_v10  ;;  %v28114_v34 = vld [vmem:[%s37924_s3 + $0x74c] ss:$28 sps:$4 sm:$0xff]   ;;  %v28120_v10 = vld [vmem:[%s37924_s3 + $0x714] ss:$28 sps:$4 sm:$0xff]   ;;  %v28115_v1 = vld [vmem:[%s37924_s3 + $0xb00] ss:$28 sps:$4 sm:$0xff]  }
 0x840   : > { %19925 = vmatprep.subr.bf16.mxu1 %v28081_v63  ;;  %v35892_v12 = vadd.f32 %v19644_v27, %v19604_v16  ;;  %v28103_v16 = vld [vmem:[%s37924_s3 + $0xb70] ss:$28 sps:$4 sm:$0xff]   ;;  %v28117_v63 = vld [vmem:[%s37924_s3 + $0xb04] ss:$28 sps:$4 sm:$0xff]  }
 0x841   : > { %v19646_v7 = vpop.f32.mrf.mxu0  ;;  %v28121_v27 = vld [vmem:[%s37924_s3 + $0xac8] ss:$28 sps:$4 sm:$0xff]  }
 0x842   : > { %19939 = vmatpush1.bf16.msra.mxu0 %v28082_v49  ;;  %v28123_v49 = vld [vmem:[%s37924_s3 + $0xacc] ss:$28 sps:$4 sm:$0xff]   ;;  %v28129_v7 = vld [vmem:[%s37924_s3 + $0xa94] ss:$28 sps:$4 sm:$0xff]  }
 0x843   : > { %19926 = vmatpush2.bf16.msra.mxu1 %v28079_v33  ;;  %v19647_v32 = vpop.f32.mrf.mxu0  ;;  %19940 = vmatprep.subr.bf16.mxu0 %v28090_v45  ;;  %v28118_v33 = vld [vmem:[%s37924_s3 + $0x710] ss:$28 sps:$4 sm:$0xff]   ;;  %v28124_v45 = vld [vmem:[%s37924_s3 + $0xa58] ss:$28 sps:$4 sm:$0xff]  }
 0x844   : > { %19977 = vmatprep.subr.bf16.mxu1 %v28087_v22  ;;  %v28126_v22 = vld [vmem:[%s37924_s3 + $0xa5c] ss:$28 sps:$4 sm:$0xff]  }
 0x845   : > { %v28135_v32 = vld [vmem:[%s37924_s3 + $0xddc] ss:$28 sps:$4 sm:$0xff]  }
 0x846   : > { %19928 = vmatmul.mubr.bf16.vlgmr.msra.gmra.mxu1 %v33350_v24  ;;  %19941 = vmatpush1.bf16.msra.mxu0 %v28088_v19  ;;  %v28127_v19 = vld [vmem:[%s37924_s3 + $0xa90] ss:$28 sps:$4 sm:$0xff]  }
 0x847   : > { %19978 = vmatpush1.bf16.msra.mxu1 %v28085_v8  ;;  %20009 = vmatprep.mubr.bf16.mxu1 %v33358_v29  ;;  %v28132_v8 = vld [vmem:[%s37924_s3 + $0xa24] ss:$28 sps:$4 sm:$0xff]  }
 0x848   : > { %19979 = vmatprep.subr.bf16.mxu1 %v28093_v54  ;;  %19942 = vmatprep.subr.bf16.mxu0 %v28096_v60  ;;  %v28130_v54 = vld [vmem:[%s37924_s3 + $0xa20] ss:$28 sps:$4 sm:$0xff]   ;;  %v28138_v60 = vld [vmem:[%s37924_s3 + $0x9ec] ss:$28 sps:$4 sm:$0xff]  }
 0x84a   : > { %19943 = vmatpush1.bf16.msra.mxu0 %v28094_v40  ;;  %v28136_v40 = vld [vmem:[%s37924_s3 + $0x9e8] ss:$28 sps:$4 sm:$0xff]  }
 0x84b   : > { %19980 = vmatpush1.bf16.msra.mxu1 %v28091_v9  ;;  %19944 = vmatprep.subr.bf16.mxu0 %v28102_v52  ;;  %v28133_v9 = vld [vmem:[%s37924_s3 + $0xdd8] ss:$28 sps:$4 sm:$0xff]  }
 0x84c   : > { %19981 = vmatprep.subr.bf16.mxu1 %v28099_v57  ;;  %v28141_v57 = vld [vmem:[%s37924_s3 + $0xda4] ss:$28 sps:$4 sm:$0xff]   ;;  %v28144_v52 = vld [vmem:[%s37924_s3 + $0x9b4] ss:$28 sps:$4 sm:$0xff]  }
 0x84e   : > { %19945 = vmatpush1.bf16.msra.mxu0 %v28100_v41  ;;  %v28142_v41 = vld [vmem:[%s37924_s3 + $0x9b0] ss:$28 sps:$4 sm:$0xff]  }
 0x84f   : > { %19982 = vmatpush1.bf16.msra.mxu1 %v28097_v21  ;;  %19946 = vmatprep.subr.bf16.mxu0 %v28108_v20  ;;  %v28139_v21 = vld [vmem:[%s37924_s3 + $0xda0] ss:$28 sps:$4 sm:$0xff]  }
 0x850   : > { %19983 = vmatprep.subr.bf16.mxu1 %v28105_v61  ;;  %v28147_v61 = vld [vmem:[%s37924_s3 + $0xd6c] ss:$28 sps:$4 sm:$0xff]   ;;  %v28150_v20 = vld [vmem:[%s37924_s3 + $0x97c] ss:$28 sps:$4 sm:$0xff]  }
 0x852   : > { %19947 = vmatpush1.bf16.msra.mxu0 %v28106_v2  ;;  %v28148_v2 = vld [vmem:[%s37924_s3 + $0x978] ss:$28 sps:$4 sm:$0xff]  }
 0x853   : > { %19984 = vmatpush1.bf16.msra.mxu1 %v28103_v16  ;;  %19948 = vmatprep.subr.bf16.mxu0 %v28114_v34  ;;  %v28145_v16 = vld [vmem:[%s37924_s3 + $0xd68] ss:$28 sps:$4 sm:$0xff]  }
 0x854   : > { %19985 = vmatprep.subr.bf16.mxu1 %v28111_v14  ;;  %v28153_v14 = vld [vmem:[%s37924_s3 + $0xd34] ss:$28 sps:$4 sm:$0xff]   ;;  %v28156_v34 = vld [vmem:[%s37924_s3 + $0x944] ss:$28 sps:$4 sm:$0xff]  }
 0x856   : > { %19949 = vmatpush1.bf16.msra.mxu0 %v28112_v43  ;;  %v28154_v43 = vld [vmem:[%s37924_s3 + $0x940] ss:$28 sps:$4 sm:$0xff]  }
 0x857   : > { %19986 = vmatpush1.bf16.msra.mxu1 %v28109_v51  ;;  %19950 = vmatprep.subr.bf16.mxu0 %v28120_v10  ;;  %v28151_v51 = vld [vmem:[%s37924_s3 + $0xd30] ss:$28 sps:$4 sm:$0xff]  }
 0x858   : > { %19987 = vmatprep.subr.bf16.mxu1 %v28117_v63  ;;  %v28159_v63 = vld [vmem:[%s37924_s3 + $0xcfc] ss:$28 sps:$4 sm:$0xff]   ;;  %v28162_v10 = vld [vmem:[%s37924_s3 + $0x90c] ss:$28 sps:$4 sm:$0xff]  }
 0x85a   : > { %19951 = vmatpush1.bf16.msra.mxu0 %v28118_v33  ;;  %v28160_v33 = vld [vmem:[%s37924_s3 + $0x908] ss:$28 sps:$4 sm:$0xff]  }
 0x85b   : > { %19988 = vmatpush1.bf16.msra.mxu1 %v28115_v1  ;;  %19952 = vmatprep.subr.bf16.mxu0 %v28126_v22  ;;  %v28157_v1 = vld [vmem:[%s37924_s3 + $0xcf8] ss:$28 sps:$4 sm:$0xff]  }
 0x85c   : > { %19989 = vmatprep.subr.bf16.mxu1 %v28123_v49  ;;  %v28165_v49 = vld [vmem:[%s37924_s3 + $0xcc4] ss:$28 sps:$4 sm:$0xff]   ;;  %v28168_v22 = vld [vmem:[%s37924_s3 + $0x8d4] ss:$28 sps:$4 sm:$0xff]  }
 0x85e   : > { %19953 = vmatpush2.bf16.msra.mxu0 %v28124_v45 }
 0x85f   : > { %19990 = vmatpush1.bf16.msra.mxu1 %v28121_v27  ;;  %19954 = vmatprep.subr.bf16.mxu0 %v28132_v8 }
 0x860   : > { %19991 = vmatprep.subr.bf16.mxu1 %v28129_v7  ;;  %v28163_v7 = vld [vmem:[%s37924_s3 + $0xcc0] ss:$28 sps:$4 sm:$0xff]  }
 0x862   : > { %19955 = vmatpush2.bf16.msra.mxu0 %v28130_v54  ;;  %v28171_v54 = vld [vmem:[%s37924_s3 + $0xc8c] ss:$28 sps:$4 sm:$0xff]  }
 0x863   : > { %19992 = vmatpush1.bf16.msra.mxu1 %v28127_v19  ;;  %19956 = vmatprep.subr.bf16.mxu0 %v28138_v60  ;;  %v28166_v19 = vld [vmem:[%s37924_s3 + $0x8d0] ss:$28 sps:$4 sm:$0xff]  }
 0x864   : > { %19993 = vmatprep.subr.bf16.mxu1 %v28135_v32 }
 0x866   : > { %19957 = vmatpush2.bf16.msra.mxu0 %v28136_v40 }
 0x867   : > { %19994 = vmatpush2.bf16.msra.mxu1 %v28133_v9  ;;  %19958 = vmatprep.subr.bf16.mxu0 %v28144_v52  ;;  %v28169_v9 = vld [vmem:[%s37924_s3 + $0xc88] ss:$28 sps:$4 sm:$0xff]  }
 0x868   : > { %19995 = vmatprep.subr.bf16.mxu1 %v28141_v57  ;;  %v28172_v57 = vld [vmem:[%s37924_s3 + $0xf98] ss:$28 sps:$4 sm:$0xff]   ;;  %v28180_v52 = vld [vmem:[%s37924_s3 + $0xf64] ss:$28 sps:$4 sm:$0xff]  }
 0x86a   : > { %19959 = vmatpush2.bf16.msra.mxu0 %v28142_v41  ;;  %v28175_v41 = vld [vmem:[%s37924_s3 + $0xc50] ss:$28 sps:$4 sm:$0xff]  }
 0x86b   : > { %19996 = vmatpush2.bf16.msra.mxu1 %v28139_v21  ;;  %19960 = vmatprep.subr.bf16.mxu0 %v28150_v20  ;;  %v28178_v20 = vld [vmem:[%s37924_s3 + $0xf60] ss:$28 sps:$4 sm:$0xff]  }
 0x86c   : > { %19997 = vmatprep.subr.bf16.mxu1 %v28147_v61 }
 0x86e   : > { %19961 = vmatpush2.bf16.msra.mxu0 %v28148_v2 }
 0x86f   : > { %19998 = vmatpush2.bf16.msra.mxu1 %v28145_v16  ;;  %19962 = vmatprep.subr.bf16.mxu0 %v28156_v34  ;;  %v28183_v16 = vld [vmem:[%s37924_s3 + $0x131c] ss:$28 sps:$4 sm:$0xff]  }
 0x870   : > { %19999 = vmatprep.subr.bf16.mxu1 %v28153_v14  ;;  %v28186_v14 = vld [vmem:[%s37924_s3 + $0xf2c] ss:$28 sps:$4 sm:$0xff]  }
 0x872   : > { %19963 = vmatpush2.bf16.msra.mxu0 %v28154_v43  ;;  %v28181_v43 = vld [vmem:[%s37924_s3 + $0x1318] ss:$28 sps:$4 sm:$0xff]  }
 0x873   : > { %20000 = vmatpush2.bf16.msra.mxu1 %v28151_v51  ;;  %19964 = vmatprep.subr.bf16.mxu0 %v28162_v10  ;;  %v28189_v10 = vld [vmem:[%s37924_s3 + $0x12e4] ss:$28 sps:$4 sm:$0xff]  }
 0x874   : > { %20001 = vmatprep.subr.bf16.mxu1 %v28159_v63  ;;  %v28184_v63 = vld [vmem:[%s37924_s3 + $0xf28] ss:$28 sps:$4 sm:$0xff]  }
 0x876   : > { %v19683_v27 = vpop.f32.mrf.mxu1  ;;  %19965 = vmatpush2.bf16.msra.mxu0 %v28160_v33  ;;  %v28192_v33 = vld [vmem:[%s37924_s3 + $0xef4] ss:$28 sps:$4 sm:$0xff]  }
 0x877   : > { %v19684_v45 = vadd.f32 %v19683_v27, %v35880_v17  ;;  %20002 = vmatpush2.bf16.msra.mxu1 %v28157_v1  ;;  %19966 = vmatprep.subr.bf16.mxu0 %v28168_v22  ;;  %v28174_v17 = vld [vmem:[%s37924_s3 + $0xf9c] ss:$28 sps:$4 sm:$0xff]   ;;  %v28190_v22 = vld [vmem:[%s37924_s3 + $0xef0] ss:$28 sps:$4 sm:$0xff]  }
 0x878   : > { %v19685_v8 = vpop.f32.mrf.mxu1  ;;  %20003 = vmatprep.subr.bf16.mxu1 %v28165_v49  ;;  %v28187_v49 = vld [vmem:[%s37924_s3 + $0x12e0] ss:$28 sps:$4 sm:$0xff]   ;;  %v28195_v27 = vld [vmem:[%s37924_s3 + $0x12ac] ss:$28 sps:$4 sm:$0xff]  }
 0x879   : > { %v19686_v32 = vadd.f32 %v19685_v8, %v35892_v12  ;;  %v28177_v12 = vld [vmem:[%s37924_s3 + $0xc54] ss:$28 sps:$4 sm:$0xff]  }
 0x87a   : > { %v19687_v60 = vpop.f32.mrf.mxu1  ;;  %19967 = vmatpush2.bf16.msra.mxu0 %v28166_v19  ;;  %v28196_v8 = vld [vmem:[%s37924_s3 + $0xeb8] ss:$28 sps:$4 sm:$0xff]  }
 0x87b   : > { %20004 = vmatpush2.bf16.msra.mxu1 %v28163_v7  ;;  %20018 = vmatprep.subr.bf16.mxu0 %v28174_v17  ;;  %v28193_v7 = vld [vmem:[%s37924_s3 + $0x12a8] ss:$28 sps:$4 sm:$0xff]   ;;  %v28201_v19 = vld [vmem:[%s37924_s3 + $0x1274] ss:$28 sps:$4 sm:$0xff]   ;;  %v28202_v17 = vld [vmem:[%s37924_s3 + $0xe80] ss:$28 sps:$4 sm:$0xff]  }
 0x87c   : > { %v19688_v40 = vpop.f32.mrf.mxu1  ;;  %20005 = vmatprep.subr.bf16.mxu1 %v28171_v54  ;;  %v28204_v54 = vld [vmem:[%s37924_s3 + $0xe84] ss:$28 sps:$4 sm:$0xff]   ;;  %v28207_v60 = vld [vmem:[%s37924_s3 + $0x123c] ss:$28 sps:$4 sm:$0xff]  }
 0x87d   : > { %v19724_v21 = vpop.f32.mrf.mxu0  ;;  %19969 = vmatmul.mubr.bf16.vlgmr.msra.gmra.mxu0 %v33476_v62  ;;  %v28205_v40 = vld [vmem:[%s37924_s3 + $0x1238] ss:$28 sps:$4 sm:$0xff]  }
 0x87e   : > { %v36082_v61 = vadd.f32 %v19724_v21, %v19684_v45  ;;  %20019 = vmatpush1.bf16.msra.mxu0 %v28172_v57  ;;  %20050 = vmatprep.mubr.bf16.mxu0 %v33484_v25  ;;  %v28198_v45 = vld [vmem:[%s37924_s3 + $0xebc] ss:$28 sps:$4 sm:$0xff]   ;;  %v28208_v57 = vld [vmem:[%s37924_s3 + $0xe48] ss:$28 sps:$4 sm:$0xff]  }
 0x87f   : > { %20006 = vmatpush2.bf16.msra.mxu1 %v28169_v9  ;;  %v19726_v2 = vpop.f32.mrf.mxu0  ;;  %20020 = vmatprep.subr.bf16.mxu0 %v28180_v52  ;;  %v28210_v9 = vld [vmem:[%s37924_s3 + $0xe4c] ss:$28 sps:$4 sm:$0xff]   ;;  %v28216_v52 = vld [vmem:[%s37924_s3 + $0xe14] ss:$28 sps:$4 sm:$0xff]   ;;  %v28211_v21 = vld [vmem:[%s37924_s3 + $0x1200] ss:$28 sps:$4 sm:$0xff]  }
 0x880   : > { %20007 = vmatprep.subr.bf16.mxu1 %v28177_v12  ;;  %v36094_v34 = vadd.f32 %v19726_v2, %v19686_v32  ;;  %v28199_v32 = vld [vmem:[%s37924_s3 + $0x1270] ss:$28 sps:$4 sm:$0xff]   ;;  %v28213_v12 = vld [vmem:[%s37924_s3 + $0x1204] ss:$28 sps:$4 sm:$0xff]  }
 0x881   : > { %v19728_v51 = vpop.f32.mrf.mxu0  ;;  %v28217_v2 = vld [vmem:[%s37924_s3 + $0x11c8] ss:$28 sps:$4 sm:$0xff]  }
 0x882   : > { %20021 = vmatpush1.bf16.msra.mxu0 %v28178_v20  ;;  %v28219_v20 = vld [vmem:[%s37924_s3 + $0x11cc] ss:$28 sps:$4 sm:$0xff]   ;;  %v28225_v51 = vld [vmem:[%s37924_s3 + $0x1194] ss:$28 sps:$4 sm:$0xff]  }
 0x883   : > { %20008 = vmatpush2.bf16.msra.mxu1 %v28175_v41  ;;  %v19729_v1 = vpop.f32.mrf.mxu0  ;;  %20022 = vmatprep.subr.bf16.mxu0 %v28186_v14  ;;  %v28214_v41 = vld [vmem:[%s37924_s3 + $0xe10] ss:$28 sps:$4 sm:$0xff]   ;;  %v28220_v14 = vld [vmem:[%s37924_s3 + $0x1158] ss:$28 sps:$4 sm:$0xff]  }
 0x884   : > { %20059 = vmatprep.subr.bf16.mxu1 %v28183_v16  ;;  %v28222_v16 = vld [vmem:[%s37924_s3 + $0x115c] ss:$28 sps:$4 sm:$0xff]  }
 0x885   : > { %v28231_v1 = vld [vmem:[%s37924_s3 + $0x14dc] ss:$28 sps:$4 sm:$0xff]  }
 0x886   : > { %20010 = vmatmul.mubr.bf16.vlgmr.msra.gmra.mxu1 %v33569_v58  ;;  %20023 = vmatpush1.bf16.msra.mxu0 %v28184_v63  ;;  %v28223_v63 = vld [vmem:[%s37924_s3 + $0x1190] ss:$28 sps:$4 sm:$0xff]  }
 0x887   : > { %20060 = vmatpush1.bf16.msra.mxu1 %v28181_v43  ;;  %20091 = vmatprep.mubr.bf16.mxu1 %v33577_v39  ;;  %v28228_v43 = vld [vmem:[%s37924_s3 + $0x1124] ss:$28 sps:$4 sm:$0xff]  }
 0x888   : > { %20061 = vmatprep.subr.bf16.mxu1 %v28189_v10  ;;  %20024 = vmatprep.subr.bf16.mxu0 %v28192_v33  ;;  %v28226_v10 = vld [vmem:[%s37924_s3 + $0x1120] ss:$28 sps:$4 sm:$0xff]   ;;  %v28234_v33 = vld [vmem:[%s37924_s3 + $0x10ec] ss:$28 sps:$4 sm:$0xff]  }
 0x88a   : > { %20025 = vmatpush1.bf16.msra.mxu0 %v28190_v22  ;;  %v28232_v22 = vld [vmem:[%s37924_s3 + $0x10e8] ss:$28 sps:$4 sm:$0xff]  }
 0x88b   : > { %20062 = vmatpush1.bf16.msra.mxu1 %v28187_v49  ;;  %20026 = vmatprep.subr.bf16.mxu0 %v28198_v45  ;;  %v28229_v49 = vld [vmem:[%s37924_s3 + $0x14d8] ss:$28 sps:$4 sm:$0xff]  }
 0x88c   : > { %20063 = vmatprep.subr.bf16.mxu1 %v28195_v27  ;;  %v28237_v27 = vld [vmem:[%s37924_s3 + $0x14a4] ss:$28 sps:$4 sm:$0xff]   ;;  %v28240_v45 = vld [vmem:[%s37924_s3 + $0x10b4] ss:$28 sps:$4 sm:$0xff]  }
 0x88e   : > { %20027 = vmatpush1.bf16.msra.mxu0 %v28196_v8  ;;  %v28238_v8 = vld [vmem:[%s37924_s3 + $0x10b0] ss:$28 sps:$4 sm:$0xff]  }
 0x88f   : > { %20064 = vmatpush1.bf16.msra.mxu1 %v28193_v7  ;;  %20028 = vmatprep.subr.bf16.mxu0 %v28204_v54  ;;  %v28235_v7 = vld [vmem:[%s37924_s3 + $0x14a0] ss:$28 sps:$4 sm:$0xff]  }
 0x890   : > { %20065 = vmatprep.subr.bf16.mxu1 %v28201_v19  ;;  %v28243_v19 = vld [vmem:[%s37924_s3 + $0x146c] ss:$28 sps:$4 sm:$0xff]   ;;  %v28246_v54 = vld [vmem:[%s37924_s3 + $0x107c] ss:$28 sps:$4 sm:$0xff]  }
 0x892   : > { %20029 = vmatpush1.bf16.msra.mxu0 %v28202_v17  ;;  %v28244_v17 = vld [vmem:[%s37924_s3 + $0x1078] ss:$28 sps:$4 sm:$0xff]  }
 0x893   : > { %20066 = vmatpush1.bf16.msra.mxu1 %v28199_v32  ;;  %20030 = vmatprep.subr.bf16.mxu0 %v28210_v9  ;;  %v28241_v32 = vld [vmem:[%s37924_s3 + $0x1468] ss:$28 sps:$4 sm:$0xff]  }
 0x894   : > { %20067 = vmatprep.subr.bf16.mxu1 %v28207_v60  ;;  %v28249_v60 = vld [vmem:[%s37924_s3 + $0x1434] ss:$28 sps:$4 sm:$0xff]   ;;  %v28252_v9 = vld [vmem:[%s37924_s3 + $0x1044] ss:$28 sps:$4 sm:$0xff]  }
 0x896   : > { %20031 = vmatpush1.bf16.msra.mxu0 %v28208_v57  ;;  %v28250_v57 = vld [vmem:[%s37924_s3 + $0x1040] ss:$28 sps:$4 sm:$0xff]  }
 0x897   : > { %20068 = vmatpush1.bf16.msra.mxu1 %v28205_v40  ;;  %20032 = vmatprep.subr.bf16.mxu0 %v28216_v52  ;;  %v28247_v40 = vld [vmem:[%s37924_s3 + $0x1430] ss:$28 sps:$4 sm:$0xff]  }
 0x898   : > { %20069 = vmatprep.subr.bf16.mxu1 %v28213_v12  ;;  %v28255_v12 = vld [vmem:[%s37924_s3 + $0x13fc] ss:$28 sps:$4 sm:$0xff]   ;;  %v28258_v52 = vld [vmem:[%s37924_s3 + $0x100c] ss:$28 sps:$4 sm:$0xff]  }
 0x89a   : > { %20033 = vmatpush1.bf16.msra.mxu0 %v28214_v41  ;;  %v28256_v41 = vld [vmem:[%s37924_s3 + $0x1008] ss:$28 sps:$4 sm:$0xff]  }
 0x89b   : > { %20070 = vmatpush1.bf16.msra.mxu1 %v28211_v21  ;;  %20034 = vmatprep.subr.bf16.mxu0 %v28222_v16  ;;  %v28253_v21 = vld [vmem:[%s37924_s3 + $0x13f8] ss:$28 sps:$4 sm:$0xff]  }
 0x89c   : > { %20071 = vmatprep.subr.bf16.mxu1 %v28219_v20  ;;  %v28261_v20 = vld [vmem:[%s37924_s3 + $0x13c4] ss:$28 sps:$4 sm:$0xff]   ;;  %v28264_v16 = vld [vmem:[%s37924_s3 + $0xfd4] ss:$28 sps:$4 sm:$0xff]  }
 0x89e   : > { %20035 = vmatpush2.bf16.msra.mxu0 %v28220_v14 }
 0x89f   : > { %20072 = vmatpush1.bf16.msra.mxu1 %v28217_v2  ;;  %20036 = vmatprep.subr.bf16.mxu0 %v28228_v43 }
 0x8a0   : > { %20073 = vmatprep.subr.bf16.mxu1 %v28225_v51  ;;  %v28259_v51 = vld [vmem:[%s37924_s3 + $0x13c0] ss:$28 sps:$4 sm:$0xff]  }
 0x8a2   : > { %20037 = vmatpush2.bf16.msra.mxu0 %v28226_v10  ;;  %v28267_v10 = vld [vmem:[%s37924_s3 + $0x138c] ss:$28 sps:$4 sm:$0xff]  }
 0x8a3   : > { %20074 = vmatpush1.bf16.msra.mxu1 %v28223_v63  ;;  %20038 = vmatprep.subr.bf16.mxu0 %v28234_v33  ;;  %v28262_v63 = vld [vmem:[%s37924_s3 + $0xfd0] ss:$28 sps:$4 sm:$0xff]  }
 0x8a4   : > { %20075 = vmatprep.subr.bf16.mxu1 %v28231_v1 }
 0x8a6   : > { %20039 = vmatpush2.bf16.msra.mxu0 %v28232_v22 }
 0x8a7   : > { %20076 = vmatpush2.bf16.msra.mxu1 %v28229_v49  ;;  %20040 = vmatprep.subr.bf16.mxu0 %v28240_v45  ;;  %v28265_v49 = vld [vmem:[%s37924_s3 + $0x1388] ss:$28 sps:$4 sm:$0xff]  }
 0x8a8   : > { %20077 = vmatprep.subr.bf16.mxu1 %v28237_v27  ;;  %v28268_v27 = vld [vmem:[%s37924_s3 + $0x1698] ss:$28 sps:$4 sm:$0xff]   ;;  %v28276_v45 = vld [vmem:[%s37924_s3 + $0x1664] ss:$28 sps:$4 sm:$0xff]  }
 0x8aa   : > { %20041 = vmatpush2.bf16.msra.mxu0 %v28238_v8  ;;  %v28271_v8 = vld [vmem:[%s37924_s3 + $0x1350] ss:$28 sps:$4 sm:$0xff]  }
 0x8ab   : > { %20078 = vmatpush2.bf16.msra.mxu1 %v28235_v7  ;;  %20042 = vmatprep.subr.bf16.mxu0 %v28246_v54  ;;  %v28274_v54 = vld [vmem:[%s37924_s3 + $0x1660] ss:$28 sps:$4 sm:$0xff]  }
 0x8ac   : > { %20079 = vmatprep.subr.bf16.mxu1 %v28243_v19 }
 0x8ae   : > { %20043 = vmatpush2.bf16.msra.mxu0 %v28244_v17 }
 0x8af   : > { %20080 = vmatpush2.bf16.msra.mxu1 %v28241_v32  ;;  %20044 = vmatprep.subr.bf16.mxu0 %v28252_v9  ;;  %v28279_v32 = vld [vmem:[%s37924_s3 + $0x1a1c] ss:$28 sps:$4 sm:$0xff]  }
 0x8b0   : > { %20081 = vmatprep.subr.bf16.mxu1 %v28249_v60  ;;  %v28282_v60 = vld [vmem:[%s37924_s3 + $0x162c] ss:$28 sps:$4 sm:$0xff]  }
 0x8b2   : > { %20045 = vmatpush2.bf16.msra.mxu0 %v28250_v57  ;;  %v28277_v57 = vld [vmem:[%s37924_s3 + $0x1a18] ss:$28 sps:$4 sm:$0xff]  }
 0x8b3   : > { %20082 = vmatpush2.bf16.msra.mxu1 %v28247_v40  ;;  %20046 = vmatprep.subr.bf16.mxu0 %v28258_v52  ;;  %v28285_v52 = vld [vmem:[%s37924_s3 + $0x19e4] ss:$28 sps:$4 sm:$0xff]  }
 0x8b4   : > { %20083 = vmatprep.subr.bf16.mxu1 %v28255_v12  ;;  %v28280_v12 = vld [vmem:[%s37924_s3 + $0x1628] ss:$28 sps:$4 sm:$0xff]  }
 0x8b6   : > { %v19765_v2 = vpop.f32.mrf.mxu1  ;;  %20047 = vmatpush2.bf16.msra.mxu0 %v28256_v41  ;;  %v28288_v41 = vld [vmem:[%s37924_s3 + $0x15f4] ss:$28 sps:$4 sm:$0xff]  }
 0x8b7   : > { %v19766_v14 = vadd.f32 %v19765_v2, %v36082_v61  ;;  %20084 = vmatpush2.bf16.msra.mxu1 %v28253_v21  ;;  %20048 = vmatprep.subr.bf16.mxu0 %v28264_v16  ;;  %v28270_v61 = vld [vmem:[%s37924_s3 + $0x169c] ss:$28 sps:$4 sm:$0xff]  }
 0x8b8   : > { %v19767_v43 = vpop.f32.mrf.mxu1  ;;  %20085 = vmatprep.subr.bf16.mxu1 %v28261_v20  ;;  %v28283_v2 = vld [vmem:[%s37924_s3 + $0x19e0] ss:$28 sps:$4 sm:$0xff]  }
 0x8b9   : > { %v19768_v1 = vadd.f32 %v19767_v43, %v36094_v34  ;;  %v28273_v34 = vld [vmem:[%s37924_s3 + $0x1354] ss:$28 sps:$4 sm:$0xff]   ;;  %v28291_v43 = vld [vmem:[%s37924_s3 + $0x19ac] ss:$28 sps:$4 sm:$0xff]  }
 0x8ba   : > { %v19769_v33 = vpop.f32.mrf.mxu1  ;;  %20049 = vmatpush2.bf16.msra.mxu0 %v28262_v63 }
 0x8bb   : > { %20086 = vmatpush2.bf16.msra.mxu1 %v28259_v51  ;;  %20100 = vmatprep.subr.bf16.mxu0 %v28270_v61  ;;  %v28286_v51 = vld [vmem:[%s37924_s3 + $0x15f0] ss:$28 sps:$4 sm:$0xff]   ;;  %v28289_v61 = vld [vmem:[%s37924_s3 + $0x19a8] ss:$28 sps:$4 sm:$0xff]  }
 0x8bc   : > { %v19770_v22 = vpop.f32.mrf.mxu1  ;;  %20087 = vmatprep.subr.bf16.mxu1 %v28267_v10  ;;  %v28294_v10 = vld [vmem:[%s37924_s3 + $0x15bc] ss:$28 sps:$4 sm:$0xff]  }
 0x8bd   : > { %v19806_v7 = vpop.f32.mrf.mxu0  ;;  %20051 = vmatmul.mubr.bf16.vlgmr.msra.gmra.mxu0 %v33704_v5  ;;  %v28297_v22 = vld [vmem:[%s37924_s3 + $0x1974] ss:$28 sps:$4 sm:$0xff]  }
 0x8be   : > { %v19807_v19 = vadd.f32 %v19806_v7, %v19766_v14  ;;  %20101 = vmatpush1.bf16.msra.mxu0 %v28268_v27  ;;  %20132 = vmatprep.mubr.bf16.mxu0 %v33712_v44  ;;  %v28300_v27 = vld [vmem:[%s37924_s3 + $0x1584] ss:$28 sps:$4 sm:$0xff]   ;;  %v28303_v7 = vld [vmem:[%s37924_s3 + $0x193c] ss:$28 sps:$4 sm:$0xff]  }
 0x8bf   : > { %20088 = vmatpush2.bf16.msra.mxu1 %v28265_v49  ;;  %v19808_v17 = vpop.f32.mrf.mxu0  ;;  %20102 = vmatprep.subr.bf16.mxu0 %v28276_v45  ;;  %v28292_v49 = vld [vmem:[%s37924_s3 + $0x15b8] ss:$28 sps:$4 sm:$0xff]   ;;  %v28298_v45 = vld [vmem:[%s37924_s3 + $0x1580] ss:$28 sps:$4 sm:$0xff]  }
 0x8c0   : > { %20089 = vmatprep.subr.bf16.mxu1 %v28273_v34  ;;  %v19809_v9 = vadd.f32 %v19808_v17, %v19768_v1  ;;  %v28295_v34 = vld [vmem:[%s37924_s3 + $0x1970] ss:$28 sps:$4 sm:$0xff]  }
 0x8c1   : > { %v19810_v40 = vpop.f32.mrf.mxu0  ;;  %v28312_v17 = vld [vmem:[%s37924_s3 + $0x1514] ss:$28 sps:$4 sm:$0xff]  }
 0x8c2   : > { %20103 = vmatpush1.bf16.msra.mxu0 %v28274_v54  ;;  %v28304_v54 = vld [vmem:[%s37924_s3 + $0x1548] ss:$28 sps:$4 sm:$0xff]  }
 0x8c3   : > { %20090 = vmatpush2.bf16.msra.mxu1 %v28271_v8  ;;  %v19811_v21 = vpop.f32.mrf.mxu0  ;;  %20104 = vmatprep.subr.bf16.mxu0 %v28282_v60  ;;  %v28306_v8 = vld [vmem:[%s37924_s3 + $0x154c] ss:$28 sps:$4 sm:$0xff]   ;;  %v28307_v60 = vld [vmem:[%s37924_s3 + $0x1900] ss:$28 sps:$4 sm:$0xff]  }
 0x8c4   : > { %20141 = vmatprep.subr.bf16.mxu1 %v28279_v32  ;;  %v28309_v32 = vld [vmem:[%s37924_s3 + $0x1904] ss:$28 sps:$4 sm:$0xff]   ;;  %v28315_v40 = vld [vmem:[%s37924_s3 + $0x18cc] ss:$28 sps:$4 sm:$0xff]   ;;  %v28321_v21 = vld [vmem:[%s37924_s3 + $0x1894] ss:$28 sps:$4 sm:$0xff]  }
 0x8c6   : > { %v19847_v20 = vpop.f32.mrf.mxu1  ;;  %20092 = vmatmul.mubr.bf16.vlgmr.msra.gmra.mxu1 %v33794_v11  ;;  %20105 = vmatpush1.bf16.msra.mxu0 %v28280_v12  ;;  %v28313_v12 = vld [vmem:[%s37924_s3 + $0x18c8] ss:$28 sps:$4 sm:$0xff]  }
 0x8c7   : > { %v36307_v16 = vadd.f32 %v19847_v20, %v19807_v19  ;;  %20142 = vmatpush1.bf16.msra.mxu1 %v28277_v57  ;;  %20173 = vmatprep.mubr.bf16.mxu1 %v33802_v6  ;;  %v28301_v19 = vld [vmem:[%s37924_s3 + $0x1938] ss:$28 sps:$4 sm:$0xff]   ;;  %v28319_v20 = vld [vmem:[%s37924_s3 + $0x1890] ss:$28 sps:$4 sm:$0xff]  }
 0x8c8   : > { %v19849_v14 = vpop.f32.mrf.mxu1  ;;  %20143 = vmatprep.subr.bf16.mxu1 %v28285_v52  ;;  %20106 = vmatprep.subr.bf16.mxu0 %v28288_v41  ;;  %v28318_v57 = vld [vmem:[%s37924_s3 + $0x185c] ss:$28 sps:$4 sm:$0xff]   ;;  %v28324_v41 = vld [vmem:[%s37924_s3 + $0x1824] ss:$28 sps:$4 sm:$0xff]  }
 0x8c9   : > { %v36319_v63 = vadd.f32 %v19849_v14, %v19809_v9  ;;  %v28310_v9 = vld [vmem:[%s37924_s3 + $0x1510] ss:$28 sps:$4 sm:$0xff]   ;;  %v28316_v52 = vld [vmem:[%s37924_s3 + $0x1858] ss:$28 sps:$4 sm:$0xff]  }
 0x8ca   : > { %v19851_v1 = vpop.f32.mrf.mxu1  ;;  %20107 = vmatpush1.bf16.msra.mxu0 %v28286_v51  ;;  %v28327_v14 = vld [vmem:[%s37924_s3 + $0x1bdc] ss:$28 sps:$4 sm:$0xff]   ;;  %v28330_v51 = vld [vmem:[%s37924_s3 + $0x17ec] ss:$28 sps:$4 sm:$0xff]  }
 0x8cb   : > { %20144 = vmatpush1.bf16.msra.mxu1 %v28283_v2  ;;  %20108 = vmatprep.subr.bf16.mxu0 %v28294_v10  ;;  %v28322_v2 = vld [vmem:[%s37924_s3 + $0x1820] ss:$28 sps:$4 sm:$0xff]   ;;  %v28328_v10 = vld [vmem:[%s37924_s3 + $0x17e8] ss:$28 sps:$4 sm:$0xff]  }
 0x8cc   : > { %v19852_v33 = vpop.f32.mrf.mxu1  ;;  %20145 = vmatprep.subr.bf16.mxu1 %v28291_v43  ;;  %v28325_v43 = vld [vmem:[%s37924_s3 + $0x1bd8] ss:$28 sps:$4 sm:$0xff]   ;;  %v28333_v1 = vld [vmem:[%s37924_s3 + $0x1ba4] ss:$28 sps:$4 sm:$0xff]  }
 0x8cd   : > { %v28331_v33 = vld [vmem:[%s37924_s3 + $0x1ba0] ss:$28 sps:$4 sm:$0xff]  }
 0x8ce   : > { %20109 = vmatpush1.bf16.msra.mxu0 %v28292_v49  ;;  %v28334_v49 = vld [vmem:[%s37924_s3 + $0x17b0] ss:$28 sps:$4 sm:$0xff]  }
 0x8cf   : > { %20146 = vmatpush1.bf16.msra.mxu1 %v28289_v61  ;;  %20110 = vmatprep.subr.bf16.mxu0 %v28300_v27  ;;  %v28336_v61 = vld [vmem:[%s37924_s3 + $0x17b4] ss:$28 sps:$4 sm:$0xff]   ;;  %v28342_v27 = vld [vmem:[%s37924_s3 + $0x177c] ss:$28 sps:$4 sm:$0xff]  }
 0x8d0   : > { %20147 = vmatprep.subr.bf16.mxu1 %v28297_v22  ;;  %v28339_v22 = vld [vmem:[%s37924_s3 + $0x1b6c] ss:$28 sps:$4 sm:$0xff]  }
 0x8d2   : > { %20111 = vmatpush1.bf16.msra.mxu0 %v28298_v45  ;;  %v28340_v45 = vld [vmem:[%s37924_s3 + $0x1778] ss:$28 sps:$4 sm:$0xff]  }
 0x8d3   : > { %20148 = vmatpush1.bf16.msra.mxu1 %v28295_v34  ;;  %20112 = vmatprep.subr.bf16.mxu0 %v28306_v8  ;;  %v28337_v34 = vld [vmem:[%s37924_s3 + $0x1b68] ss:$28 sps:$4 sm:$0xff]  }
 0x8d4   : > { %20149 = vmatprep.subr.bf16.mxu1 %v28303_v7  ;;  %v28345_v7 = vld [vmem:[%s37924_s3 + $0x1b34] ss:$28 sps:$4 sm:$0xff]   ;;  %v28348_v8 = vld [vmem:[%s37924_s3 + $0x1744] ss:$28 sps:$4 sm:$0xff]  }
 0x8d6   : > { %20113 = vmatpush1.bf16.msra.mxu0 %v28304_v54  ;;  %v28346_v54 = vld [vmem:[%s37924_s3 + $0x1740] ss:$28 sps:$4 sm:$0xff]  }
 0x8d7   : > { %20150 = vmatpush1.bf16.msra.mxu1 %v28301_v19  ;;  %20114 = vmatprep.subr.bf16.mxu0 %v28312_v17  ;;  %v28343_v19 = vld [vmem:[%s37924_s3 + $0x1b30] ss:$28 sps:$4 sm:$0xff]  }
 0x8d8   : > { %20151 = vmatprep.subr.bf16.mxu1 %v28309_v32  ;;  %v28351_v32 = vld [vmem:[%s37924_s3 + $0x1afc] ss:$28 sps:$4 sm:$0xff]   ;;  %v28354_v17 = vld [vmem:[%s37924_s3 + $0x170c] ss:$28 sps:$4 sm:$0xff]  }
 0x8da   : > { %20115 = vmatpush1.bf16.msra.mxu0 %v28310_v9  ;;  %v28352_v9 = vld [vmem:[%s37924_s3 + $0x1708] ss:$28 sps:$4 sm:$0xff]  }
 0x8db   : > { %20152 = vmatpush1.bf16.msra.mxu1 %v28307_v60  ;;  %20116 = vmatprep.subr.bf16.mxu0 %v28318_v57  ;;  %v28349_v60 = vld [vmem:[%s37924_s3 + $0x1af8] ss:$28 sps:$4 sm:$0xff]  }
 0x8dc   : > { %20153 = vmatprep.subr.bf16.mxu1 %v28315_v40  ;;  %v28357_v40 = vld [vmem:[%s37924_s3 + $0x1ac4] ss:$28 sps:$4 sm:$0xff]   ;;  %v28360_v57 = vld [vmem:[%s37924_s3 + $0x16d4] ss:$28 sps:$4 sm:$0xff]  }
 0x8de   : > { %20117 = vmatpush2.bf16.msra.mxu0 %v28316_v52  ;;  %v28358_v52 = vld [vmem:[%s37924_s3 + $0x16d0] ss:$28 sps:$4 sm:$0xff]  }
 0x8df   : > { %20154 = vmatpush1.bf16.msra.mxu1 %v28313_v12  ;;  %20118 = vmatprep.subr.bf16.mxu0 %v28324_v41  ;;  %v28355_v12 = vld [vmem:[%s37924_s3 + $0x1ac0] ss:$28 sps:$4 sm:$0xff]  }
 0x8e0   : > { %20155 = vmatprep.subr.bf16.mxu1 %v28321_v21  ;;  %v28363_v21 = vld [vmem:[%s37924_s3 + $0x1a8c] ss:$28 sps:$4 sm:$0xff]   ;;  %v28366_v41 = vld [vmem:[%s37924_s3 + $0x1d9c] ss:$28 sps:$4 sm:$0xff]  }
 0x8e2   : > { %20119 = vmatpush2.bf16.msra.mxu0 %v28322_v2  ;;  %v28364_v2 = vld [vmem:[%s37924_s3 + $0x1d98] ss:$28 sps:$4 sm:$0xff]  }
 0x8e3   : > { %20156 = vmatpush1.bf16.msra.mxu1 %v28319_v20  ;;  %20120 = vmatprep.subr.bf16.mxu0 %v28330_v51  ;;  %v28361_v20 = vld [vmem:[%s37924_s3 + $0x1a88] ss:$28 sps:$4 sm:$0xff]  }
 0x8e4   : > { %20157 = vmatprep.subr.bf16.mxu1 %v28327_v14  ;;  %v28369_v14 = vld [vmem:[%s37924_s3 + $0x1a54] ss:$28 sps:$4 sm:$0xff]   ;;  %v28372_v51 = vld [vmem:[%s37924_s3 + $0x1d64] ss:$28 sps:$4 sm:$0xff]  }
 0x8e6   : > { %20121 = vmatpush2.bf16.msra.mxu0 %v28328_v10  ;;  %v28367_v10 = vld [vmem:[%s37924_s3 + $0x1a50] ss:$28 sps:$4 sm:$0xff]  }
 0x8e7   : > { %20158 = vmatpush2.bf16.msra.mxu1 %v28325_v43  ;;  %20122 = vmatprep.subr.bf16.mxu0 %v28336_v61  ;;  %v28375_v61 = vld [vmem:[%s37924_s3 + $0x211c] ss:$28 sps:$4 sm:$0xff]  }
 0x8e8   : > { %20159 = vmatprep.subr.bf16.mxu1 %v28333_v1  ;;  %v28370_v1 = vld [vmem:[%s37924_s3 + $0x1d60] ss:$28 sps:$4 sm:$0xff]  }
 0x8ea   : > { %20123 = vmatpush2.bf16.msra.mxu0 %v28334_v49 }
 0x8eb   : > { %20160 = vmatpush2.bf16.msra.mxu1 %v28331_v33  ;;  %20124 = vmatprep.subr.bf16.mxu0 %v28342_v27  ;;  %v28937_v33 = vld [vmem:[%s37925_s4] sm:$0x7f]  ;;  %v28378_v27 = vld [vmem:[%s37924_s3 + $0x1d2c] ss:$28 sps:$4 sm:$0xff]  }
 0x8ec   : > { %20161 = vmatprep.subr.bf16.mxu1 %v28339_v22  ;;  %v11712_v49 = vrot.slane %v28937_v33, %v30484_v30  ;;  %v28376_v30 = vld [vmem:[%s37924_s3 + $0x1d28] ss:$28 sps:$4 sm:$0xff]  }
 0x8ee   : > { %20125 = vmatpush2.bf16.msra.mxu0 %v28340_v45 }
 0x8ef   : > { %20162 = vmatpush2.bf16.msra.mxu1 %v28337_v34  ;;  %20126 = vmatprep.subr.bf16.mxu0 %v28348_v8  ;;  %v11716_v34 = vrot.slane %v28937_v33, %v30493_v36  ;;  %v28381_v8 = vld [vmem:[%s37924_s3 + $0x20e4] ss:$28 sps:$4 sm:$0xff]   ;;  %v28384_v36 = vld [vmem:[%s37924_s3 + $0x1cf4] ss:$28 sps:$4 sm:$0xff]   ;;  %v28402_v33 = vld [vmem:[%s37924_s3 + $0x1c4c] ss:$28 sps:$4 sm:$0xff]  }
 0x8f0   : > { %20163 = vmatprep.subr.bf16.mxu1 %v28345_v7  ;;  %v28373_v7 = vld [vmem:[%s37924_s3 + $0x2118] ss:$28 sps:$4 sm:$0xff]  }
 0x8f2   : > { %20127 = vmatpush2.bf16.msra.mxu0 %v28346_v54 }
 0x8f3   : > { %20164 = vmatpush2.bf16.msra.mxu1 %v28343_v19  ;;  %20128 = vmatprep.subr.bf16.mxu0 %v28354_v17 }
 0x8f4   : > { %20165 = vmatprep.subr.bf16.mxu1 %v28351_v32 }
 0x8f6   : > { %20129 = vmatpush2.bf16.msra.mxu0 %v28352_v9  ;;  %v28379_v9 = vld [vmem:[%s37924_s3 + $0x20e0] ss:$28 sps:$4 sm:$0xff]  }
 0x8f7   : > { %20166 = vmatpush2.bf16.msra.mxu1 %v28349_v60  ;;  %20130 = vmatprep.subr.bf16.mxu0 %v28360_v57  ;;  %v28382_v57 = vld [vmem:[%s37924_s3 + $0x1cf0] ss:$28 sps:$4 sm:$0xff]  }
 0x8f8   : > { %20167 = vmatprep.subr.bf16.mxu1 %v28357_v40 }
 0x8fa   : > { %20131 = vmatpush2.bf16.msra.mxu0 %v28358_v52 }
 0x8fb   : > { %20168 = vmatpush2.bf16.msra.mxu1 %v28355_v12  ;;  %20182 = vmatprep.subr.bf16.mxu0 %v28366_v41  ;;  %v28387_v12 = vld [vmem:[%s37924_s3 + $0x20ac] ss:$28 sps:$4 sm:$0xff]  }
 0x8fc   : > { %20169 = vmatprep.subr.bf16.mxu1 %v28363_v21  ;;  %v28390_v21 = vld [vmem:[%s37924_s3 + $0x1cbc] ss:$28 sps:$4 sm:$0xff]  }
 0x8fd   : > { %v19888_v43 = vpop.f32.mrf.mxu0  ;;  %20133 = vmatmul.mubr.bf16.vlgmr.msra.gmra.mxu0 %v33923_v46 }
 0x8fe   : > { %20183 = vmatpush1.bf16.msra.mxu0 %v28364_v2  ;;  %20214 = vmatprep.mubr.bf16.mxu0 %v33928_v4  ;;  %v19889_v19 = vadd.f32 %v19888_v43, %v11712_v49  ;;  %v28396_v43 = vld [vmem:[%s37924_s3 + $0x1c84] ss:$28 sps:$4 sm:$0xff]   ;;  %v28397_v49 = vld [vmem:[%s37924_s3 + $0x2038] ss:$28 sps:$4 sm:$0xff]  }
 0x8ff   : > { %20170 = vmatpush2.bf16.msra.mxu1 %v28361_v20  ;;  %v19890_v22 = vpop.f32.mrf.mxu0  ;;  %20184 = vmatprep.subr.bf16.mxu0 %v28372_v51  ;;  %v28385_v20 = vld [vmem:[%s37924_s3 + $0x20a8] ss:$28 sps:$4 sm:$0xff]   ;;  %v28393_v51 = vld [vmem:[%s37924_s3 + $0x2074] ss:$28 sps:$4 sm:$0xff]  }
 0x900   : > { %20171 = vmatprep.subr.bf16.mxu1 %v28369_v14  ;;  %v19891_v17 = vadd.f32 %v19890_v22, %v11716_v34  ;;  %v28388_v14 = vld [vmem:[%s37924_s3 + $0x1cb8] ss:$28 sps:$4 sm:$0xff]   ;;  %v28400_v22 = vld [vmem:[%s37924_s3 + $0x1c48] ss:$28 sps:$4 sm:$0xff]  }
 0x901   : > { %v19892_v45 = vpop.f32.mrf.mxu0  ;;  %v28408_v34 = vld [vmem:[%s37924_s3 + $0x1c14] ss:$28 sps:$4 sm:$0xff]  }
 0x902   : > { %20185 = vmatpush1.bf16.msra.mxu0 %v28370_v1  ;;  %v28394_v1 = vld [vmem:[%s37924_s3 + $0x1c80] ss:$28 sps:$4 sm:$0xff]  }
 0x903   : > { %20172 = vmatpush2.bf16.msra.mxu1 %v28367_v10  ;;  %v19893_v54 = vpop.f32.mrf.mxu0  ;;  %20186 = vmatprep.subr.bf16.mxu0 %v28378_v27  ;;  %v28391_v10 = vld [vmem:[%s37924_s3 + $0x2070] ss:$28 sps:$4 sm:$0xff]   ;;  %v28405_v27 = vld [vmem:[%s37924_s3 + $0x2004] ss:$28 sps:$4 sm:$0xff]  }
 0x904   : > { %20223 = vmatprep.subr.bf16.mxu1 %v28375_v61  ;;  %v28399_v61 = vld [vmem:[%s37924_s3 + $0x203c] ss:$28 sps:$4 sm:$0xff]  }
 0x905   : > { %v28403_v45 = vld [vmem:[%s37924_s3 + $0x2000] ss:$28 sps:$4 sm:$0xff]   ;;  %v28412_v54 = vld [vmem:[%s37924_s3 + $0x1f58] ss:$28 sps:$4 sm:$0xff]  }
 0x906   : > { %v19929_v32 = vpop.f32.mrf.mxu1  ;;  %20174 = vmatmul.mubr.bf16.vlgmr.msra.gmra.mxu1 %v34011_v3  ;;  %20187 = vmatpush1.bf16.msra.mxu0 %v28376_v30  ;;  %v28411_v30 = vld [vmem:[%s37924_s3 + $0x1fcc] ss:$28 sps:$4 sm:$0xff]  }
 0x907   : > { %v36512_v60 = vadd.f32 %v19929_v32, %v19889_v19  ;;  %20224 = vmatpush1.bf16.msra.mxu1 %v28373_v7  ;;  %20255 = vmatprep.mubr.bf16.mxu1 %v34019_v18  ;;  %v28406_v7 = vld [vmem:[%s37924_s3 + $0x1c10] ss:$28 sps:$4 sm:$0xff]   ;;  %v28409_v19 = vld [vmem:[%s37924_s3 + $0x1fc8] ss:$28 sps:$4 sm:$0xff]  }
 0x908   : > { %v19931_v40 = vpop.f32.mrf.mxu1  ;;  %20225 = vmatprep.subr.bf16.mxu1 %v28381_v8  ;;  %20188 = vmatprep.subr.bf16.mxu0 %v28384_v36  ;;  %v28414_v8 = vld [vmem:[%s37924_s3 + $0x1f5c] ss:$28 sps:$4 sm:$0xff]   ;;  %v28417_v36 = vld [vmem:[%s37924_s3 + $0x1f94] ss:$28 sps:$4 sm:$0xff]   ;;  %v28420_v32 = vld [vmem:[%s37924_s3 + $0x1f24] ss:$28 sps:$4 sm:$0xff]  }
 0x909   : > { %v36524_v52 = vadd.f32 %v19931_v40, %v19891_v17  ;;  %v28415_v17 = vld [vmem:[%s37924_s3 + $0x1f90] ss:$28 sps:$4 sm:$0xff]   ;;  %v28423_v40 = vld [vmem:[%s37924_s3 + $0x22dc] ss:$28 sps:$4 sm:$0xff]  }
 0x90a   : > { %v19933_v41 = vpop.f32.mrf.mxu1  ;;  %20189 = vmatpush1.bf16.msra.mxu0 %v28382_v57  ;;  %v28426_v57 = vld [vmem:[%s37924_s3 + $0x1eec] ss:$28 sps:$4 sm:$0xff]  }
 0x90b   : > { %20226 = vmatpush1.bf16.msra.mxu1 %v28379_v9  ;;  %20190 = vmatprep.subr.bf16.mxu0 %v28390_v21  ;;  %v28418_v9 = vld [vmem:[%s37924_s3 + $0x1f20] ss:$28 sps:$4 sm:$0xff]   ;;  %v28424_v21 = vld [vmem:[%s37924_s3 + $0x1ee8] ss:$28 sps:$4 sm:$0xff]  }
 0x90c   : > { %v19934_v2 = vpop.f32.mrf.mxu1  ;;  %20227 = vmatprep.subr.bf16.mxu1 %v28387_v12  ;;  %v28421_v12 = vld [vmem:[%s37924_s3 + $0x22d8] ss:$28 sps:$4 sm:$0xff]   ;;  %v28429_v41 = vld [vmem:[%s37924_s3 + $0x22a4] ss:$28 sps:$4 sm:$0xff]  }
 0x90d   : > { %v28427_v2 = vld [vmem:[%s37924_s3 + $0x22a0] ss:$28 sps:$4 sm:$0xff]  }
 0x90e   : > { %20191 = vmatpush1.bf16.msra.mxu0 %v28388_v14  ;;  %v28430_v14 = vld [vmem:[%s37924_s3 + $0x1eb0] ss:$28 sps:$4 sm:$0xff]  }
 0x90f   : > { %20228 = vmatpush1.bf16.msra.mxu1 %v28385_v20  ;;  %20192 = vmatprep.subr.bf16.mxu0 %v28396_v43  ;;  %v28432_v20 = vld [vmem:[%s37924_s3 + $0x1eb4] ss:$28 sps:$4 sm:$0xff]   ;;  %v28438_v43 = vld [vmem:[%s37924_s3 + $0x1e7c] ss:$28 sps:$4 sm:$0xff]  }
 0x910   : > { %20229 = vmatprep.subr.bf16.mxu1 %v28393_v51  ;;  %v28435_v51 = vld [vmem:[%s37924_s3 + $0x226c] ss:$28 sps:$4 sm:$0xff]  }
 0x912   : > { %20193 = vmatpush1.bf16.msra.mxu0 %v28394_v1  ;;  %v28436_v1 = vld [vmem:[%s37924_s3 + $0x1e78] ss:$28 sps:$4 sm:$0xff]  }
 0x913   : > { %20230 = vmatpush1.bf16.msra.mxu1 %v28391_v10  ;;  %20194 = vmatprep.subr.bf16.mxu0 %v28402_v33  ;;  %v28433_v10 = vld [vmem:[%s37924_s3 + $0x2268] ss:$28 sps:$4 sm:$0xff]  }
 0x914   : > { %20231 = vmatprep.subr.bf16.mxu1 %v28399_v61  ;;  %v28441_v61 = vld [vmem:[%s37924_s3 + $0x2234] ss:$28 sps:$4 sm:$0xff]   ;;  %v28444_v33 = vld [vmem:[%s37924_s3 + $0x1e44] ss:$28 sps:$4 sm:$0xff]  }
 0x916   : > { %20195 = vmatpush1.bf16.msra.mxu0 %v28400_v22  ;;  %v28442_v22 = vld [vmem:[%s37924_s3 + $0x1e40] ss:$28 sps:$4 sm:$0xff]  }
 0x917   : > { %20232 = vmatpush1.bf16.msra.mxu1 %v28397_v49  ;;  %20196 = vmatprep.subr.bf16.mxu0 %v28408_v34  ;;  %v28439_v49 = vld [vmem:[%s37924_s3 + $0x2230] ss:$28 sps:$4 sm:$0xff]  }
 0x918   : > { %20233 = vmatprep.subr.bf16.mxu1 %v28405_v27  ;;  %v28447_v27 = vld [vmem:[%s37924_s3 + $0x21fc] ss:$28 sps:$4 sm:$0xff]   ;;  %v28450_v34 = vld [vmem:[%s37924_s3 + $0x1e0c] ss:$28 sps:$4 sm:$0xff]  }
 0x91a   : > { %20197 = vmatpush1.bf16.msra.mxu0 %v28406_v7  ;;  %v28448_v7 = vld [vmem:[%s37924_s3 + $0x1e08] ss:$28 sps:$4 sm:$0xff]  }
 0x91b   : > { %20234 = vmatpush1.bf16.msra.mxu1 %v28403_v45  ;;  %20198 = vmatprep.subr.bf16.mxu0 %v28414_v8  ;;  %v28445_v45 = vld [vmem:[%s37924_s3 + $0x21f8] ss:$28 sps:$4 sm:$0xff]  }
 0x91c   : > { %20235 = vmatprep.subr.bf16.mxu1 %v28411_v30  ;;  %v28453_v30 = vld [vmem:[%s37924_s3 + $0x21c4] ss:$28 sps:$4 sm:$0xff]   ;;  %v28456_v8 = vld [vmem:[%s37924_s3 + $0x1dd4] ss:$28 sps:$4 sm:$0xff]  }
 0x91e   : > { %20199 = vmatpush2.bf16.msra.mxu0 %v28412_v54  ;;  %v28454_v54 = vld [vmem:[%s37924_s3 + $0x1dd0] ss:$28 sps:$4 sm:$0xff]  }
 0x91f   : > { %20236 = vmatpush1.bf16.msra.mxu1 %v28409_v19  ;;  %20200 = vmatprep.subr.bf16.mxu0 %v28420_v32  ;;  %v28451_v19 = vld [vmem:[%s37924_s3 + $0x21c0] ss:$28 sps:$4 sm:$0xff]  }
 0x920   : > { %20237 = vmatprep.subr.bf16.mxu1 %v28417_v36  ;;  %v28459_v36 = vld [vmem:[%s37924_s3 + $0x218c] ss:$28 sps:$4 sm:$0xff]   ;;  %v28462_v32 = vld [vmem:[%s37924_s3 + $0x249c] ss:$28 sps:$4 sm:$0xff]  }
 0x922   : > { %20201 = vmatpush2.bf16.msra.mxu0 %v28418_v9  ;;  %v28460_v9 = vld [vmem:[%s37924_s3 + $0x2498] ss:$28 sps:$4 sm:$0xff]  }
 0x923   : > { %20238 = vmatpush1.bf16.msra.mxu1 %v28415_v17  ;;  %20202 = vmatprep.subr.bf16.mxu0 %v28426_v57  ;;  %v28457_v17 = vld [vmem:[%s37924_s3 + $0x2188] ss:$28 sps:$4 sm:$0xff]  }
 0x924   : > { %20239 = vmatprep.subr.bf16.mxu1 %v28423_v40  ;;  %v28465_v40 = vld [vmem:[%s37924_s3 + $0x2154] ss:$28 sps:$4 sm:$0xff]   ;;  %v28468_v57 = vld [vmem:[%s37924_s3 + $0x2464] ss:$28 sps:$4 sm:$0xff]  }
 0x926   : > { %20203 = vmatpush2.bf16.msra.mxu0 %v28424_v21  ;;  %v28463_v21 = vld [vmem:[%s37924_s3 + $0x2150] ss:$28 sps:$4 sm:$0xff]  }
 0x927   : > { %20240 = vmatpush2.bf16.msra.mxu1 %v28421_v12  ;;  %20204 = vmatprep.subr.bf16.mxu0 %v28432_v20  ;;  %v28466_v20 = vld [vmem:[%s37924_s3 + $0x2460] ss:$28 sps:$4 sm:$0xff]  }
 0x928   : > { %20241 = vmatprep.subr.bf16.mxu1 %v28429_v41 }
 0x92a   : > { %20205 = vmatpush2.bf16.msra.mxu0 %v28430_v14 }
 0x92b   : > { %20242 = vmatpush2.bf16.msra.mxu1 %v28427_v2  ;;  %20206 = vmatprep.subr.bf16.mxu0 %v28438_v43  ;;  %v28471_v2 = vld [vmem:[%s37924_s3 + $0x281c] ss:$28 sps:$4 sm:$0xff]  }
 0x92c   : > { %20243 = vmatprep.subr.bf16.mxu1 %v28435_v51  ;;  %v28474_v51 = vld [vmem:[%s37924_s3 + $0x242c] ss:$28 sps:$4 sm:$0xff]  }
 0x92e   : > { %20207 = vmatpush2.bf16.msra.mxu0 %v28436_v1  ;;  %v28472_v1 = vld [vmem:[%s37924_s3 + $0x2428] ss:$28 sps:$4 sm:$0xff]  }
 0x92f   : > { %20244 = vmatpush2.bf16.msra.mxu1 %v28433_v10  ;;  %20208 = vmatprep.subr.bf16.mxu0 %v28444_v33  ;;  %v28469_v10 = vld [vmem:[%s37924_s3 + $0x2818] ss:$28 sps:$4 sm:$0xff]  }
 0x930   : > { %20245 = vmatprep.subr.bf16.mxu1 %v28441_v61  ;;  %v28477_v61 = vld [vmem:[%s37924_s3 + $0x27e4] ss:$28 sps:$4 sm:$0xff]  }
 0x932   : > { %20209 = vmatpush2.bf16.msra.mxu0 %v28442_v22 }
 0x933   : > { %20246 = vmatpush2.bf16.msra.mxu1 %v28439_v49  ;;  %20210 = vmatprep.subr.bf16.mxu0 %v28450_v34 }
 0x934   : > { %20247 = vmatprep.subr.bf16.mxu1 %v28447_v27  ;;  %v28475_v27 = vld [vmem:[%s37924_s3 + $0x27e0] ss:$28 sps:$4 sm:$0xff]  }
 0x936   : > { %20211 = vmatpush2.bf16.msra.mxu0 %v28448_v7  ;;  %v28483_v7 = vld [vmem:[%s37924_s3 + $0x27ac] ss:$28 sps:$4 sm:$0xff]  }
 0x937   : > { %20248 = vmatpush2.bf16.msra.mxu1 %v28445_v45  ;;  %20212 = vmatprep.subr.bf16.mxu0 %v28456_v8  ;;  %v28478_v45 = vld [vmem:[%s37924_s3 + $0x23f0] ss:$28 sps:$4 sm:$0xff]   ;;  %v28486_v8 = vld [vmem:[%s37924_s3 + $0x23bc] ss:$28 sps:$4 sm:$0xff]  }
 0x938   : > { %20249 = vmatprep.subr.bf16.mxu1 %v28453_v30 }
 0x93a   : > { %20213 = vmatpush2.bf16.msra.mxu0 %v28454_v54  ;;  %v28481_v54 = vld [vmem:[%s37924_s3 + $0x27a8] ss:$28 sps:$4 sm:$0xff]  }
 0x93b   : > { %20250 = vmatpush2.bf16.msra.mxu1 %v28451_v19  ;;  %20264 = vmatprep.subr.bf16.mxu0 %v28462_v32  ;;  %v28484_v32 = vld [vmem:[%s37924_s3 + $0x23b8] ss:$28 sps:$4 sm:$0xff]  }
 0x93c   : > { %20251 = vmatprep.subr.bf16.mxu1 %v28459_v36 }
 0x93d   : > { %v19970_v12 = vpop.f32.mrf.mxu0  ;;  %20215 = vmatmul.mubr.bf16.vlgmr.msra.gmra.mxu0 %v34137_v42 }
 0x93e   : > { %v19971_v41 = vadd.f32 %v19970_v12, %v36512_v60  ;;  %20265 = vmatpush1.bf16.msra.mxu0 %v28460_v9  ;;  %20296 = vmatprep.mubr.bf16.mxu0 %v34145_v59  ;;  %v28492_v9 = vld [vmem:[%s37924_s3 + $0x2384] ss:$28 sps:$4 sm:$0xff]   ;;  %v28495_v12 = vld [vmem:[%s37924_s3 + $0x273c] ss:$28 sps:$4 sm:$0xff]  }
 0x93f   : > { %20252 = vmatpush2.bf16.msra.mxu1 %v28457_v17  ;;  %v19972_v14 = vpop.f32.mrf.mxu0  ;;  %20266 = vmatprep.subr.bf16.mxu0 %v28468_v57  ;;  %v28489_v17 = vld [vmem:[%s37924_s3 + $0x2774] ss:$28 sps:$4 sm:$0xff]   ;;  %v28490_v57 = vld [vmem:[%s37924_s3 + $0x2380] ss:$28 sps:$4 sm:$0xff]  }
 0x940   : > { %20253 = vmatprep.subr.bf16.mxu1 %v28465_v40  ;;  %v19973_v60 = vadd.f32 %v19972_v14, %v36524_v52  ;;  %v28480_v52 = vld [vmem:[%s37924_s3 + $0x23f4] ss:$28 sps:$4 sm:$0xff]  }
 0x941   : > { %v19974_v43 = vpop.f32.mrf.mxu0  ;;  %v28487_v40 = vld [vmem:[%s37924_s3 + $0x2770] ss:$28 sps:$4 sm:$0xff]  }
 0x942   : > { %20267 = vmatpush1.bf16.msra.mxu0 %v28466_v20  ;;  %v28496_v20 = vld [vmem:[%s37924_s3 + $0x2348] ss:$28 sps:$4 sm:$0xff]   ;;  %v28504_v14 = vld [vmem:[%s37924_s3 + $0x2314] ss:$28 sps:$4 sm:$0xff]  }
 0x943   : > { %20254 = vmatpush2.bf16.msra.mxu1 %v28463_v21  ;;  %v19975_v33 = vpop.f32.mrf.mxu0  ;;  %20268 = vmatprep.subr.bf16.mxu0 %v28474_v51  ;;  %v28498_v21 = vld [vmem:[%s37924_s3 + $0x234c] ss:$28 sps:$4 sm:$0xff]   ;;  %v28499_v51 = vld [vmem:[%s37924_s3 + $0x2700] ss:$28 sps:$4 sm:$0xff]  }
 0x944   : > { %20305 = vmatprep.subr.bf16.mxu1 %v28471_v2  ;;  %v28501_v2 = vld [vmem:[%s37924_s3 + $0x2704] ss:$28 sps:$4 sm:$0xff]   ;;  %v28507_v43 = vld [vmem:[%s37924_s3 + $0x26cc] ss:$28 sps:$4 sm:$0xff]   ;;  %v28513_v33 = vld [vmem:[%s37924_s3 + $0x2694] ss:$28 sps:$4 sm:$0xff]  }
 0x946   : > { %v20011_v49 = vpop.f32.mrf.mxu1  ;;  %20256 = vmatmul.mubr.bf16.vlgmr.msra.gmra.mxu1 %v34222_v53  ;;  %20269 = vmatpush1.bf16.msra.mxu0 %v28472_v1  ;;  %v28505_v1 = vld [vmem:[%s37924_s3 + $0x26c8] ss:$28 sps:$4 sm:$0xff]  }
 0x947   : > { %v36714_v22 = vadd.f32 %v20011_v49, %v19971_v41  ;;  %20306 = vmatpush1.bf16.msra.mxu1 %v28469_v10  ;;  %20337 = vmatprep.mubr.bf16.mxu1 %v34230_v15  ;;  %v28493_v41 = vld [vmem:[%s37924_s3 + $0x2738] ss:$28 sps:$4 sm:$0xff]   ;;  %v28511_v49 = vld [vmem:[%s37924_s3 + $0x2690] ss:$28 sps:$4 sm:$0xff]  }
 0x948   : > { %v20013_v34 = vpop.f32.mrf.mxu1  ;;  %20307 = vmatprep.subr.bf16.mxu1 %v28477_v61  ;;  %20270 = vmatprep.subr.bf16.mxu0 %v28480_v52  ;;  %v28510_v10 = vld [vmem:[%s37924_s3 + $0x265c] ss:$28 sps:$4 sm:$0xff]   ;;  %v28516_v52 = vld [vmem:[%s37924_s3 + $0x2624] ss:$28 sps:$4 sm:$0xff]  }
 0x949   : > { %v36726_v30 = vadd.f32 %v20013_v34, %v19973_v60  ;;  %v28502_v60 = vld [vmem:[%s37924_s3 + $0x2310] ss:$28 sps:$4 sm:$0xff]   ;;  %v28508_v61 = vld [vmem:[%s37924_s3 + $0x2658] ss:$28 sps:$4 sm:$0xff]  }
 0x94a   : > { %v20015_v19 = vpop.f32.mrf.mxu1  ;;  %20271 = vmatpush1.bf16.msra.mxu0 %v28478_v45  ;;  %v28519_v34 = vld [vmem:[%s37924_s3 + $0x29dc] ss:$28 sps:$4 sm:$0xff]   ;;  %v28522_v45 = vld [vmem:[%s37924_s3 + $0x25ec] ss:$28 sps:$4 sm:$0xff]  }
 0x94b   : > { %20308 = vmatpush1.bf16.msra.mxu1 %v28475_v27  ;;  %20272 = vmatprep.subr.bf16.mxu0 %v28486_v8  ;;  %v28514_v27 = vld [vmem:[%s37924_s3 + $0x2620] ss:$28 sps:$4 sm:$0xff]   ;;  %v28520_v8 = vld [vmem:[%s37924_s3 + $0x25e8] ss:$28 sps:$4 sm:$0xff]  }
 0x94c   : > { %v20016_v36 = vpop.f32.mrf.mxu1  ;;  %20309 = vmatprep.subr.bf16.mxu1 %v28483_v7  ;;  %v28517_v7 = vld [vmem:[%s37924_s3 + $0x29d8] ss:$28 sps:$4 sm:$0xff]   ;;  %v28525_v19 = vld [vmem:[%s37924_s3 + $0x29a4] ss:$28 sps:$4 sm:$0xff]  }
 0x94d   : > { %v28523_v36 = vld [vmem:[%s37924_s3 + $0x29a0] ss:$28 sps:$4 sm:$0xff]  }
 0x94e   : > { %20273 = vmatpush1.bf16.msra.mxu0 %v28484_v32  ;;  %v28526_v32 = vld [vmem:[%s37924_s3 + $0x25b0] ss:$28 sps:$4 sm:$0xff]  }
 0x94f   : > { %20310 = vmatpush1.bf16.msra.mxu1 %v28481_v54  ;;  %20274 = vmatprep.subr.bf16.mxu0 %v28492_v9  ;;  %v28528_v54 = vld [vmem:[%s37924_s3 + $0x25b4] ss:$28 sps:$4 sm:$0xff]   ;;  %v28534_v9 = vld [vmem:[%s37924_s3 + $0x257c] ss:$28 sps:$4 sm:$0xff]  }
 0x950   : > { %20311 = vmatprep.subr.bf16.mxu1 %v28489_v17  ;;  %v28531_v17 = vld [vmem:[%s37924_s3 + $0x296c] ss:$28 sps:$4 sm:$0xff]  }
 0x952   : > { %20275 = vmatpush1.bf16.msra.mxu0 %v28490_v57  ;;  %v28532_v57 = vld [vmem:[%s37924_s3 + $0x2578] ss:$28 sps:$4 sm:$0xff]  }
 0x953   : > { %20312 = vmatpush1.bf16.msra.mxu1 %v28487_v40  ;;  %20276 = vmatprep.subr.bf16.mxu0 %v28498_v21  ;;  %v28529_v40 = vld [vmem:[%s37924_s3 + $0x2968] ss:$28 sps:$4 sm:$0xff]  }
 0x954   : > { %20313 = vmatprep.subr.bf16.mxu1 %v28495_v12  ;;  %v28537_v12 = vld [vmem:[%s37924_s3 + $0x2934] ss:$28 sps:$4 sm:$0xff]   ;;  %v28540_v21 = vld [vmem:[%s37924_s3 + $0x2544] ss:$28 sps:$4 sm:$0xff]  }
 0x956   : > { %20277 = vmatpush1.bf16.msra.mxu0 %v28496_v20  ;;  %v28538_v20 = vld [vmem:[%s37924_s3 + $0x2540] ss:$28 sps:$4 sm:$0xff]  }
 0x957   : > { %20314 = vmatpush1.bf16.msra.mxu1 %v28493_v41  ;;  %20278 = vmatprep.subr.bf16.mxu0 %v28504_v14  ;;  %v28535_v41 = vld [vmem:[%s37924_s3 + $0x2930] ss:$28 sps:$4 sm:$0xff]  }
 0x958   : > { %20315 = vmatprep.subr.bf16.mxu1 %v28501_v2  ;;  %v28543_v2 = vld [vmem:[%s37924_s3 + $0x28fc] ss:$28 sps:$4 sm:$0xff]   ;;  %v28546_v14 = vld [vmem:[%s37924_s3 + $0x250c] ss:$28 sps:$4 sm:$0xff]  }
 0x95a   : > { %20279 = vmatpush1.bf16.msra.mxu0 %v28502_v60  ;;  %v28544_v60 = vld [vmem:[%s37924_s3 + $0x2508] ss:$28 sps:$4 sm:$0xff]  }
 0x95b   : > { %20316 = vmatpush1.bf16.msra.mxu1 %v28499_v51  ;;  %20280 = vmatprep.subr.bf16.mxu0 %v28510_v10  ;;  %v28541_v51 = vld [vmem:[%s37924_s3 + $0x28f8] ss:$28 sps:$4 sm:$0xff]  }
 0x95c   : > { %20317 = vmatprep.subr.bf16.mxu1 %v28507_v43  ;;  %v28549_v43 = vld [vmem:[%s37924_s3 + $0x28c4] ss:$28 sps:$4 sm:$0xff]   ;;  %v28552_v10 = vld [vmem:[%s37924_s3 + $0x24d4] ss:$28 sps:$4 sm:$0xff]  }
 0x95e   : > { %20281 = vmatpush2.bf16.msra.mxu0 %v28508_v61  ;;  %v28550_v61 = vld [vmem:[%s37924_s3 + $0x24d0] ss:$28 sps:$4 sm:$0xff]  }
 0x95f   : > { %20318 = vmatpush1.bf16.msra.mxu1 %v28505_v1  ;;  %20282 = vmatprep.subr.bf16.mxu0 %v28516_v52  ;;  %v28547_v1 = vld [vmem:[%s37924_s3 + $0x28c0] ss:$28 sps:$4 sm:$0xff]  }
 0x960   : > { %20319 = vmatprep.subr.bf16.mxu1 %v28513_v33  ;;  %v28555_v33 = vld [vmem:[%s37924_s3 + $0x288c] ss:$28 sps:$4 sm:$0xff]   ;;  %v28558_v52 = vld [vmem:[%s37924_s3 + $0x2abc] ss:$28 sps:$4 sm:$0xff]  }
 0x962   : > { %20283 = vmatpush2.bf16.msra.mxu0 %v28514_v27  ;;  %v28556_v27 = vld [vmem:[%s37924_s3 + $0x2ab8] ss:$28 sps:$4 sm:$0xff]  }
 0x963   : > { %20320 = vmatpush1.bf16.msra.mxu1 %v28511_v49  ;;  %20284 = vmatprep.subr.bf16.mxu0 %v28522_v45  ;;  %v28553_v49 = vld [vmem:[%s37924_s3 + $0x2888] ss:$28 sps:$4 sm:$0xff]  }
 0x964   : > { %20321 = vmatprep.subr.bf16.mxu1 %v28519_v34  ;;  %v28561_v34 = vld [vmem:[%s37924_s3 + $0x2854] ss:$28 sps:$4 sm:$0xff]   ;;  %v28564_v45 = vld [vmem:[%s37924_s3 + $0x2a84] ss:$28 sps:$4 sm:$0xff]  }
 0x966   : > { %20285 = vmatpush2.bf16.msra.mxu0 %v28520_v8  ;;  %v28559_v8 = vld [vmem:[%s37924_s3 + $0x2850] ss:$28 sps:$4 sm:$0xff]  }
 0x967   : > { %20322 = vmatpush2.bf16.msra.mxu1 %v28517_v7  ;;  %20286 = vmatprep.subr.bf16.mxu0 %v28528_v54  ;;  %v28562_v54 = vld [vmem:[%s37924_s3 + $0x2a80] ss:$28 sps:$4 sm:$0xff]  }
 0x968   : > { %20323 = vmatprep.subr.bf16.mxu1 %v28525_v19 }
 0x96a   : > { %20287 = vmatpush2.bf16.msra.mxu0 %v28526_v32 }
 0x96b   : > { %20324 = vmatpush2.bf16.msra.mxu1 %v28523_v36  ;;  %20288 = vmatprep.subr.bf16.mxu0 %v28534_v9  ;;  %v28565_v36 = vld [vmem:[%s37924_s3 + $0x360] ss:$28 sps:$4 sm:$0xff]  }
 0x96c   : > { %20325 = vmatprep.subr.bf16.mxu1 %v28531_v17  ;;  %v28568_v17 = vld [vmem:[%s37924_s3 + $0x2a4c] ss:$28 sps:$4 sm:$0xff]  }
 0x96e   : > { %20289 = vmatpush2.bf16.msra.mxu0 %v28532_v57  ;;  %v28566_v57 = vld [vmem:[%s37924_s3 + $0x2a48] ss:$28 sps:$4 sm:$0xff]  }
 0x96f   : > { %20326 = vmatpush2.bf16.msra.mxu1 %v28529_v40  ;;  %20290 = vmatprep.subr.bf16.mxu0 %v28540_v21  ;;  %v28569_v40 = vld [vmem:[%s37924_s3 + $0x1a0] ss:$28 sps:$4 sm:$0xff]  }
 0x970   : > { %20327 = vmatprep.subr.bf16.mxu1 %v28537_v12  ;;  %v28570_v12 = vld [vmem:[%s37924_s3 + $0x328] ss:$28 sps:$4 sm:$0xff]  }
 0x972   : > { %20291 = vmatpush2.bf16.msra.mxu0 %v28538_v20 }
 0x973   : > { %20328 = vmatpush2.bf16.msra.mxu1 %v28535_v41  ;;  %20292 = vmatprep.subr.bf16.mxu0 %v28546_v14 }
 0x974   : > { %20329 = vmatprep.subr.bf16.mxu1 %v28543_v2  ;;  %v28574_v2 = vld [vmem:[%s37924_s3 + $0x168] ss:$28 sps:$4 sm:$0xff]  }
 0x976   : > { %20293 = vmatpush2.bf16.msra.mxu0 %v28544_v60  ;;  %v28575_v60 = vld [vmem:[%s37924_s3 + $0x2f0] ss:$28 sps:$4 sm:$0xff]  }
 0x977   : > { %20330 = vmatpush2.bf16.msra.mxu1 %v28541_v51  ;;  %20294 = vmatprep.subr.bf16.mxu0 %v28552_v10  ;;  %v28571_v51 = vld [vmem:[%s37924_s3 + $0x2a10] ss:$28 sps:$4 sm:$0xff]  }
 0x978   : > { %20331 = vmatprep.subr.bf16.mxu1 %v28549_v43 }
 0x97a   : > { %20295 = vmatpush2.bf16.msra.mxu0 %v28550_v61 }
 0x97b   : > { %20332 = vmatpush2.bf16.msra.mxu1 %v28547_v1  ;;  %20354 = vmatprep.subr.bf16.mxu0 %v28558_v52  ;;  %v28576_v1 = vld [vmem:[%s37924_s3 + $0x130] ss:$28 sps:$4 sm:$0xff]   ;;  %v28579_v52 = vld [vmem:[%s37924_s3 + $0x2b8] ss:$28 sps:$4 sm:$0xff]  }
 0x97c   : > { %20333 = vmatprep.subr.bf16.mxu1 %v28555_v33  ;;  %v28578_v33 = vld [vmem:[%s37924_s3 + $0x520] ss:$28 sps:$4 sm:$0xff]  }
 0x97d   : > { %v20052_v7 = vpop.f32.mrf.mxu0  ;;  %20297 = vmatmul.mubr.bf16.vlgmr.msra.gmra.mxu0 %v34350_v37 }
 0x97e   : > { %v20053_v19 = vadd.f32 %v20052_v7, %v36714_v22  ;;  %20355 = vmatpush1.bf16.msra.mxu0 %v28556_v27  ;;  %20378 = vmatprep.mubr.bf16.mxu0 %v28947_v13  ;;  %v28580_v27 = vld [vmem:[%s37924_s3 + $0xf8] ss:$28 sps:$4 sm:$0xff]   ;;  %v28585_v7 = vld [vmem:[%s37924_s3 + $0x670] ss:$28 sps:$4 sm:$0xff]  }
 0x97f   : > { %20334 = vmatpush2.bf16.msra.mxu1 %v28553_v49  ;;  %v20054_v32 = vpop.f32.mrf.mxu0  ;;  %20356 = vmatprep.subr.bf16.mxu0 %v28564_v45  ;;  %v28581_v49 = vld [vmem:[%s37924_s3 + $0x6a8] ss:$28 sps:$4 sm:$0xff]   ;;  %v28583_v45 = vld [vmem:[%s37924_s3 + $0x280] ss:$28 sps:$4 sm:$0xff]  }
 0x980   : > { %20335 = vmatprep.subr.bf16.mxu1 %v28561_v34  ;;  %v20055_v22 = vadd.f32 %v20054_v32, %v36726_v30  ;;  %v28573_v30 = vld [vmem:[%s37924_s3 + $0x2a14] ss:$28 sps:$4 sm:$0xff]   ;;  %v28582_v34 = vld [vmem:[%s37924_s3 + $0x4e8] ss:$28 sps:$4 sm:$0xff]  }
 0x981   : > { %v20056_v9 = vpop.f32.mrf.mxu0  ;;  %v28590_v32 = vld [vmem:[%s37924_s3 + $0x478] ss:$28 sps:$4 sm:$0xff]  }
 0x982   : > { %20357 = vmatpush1.bf16.msra.mxu0 %v28562_v54  ;;  %v28589_v54 = vld [vmem:[%s37924_s3 + $0x638] ss:$28 sps:$4 sm:$0xff]   ;;  %v28592_v9 = vld [vmem:[%s37924_s3 + $0x50] ss:$28 sps:$4 sm:$0xff]  }
 0x983   : > { %20336 = vmatpush2.bf16.msra.mxu1 %v28559_v8  ;;  %v20057_v21 = vpop.f32.mrf.mxu0  ;;  %20358 = vmatprep.subr.bf16.mxu0 %v28568_v17  ;;  %v28584_v8 = vld [vmem:[%s37924_s3 + $0xc0] ss:$28 sps:$4 sm:$0xff]   ;;  %v28591_v17 = vld [vmem:[%s37924_s3 + $0x210] ss:$28 sps:$4 sm:$0xff]  }
 0x984   : > { %24688 = vmatprep.subr.bf16.mxu1 %v28565_v36  ;;  %v28588_v36 = vld [vmem:[%s37924_s3 + $0x88] ss:$28 sps:$4 sm:$0xff]   ;;  %v28596_v21 = vld [vmem:[%s37924_s3 + $0x18] ss:$28 sps:$4 sm:$0xff]  }
 0x986   : > { %v20093_v41 = vpop.f32.mrf.mxu1  ;;  %20338 = vmatmul.mubr.bf16.vlgmr.msra.gmra.mxu1 %v34442_v23  ;;  %20359 = vmatpush1.bf16.msra.mxu0 %v28566_v57  ;;  %v28595_v57 = vld [vmem:[%s37924_s3 + $0x1d8] ss:$28 sps:$4 sm:$0xff]  }
 0x987   : > { %v36916_v20 = vadd.f32 %v20093_v41, %v20053_v19  ;;  %24689 = vmatpush3.bf16.msra.mxu1 %v28569_v40  ;;  %20419 = vmatprep.mubr.bf16.mxu1 %v33052_v47  ;;  %v28577_v47 = vld [vmem:[%s37924_s3 + $0x6e0] ss:$28 sps:$4 sm:$0xff]   ;;  %v28587_v19 = vld [vmem:[%s37924_s3 + $0x248] ss:$28 sps:$4 sm:$0xff]  }
 0x988   : > { %v20095_v14 = vpop.f32.mrf.mxu1  ;;  %24690 = vmatprep.subr.bf16.mxu1 %v28570_v12  ;;  %20360 = vmatprep.subr.bf16.mxu0 %v28573_v30  ;;  %v28594_v40 = vld [vmem:[%s37924_s3 + $0x440] ss:$28 sps:$4 sm:$0xff]   ;;  %v28597_v12 = vld [vmem:[%s37924_s3 + $0x5c8] ss:$28 sps:$4 sm:$0xff]  }
 0x989   : > { %v36928_v43 = vadd.f32 %v20095_v14, %v20055_v22  ;;  %v28593_v22 = vld [vmem:[%s37924_s3 + $0x600] ss:$28 sps:$4 sm:$0xff]   ;;  %v28598_v30 = vld [vmem:[%s37924_s3 + $0x408] ss:$28 sps:$4 sm:$0xff]  }
 0x98a   : > { %v20097_v10 = vpop.f32.mrf.mxu1  ;;  %20361 = vmatpush1.bf16.msra.mxu0 %v28571_v51  ;;  %v28599_v41 = vld [vmem:[%s37924_s3 + $0xa60] ss:$28 sps:$4 sm:$0xff]   ;;  %v28602_v51 = vld [vmem:[%s37924_s3 + $0x3d0] ss:$28 sps:$4 sm:$0xff]  }
 0x98b   : > { %24691 = vmatpush3.bf16.msra.mxu1 %v28574_v2  ;;  %24710 = vmatprep.subr.bf16.mxu0 %v28577_v47  ;;  %v28600_v2 = vld [vmem:[%s37924_s3 + $0x590] ss:$28 sps:$4 sm:$0xff]   ;;  %v28601_v14 = vld [vmem:[%s37924_s3 + $0x8a0] ss:$28 sps:$4 sm:$0xff]   ;;  %v28604_v47 = vld [vmem:[%s37924_s3 + $0x558] ss:$28 sps:$4 sm:$0xff]  }
 0x98c   : > { %v20098_v61 = vpop.f32.mrf.mxu1  ;;  %24692 = vmatprep.subr.bf16.mxu1 %v28575_v60  ;;  %v28603_v60 = vld [vmem:[%s37924_s3 + $0xa28] ss:$28 sps:$4 sm:$0xff]  }
 0x98d   : > { %24505 = vmatmul.mubr.msk.bf16.vlgmr.msra.gmra.mxu0 %vm18784_vm2, %v34409_v50  ;;  %v28605_v10 = vld [vmem:[%s37924_s3 + $0x868] ss:$28 sps:$4 sm:$0xff]   ;;  %v28607_v61 = vld [vmem:[%s37924_s3 + $0x9f0] ss:$28 sps:$4 sm:$0xff]  }
 0x98e   : > { %24711 = vmatpush3.bf16.msra.mxu0 %v28578_v33  ;;  %20459 = vmatprep.mubr.bf16.mxu0 %v33141_v55  ;;  %v28586_v55 = vld [vmem:[%s37924_s3 + $0x4b0] ss:$28 sps:$4 sm:$0xff]   ;;  %v28610_v33 = vld [vmem:[%s37924_s3 + $0xc20] ss:$28 sps:$4 sm:$0xff]  }
 0x98f   : > { %24693 = vmatpush3.bf16.msra.mxu1 %v28576_v1  ;;  %24712 = vmatprep.subr.bf16.mxu0 %v28581_v49  ;;  %v28606_v1 = vld [vmem:[%s37924_s3 + $0x398] ss:$28 sps:$4 sm:$0xff]   ;;  %v28613_v49 = vld [vmem:[%s37924_s3 + $0xda8] ss:$28 sps:$4 sm:$0xff]  }
 0x990   : > { %24694 = vmatprep.subr.bf16.mxu1 %v28579_v52  ;;  %v28611_v52 = vld [vmem:[%s37924_s3 + $0x9b8] ss:$28 sps:$4 sm:$0xff]  }
 0x992   : > { %24713 = vmatpush3.bf16.msra.mxu0 %v28582_v34  ;;  %v28614_v34 = vld [vmem:[%s37924_s3 + $0xbe8] ss:$28 sps:$4 sm:$0xff]  }
 0x993   : > { %24695 = vmatpush3.bf16.msra.mxu1 %v28580_v27  ;;  %24714 = vmatprep.subr.bf16.mxu0 %v28585_v7  ;;  %v28612_v27 = vld [vmem:[%s37924_s3 + $0x7f8] ss:$28 sps:$4 sm:$0xff]   ;;  %v28616_v7 = vld [vmem:[%s37924_s3 + $0x7c0] ss:$28 sps:$4 sm:$0xff]  }
 0x994   : > { %24696 = vmatprep.subr.bf16.mxu1 %v28583_v45  ;;  %v28615_v45 = vld [vmem:[%s37924_s3 + $0x980] ss:$28 sps:$4 sm:$0xff]  }
 0x996   : > { %24715 = vmatpush3.bf16.msra.mxu0 %v28586_v55  ;;  %v28621_v55 = vld [vmem:[%s37924_s3 + $0xd38] ss:$28 sps:$4 sm:$0xff]  }
 0x997   : > { %24697 = vmatpush3.bf16.msra.mxu1 %v28584_v8  ;;  %24716 = vmatprep.subr.bf16.mxu0 %v28589_v54  ;;  %v28619_v8 = vld [vmem:[%s37924_s3 + $0x948] ss:$28 sps:$4 sm:$0xff]   ;;  %v28622_v54 = vld [vmem:[%s37924_s3 + $0xb78] ss:$28 sps:$4 sm:$0xff]  }
 0x998   : > { %24698 = vmatprep.subr.bf16.mxu1 %v28587_v19  ;;  %v28620_v19 = vld [vmem:[%s37924_s3 + $0x788] ss:$28 sps:$4 sm:$0xff]  }
 0x99a   : > { %24717 = vmatpush3.bf16.msra.mxu0 %v28590_v32  ;;  %v28625_v32 = vld [vmem:[%s37924_s3 + $0xd00] ss:$28 sps:$4 sm:$0xff]  }
 0x99b   : > { %24699 = vmatpush3.bf16.msra.mxu1 %v28588_v36  ;;  %24718 = vmatprep.subr.bf16.mxu0 %v28593_v22  ;;  %v28623_v36 = vld [vmem:[%s37924_s3 + $0x910] ss:$28 sps:$4 sm:$0xff]   ;;  %v28626_v22 = vld [vmem:[%s37924_s3 + $0xb40] ss:$28 sps:$4 sm:$0xff]  }
 0x99c   : > { %24700 = vmatprep.subr.bf16.mxu1 %v28591_v17  ;;  %v28624_v17 = vld [vmem:[%s37924_s3 + $0x750] ss:$28 sps:$4 sm:$0xff]  }
 0x99e   : > { %24719 = vmatpush3.bf16.msra.mxu0 %v28594_v40  ;;  %v28629_v40 = vld [vmem:[%s37924_s3 + $0xcc8] ss:$28 sps:$4 sm:$0xff]  }
 0x99f   : > { %24701 = vmatpush3.bf16.msra.mxu1 %v28592_v9  ;;  %24720 = vmatprep.subr.bf16.mxu0 %v28597_v12  ;;  %v28627_v9 = vld [vmem:[%s37924_s3 + $0x8d8] ss:$28 sps:$4 sm:$0xff]  }
 0x9a0   : > { %24702 = vmatprep.subr.bf16.mxu1 %v28595_v57  ;;  %v28628_v12 = vld [vmem:[%s37924_s3 + $0x718] ss:$28 sps:$4 sm:$0xff]  }
 0x9a2   : > { %24721 = vmatpush3.bf16.msra.mxu0 %v28598_v30  ;;  %v28630_v30 = vld [vmem:[%s37924_s3 + $0xb08] ss:$28 sps:$4 sm:$0xff]  }
 0x9a3   : > { %24703 = vmatpush3.bf16.msra.mxu1 %v28596_v21  ;;  %24722 = vmatprep.subr.bf16.mxu0 %v28600_v2 }
 0x9a4   : > { %24732 = vmatprep.subr.bf16.mxu1 %v28599_v41  ;;  %v28631_v41 = vld [vmem:[%s37924_s3 + $0x1160] ss:$28 sps:$4 sm:$0xff]  }
 0x9a6   : > { %20420 = vmatmul.mubr.bf16.vlgmr.msra.gmra.mxu1 %v33259_v48  ;;  %24723 = vmatpush3.bf16.msra.mxu0 %v28602_v51  ;;  %v28609_v48 = vld [vmem:[%s37924_s3 + $0xde0] ss:$28 sps:$4 sm:$0xff]  }
 0x9a7   : > { %24733 = vmatpush3.bf16.msra.mxu1 %v28601_v14  ;;  %20499 = vmatprep.mubr.bf16.mxu1 %v33264_v38  ;;  %v28608_v38 = vld [vmem:[%s37924_s3 + $0x830] ss:$28 sps:$4 sm:$0xff]  }
 0x9a8   : > { %24734 = vmatprep.subr.bf16.mxu1 %v28603_v60  ;;  %24724 = vmatprep.subr.bf16.mxu0 %v28604_v47  ;;  %v28632_v14 = vld [vmem:[%s37924_s3 + $0xc90] ss:$28 sps:$4 sm:$0xff]  }
 0x9a9   : > { %v28634_v47 = vld [vmem:[%s37924_s3 + $0xad0] ss:$28 sps:$4 sm:$0xff]  }
 0x9aa   : > { %24725 = vmatpush3.bf16.msra.mxu0 %v28606_v1 }
 0x9ab   : > { %24735 = vmatpush3.bf16.msra.mxu1 %v28605_v10  ;;  %24754 = vmatprep.subr.bf16.mxu0 %v28609_v48  ;;  %v28635_v10 = vld [vmem:[%s37924_s3 + $0x1128] ss:$28 sps:$4 sm:$0xff]  }
 0x9ac   : > { %24736 = vmatprep.subr.bf16.mxu1 %v28607_v61 }
 0x9ad   : > { %20460 = vmatmul.mubr.bf16.vlgmr.msra.gmra.mxu0 %v33350_v24  ;;  %v28617_v24 = vld [vmem:[%s37924_s3 + $0xd70] ss:$28 sps:$4 sm:$0xff]  }
 0x9ae   : > { %24755 = vmatpush3.bf16.msra.mxu0 %v28610_v33  ;;  %20539 = vmatprep.mubr.bf16.mxu0 %v33358_v29  ;;  %v28618_v29 = vld [vmem:[%s37924_s3 + $0xbb0] ss:$28 sps:$4 sm:$0xff]  }
 0x9af   : > { %24737 = vmatpush3.bf16.msra.mxu1 %v28608_v38  ;;  %24756 = vmatprep.subr.bf16.mxu0 %v28613_v49  ;;  %v28637_v38 = vld [vmem:[%s37924_s3 + $0xf68] ss:$28 sps:$4 sm:$0xff]  }
 0x9b0   : > { %24738 = vmatprep.subr.bf16.mxu1 %v28611_v52  ;;  %v28638_v52 = vld [vmem:[%s37924_s3 + $0xa98] ss:$28 sps:$4 sm:$0xff]  }
 0x9b2   : > { %24757 = vmatpush3.bf16.msra.mxu0 %v28614_v34  ;;  %v28640_v34 = vld [vmem:[%s37924_s3 + $0xf30] ss:$28 sps:$4 sm:$0xff]  }
 0x9b3   : > { %24739 = vmatpush3.bf16.msra.mxu1 %v28612_v27  ;;  %24758 = vmatprep.subr.bf16.mxu0 %v28617_v24  ;;  %v28642_v24 = vld [vmem:[%s37924_s3 + $0x1320] ss:$28 sps:$4 sm:$0xff]  }
 0x9b4   : > { %24740 = vmatprep.subr.bf16.mxu1 %v28615_v45 }
 0x9b6   : > { %24759 = vmatpush3.bf16.msra.mxu0 %v28618_v29  ;;  %v28645_v29 = vld [vmem:[%s37924_s3 + $0x14a8] ss:$28 sps:$4 sm:$0xff]  }
 0x9b7   : > { %24741 = vmatpush3.bf16.msra.mxu1 %v28616_v7  ;;  %24760 = vmatprep.subr.bf16.mxu0 %v28621_v55  ;;  %v28643_v7 = vld [vmem:[%s37924_s3 + $0x10b8] ss:$28 sps:$4 sm:$0xff]   ;;  %v28646_v55 = vld [vmem:[%s37924_s3 + $0x12e8] ss:$28 sps:$4 sm:$0xff]  }
 0x9b8   : > { %24742 = vmatprep.subr.bf16.mxu1 %v28619_v8  ;;  %v28644_v8 = vld [vmem:[%s37924_s3 + $0xef8] ss:$28 sps:$4 sm:$0xff]  }
 0x9ba   : > { %24761 = vmatpush3.bf16.msra.mxu0 %v28622_v54  ;;  %v28648_v54 = vld [vmem:[%s37924_s3 + $0xec0] ss:$28 sps:$4 sm:$0xff]  }
 0x9bb   : > { %24743 = vmatpush3.bf16.msra.mxu1 %v28620_v19  ;;  %24762 = vmatprep.subr.bf16.mxu0 %v28625_v32  ;;  %v28647_v19 = vld [vmem:[%s37924_s3 + $0x1080] ss:$28 sps:$4 sm:$0xff]   ;;  %v28653_v32 = vld [vmem:[%s37924_s3 + $0x1438] ss:$28 sps:$4 sm:$0xff]  }
 0x9bc   : > { %24744 = vmatprep.subr.bf16.mxu1 %v28623_v36  ;;  %v28651_v36 = vld [vmem:[%s37924_s3 + $0x1048] ss:$28 sps:$4 sm:$0xff]  }
 0x9bd   : > { %v20134_v57 = vpop.f32.mrf.mxu0 }
 0x9be   : > { %v20135_v21 = vadd.f32 %v20134_v57, %v36916_v20  ;;  %24763 = vmatpush3.bf16.msra.mxu0 %v28626_v22  ;;  %v28633_v20 = vld [vmem:[%s37924_s3 + $0xfa0] ss:$28 sps:$4 sm:$0xff]   ;;  %v28654_v22 = vld [vmem:[%s37924_s3 + $0x1278] ss:$28 sps:$4 sm:$0xff]   ;;  %v28656_v57 = vld [vmem:[%s37924_s3 + $0xe50] ss:$28 sps:$4 sm:$0xff]  }
 0x9bf   : > { %24745 = vmatpush3.bf16.msra.mxu1 %v28624_v17  ;;  %v20136_v2 = vpop.f32.mrf.mxu0  ;;  %24764 = vmatprep.subr.bf16.mxu0 %v28629_v40  ;;  %v28652_v17 = vld [vmem:[%s37924_s3 + $0xe88] ss:$28 sps:$4 sm:$0xff]   ;;  %v28657_v40 = vld [vmem:[%s37924_s3 + $0x1400] ss:$28 sps:$4 sm:$0xff]  }
 0x9c0   : > { %24746 = vmatprep.subr.bf16.mxu1 %v28627_v9  ;;  %v20137_v51 = vadd.f32 %v20136_v2, %v36928_v43  ;;  %v28636_v43 = vld [vmem:[%s37924_s3 + $0xc58] ss:$28 sps:$4 sm:$0xff]   ;;  %v28655_v9 = vld [vmem:[%s37924_s3 + $0x1010] ss:$28 sps:$4 sm:$0xff]   ;;  %v28662_v2 = vld [vmem:[%s37924_s3 + $0x1208] ss:$28 sps:$4 sm:$0xff]  }
 0x9c1   : > { %v20138_v60 = vpop.f32.mrf.mxu0 }
 0x9c2   : > { %24765 = vmatpush3.bf16.msra.mxu0 %v28630_v30  ;;  %v28661_v30 = vld [vmem:[%s37924_s3 + $0x13c8] ss:$28 sps:$4 sm:$0xff]   ;;  %v28665_v60 = vld [vmem:[%s37924_s3 + $0x16a0] ss:$28 sps:$4 sm:$0xff]  }
 0x9c3   : > { %24747 = vmatpush3.bf16.msra.mxu1 %v28628_v12  ;;  %v20139_v1 = vpop.f32.mrf.mxu0  ;;  %24766 = vmatprep.subr.bf16.mxu0 %v28632_v14  ;;  %v28658_v12 = vld [vmem:[%s37924_s3 + $0x1240] ss:$28 sps:$4 sm:$0xff]  }
 0x9c4   : > { %24776 = vmatprep.subr.bf16.mxu1 %v28631_v41  ;;  %v28660_v41 = vld [vmem:[%s37924_s3 + $0xe18] ss:$28 sps:$4 sm:$0xff]   ;;  %v28663_v14 = vld [vmem:[%s37924_s3 + $0x1860] ss:$28 sps:$4 sm:$0xff]   ;;  %v28669_v1 = vld [vmem:[%s37924_s3 + $0x1668] ss:$28 sps:$4 sm:$0xff]  }
 0x9c6   : > { %v20175_v61 = vpop.f32.mrf.mxu1  ;;  %20500 = vmatmul.mubr.bf16.vlgmr.msra.gmra.mxu1 %v33476_v62  ;;  %24767 = vmatpush3.bf16.msra.mxu0 %v28634_v47  ;;  %v28639_v62 = vld [vmem:[%s37924_s3 + $0x10f0] ss:$28 sps:$4 sm:$0xff]   ;;  %v28667_v47 = vld [vmem:[%s37924_s3 + $0x1828] ss:$28 sps:$4 sm:$0xff]  }
 0x9c7   : > { %v37123_v48 = vadd.f32 %v20175_v61, %v20135_v21  ;;  %24777 = vmatpush3.bf16.msra.mxu1 %v28633_v20  ;;  %20579 = vmatprep.mubr.bf16.mxu1 %v33484_v25  ;;  %v28641_v25 = vld [vmem:[%s37924_s3 + $0x14e0] ss:$28 sps:$4 sm:$0xff]   ;;  %v28659_v21 = vld [vmem:[%s37924_s3 + $0xfd8] ss:$28 sps:$4 sm:$0xff]   ;;  %v28666_v20 = vld [vmem:[%s37924_s3 + $0x11d0] ss:$28 sps:$4 sm:$0xff]  }
 0x9c8   : > { %v20177_v33 = vpop.f32.mrf.mxu1  ;;  %24778 = vmatprep.subr.bf16.mxu1 %v28635_v10  ;;  %24768 = vmatprep.subr.bf16.mxu0 %v28636_v43  ;;  %v28668_v10 = vld [vmem:[%s37924_s3 + $0x1358] ss:$28 sps:$4 sm:$0xff]   ;;  %v28671_v61 = vld [vmem:[%s37924_s3 + $0x17f0] ss:$28 sps:$4 sm:$0xff]  }
 0x9c9   : > { %v37135_v49 = vadd.f32 %v20177_v33, %v20137_v51  ;;  %v28664_v51 = vld [vmem:[%s37924_s3 + $0x1390] ss:$28 sps:$4 sm:$0xff]   ;;  %v28670_v43 = vld [vmem:[%s37924_s3 + $0x1198] ss:$28 sps:$4 sm:$0xff]  }
 0x9ca   : > { %v20179_v27 = vpop.f32.mrf.mxu1  ;;  %24769 = vmatpush3.bf16.msra.mxu0 %v28638_v52  ;;  %v28675_v33 = vld [vmem:[%s37924_s3 + $0x17b8] ss:$28 sps:$4 sm:$0xff]   ;;  %v28677_v52 = vld [vmem:[%s37924_s3 + $0x1ba8] ss:$28 sps:$4 sm:$0xff]  }
 0x9cb   : > { %24779 = vmatpush3.bf16.msra.mxu1 %v28637_v38  ;;  %24798 = vmatprep.subr.bf16.mxu0 %v28641_v25  ;;  %v28674_v38 = vld [vmem:[%s37924_s3 + $0x1a20] ss:$28 sps:$4 sm:$0xff]   ;;  %v28678_v25 = vld [vmem:[%s37924_s3 + $0x19e8] ss:$28 sps:$4 sm:$0xff]  }
 0x9cc   : > { %v20180_v45 = vpop.f32.mrf.mxu1  ;;  %24780 = vmatprep.subr.bf16.mxu1 %v28639_v62  ;;  %v28676_v62 = vld [vmem:[%s37924_s3 + $0x15f8] ss:$28 sps:$4 sm:$0xff]   ;;  %v28679_v27 = vld [vmem:[%s37924_s3 + $0x1780] ss:$28 sps:$4 sm:$0xff]  }
 0x9cd   : > { %20540 = vmatmul.mubr.bf16.vlgmr.msra.gmra.mxu0 %v33569_v58  ;;  %v28649_v58 = vld [vmem:[%s37924_s3 + $0x1470] ss:$28 sps:$4 sm:$0xff]   ;;  %v28683_v45 = vld [vmem:[%s37924_s3 + $0x1748] ss:$28 sps:$4 sm:$0xff]  }
 0x9ce   : > { %24799 = vmatpush3.bf16.msra.mxu0 %v28642_v24  ;;  %20619 = vmatprep.mubr.bf16.mxu0 %v33577_v39  ;;  %v28650_v39 = vld [vmem:[%s37924_s3 + $0x12b0] ss:$28 sps:$4 sm:$0xff]   ;;  %v28685_v24 = vld [vmem:[%s37924_s3 + $0x1b38] ss:$28 sps:$4 sm:$0xff]  }
 0x9cf   : > { %24781 = vmatpush3.bf16.msra.mxu1 %v28640_v34  ;;  %24800 = vmatprep.subr.bf16.mxu0 %v28645_v29  ;;  %v28680_v34 = vld [vmem:[%s37924_s3 + $0x15c0] ss:$28 sps:$4 sm:$0xff]   ;;  %v28686_v29 = vld [vmem:[%s37924_s3 + $0x1978] ss:$28 sps:$4 sm:$0xff]  }
 0x9d0   : > { %24782 = vmatprep.subr.bf16.mxu1 %v28643_v7  ;;  %v28684_v7 = vld [vmem:[%s37924_s3 + $0x1588] ss:$28 sps:$4 sm:$0xff]  }
 0x9d2   : > { %24801 = vmatpush3.bf16.msra.mxu0 %v28646_v55  ;;  %v28689_v55 = vld [vmem:[%s37924_s3 + $0x1b00] ss:$28 sps:$4 sm:$0xff]  }
 0x9d3   : > { %24783 = vmatpush3.bf16.msra.mxu1 %v28644_v8  ;;  %24802 = vmatprep.subr.bf16.mxu0 %v28649_v58  ;;  %v28687_v8 = vld [vmem:[%s37924_s3 + $0x1710] ss:$28 sps:$4 sm:$0xff]   ;;  %v28690_v58 = vld [vmem:[%s37924_s3 + $0x1940] ss:$28 sps:$4 sm:$0xff]  }
 0x9d4   : > { %24784 = vmatprep.subr.bf16.mxu1 %v28647_v19  ;;  %v28688_v19 = vld [vmem:[%s37924_s3 + $0x1550] ss:$28 sps:$4 sm:$0xff]  }
 0x9d6   : > { %24803 = vmatpush3.bf16.msra.mxu0 %v28650_v39  ;;  %v28693_v39 = vld [vmem:[%s37924_s3 + $0x1ac8] ss:$28 sps:$4 sm:$0xff]  }
 0x9d7   : > { %24785 = vmatpush3.bf16.msra.mxu1 %v28648_v54  ;;  %24804 = vmatprep.subr.bf16.mxu0 %v28653_v32  ;;  %v28691_v54 = vld [vmem:[%s37924_s3 + $0x16d8] ss:$28 sps:$4 sm:$0xff]  }
 0x9d8   : > { %24786 = vmatprep.subr.bf16.mxu1 %v28651_v36  ;;  %v28692_v32 = vld [vmem:[%s37924_s3 + $0x1518] ss:$28 sps:$4 sm:$0xff]  }
 0x9da   : > { %24805 = vmatpush3.bf16.msra.mxu0 %v28654_v22  ;;  %v28694_v22 = vld [vmem:[%s37924_s3 + $0x1908] ss:$28 sps:$4 sm:$0xff]  }
 0x9db   : > { %24787 = vmatpush3.bf16.msra.mxu1 %v28652_v17  ;;  %24806 = vmatprep.subr.bf16.mxu0 %v28657_v40 }
 0x9dc   : > { %24788 = vmatprep.subr.bf16.mxu1 %v28655_v9  ;;  %v28695_v9 = vld [vmem:[%s37924_s3 + $0x1f60] ss:$28 sps:$4 sm:$0xff]  }
 0x9de   : > { %24807 = vmatpush3.bf16.msra.mxu0 %v28658_v12 }
 0x9df   : > { %24789 = vmatpush3.bf16.msra.mxu1 %v28656_v57  ;;  %24808 = vmatprep.subr.bf16.mxu0 %v28661_v30  ;;  %v28696_v57 = vld [vmem:[%s37924_s3 + $0x1a90] ss:$28 sps:$4 sm:$0xff]  }
 0x9e0   : > { %24790 = vmatprep.subr.bf16.mxu1 %v28659_v21  ;;  %v28698_v30 = vld [vmem:[%s37924_s3 + $0x18d0] ss:$28 sps:$4 sm:$0xff]  }
 0x9e2   : > { %24809 = vmatpush3.bf16.msra.mxu0 %v28662_v2 }
 0x9e3   : > { %24791 = vmatpush3.bf16.msra.mxu1 %v28660_v41  ;;  %24810 = vmatprep.subr.bf16.mxu0 %v28664_v51  ;;  %v28699_v41 = vld [vmem:[%s37924_s3 + $0x1f28] ss:$28 sps:$4 sm:$0xff]  }
 0x9e4   : > { %24820 = vmatprep.subr.bf16.mxu1 %v28663_v14 }
 0x9e6   : > { %20580 = vmatmul.mubr.bf16.vlgmr.msra.gmra.mxu1 %v33704_v5  ;;  %24811 = vmatpush3.bf16.msra.mxu0 %v28666_v20  ;;  %v28673_v5 = vld [vmem:[%s37924_s3 + $0x1be0] ss:$28 sps:$4 sm:$0xff]  }
 0x9e7   : > { %24821 = vmatpush3.bf16.msra.mxu1 %v28665_v60  ;;  %20659 = vmatprep.mubr.bf16.mxu1 %v33712_v44  ;;  %v28672_v44 = vld [vmem:[%s37924_s3 + $0x1630] ss:$28 sps:$4 sm:$0xff]   ;;  %v28701_v60 = vld [vmem:[%s37924_s3 + $0x1d68] ss:$28 sps:$4 sm:$0xff]  }
 0x9e8   : > { %24822 = vmatprep.subr.bf16.mxu1 %v28667_v47  ;;  %24812 = vmatprep.subr.bf16.mxu0 %v28668_v10  ;;  %v28702_v47 = vld [vmem:[%s37924_s3 + $0x1898] ss:$28 sps:$4 sm:$0xff]  }
 0x9ea   : > { %24813 = vmatpush3.bf16.msra.mxu0 %v28670_v43  ;;  %v28704_v43 = vld [vmem:[%s37924_s3 + $0x1d30] ss:$28 sps:$4 sm:$0xff]  }
 0x9eb   : > { %24823 = vmatpush3.bf16.msra.mxu1 %v28669_v1  ;;  %24842 = vmatprep.subr.bf16.mxu0 %v28673_v5  ;;  %v28706_v5 = vld [vmem:[%s37924_s3 + $0x2120] ss:$28 sps:$4 sm:$0xff]  }
 0x9ec   : > { %24824 = vmatprep.subr.bf16.mxu1 %v28671_v61 }
 0x9ed   : > { %20620 = vmatmul.mubr.bf16.vlgmr.msra.gmra.mxu0 %v33794_v11  ;;  %v28681_v11 = vld [vmem:[%s37924_s3 + $0x1b70] ss:$28 sps:$4 sm:$0xff]  }
 0x9ee   : > { %24843 = vmatpush3.bf16.msra.mxu0 %v28674_v38  ;;  %20699 = vmatprep.mubr.bf16.mxu0 %v33802_v6  ;;  %v28682_v6 = vld [vmem:[%s37924_s3 + $0x19b0] ss:$28 sps:$4 sm:$0xff]   ;;  %v28709_v38 = vld [vmem:[%s37924_s3 + $0x22a8] ss:$28 sps:$4 sm:$0xff]  }
 0x9ef   : > { %24825 = vmatpush3.bf16.msra.mxu1 %v28672_v44  ;;  %24844 = vmatprep.subr.bf16.mxu0 %v28677_v52  ;;  %v28707_v44 = vld [vmem:[%s37924_s3 + $0x1eb8] ss:$28 sps:$4 sm:$0xff]   ;;  %v28710_v52 = vld [vmem:[%s37924_s3 + $0x20e8] ss:$28 sps:$4 sm:$0xff]  }
 0x9f0   : > { %24826 = vmatprep.subr.bf16.mxu1 %v28675_v33  ;;  %v28708_v33 = vld [vmem:[%s37924_s3 + $0x1cf8] ss:$28 sps:$4 sm:$0xff]  }
 0x9f2   : > { %24845 = vmatpush3.bf16.msra.mxu0 %v28678_v25  ;;  %v28712_v25 = vld [vmem:[%s37924_s3 + $0x1cc0] ss:$28 sps:$4 sm:$0xff]  }
 0x9f3   : > { %24827 = vmatpush3.bf16.msra.mxu1 %v28676_v62  ;;  %24846 = vmatprep.subr.bf16.mxu0 %v28681_v11  ;;  %v28711_v62 = vld [vmem:[%s37924_s3 + $0x1e80] ss:$28 sps:$4 sm:$0xff]   ;;  %v28717_v11 = vld [vmem:[%s37924_s3 + $0x2238] ss:$28 sps:$4 sm:$0xff]  }
 0x9f4   : > { %24828 = vmatprep.subr.bf16.mxu1 %v28679_v27  ;;  %v28715_v27 = vld [vmem:[%s37924_s3 + $0x1e48] ss:$28 sps:$4 sm:$0xff]  }
 0x9f6   : > { %24847 = vmatpush3.bf16.msra.mxu0 %v28682_v6  ;;  %v28718_v6 = vld [vmem:[%s37924_s3 + $0x2078] ss:$28 sps:$4 sm:$0xff]  }
 0x9f7   : > { %24829 = vmatpush3.bf16.msra.mxu1 %v28680_v34  ;;  %24848 = vmatprep.subr.bf16.mxu0 %v28685_v24  ;;  %v28716_v34 = vld [vmem:[%s37924_s3 + $0x1c88] ss:$28 sps:$4 sm:$0xff]   ;;  %v28721_v24 = vld [vmem:[%s37924_s3 + $0x2200] ss:$28 sps:$4 sm:$0xff]  }
 0x9f8   : > { %24830 = vmatprep.subr.bf16.mxu1 %v28683_v45  ;;  %v28719_v45 = vld [vmem:[%s37924_s3 + $0x1e10] ss:$28 sps:$4 sm:$0xff]  }
 0x9fa   : > { %24849 = vmatpush3.bf16.msra.mxu0 %v28686_v29  ;;  %v28722_v29 = vld [vmem:[%s37924_s3 + $0x2040] ss:$28 sps:$4 sm:$0xff]  }
 0x9fb   : > { %24831 = vmatpush3.bf16.msra.mxu1 %v28684_v7  ;;  %24850 = vmatprep.subr.bf16.mxu0 %v28689_v55  ;;  %v28720_v7 = vld [vmem:[%s37924_s3 + $0x1c50] ss:$28 sps:$4 sm:$0xff]   ;;  %v28725_v55 = vld [vmem:[%s37924_s3 + $0x21c8] ss:$28 sps:$4 sm:$0xff]  }
 0x9fc   : > { %24832 = vmatprep.subr.bf16.mxu1 %v28687_v8  ;;  %v28723_v8 = vld [vmem:[%s37924_s3 + $0x1dd8] ss:$28 sps:$4 sm:$0xff]  }
 0x9fd   : > { %v20216_v36 = vpop.f32.mrf.mxu0 }
 0x9fe   : > { %v20217_v17 = vadd.f32 %v20216_v36, %v37123_v48  ;;  %24851 = vmatpush3.bf16.msra.mxu0 %v28690_v58  ;;  %v28697_v48 = vld [vmem:[%s37924_s3 + $0x1da0] ss:$28 sps:$4 sm:$0xff]   ;;  %v28726_v58 = vld [vmem:[%s37924_s3 + $0x2008] ss:$28 sps:$4 sm:$0xff]  }
 0x9ff   : > { %24833 = vmatpush3.bf16.msra.mxu1 %v28688_v19  ;;  %v20218_v40 = vpop.f32.mrf.mxu0  ;;  %24852 = vmatprep.subr.bf16.mxu0 %v28693_v39  ;;  %v28724_v19 = vld [vmem:[%s37924_s3 + $0x1c18] ss:$28 sps:$4 sm:$0xff]   ;;  %v28728_v39 = vld [vmem:[%s37924_s3 + $0x2190] ss:$28 sps:$4 sm:$0xff]   ;;  %v28729_v36 = vld [vmem:[%s37924_s3 + $0x24a0] ss:$28 sps:$4 sm:$0xff]  }
 0xa00   : > { %24834 = vmatprep.subr.bf16.mxu1 %v28691_v54  ;;  %v20219_v12 = vadd.f32 %v20218_v40, %v37135_v49  ;;  %v28700_v49 = vld [vmem:[%s37924_s3 + $0x1a58] ss:$28 sps:$4 sm:$0xff]   ;;  %v28727_v54 = vld [vmem:[%s37924_s3 + $0x2660] ss:$28 sps:$4 sm:$0xff]  }
 0xa01   : > { %v20220_v21 = vpop.f32.mrf.mxu0  ;;  %v28734_v40 = vld [vmem:[%s37924_s3 + $0x1f98] ss:$28 sps:$4 sm:$0xff]  }
 0xa02   : > { %24853 = vmatpush3.bf16.msra.mxu0 %v28694_v22  ;;  %v28732_v22 = vld [vmem:[%s37924_s3 + $0x2158] ss:$28 sps:$4 sm:$0xff]  }
 0xa03   : > { %24835 = vmatpush3.bf16.msra.mxu1 %v28692_v32  ;;  %v20221_v2 = vpop.f32.mrf.mxu0  ;;  %24854 = vmatprep.subr.bf16.mxu0 %v28696_v57  ;;  %v28730_v32 = vld [vmem:[%s37924_s3 + $0x1fd0] ss:$28 sps:$4 sm:$0xff]   ;;  %v28739_v21 = vld [vmem:[%s37924_s3 + $0x25b8] ss:$28 sps:$4 sm:$0xff]  }
 0xa04   : > { %24864 = vmatprep.subr.bf16.mxu1 %v28695_v9  ;;  %v28733_v9 = vld [vmem:[%s37924_s3 + $0x2468] ss:$28 sps:$4 sm:$0xff]   ;;  %v28735_v57 = vld [vmem:[%s37924_s3 + $0x25f0] ss:$28 sps:$4 sm:$0xff]   ;;  %v28743_v2 = vld [vmem:[%s37924_s3 + $0x2580] ss:$28 sps:$4 sm:$0xff]  }
 0xa06   : > { %v20257_v14 = vpop.f32.mrf.mxu1  ;;  %20660 = vmatmul.mubr.bf16.vlgmr.msra.gmra.mxu1 %v33923_v46  ;;  %24855 = vmatpush3.bf16.msra.mxu0 %v28698_v30  ;;  %v28703_v46 = vld [vmem:[%s37924_s3 + $0x1ef0] ss:$28 sps:$4 sm:$0xff]   ;;  %v28740_v30 = vld [vmem:[%s37924_s3 + $0x23f8] ss:$28 sps:$4 sm:$0xff]  }
 0xa07   : > { %v37329_v51 = vadd.f32 %v20257_v14, %v20217_v17  ;;  %24865 = vmatpush3.bf16.msra.mxu1 %v28697_v48  ;;  %20739 = vmatprep.mubr.bf16.mxu1 %v33928_v4  ;;  %v28705_v4 = vld [vmem:[%s37924_s3 + $0x22e0] ss:$28 sps:$4 sm:$0xff]   ;;  %v28731_v17 = vld [vmem:[%s37924_s3 + $0x2628] ss:$28 sps:$4 sm:$0xff]  }
 0xa08   : > { %v20259_v20 = vpop.f32.mrf.mxu1  ;;  %24866 = vmatprep.subr.bf16.mxu1 %v28699_v41  ;;  %24856 = vmatprep.subr.bf16.mxu0 %v28700_v49  ;;  %v28741_v48 = vld [vmem:[%s37924_s3 + $0x29a8] ss:$28 sps:$4 sm:$0xff]   ;;  %v28744_v49 = vld [vmem:[%s37924_s3 + $0x23c0] ss:$28 sps:$4 sm:$0xff]  }
 0xa09   : > { %v37341_v10 = vadd.f32 %v20259_v20, %v20219_v12  ;;  %v28738_v12 = vld [vmem:[%s37924_s3 + $0x2820] ss:$28 sps:$4 sm:$0xff]   ;;  %v28742_v41 = vld [vmem:[%s37924_s3 + $0x27e8] ss:$28 sps:$4 sm:$0xff]  }
 0xa0a   : > { %v20261_v1 = vpop.f32.mrf.mxu1  ;;  %24857 = vmatpush3.bf16.msra.mxu0 %v28702_v47  ;;  %v28747_v14 = vld [vmem:[%s37924_s3 + $0x2548] ss:$28 sps:$4 sm:$0xff]   ;;  %v28750_v47 = vld [vmem:[%s37924_s3 + $0x2778] ss:$28 sps:$4 sm:$0xff]  }
 0xa0b   : > { %24867 = vmatpush3.bf16.msra.mxu1 %v28701_v60  ;;  %24886 = vmatprep.subr.bf16.mxu0 %v28705_v4  ;;  %v28749_v60 = vld [vmem:[%s37924_s3 + $0x2938] ss:$28 sps:$4 sm:$0xff]   ;;  %v28748_v20 = vld [vmem:[%s37924_s3 + $0x2388] ss:$28 sps:$4 sm:$0xff]   ;;  %v28753_v4 = vld [vmem:[%s37924_s3 + $0x2900] ss:$28 sps:$4 sm:$0xff]  }
 0xa0c   : > { %v20262_v61 = vpop.f32.mrf.mxu1  ;;  %24868 = vmatprep.subr.bf16.mxu1 %v28703_v46  ;;  %v28751_v46 = vld [vmem:[%s37924_s3 + $0x2510] ss:$28 sps:$4 sm:$0xff]  }
 0xa0d   : > { %20700 = vmatmul.mubr.bf16.vlgmr.msra.gmra.mxu0 %v34011_v3  ;;  %v28713_v3 = vld [vmem:[%s37924_s3 + $0x2270] ss:$28 sps:$4 sm:$0xff]   ;;  %v28755_v61 = vld [vmem:[%s37924_s3 + $0x24d8] ss:$28 sps:$4 sm:$0xff]  }
 0xa0e   : > { %24887 = vmatpush3.bf16.msra.mxu0 %v28706_v5  ;;  %20779 = vmatprep.mubr.bf16.mxu0 %v34019_v18  ;;  %v28714_v18 = vld [vmem:[%s37924_s3 + $0x20b0] ss:$28 sps:$4 sm:$0xff]   ;;  %v28757_v5 = vld [vmem:[%s37924_s3 + $0x28c8] ss:$28 sps:$4 sm:$0xff]  }
 0xa0f   : > { %24869 = vmatpush3.bf16.msra.mxu1 %v28704_v43  ;;  %24888 = vmatprep.subr.bf16.mxu0 %v28709_v38  ;;  %v28752_v1 = vld [vmem:[%s37924_s3 + $0x2350] ss:$28 sps:$4 sm:$0xff]   ;;  %v28754_v43 = vld [vmem:[%s37924_s3 + $0x2740] ss:$28 sps:$4 sm:$0xff]   ;;  %v28756_v38 = vld [vmem:[%s37924_s3 + $0x2318] ss:$28 sps:$4 sm:$0xff]  }
 0xa10   : > { %24870 = vmatprep.subr.bf16.mxu1 %v28707_v44 }
 0xa12   : > { %24889 = vmatpush3.bf16.msra.mxu0 %v28710_v52  ;;  %v28758_v52 = vld [vmem:[%s37924_s3 + $0x2708] ss:$28 sps:$4 sm:$0xff]  }
 0xa13   : > { %24871 = vmatpush3.bf16.msra.mxu1 %v28708_v33  ;;  %24890 = vmatprep.subr.bf16.mxu0 %v28713_v3  ;;  %v28759_v3 = vld [vmem:[%s37924_s3 + $0x2890] ss:$28 sps:$4 sm:$0xff]  }
 0xa14   : > { %24872 = vmatprep.subr.bf16.mxu1 %v28711_v62 }
 0xa16   : > { %24891 = vmatpush3.bf16.msra.mxu0 %v28714_v18 }
 0xa17   : > { %24873 = vmatpush3.bf16.msra.mxu1 %v28712_v25  ;;  %24892 = vmatprep.subr.bf16.mxu0 %v28717_v11 }
 0xa18   : > { %24874 = vmatprep.subr.bf16.mxu1 %v28715_v27  ;;  %v28761_v27 = vld [vmem:[%s37924_s3 + $0x26d0] ss:$28 sps:$4 sm:$0xff]  }
 0xa1a   : > { %24893 = vmatpush3.bf16.msra.mxu0 %v28718_v6 }
 0xa1b   : > { %24875 = vmatpush3.bf16.msra.mxu1 %v28716_v34  ;;  %24894 = vmatprep.subr.bf16.mxu0 %v28721_v24 }
 0xa1c   : > { %24876 = vmatprep.subr.bf16.mxu1 %v28719_v45  ;;  %v28763_v45 = vld [vmem:[%s37924_s3 + $0x2a88] ss:$28 sps:$4 sm:$0xff]  }
 0xa1e   : > { %24895 = vmatpush3.bf16.msra.mxu0 %v28722_v29  ;;  %v20908_v29 = vmax.f32 %v35083_v26, 0.0 }
 0xa1f   : > { %24877 = vmatpush3.bf16.msra.mxu1 %v28720_v7  ;;  %24896 = vmatprep.subr.bf16.mxu0 %v28725_v55  ;;  %v28764_v7 = vld [vmem:[%s37924_s3 + $0x2698] ss:$28 sps:$4 sm:$0xff]   ;;  %v28765_v55 = vld [vmem:[%s37924_s3 + $0x2a50] ss:$28 sps:$4 sm:$0xff]  }
 0xa20   : > { %24878 = vmatprep.subr.bf16.mxu1 %v28723_v8  ;;  %v20915_v26 = vpack.c.bf16 %v20908_v29, %v20908_v29  ;;  %v28823_v29 = vld [vmem:[%s37926_s5 + $0x1f4] ss:$8 sps:$4 sm:$0xff]  }
 0xa22   : > { %24897 = vmatpush3.bf16.msra.mxu0 %v28726_v58  ;;  %v28766_v58 = vld [vmem:[%s37926_s5 + $0x70] ss:$8 sps:$4 sm:$0xff]  }
 0xa23   : > { %24879 = vmatpush3.bf16.msra.mxu1 %v28724_v19  ;;  %24898 = vmatprep.subr.bf16.mxu0 %v28728_v39 }
 0xa24   : > { %24908 = vmatprep.subr.bf16.mxu1 %v28727_v54  ;;  %v28772_v54 = vld [vmem:[%s37926_s5 + $0x64] ss:$8 sps:$4 sm:$0xff]  }
 0xa26   : > { %20740 = vmatmul.mubr.bf16.vlgmr.msra.gmra.mxu1 %v34137_v42  ;;  %24899 = vmatpush3.bf16.msra.mxu0 %v28730_v32  ;;  %v28737_v42 = vld [vmem:[%s37924_s3 + $0x29e0] ss:$28 sps:$4 sm:$0xff]  }
 0xa27   : > { %24909 = vmatpush3.bf16.msra.mxu1 %v28729_v36  ;;  %20819 = vmatprep.mubr.bf16.mxu1 %v34145_v59  ;;  %v28736_v59 = vld [vmem:[%s37924_s3 + $0x2430] ss:$28 sps:$4 sm:$0xff]   ;;  %v28769_v36 = vld [vmem:[%s37924_s3 + $0x2a18] ss:$28 sps:$4 sm:$0xff]  }
 0xa28   : > { %24910 = vmatprep.subr.bf16.mxu1 %v28731_v17  ;;  %24900 = vmatprep.subr.bf16.mxu0 %v28732_v22  ;;  %v28770_v17 = vld [vmem:[%s37926_s5 + $0x60] ss:$8 sps:$4 sm:$0xff]   ;;  %v28775_v22 = vld [vmem:[%s37926_s5 + $0x174] ss:$8 sps:$4 sm:$0xff]  }
 0xa2a   : > { %24901 = vmatpush3.bf16.msra.mxu0 %v28734_v40  ;;  %v28778_v40 = vld [vmem:[%s37926_s5 + $0x54] ss:$8 sps:$4 sm:$0xff]  }
 0xa2b   : > { %24911 = vmatpush3.bf16.msra.mxu1 %v28733_v9  ;;  %24930 = vmatprep.subr.bf16.mxu0 %v28737_v42  ;;  %v20910_v9 = vmax.f32 %v36319_v63, 0.0  ;;  %v28773_v42 = vld [vmem:[%s37926_s5 + $0x170] ss:$8 sps:$4 sm:$0xff]  }
 0xa2c   : > { %24912 = vmatprep.subr.bf16.mxu1 %v28735_v57  ;;  %v28776_v63 = vld [vmem:[%s37926_s5 + $0x50] ss:$8 sps:$4 sm:$0xff]  }
 0xa2d   : > { %20780 = vmatmul.mubr.bf16.vlgmr.msra.gmra.mxu0 %v34222_v53  ;;  %v28745_v53 = vld [vmem:[%s37924_s3 + $0x2970] ss:$28 sps:$4 sm:$0xff]  }
 0xa2e   : > { %24931 = vmatpush3.bf16.msra.mxu0 %v28738_v12  ;;  %20859 = vmatprep.mubr.bf16.mxu0 %v34230_v15  ;;  %v28746_v15 = vld [vmem:[%s37924_s3 + $0x27b0] ss:$28 sps:$4 sm:$0xff]  }
 0xa2f   : > { %24913 = vmatpush3.bf16.msra.mxu1 %v28736_v59  ;;  %24932 = vmatprep.subr.bf16.mxu0 %v28741_v48  ;;  %v20917_v59 = vpack.c.bf16 %v20910_v9, %v20910_v9  ;;  %v28779_v48 = vld [vmem:[%s37926_s5 + $0x160] ss:$8 sps:$4 sm:$0xff]  }
 0xa30   : > { %24914 = vmatprep.subr.bf16.mxu1 %v28739_v21  ;;  %v28784_v21 = vld [vmem:[%s37926_s5 + $0x44] ss:$8 sps:$4 sm:$0xff]   ;;  %v28827_v9 = vld [vmem:[%s37926_s5 + $0x1e0] ss:$8 sps:$4 sm:$0xff]  }
 0xa32   : > { %24933 = vmatpush3.bf16.msra.mxu0 %v28742_v41  ;;  %v28787_v41 = vld [vmem:[%s37926_s5 + $0x154] ss:$8 sps:$4 sm:$0xff]  }
 0xa33   : > { %24915 = vmatpush3.bf16.msra.mxu1 %v28740_v30  ;;  %24934 = vmatprep.subr.bf16.mxu0 %v28745_v53  ;;  %v28782_v30 = vld [vmem:[%s37926_s5 + $0x40] ss:$8 sps:$4 sm:$0xff]   ;;  %v28788_v53 = vld [vmem:[%s37926_s5 + $0x30] ss:$8 sps:$4 sm:$0xff]  }
 0xa34   : > { %24916 = vmatprep.subr.bf16.mxu1 %v28743_v2  ;;  %v28785_v2 = vld [vmem:[%s37926_s5 + $0x150] ss:$8 sps:$4 sm:$0xff]  }
 0xa36   : > { %24935 = vmatpush3.bf16.msra.mxu0 %v28746_v15  ;;  %v28796_v15 = vld [vmem:[%s37926_s5 + $0x24] ss:$8 sps:$4 sm:$0xff]  }
 0xa37   : > { %24917 = vmatpush3.bf16.msra.mxu1 %v28744_v49  ;;  %24936 = vmatprep.subr.bf16.mxu0 %v28749_v60  ;;  %v28793_v49 = vld [vmem:[%s37926_s5 + $0x144] ss:$8 sps:$4 sm:$0xff]   ;;  %v28794_v60 = vld [vmem:[%s37926_s5 + $0x20] ss:$8 sps:$4 sm:$0xff]  }
 0xa38   : > { %24918 = vmatprep.subr.bf16.mxu1 %v28747_v14  ;;  %v28791_v14 = vld [vmem:[%s37926_s5 + $0x140] ss:$8 sps:$4 sm:$0xff]  }
 0xa3a   : > { %24937 = vmatpush3.bf16.msra.mxu0 %v28750_v47  ;;  %v28802_v47 = vld [vmem:[%s37926_s5 + $0x14] ss:$8 sps:$4 sm:$0xff]  }
 0xa3b   : > { %24919 = vmatpush3.bf16.msra.mxu1 %v28748_v20  ;;  %24938 = vmatprep.subr.bf16.mxu0 %v28753_v4  ;;  %v28799_v20 = vld [vmem:[%s37926_s5 + $0x134] ss:$8 sps:$4 sm:$0xff]   ;;  %v28800_v4 = vld [vmem:[%s37926_s5 + $0x10] ss:$8 sps:$4 sm:$0xff]  }
 0xa3c   : > { %24920 = vmatprep.subr.bf16.mxu1 %v28751_v46  ;;  %v28797_v46 = vld [vmem:[%s37926_s5 + $0x130] ss:$8 sps:$4 sm:$0xff]  }
 0xa3d   : > { %v20298_v44 = vpop.f32.mrf.mxu0 }
 0xa3e   : > { %v20299_v33 = vadd.f32 %v20298_v44, %v37329_v51  ;;  %24939 = vmatpush3.bf16.msra.mxu0 %v28754_v43  ;;  %v28760_v51 = vld [vmem:[%s37924_s3 + $0x2ac0] ss:$28 sps:$4 sm:$0xff]   ;;  %v28808_v43 = vld [vmem:[%s37926_s5 + $0x4] ss:$8 sps:$4 sm:$0xff]  }
 0xa3f   : > { %24921 = vmatpush3.bf16.msra.mxu1 %v28752_v1  ;;  %v20300_v62 = vpop.f32.mrf.mxu0  ;;  %24940 = vmatprep.subr.bf16.mxu0 %v28757_v5  ;;  %v28805_v1 = vld [vmem:[%s37926_s5 + $0x124] ss:$8 sps:$4 sm:$0xff]   ;;  %v28803_v5 = vld [vmem:[%s37926_s5 + $0x120] ss:$8 sps:$4 sm:$0xff]  }
 0xa40   : > { %24922 = vmatprep.subr.bf16.mxu1 %v28755_v61  ;;  %v37519_v25 = vadd.f32 %v20300_v62, %v37341_v10  ;;  %v28762_v10 = vld [vmem:[%s37924_s3 + $0x2858] ss:$28 sps:$4 sm:$0xff]  }
 0xa41   : > { %v20302_v18 = vpop.f32.mrf.mxu0  ;;  %v28814_v62 = vld [vmem:[%s37926_s5 + $0xf4] ss:$8 sps:$4 sm:$0xff]  }
 0xa42   : > { %24941 = vmatpush3.bf16.msra.mxu0 %v28758_v52  ;;  %v28809_v18 = vld [vmem:[%s37926_s5 + $0x110] ss:$8 sps:$4 sm:$0xff]  }
 0xa43   : > { %24923 = vmatpush3.bf16.msra.mxu1 %v28756_v38  ;;  %v20303_v11 = vpop.f32.mrf.mxu0  ;;  %24942 = vmatprep.subr.bf16.mxu0 %v28759_v3  ;;  %v28806_v38 = vld [vmem:[%s37926_s5] ss:$8 sps:$4 sm:$0xff]  }
 0xa44   : > { %24963 = vmatprep.subr.bf16.mxu1 %v28948_v0  ;;  %v28817_v11 = vld [vmem:[%s37926_s5 + $0x104] ss:$8 sps:$4 sm:$0xff]  }
 0xa46   : > { %v20339_v34 = vpop.f32.mrf.mxu1  ;;  %20820 = vmatmul.mubr.bf16.vlgmr.msra.gmra.mxu1 %v34350_v37  ;;  %24943 = vmatpush3.bf16.msra.mxu0 %v28761_v27  ;;  %v28768_v37 = vld [vmem:[%s37926_s5 + $0x74] ss:$8 sps:$4 sm:$0xff]   ;;  %v28812_v27 = vld [vmem:[%s37926_s5 + $0xf0] ss:$8 sps:$4 sm:$0xff]  }
 0xa47   : > { %v20340_v6 = vadd.f32 %v20339_v34, %v20299_v33  ;;  %24964 = vmatpush3.bf16.msra.mxu1 %v28760_v51  ;;  %24971 = vmatprep.mubr.msk.bf16.mxu1 %vm28949_vm1, %v28948_v0  ;;  %v28811_v33 = vld [vmem:[%s37926_s5 + $0x114] ss:$8 sps:$4 sm:$0xff]   ;;  %v28938_v34 = vld [vmem:[%s37925_s4] sm:$0x7f] }
 0xa48   : > { %v37537_v24 = vpop.f32.mrf.mxu1  ;;  %24965 = vmatprep.subr.bf16.mxu1 %v28948_v0  ;;  %24944 = vmatprep.subr.bf16.mxu0 %v28762_v10  ;;  %v28820_v10 = vld [vmem:[%s37926_s5 + $0xe4] ss:$8 sps:$4 sm:$0xff]  }
 0xa4a   : > { %v20343_v8 = vpop.f32.mrf.mxu1  ;;  %24945 = vmatpush3.bf16.msra.mxu0 %v28764_v7  ;;  %v28815_v7 = vld [vmem:[%s37926_s5 + $0x100] ss:$8 sps:$4 sm:$0xff]  }
 0xa4b   : > { %24966 = vmatpush3.bf16.msra.mxu1 %v28763_v45  ;;  %21524 = vmatprep.subr.bf16.mxu0 %v28768_v37  ;;  %v28818_v37 = vld [vmem:[%s37926_s5 + $0xe0] ss:$8 sps:$4 sm:$0xff]  }
 0xa4c   : > { %v20344_v19 = vpop.f32.mrf.mxu1  ;;  %24967 = vmatprep.subr.bf16.mxu1 %v28948_v0 }
 0xa4d   : > { %v20380_v39 = vpop.f32.mrf.mxu0  ;;  %20860 = vmatmul.mubr.bf16.vlgmr.msra.gmra.mxu0 %v34442_v23 }
 0xa4e   : > { %v37561_v32 = vadd.f32 %v20380_v39, %v20340_v6  ;;  %21525 = vmatpush1.bf16.msra.mxu0 %v28766_v58  ;;  %21556 = vmatprep.mubr.bf16.mxu0 %v20915_v26  ;;  %v11720_v6 = vrot.slane %v28938_v34, %v30897_v56  ;;  %v28826_v56 = vld [vmem:[%s37926_s5 + $0xd4] ss:$8 sps:$4 sm:$0xff]   ;;  %v28824_v39 = vld [vmem:[%s37926_s5 + $0xd0] ss:$8 sps:$4 sm:$0xff]  }
 0xa4f   : > { %24968 = vmatpush3.bf16.msra.mxu1 %v28765_v55  ;;  %v37570_v23 = vpop.f32.mrf.mxu0  ;;  %21526 = vmatprep.subr.bf16.mxu0 %v28772_v54  ;;  %v28821_v54 = vld [vmem:[%s37926_s5 + $0x1f0] ss:$8 sps:$4 sm:$0xff]  }
 0xa50   : > { %24969 = vmatprep.subr.bf16.mxu1 %v28948_v0  ;;  %v28781_v0 = vld [vmem:[%s37926_s5 + $0x164] ss:$8 sps:$4 sm:$0xff]  }
 0xa51   : > { %v20384_v57 = vpop.f32.mrf.mxu0 }
 0xa52   : > { %21527 = vmatpush1.bf16.msra.mxu0 %v28770_v17  ;;  %v28835_v57 = vld [vmem:[%s37926_s5 + $0x1d4] ss:$8 sps:$4 sm:$0xff]  }
 0xa53   : > { %24970 = vmatpush3.bf16.msra.mxu1 %v28769_v36  ;;  %v20385_v12 = vpop.f32.mrf.mxu0  ;;  %21528 = vmatprep.subr.bf16.mxu0 %v28778_v40  ;;  %v28829_v36 = vld [vmem:[%s37926_s5 + $0x1e4] ss:$8 sps:$4 sm:$0xff]   ;;  %v28830_v40 = vld [vmem:[%s37926_s5 + $0xc0] ss:$8 sps:$4 sm:$0xff]  }
 0xa54   : > { %21565 = vmatprep.subr.bf16.mxu1 %v28775_v22  ;;  %v28832_v22 = vld [vmem:[%s37926_s5 + $0xc4] ss:$8 sps:$4 sm:$0xff]  }
 0xa55   : > { %v28844_v12 = vld [vmem:[%s37926_s5 + $0xa4] ss:$8 sps:$4 sm:$0xff]  }
 0xa56   : > { %24972 = vmatmul.mubr.msk.bf16.vlgmr.msra.gmra.mxu1 %vm18784_vm2, %v34409_v50  ;;  %21529 = vmatpush1.bf16.msra.mxu0 %v28776_v63  ;;  %v28790_v50 = vld [vmem:[%s37926_s5 + $0x34] ss:$8 sps:$4 sm:$0xff]   ;;  %v28833_v63 = vld [vmem:[%s37926_s5 + $0x1d0] ss:$8 sps:$4 sm:$0xff]  }
 0xa57   : > { %21566 = vmatpush1.bf16.msra.mxu1 %v28773_v42  ;;  %21597 = vmatprep.mubr.bf16.mxu1 %v20917_v59  ;;  %v28838_v42 = vld [vmem:[%s37926_s5 + $0xb4] ss:$8 sps:$4 sm:$0xff]   ;;  %v28841_v59 = vld [vmem:[%s37926_s5 + $0x1c4] ss:$8 sps:$4 sm:$0xff]  }
 0xa58   : > { %21567 = vmatprep.subr.bf16.mxu1 %v28781_v0  ;;  %21530 = vmatprep.subr.bf16.mxu0 %v28784_v21  ;;  %v28836_v0 = vld [vmem:[%s37926_s5 + $0xb0] ss:$8 sps:$4 sm:$0xff]   ;;  %v28839_v21 = vld [vmem:[%s37926_s5 + $0x1c0] ss:$8 sps:$4 sm:$0xff]  }
 0xa5a   : > { %21531 = vmatpush1.bf16.msra.mxu0 %v28782_v30  ;;  %v28847_v30 = vld [vmem:[%s37926_s5 + $0x1b4] ss:$8 sps:$4 sm:$0xff]  }
 0xa5b   : > { %21568 = vmatpush1.bf16.msra.mxu1 %v28779_v48  ;;  %21532 = vmatprep.subr.bf16.mxu0 %v28790_v50  ;;  %v28842_v48 = vld [vmem:[%s37926_s5 + $0xa0] ss:$8 sps:$4 sm:$0xff]   ;;  %v28845_v50 = vld [vmem:[%s37926_s5 + $0x1b0] ss:$8 sps:$4 sm:$0xff]  }
 0xa5c   : > { %21569 = vmatprep.subr.bf16.mxu1 %v28787_v41  ;;  %v28850_v41 = vld [vmem:[%s37926_s5 + $0x94] ss:$8 sps:$4 sm:$0xff]  }
 0xa5e   : > { %21533 = vmatpush1.bf16.msra.mxu0 %v28788_v53  ;;  %v28848_v53 = vld [vmem:[%s37926_s5 + $0x90] ss:$8 sps:$4 sm:$0xff]  }
 0xa5f   : > { %21570 = vmatpush1.bf16.msra.mxu1 %v28785_v2  ;;  %21534 = vmatprep.subr.bf16.mxu0 %v28796_v15  ;;  %v20342_v2 = vadd.f32 %v37537_v24, %v37519_v25  ;;  %v28856_v15 = vld [vmem:[%s37926_s5 + $0x84] ss:$8 sps:$4 sm:$0xff]   ;;  %v28851_v25 = vld [vmem:[%s37926_s5 + $0x1a0] ss:$8 sps:$4 sm:$0xff]  }
 0xa60   : > { %21571 = vmatprep.subr.bf16.mxu1 %v28793_v49  ;;  %v28853_v49 = vld [vmem:[%s37926_s5 + $0x1a4] ss:$8 sps:$4 sm:$0xff]  }
 0xa62   : > { %21535 = vmatpush1.bf16.msra.mxu0 %v28794_v60 }
 0xa63   : > { %21572 = vmatpush1.bf16.msra.mxu1 %v28791_v14  ;;  %21536 = vmatprep.subr.bf16.mxu0 %v28802_v47  ;;  %v20383_v14 = vadd.f32 %v37570_v23, %v20342_v2  ;;  %v28859_v47 = vld [vmem:[%s37926_s5 + $0x194] ss:$8 sps:$4 sm:$0xff]  }
 0xa64   : > { %21573 = vmatprep.subr.bf16.mxu1 %v28799_v20  ;;  %v28854_v20 = vld [vmem:[%s37926_s5 + $0x80] ss:$8 sps:$4 sm:$0xff]  }
 0xa66   : > { %v24704_v61 = vpop.f32.mrf.mxu1  ;;  %21537 = vmatpush1.bf16.msra.mxu0 %v28800_v4  ;;  %v28862_v4 = vld [vmem:[%s37926_s5 + $0x274] ss:$8 sps:$4 sm:$0xff]  }
 0xa67   : > { %21574 = vmatpush1.bf16.msra.mxu1 %v28797_v46  ;;  %21538 = vmatprep.subr.bf16.mxu0 %v28808_v43  ;;  %v20907_v46 = vmax.f32 %v35077_v28, 0.0  ;;  %v28860_v28 = vld [vmem:[%s37926_s5 + $0x270] ss:$8 sps:$4 sm:$0xff]  }
 0xa68   : > { %v24705_v44 = vpop.f32.mrf.mxu1  ;;  %21575 = vmatprep.subr.bf16.mxu1 %v28805_v1  ;;  %v20912_v1 = vmax.f32 %v20383_v14, 0.0 }
 0xa69   : > { %v24706_v52 = vadd.f32 %v24705_v44, %v24704_v61 }
 0xa6a   : > { %v24707_v3 = vpop.f32.mrf.mxu1  ;;  %21539 = vmatpush1.bf16.msra.mxu0 %v28806_v38  ;;  %v20914_v38 = vpack.c.bf16 %v20907_v46, %v20907_v46  ;;  %v28902_v46 = vld [vmem:[%s37926_s5 + $0x2a0] ss:$8 sps:$4 sm:$0xff]  }
 0xa6b   : > { %21576 = vmatpush1.bf16.msra.mxu1 %v28803_v5  ;;  %21540 = vmatprep.subr.bf16.mxu0 %v28814_v62  ;;  %v20422_v55 = vadd.f32 %v24706_v52, %v11720_v6  ;;  %v28857_v5 = vld [vmem:[%s37926_s5 + $0x190] ss:$8 sps:$4 sm:$0xff]   ;;  %v28868_v52 = vld [vmem:[%s37926_s5 + $0x264] ss:$8 sps:$4 sm:$0xff]   ;;  %v20919_v62 = vpack.c.bf16 %v20912_v1, %v20912_v1 }
 0xa6c   : > { %v24708_v51 = vpop.f32.mrf.mxu1  ;;  %21577 = vmatprep.subr.bf16.mxu1 %v28811_v33  ;;  %v28865_v33 = vld [vmem:[%s37926_s5 + $0x184] ss:$8 sps:$4 sm:$0xff]  }
 0xa6d   : > { %v24726_v45 = vpop.f32.mrf.mxu0  ;;  %v20909_v51 = vmax.f32 %v36307_v16, 0.0  ;;  %v28869_v16 = vld [vmem:[%s37926_s5 + $0x250] ss:$8 sps:$4 sm:$0xff]   ;;  %v28910_v1 = vld [vmem:[%s37926_s5 + $0x284] ss:$8 sps:$4 sm:$0xff]  }
 0xa6e   : > { %21541 = vmatpush2.bf16.msra.mxu0 %v28812_v27  ;;  %v28866_v27 = vld [vmem:[%s37926_s5 + $0x260] ss:$8 sps:$4 sm:$0xff]  }
 0xa6f   : > { %21578 = vmatpush1.bf16.msra.mxu1 %v28809_v18  ;;  %v24727_v8 = vpop.f32.mrf.mxu0  ;;  %21542 = vmatprep.subr.bf16.mxu0 %v28820_v10  ;;  %v28863_v18 = vld [vmem:[%s37926_s5 + $0x180] ss:$8 sps:$4 sm:$0xff]   ;;  %v28871_v10 = vld [vmem:[%s37926_s5 + $0x254] ss:$8 sps:$4 sm:$0xff]  }
 0xa70   : > { %21579 = vmatprep.subr.bf16.mxu1 %v28817_v11  ;;  %v24728_v19 = vadd.f32 %v24727_v8, %v24726_v45  ;;  %v20916_v45 = vpack.c.bf16 %v20909_v51, %v20909_v51  ;;  %v28911_v8 = vld [vmem:[%s37926_s5 + $0x300] ss:$8 sps:$4 sm:$0xff]  }
 0xa71   : > { %v24729_v58 = vpop.f32.mrf.mxu0 }
 0xa72   : > { %v20462_v26 = vadd.f32 %v24728_v19, %v20422_v55  ;;  %21543 = vmatpush2.bf16.msra.mxu0 %v28818_v37  ;;  %v28872_v55 = vld [vmem:[%s37926_s5 + $0x240] ss:$8 sps:$4 sm:$0xff]   ;;  %v28877_v19 = vld [vmem:[%s37926_s5 + $0x234] ss:$8 sps:$4 sm:$0xff]   ;;  %v28875_v58 = vld [vmem:[%s37926_s5 + $0x230] ss:$8 sps:$4 sm:$0xff]  }
 0xa73   : > { %21580 = vmatpush1.bf16.msra.mxu1 %v28815_v7  ;;  %v24730_v17 = vpop.f32.mrf.mxu0  ;;  %21544 = vmatprep.subr.bf16.mxu0 %v28826_v56  ;;  %v28913_v56 = vld [vmem:[%s37926_s5 + $0x304] ss:$8 sps:$4 sm:$0xff]  }
 0xa74   : > { %21581 = vmatprep.subr.bf16.mxu1 %v28823_v29  ;;  %v28874_v29 = vld [vmem:[%s37926_s5 + $0x244] ss:$8 sps:$4 sm:$0xff]  }
 0xa75   : > { %v28886_v17 = vld [vmem:[%s37926_s5 + $0x204] ss:$8 sps:$4 sm:$0xff]  }
 0xa76   : > { %21545 = vmatpush2.bf16.msra.mxu0 %v28824_v39  ;;  %v28883_v39 = vld [vmem:[%s37926_s5 + $0x214] ss:$8 sps:$4 sm:$0xff]  }
 0xa77   : > { %21582 = vmatpush2.bf16.msra.mxu1 %v28821_v54  ;;  %21546 = vmatprep.subr.bf16.mxu0 %v28832_v22  ;;  %v28880_v54 = vld [vmem:[%s37926_s5 + $0x224] ss:$8 sps:$4 sm:$0xff]  }
 0xa78   : > { %21583 = vmatprep.subr.bf16.mxu1 %v28829_v36  ;;  %v28881_v36 = vld [vmem:[%s37926_s5 + $0x210] ss:$8 sps:$4 sm:$0xff]  }
 0xa7a   : > { %21547 = vmatpush2.bf16.msra.mxu0 %v28830_v40  ;;  %v28884_v40 = vld [vmem:[%s37926_s5 + $0x200] ss:$8 sps:$4 sm:$0xff]  }
 0xa7b   : > { %21584 = vmatpush2.bf16.msra.mxu1 %v28827_v9  ;;  %21548 = vmatprep.subr.bf16.mxu0 %v28838_v42  ;;  %v28889_v42 = vld [vmem:[%s37926_s5 + $0x2f4] ss:$8 sps:$4 sm:$0xff]  }
 0xa7c   : > { %21585 = vmatprep.subr.bf16.mxu1 %v28835_v57 }
 0xa7e   : > { %21549 = vmatpush2.bf16.msra.mxu0 %v28836_v0 }
 0xa7f   : > { %21586 = vmatpush2.bf16.msra.mxu1 %v28833_v63  ;;  %21550 = vmatprep.subr.bf16.mxu0 %v28844_v12  ;;  %v28887_v12 = vld [vmem:[%s37926_s5 + $0x2f0] ss:$8 sps:$4 sm:$0xff]  }
 0xa80   : > { %21587 = vmatprep.subr.bf16.mxu1 %v28841_v59 }
 0xa82   : > { %21551 = vmatpush2.bf16.msra.mxu0 %v28842_v48 }
 0xa83   : > { %21588 = vmatpush2.bf16.msra.mxu1 %v28839_v21  ;;  %21552 = vmatprep.subr.bf16.mxu0 %v28850_v41  ;;  %v28892_v21 = vld [vmem:[%s37926_s5 + $0x2e4] ss:$8 sps:$4 sm:$0xff]  }
 0xa84   : > { %21589 = vmatprep.subr.bf16.mxu1 %v28847_v30  ;;  %v28890_v30 = vld [vmem:[%s37926_s5 + $0x2e0] ss:$8 sps:$4 sm:$0xff]  }
 0xa86   : > { %v24748_v60 = vpop.f32.mrf.mxu1  ;;  %21553 = vmatpush2.bf16.msra.mxu0 %v28848_v53 }
 0xa87   : > { %21590 = vmatpush2.bf16.msra.mxu1 %v28845_v50  ;;  %21554 = vmatprep.subr.bf16.mxu0 %v28856_v15  ;;  %v28895_v50 = vld [vmem:[%s37926_s5 + $0x2d4] ss:$8 sps:$4 sm:$0xff]   ;;  %v28893_v15 = vld [vmem:[%s37926_s5 + $0x2d0] ss:$8 sps:$4 sm:$0xff]  }
 0xa88   : > { %v24749_v24 = vpop.f32.mrf.mxu1  ;;  %21591 = vmatprep.subr.bf16.mxu1 %v28853_v49 }
 0xa89   : > { %v24750_v23 = vadd.f32 %v24749_v24, %v24748_v60  ;;  %v28898_v60 = vld [vmem:[%s37926_s5 + $0x2c4] ss:$8 sps:$4 sm:$0xff]   ;;  %v28901_v24 = vld [vmem:[%s37926_s5 + $0x2b4] ss:$8 sps:$4 sm:$0xff]  }
 0xa8a   : > { %v24751_v43 = vpop.f32.mrf.mxu1  ;;  %21555 = vmatpush2.bf16.msra.mxu0 %v28854_v20  ;;  %v28899_v20 = vld [vmem:[%s37926_s5 + $0x2b0] ss:$8 sps:$4 sm:$0xff]  }
 0xa8b   : > { %v20502_v61 = vadd.f32 %v24750_v23, %v20462_v26  ;;  %21592 = vmatpush2.bf16.msra.mxu1 %v28851_v25  ;;  %21606 = vmatprep.subr.bf16.mxu0 %v28862_v4  ;;  %v28878_v26 = vld [vmem:[%s37926_s5 + $0x220] ss:$8 sps:$4 sm:$0xff]   ;;  %v28907_v23 = vld [vmem:[%s37926_s5 + $0x294] ss:$8 sps:$4 sm:$0xff]   ;;  %v28905_v4 = vld [vmem:[%s37926_s5 + $0x290] ss:$8 sps:$4 sm:$0xff]  }
 0xa8c   : > { %v24752_v44 = vpop.f32.mrf.mxu1  ;;  %21593 = vmatprep.subr.bf16.mxu1 %v28859_v47  ;;  %v28896_v25 = vld [vmem:[%s37926_s5 + $0x2c0] ss:$8 sps:$4 sm:$0xff]   ;;  %v28904_v47 = vld [vmem:[%s37926_s5 + $0x2a4] ss:$8 sps:$4 sm:$0xff]  }
 0xa8d   : > { %v24770_v3 = vpop.f32.mrf.mxu0  ;;  %21557 = vmatmul.mubr.bf16.vlgmr.msra.gmra.mxu0 %v20914_v38  ;;  %v20911_v44 = vmax.f32 %v37561_v32, 0.0 }
 0xa8e   : > { %21607 = vmatpush1.bf16.msra.mxu0 %v28860_v28  ;;  %21638 = vmatprep.mubr.bf16.mxu0 %v20919_v62 }
 0xa8f   : > { %21594 = vmatpush2.bf16.msra.mxu1 %v28857_v5  ;;  %v24771_v11 = vpop.f32.mrf.mxu0  ;;  %21608 = vmatprep.subr.bf16.mxu0 %v28868_v52  ;;  %v28908_v5 = vld [vmem:[%s37926_s5 + $0x280] ss:$8 sps:$4 sm:$0xff]   ;;  %v20918_v62 = vpack.c.bf16 %v20911_v44, %v20911_v44 }
 0xa90   : > { %21595 = vmatprep.subr.bf16.mxu1 %v28865_v33  ;;  %v24772_v34 = vadd.f32 %v24771_v11, %v24770_v3 }
 0xa91   : > { %v24773_v6 = vpop.f32.mrf.mxu0 }
 0xa92   : > { %v20542_v7 = vadd.f32 %v24772_v34, %v20502_v61  ;;  %21609 = vmatpush1.bf16.msra.mxu0 %v28866_v27 }
 0xa93   : > { %21596 = vmatpush2.bf16.msra.mxu1 %v28863_v18  ;;  %v24774_v37 = vpop.f32.mrf.mxu0  ;;  %21610 = vmatprep.subr.bf16.mxu0 %v28871_v10 }
 0xa94   : > { %21661 = vmatprep.subr.bf16.mxu1 %v28913_v56 }
 0xa96   : > { %21598 = vmatmul.mubr.bf16.vlgmr.msra.gmra.mxu1 %v20916_v45  ;;  %21611 = vmatpush1.bf16.msra.mxu0 %v28869_v16 }
 0xa97   : > { %21679 = vmatprep.mubr.bf16.mxu1 %v28947_v13  ;;  %21662 = vmatpush1.bf16.msra.mxu1 %v28911_v8 }
 0xa98   : > { %21612 = vmatprep.subr.bf16.mxu0 %v28874_v29  ;;  %21783 = vmatprep.subr.bf16.mxu1 %v28947_v13 }
 0xa9a   : > { %21613 = vmatpush1.bf16.msra.mxu0 %v28872_v55 }
 0xa9b   : > { %21614 = vmatprep.subr.bf16.mxu0 %v28877_v19 }
 0xa9e   : > { %21615 = vmatpush1.bf16.msra.mxu0 %v28875_v58 }
 0xa9f   : > { %21616 = vmatprep.subr.bf16.mxu0 %v28880_v54 }
 0xaa2   : > { %21617 = vmatpush1.bf16.msra.mxu0 %v28878_v26 }
 0xaa3   : > { %21618 = vmatprep.subr.bf16.mxu0 %v28883_v39 }
 0xaa6   : > { %v24792_v22 = vpop.f32.mrf.mxu1  ;;  %21619 = vmatpush1.bf16.msra.mxu0 %v28881_v36 }
 0xaa7   : > { %21620 = vmatprep.subr.bf16.mxu0 %v28886_v17 }
 0xaa8   : > { %v24793_v9 = vpop.f32.mrf.mxu1 }
 0xaa9   : > { %v24794_v57 = vadd.f32 %v24793_v9, %v24792_v22 }
 0xaaa   : > { %v24795_v63 = vpop.f32.mrf.mxu1  ;;  %21621 = vmatpush1.bf16.msra.mxu0 %v28884_v40 }
 0xaab   : > { %v20582_v0 = vadd.f32 %v24794_v57, %v20542_v7  ;;  %21622 = vmatprep.subr.bf16.mxu0 %v28889_v42 }
 0xaac   : > { %v24796_v59 = vpop.f32.mrf.mxu1 }
 0xaad   : > { %v24814_v48 = vpop.f32.mrf.mxu0 }
 0xaae   : > { %21623 = vmatpush2.bf16.msra.mxu0 %v28887_v12 }
 0xaaf   : > { %v24815_v41 = vpop.f32.mrf.mxu0  ;;  %21624 = vmatprep.subr.bf16.mxu0 %v28892_v21 }
 0xab0   : > { %v24816_v2 = vadd.f32 %v24815_v41, %v24814_v48 }
 0xab1   : > { %v24817_v53 = vpop.f32.mrf.mxu0 }
 0xab2   : > { %v20622_v49 = vadd.f32 %v24816_v2, %v20582_v0  ;;  %21625 = vmatpush2.bf16.msra.mxu0 %v28890_v30  ;;  %v28914_v30 = vld [vmem:[%s37928_s7 + $0x38] sm:$0xff]   ;;  %v28915_v2 = vld [vmem:[%s37928_s7 + $0x30] sm:$0xff]   ;;  %v28916_v53 = vld [vmem:[%s37928_s7 + $0x28] sm:$0xff]  }
 0xab3   : > { %v24818_v14 = vpop.f32.mrf.mxu0  ;;  %21626 = vmatprep.subr.bf16.mxu0 %v28895_v50 }
 0xab4   : > { %v28919_v14 = vld [vmem:[%s37928_s7 + $0x10] sm:$0xff]  }
 0xab6   : > { %21627 = vmatpush2.bf16.msra.mxu0 %v28893_v15  ;;  %v28918_v15 = vld [vmem:[%s37928_s7 + $0x18] sm:$0xff]  }
 0xab7   : > { %21628 = vmatprep.subr.bf16.mxu0 %v28898_v60  ;;  %v28920_v60 = vld [vmem:[%s37928_s7 + $0x8] sm:$0xff]  }
 0xaba   : > { %21629 = vmatpush2.bf16.msra.mxu0 %v28896_v25  ;;  %v28921_v25 = vld [vmem:[%s37928_s7] sm:$0xff]  }
 0xabb   : > { %21630 = vmatprep.subr.bf16.mxu0 %v28901_v24  ;;  %v21019_v24 = vld [vmem:[%s37927_s6] sm:$0x3] }
 0xabe   : > { %21631 = vmatpush2.bf16.msra.mxu0 %v28899_v20 }
 0xabf   : > { %21632 = vmatprep.subr.bf16.mxu0 %v28904_v47  ;;  %v21024_v47 = vrot.slane %v21019_v24, %v29826_v31  ;;  %v28923_v31 = vld [vmem:[%s37928_s7 + $0x40] sm:$0xff]  }
 0xac2   : > { %21633 = vmatpush2.bf16.msra.mxu0 %v28902_v46 }
 0xac3   : > { %21634 = vmatprep.subr.bf16.mxu0 %v28907_v23  ;;  %v21028_v23 = vrot.slane %v21019_v24, %v29835_v35 }
 0xac6   : > { %v24836_v43 = vpop.f32.mrf.mxu1  ;;  %21635 = vmatpush2.bf16.msra.mxu0 %v28905_v4 }
 0xac7   : > { %21636 = vmatprep.subr.bf16.mxu0 %v28910_v1 }
 0xac8   : > { %v24837_v61 = vpop.f32.mrf.mxu1 }
 0xac9   : > { %v24838_v28 = vadd.f32 %v24837_v61, %v24836_v43 }
 0xaca   : > { %v24839_v38 = vpop.f32.mrf.mxu1  ;;  %21637 = vmatpush2.bf16.msra.mxu0 %v28908_v5 }
 0xacb   : > { %v20662_v33 = vadd.f32 %v24838_v28, %v20622_v49  ;;  %v28917_v49 = vld [vmem:[%s37928_s7 + $0x20] sm:$0xff]  }
 0xacc   : > { %v24840_v52 = vpop.f32.mrf.mxu1 }
 0xacd   : > { %v24858_v3 = vpop.f32.mrf.mxu0  ;;  %21639 = vmatmul.mubr.bf16.vlgmr.msra.gmra.mxu0 %v20918_v62  ;;  %v28922_v62 = vld [vmem:[%s37928_s7 + $0x48] sm:$0xff]  }
 0xacf   : > { %v24859_v18 = vpop.f32.mrf.mxu0 }
 0xad0   : > { %v24860_v29 = vadd.f32 %v24859_v18, %v24858_v3 }
 0xad1   : > { %v24861_v51 = vpop.f32.mrf.mxu0 }
 0xad2   : > { %v20702_v19 = vadd.f32 %v24860_v29, %v20662_v33 }
 0xad3   : > { %v24862_v27 = vpop.f32.mrf.mxu0 }
 0xae6   : > { %v24880_v11 = vpop.f32.mrf.mxu1 }
 0xae8   : > { %v24881_v10 = vpop.f32.mrf.mxu1 }
 0xae9   : > { %v24882_v56 = vadd.f32 %v24881_v10, %v24880_v11 }
 0xaea   : > { %v24883_v34 = vpop.f32.mrf.mxu1 }
 0xaeb   : > { %v20742_v26 = vadd.f32 %v24882_v56, %v20702_v19 }
 0xaec   : > { %v24884_v6 = vpop.f32.mrf.mxu1 }
 0xaed   : > { %v24902_v45 = vpop.f32.mrf.mxu0 }
 0xaef   : > { %v24903_v7 = vpop.f32.mrf.mxu0 }
 0xaf0   : > { %v24904_v58 = vadd.f32 %v24903_v7, %v24902_v45 }
 0xaf1   : > { %v24905_v16 = vpop.f32.mrf.mxu0 }
 0xaf2   : > { %v20782_v17 = vadd.f32 %v24904_v58, %v20742_v26 }
 0xaf3   : > { %v24906_v32 = vpop.f32.mrf.mxu0 }
 0xb06   : > { %v24924_v37 = vpop.f32.mrf.mxu1 }
 0xb08   : > { %v24925_v8 = vpop.f32.mrf.mxu1 }
 0xb09   : > { %v24926_v39 = vadd.f32 %v24925_v8, %v24924_v37  ;;  %v24606_v8 = vld [vmem:[%s37929_s8] ss:$0 sm:$0xff] }
 0xb0a   : > { %v24927_v55 = vpop.f32.mrf.mxu1 }
 0xb0b   : > { %v20822_v9 = vadd.f32 %v24926_v39, %v20782_v17 }
 0xb0c   : > { %v24928_v54 = vpop.f32.mrf.mxu1 }
 0xb0d   : > { %v24946_v36 = vpop.f32.mrf.mxu0 }
 0xb0f   : > { %v24947_v22 = vpop.f32.mrf.mxu0 }
 0xb10   : > { %v24948_v40 = vadd.f32 %v24947_v22, %v24946_v36 }
 0xb11   : > { %v24949_v57 = vpop.f32.mrf.mxu0 }
 0xb12   : > { %v20862_v42 = vadd.f32 %v24948_v40, %v20822_v9 }
 0xb13   : > { %v24950_v63 = vpop.f32.mrf.mxu0 }
 0xb16   : > { %v20901_v0 = vpop.f32.mrf.mxu1 }
 0xb17   : > { %v20902_v59 = vadd.f32 %v20901_v0, %v20862_v42 }
 0xb18   : > { %v24973_v12 = vpop.f32.mrf.mxu1 }
 0xb19   : > { %v20913_v21 = vmax.f32 %v20902_v59, 0.0 }
 0xb1a   : > { %v20904_v48 = vpop.f32.mrf.mxu1 }
 0xb1b   : > { %v20920_v41 = vpack.c.bf16 %v20913_v21, %v20913_v21 }
 0xb1c   : > { %v24974_v50 = vpop.f32.mrf.mxu1 }
 0xb1d   : > { %24605 = vmatmul.mubr.msk.bf16.vlgmr.msra.gmra.mxu1 %vm7941_vm0, %v20920_v41 }
 0xb1e   : > { %21784 = vmatpush1.bf16.msra.mxu1 %v28914_v30 }
 0xb1f   : > { %21785 = vmatprep.subr.bf16.mxu1 %v28947_v13 }
 0xb22   : > { %21786 = vmatpush1.bf16.msra.mxu1 %v28915_v2 }
 0xb23   : > { %21787 = vmatprep.subr.bf16.mxu1 %v28947_v13 }
 0xb26   : > { %21788 = vmatpush1.bf16.msra.mxu1 %v28916_v53 }
 0xb27   : > { %21789 = vmatprep.subr.bf16.mxu1 %v28947_v13 }
 0xb2a   : > { %21790 = vmatpush1.bf16.msra.mxu1 %v28917_v49 }
 0xb2b   : > { %21791 = vmatprep.subr.bf16.mxu1 %v28947_v13 }
 0xb2e   : > { %21792 = vmatpush1.bf16.msra.mxu1 %v28918_v15 }
 0xb2f   : > { %21793 = vmatprep.subr.bf16.mxu1 %v28947_v13 }
 0xb32   : > { %21794 = vmatpush1.bf16.msra.mxu1 %v28919_v14 }
 0xb33   : > { %21795 = vmatprep.subr.bf16.mxu1 %v28947_v13 }
 0xb36   : > { %21796 = vmatpush1.bf16.msra.mxu1 %v28920_v60 }
 0xb37   : > { %21797 = vmatprep.subr.bf16.mxu1 %v28947_v13 }
 0xb3a   : > { %21798 = vmatpush1.bf16.msra.mxu1 %v28921_v25 }
 0xb3b   : > { %21811 = vmatprep.subr.bf16.mxu1 %v28947_v13 }
 0xb3e   : > { %21812 = vmatpush2.bf16.msra.mxu1 %v28922_v62 }
 0xb3f   : > { %21813 = vmatprep.subr.bf16.mxu1 %v28947_v13 }
 0xb42   : > { %21814 = vmatpush2.bf16.msra.mxu1 %v28923_v31 }
 0xb4d   : > { %v21558_v20 = vpop.f32.mrf.mxu0 }
 0xb4e   : > { %v21559_v1 = vadd.f32 %v21558_v20, %v21024_v47 }
 0xb4f   : > { %v21560_v46 = vpop.f32.mrf.mxu0 }
 0xb50   : > { %v21561_v5 = vadd.f32 %v21560_v46, %v21028_v23 }
 0xb51   : > { %v21562_v4 = vpop.f32.mrf.mxu0 }
 0xb53   : > { %v21563_v43 = vpop.f32.mrf.mxu0 }
 0xb56   : > { %v21599_v61 = vpop.f32.mrf.mxu1 }
 0xb57   : > { %v21600_v44 = vadd.f32 %v21599_v61, %v21559_v1 }
 0xb58   : > { %v21601_v28 = vpop.f32.mrf.mxu1 }
 0xb59   : > { %v21602_v38 = vadd.f32 %v21601_v28, %v21561_v5 }
 0xb5a   : > { %v21603_v33 = vpop.f32.mrf.mxu1 }
 0xb5c   : > { %v21604_v52 = vpop.f32.mrf.mxu1 }
 0xb8d   : > { %v21640_v35 = vpop.f32.mrf.mxu0 }
 0xb8e   : > { %v21641_v3 = vadd.f32 %v21640_v35, %v21600_v44 }
 0xb8f   : > { %v21642_v18 = vpop.f32.mrf.mxu0 }
 0xb90   : > { %v21643_v51 = vadd.f32 %v21642_v18, %v21602_v38 }
 0xb91   : > { %v21644_v27 = vpop.f32.mrf.mxu0 }
 0xb93   : > { %v21645_v11 = vpop.f32.mrf.mxu0 }
 0xbdd   : > { %v21681_v10 = vpop.f32.mrf.mxu1 }
 0xbde   : > { %v21682_v34 = vadd.f32 %v21681_v10, %v21641_v3 }
 0xbdf   : > { %v21683_v6 = vpop.f32.mrf.mxu1 }
 0xbe0   : > { %v21684_v45 = vadd.f32 %v21683_v6, %v21643_v51  ;;  %v21688_v7 = vmax.f32 %v21682_v34, 0.0 }
 0xbe1   : > { %v21685_v16 = vpop.f32.mrf.mxu1 }
 0xbe2   : > { %v21689_v32 = vmax.f32 %v21684_v45, 0.0  ;;  %v21690_v29 = vpack.c.bf16 %v21688_v7, %v21688_v7 }
 0xbe3   : > { %v21686_v13 = vpop.f32.mrf.mxu1 }
 0xbe4   : > { %v21691_v37 = vpack.c.bf16 %v21689_v32, %v21689_v32 }
 0xbe6   : > { %24617 = vmatprep.mubr.msk.bf16.mxu1 %vm21779_vm3, %v21691_v37 }
 0xbe7   : > { %21816 = vmatmul.mubr.bf16.vlgmr.msra.gmra.mxu1 %v21690_v29 }
 0xca7   : > { %v21817_v56 = vpop.f32.mrf.mxu1 }
 0xca8   : > { %v21818_v55 = vadd.f32 %v24606_v8, %v21817_v56 }
 0xca9   : > { %v21819_v19 = vpop.f32.mrf.mxu1 }
 0xcaa   : > { %21824 = vst.msk [vmem:[%s330_s20] sm:$0xff] %vm21823_vm4, %v21818_v55 }
 0xcab   : > { %v21820_v58 = vpop.f32.mrf.mxu1 }
 0xcad   : > { %v21821_v54 = vpop.f32.mrf.mxu1 }
 0xcae PF: > { %s19_s30 = sadd.s32 1, %s28945_s30  }
 0xcaf   : > { %p16_p4 = scmp.ge.s32.totalorder %s19_s30, 4  }
 0xcb1   :  { %18 = sbr.rel (!%p16_p4) target bundleno = 1 (0x1), region = 86 }

</bundles_post_ra>
